<compile_context>
chip_gen: v7x
topology: tpu7x:2x2x1
jax: 0.10.0
libtpu: 0.0.40
codegen_flags: <defaults>
</compile_context>

<pallas_src>
import jax
import jax.numpy as jnp
from jax import lax
from jax.experimental import pallas as pl
from jax.experimental.pallas import tpu as pltpu


# ------------------------------ fused Pallas kernel ------------------------------

def _simple_cnn_kernel(x_ref, w1b_ref, b1t_ref, w2b_ref, b2t_ref,
                       wfc1_ref, bfc1_ref, wfc2_ref, bfc2_ref,
                       logits_ref, probs_ref, p1pad_ref):
    """Whole SimpleCNN forward for one batch tile; every intermediate stays in VMEM."""
    f32, bf16 = jnp.float32, jnp.bfloat16
    bt = x_ref.shape[0]

    # ---- conv1 (1->32, 5x5, pad=2) + bias + ReLU: one MXU matmul ------------------
    # x_ref: (bt, 32, 32) bf16, spatially pre-padded.  Banded (Toeplitz) weights
    # make output columns (p = x&1, xh = x>>1, c) -> 896 lanes; the in-VMEM
    # im2col over dy gives K = 5*32 = 160.
    x = x_ref[...]
    q1 = jnp.concatenate([x[:, dy:dy + 28, :] for dy in range(5)], axis=-1)
    q1 = q1.reshape(bt * 28, 5 * 32)
    acc1 = jnp.dot(q1, w1b_ref[...], preferred_element_type=f32)     # (bt*28, 896)
    acc1 = jnp.maximum(acc1 + b1t_ref[...], 0.0)

    # ---- maxpool 2x2 #1: lane-half max (W) + row-pair max (H) ----------------------
    wmax = jnp.maximum(acc1[:, :448], acc1[:, 448:])                 # (bt*28, 448)
    wmax = wmax.reshape(bt, 14, 2, 448)
    pooled1 = jnp.maximum(wmax[:, :, 0, :], wmax[:, :, 1, :])        # (bt, 14, 448)

    # ---- conv2 input: H-padded, lane-dense VMEM scratch (bt, 18, 448) --------------
    # W padding is absorbed by the banded weights, so only the 4 H-pad rows need
    # zeros; re-zero them every grid step (safe under megacore grid sharding),
    # write the pooled interior in place.
    zrow = jnp.zeros((bt, 2, 448), f32)
    p1pad_ref[:, 0:2, :] = zrow
    p1pad_ref[:, 16:18, :] = zrow
    p1pad_ref[:, 2:16, :] = pooled1

    # ---- conv2 (32->64, 5x5, pad=2) + bias + ReLU -----------------------------------
    # 5 accumulating (bt*14, 448) x (448, 896) matmuls (one per dy tap); output
    # columns are (p = x&1, xh = x>>1, c_out) -> full 896-lane MXU output width.
    def conv2_lhs(dy):
        return p1pad_ref[:, dy:dy + 14, :].reshape(bt * 14, 448).astype(bf16)

    acc2 = jnp.dot(conv2_lhs(0), w2b_ref[0], preferred_element_type=f32)
    for dy in range(1, 5):
        acc2 = acc2 + jnp.dot(conv2_lhs(dy), w2b_ref[dy],
                              preferred_element_type=f32)            # (bt*14, 896)
    acc2 = jnp.maximum(acc2 + b2t_ref[...], 0.0)

    # ---- maxpool 2x2 #2 ----------------------------------------------------------------
    wmax2 = jnp.maximum(acc2[:, :448], acc2[:, 448:])                # (bt*14, 448)
    wmax2 = wmax2.reshape(bt, 7, 2, 448)
    pooled2 = jnp.maximum(wmax2[:, :, 0, :], wmax2[:, :, 1, :])      # (bt, 7, 448)

    # ---- fc1 + ReLU (PyTorch NCHW flatten folded into wfc1's row permutation) ----------
    flat = pooled2.reshape(bt, 7 * 448).astype(bf16)                 # (bt, 3136)
    h1 = jnp.dot(flat, wfc1_ref[...], preferred_element_type=f32)
    h1 = jnp.maximum(h1 + bfc1_ref[...], 0.0)                        # (bt, 512)

    # ---- fc2 + softmax (fused epilogue) --------------------------------------------------
    logits = jnp.dot(h1.astype(bf16), wfc2_ref[...],
                     preferred_element_type=f32) + bfc2_ref[...]
    logits_ref[...] = logits
    m = jnp.max(logits, axis=-1, keepdims=True)
    e = jnp.exp(logits - m)
    probs_ref[...] = e * pl.reciprocal(jnp.sum(e, axis=-1, keepdims=True),
                                       approx=True)


# --------------------------- host-side weight re-layouts ---------------------------

def _conv1_banded_weights(w1):
    """(5,5,1,32) -> (160, 896) Toeplitz-over-W weights, im2col-over-H rows.

    Row index: dy*32 + w_in (padded input column 0..31).  Column index uses the
    pool-friendly order p*448 + xh*32 + c with output x = 2*xh + p.
    """
    w = w1[:, :, 0, :].astype(jnp.float32)                    # (dy, dx, c)
    w_in = jnp.arange(32)[:, None]                            # padded input col
    x_out = jnp.arange(28)[None, :]                           # output col
    dx = w_in - x_out                                         # (32, 28)
    band = w[:, jnp.clip(dx, 0, 4), :]                        # (5, 32, 28, 32)
    band = jnp.where(((dx >= 0) & (dx <= 4))[None, :, :, None], band, 0.0)
    band = band.reshape(5, 32, 14, 2, 32).transpose(0, 1, 3, 2, 4)   # [dy,w,p,xh,c]
    return band.reshape(5 * 32, 2 * 14 * 32)                  # (160, 896)


def _conv2_banded_weights(w2):
    """(5,5,32,64) -> (5, 448, 896) Toeplitz-over-W weights (one slab per dy).

    Row index: w*32 + ci with w the *unpadded* pooled column 0..13 (the W-pad
    zeros are absorbed into the band).  Column index: p*448 + xh*64 + co with
    output x = 2*xh + p.
    """
    w = w2.astype(jnp.float32)                                # (dy, dx, ci, co)
    w_in = jnp.arange(14)[:, None]                            # unpadded input col
    x_out = jnp.arange(14)[None, :]                           # output col
    dx = (w_in + 2) - x_out                                   # (14, 14)
    band = w[:, jnp.clip(dx, 0, 4), :, :]                     # (5, 14, 14, 32, 64)
    band = jnp.where(((dx >= 0) & (dx <= 4))[None, :, :, None, None], band, 0.0)
    band = band.transpose(0, 1, 3, 2, 4)                      # [dy, w, ci, x, co]
    band = band.reshape(5, 14, 32, 7, 2, 64).transpose(0, 1, 2, 4, 3, 5)
    return band.reshape(5, 14 * 32, 2 * 7 * 64)               # (5, 448, 896)


# --------------------------------- host-side wrapper ---------------------------------

def simple_cnn_forward(x_nchw, params, *, batch_tile=64,
                       vmem_limit_bytes=48 * 1024 * 1024):
    """Pallas TPU implementation of SimpleCNN.forward. Returns (logits, softmax).

    batch_tile: per-grid-step batch (multiple of 8).  Guidance: ~64-128 on
    v5e/v6e (128 MiB VMEM, raise vmem_limit_bytes accordingly), ~32-64 on v7x
    (64 MiB VMEM).  The grid is kept at >= 2 steps when the batch allows so
    both v7x TensorCores get work.
    """
    N, cin, H, W = x_nchw.shape
    assert cin == 1 and H == 28 and W == 28, "SimpleCNN expects 1x28x28 inputs"
    # TODO(synk): generalize the banded conv1 lowering to in_channels > 1.

    # --- batch tile / grid -----------------------------------------------------------
    if N <= 8:
        bt = N                                    # single full-extent tile
    else:
        bt = max(8, min(batch_tile, N))
        bt -= bt % 8
        if pl.cdiv(N, bt) < 2 and N >= 16:        # >= 2 steps for v7x's two TCs
            bt = max(8, (bt // 2) - ((bt // 2) % 8))
    npad = pl.cdiv(N, bt) * bt

    # --- input: NCHW -> (N, 32, 32) bf16, spatially pre-padded, batch padded ----------
    x = x_nchw[:, 0].astype(jnp.float32)
    x = jnp.pad(x, ((0, npad - N), (2, 2), (2, 2))).astype(jnp.bfloat16)

    # --- one-time (trace-time) weight re-layouts; MXU operands in bf16 -----------------
    bf16 = jnp.bfloat16
    w1b = _conv1_banded_weights(params["w1"]).astype(bf16)            # (160, 896)
    b1t = jnp.tile(params["b1"].astype(jnp.float32), 28).reshape(1, 896)
    w2b = _conv2_banded_weights(params["w2"]).astype(bf16)            # (5, 448, 896)
    b2t = jnp.tile(params["b2"].astype(jnp.float32), 14).reshape(1, 896)
    # Fold the PyTorch NCHW flatten into wfc1: rows (c, h, w) -> (h, w, c).
    wfc1 = (params["wfc1"].astype(jnp.float32)
            .reshape(64, 7, 7, 512).transpose(1, 2, 0, 3)
            .reshape(3136, 512).astype(bf16))
    bfc1 = params["bfc1"].astype(jnp.float32).reshape(1, 512)
    wfc2 = params["wfc2"].astype(bf16)
    bfc2 = params["bfc2"].astype(jnp.float32).reshape(1, 10)

    # --- cost hint for XLA's scheduler --------------------------------------------------
    flops = 2 * npad * (28 * 160 * 896 + 5 * 14 * 448 * 896
                        + 3136 * 512 + 512 * 10)
    weight_bytes = sum(int(a.size) * a.dtype.itemsize
                       for a in (w1b, b1t, w2b, b2t, wfc1, bfc1, wfc2, bfc2))
    cost = pl.CostEstimate(
        flops=flops,
        transcendentals=npad * 10,
        bytes_accessed=int(x.size) * x.dtype.itemsize + weight_bytes
        + 2 * npad * 10 * 4)

    const2 = lambda i: (0, 0)
    const3 = lambda i: (0, 0, 0)
    logits, probs = pl.pallas_call(
        _simple_cnn_kernel,
        out_shape=(jax.ShapeDtypeStruct((npad, 10), jnp.float32),
                   jax.ShapeDtypeStruct((npad, 10), jnp.float32)),
        grid=(npad // bt,),
        in_specs=[
            pl.BlockSpec((bt, 32, 32), lambda i: (i, 0, 0)),   # padded input tile
            pl.BlockSpec((160, 896), const2),                  # conv1 banded weights
            pl.BlockSpec((1, 896), const2),                    # conv1 bias (tiled)
            pl.BlockSpec((5, 448, 896), const3),               # conv2 banded weights
            pl.BlockSpec((1, 896), const2),                    # conv2 bias (tiled)
            pl.BlockSpec((3136, 512), const2),                 # fc1 weights (permuted)
            pl.BlockSpec((1, 512), const2),                    # fc1 bias
            pl.BlockSpec((512, 10), const2),                   # fc2 weights
            pl.BlockSpec((1, 10), const2),                     # fc2 bias
        ],
        out_specs=(pl.BlockSpec((bt, 10), lambda i: (i, 0)),
                   pl.BlockSpec((bt, 10), lambda i: (i, 0))),
        scratch_shapes=[pltpu.VMEM((bt, 18, 448), jnp.float32)],
        compiler_params=pltpu.CompilerParams(
            dimension_semantics=("parallel",),
            vmem_limit_bytes=vmem_limit_bytes),
        cost_estimate=cost,
    )(x, w1b, b1t, w2b, b2t, wfc1, bfc1, wfc2, bfc2)
    return logits[:N], probs[:N]


# -------------------------------- init & pure-JAX reference --------------------------------

def init_params(key, in_channels=1, num_classes=10):
    ks = jax.random.split(key, 8)
    s = 0.05
    return {
        # conv weights stored as (kh, kw, Cin, Cout)
        "w1": s * jax.random.normal(ks[0], (5, 5, in_channels, 32), jnp.float32),
        "b1": s * jax.random.normal(ks[1], (32,), jnp.float32),
        "w2": s * jax.random.normal(ks[2], (5, 5, 32, 64), jnp.float32),
        "b2": s * jax.random.normal(ks[3], (64,), jnp.float32),
        # fc1 rows in PyTorch NCHW flatten order (c, h, w)
        "wfc1": s * jax.random.normal(ks[4], (64 * 7 * 7, 512), jnp.float32),
        "bfc1": s * jax.random.normal(ks[5], (512,), jnp.float32),
        "wfc2": s * jax.random.normal(ks[6], (512, num_classes), jnp.float32),
        "bfc2": s * jax.random.normal(ks[7], (num_classes,), jnp.float32),
    }


def reference_forward(x_nchw, params):
    """Pure-JAX reference (XLA conv / reduce_window) for correctness check."""
    x = x_nchw.astype(jnp.float32)
    dn = ("NCHW", "OIHW", "NCHW")
    w1 = jnp.transpose(params["w1"], (3, 2, 0, 1))
    y = lax.conv_general_dilated(x, w1, (1, 1), [(2, 2), (2, 2)],
                                 dimension_numbers=dn)
    y = jnp.maximum(y + params["b1"][None, :, None, None], 0.0)
    y = lax.reduce_window(y, -jnp.inf, lax.max, (1, 1, 2, 2), (1, 1, 2, 2), "VALID")
    w2 = jnp.transpose(params["w2"], (3, 2, 0, 1))
    y = lax.conv_general_dilated(y, w2, (1, 1), [(2, 2), (2, 2)],
                                 dimension_numbers=dn)
    y = jnp.maximum(y + params["b2"][None, :, None, None], 0.0)
    y = lax.reduce_window(y, -jnp.inf, lax.max, (1, 1, 2, 2), (1, 1, 2, 2), "VALID")
    flat = y.reshape(y.shape[0], -1)
    h = jnp.maximum(flat @ params["wfc1"] + params["bfc1"], 0.0)
    logits = h @ params["wfc2"] + params["bfc2"]
    return logits, jax.nn.softmax(logits, axis=1)


if __name__ == "__main__":
    key = jax.random.PRNGKey(0)
    kx, kp = jax.random.split(key)

    # Input: batch=2, 1 channel, 28x28 (required by Linear(64*7*7, 512)).
    x = jax.random.normal(kx, (2, 1, 28, 28), jnp.float32)
    params = init_params(kp)

    logits, probs = jax.jit(simple_cnn_forward)(x, params)
    jax.block_until_ready((logits, probs))

    ref_logits, ref_probs = reference_forward(x, params)
    assert logits.shape == (2, 10) and probs.shape == (2, 10)
    # bf16 MXU operands (f32 accumulation) -> loosened tolerances vs f32 reference.
    assert jnp.allclose(logits, ref_logits, rtol=5e-2, atol=3e-2), (
        float(jnp.max(jnp.abs(logits - ref_logits))))
    assert jnp.allclose(probs, ref_probs, rtol=3e-2, atol=1e-2)
    assert jnp.allclose(jnp.sum(probs, axis=1), 1.0, atol=1e-2)

    print("KERNEL_OK")
</pallas_src>

<mosaic_0001>
module attributes {stable_mosaic.version = 11 : i64} {
  func.func @_simple_cnn_kernel(%arg0: i32, %arg1: memref<2x32x32xbf16, #tpu.memory_space<vmem>>, %arg2: memref<160x896xbf16, #tpu.memory_space<vmem>>, %arg3: memref<1x896xf32, #tpu.memory_space<vmem>>, %arg4: memref<5x448x896xbf16, #tpu.memory_space<vmem>>, %arg5: memref<1x896xf32, #tpu.memory_space<vmem>>, %arg6: memref<3136x512xbf16, #tpu.memory_space<vmem>>, %arg7: memref<1x512xf32, #tpu.memory_space<vmem>>, %arg8: memref<512x10xbf16, #tpu.memory_space<vmem>>, %arg9: memref<1x10xf32, #tpu.memory_space<vmem>>, %arg10: memref<2x10xf32, #tpu.memory_space<vmem>>, %arg11: memref<2x10xf32, #tpu.memory_space<vmem>>, %arg12: memref<2x18x448xf32, #tpu.memory_space<vmem>>) attributes {dimension_semantics = [#tpu.dimension_semantics<parallel>], iteration_bounds = array<i64: 1>, scalar_prefetch = 0 : i64, scratch_operands = 1 : i64, tpu.core_type = #tpu.core_type<tc>, window_params = [{transform_indices = @transform_0, window_bounds = array<i64: 2, 32, 32>}, {pipeline_mode = #tpu.pipeline_mode<synchronous>, transform_indices = @transform_1, window_bounds = array<i64: 160, 896>}, {pipeline_mode = #tpu.pipeline_mode<synchronous>, transform_indices = @transform_2, window_bounds = array<i64: 1, 896>}, {pipeline_mode = #tpu.pipeline_mode<synchronous>, transform_indices = @transform_3, window_bounds = array<i64: 5, 448, 896>}, {pipeline_mode = #tpu.pipeline_mode<synchronous>, transform_indices = @transform_4, window_bounds = array<i64: 1, 896>}, {pipeline_mode = #tpu.pipeline_mode<synchronous>, transform_indices = @transform_5, window_bounds = array<i64: 3136, 512>}, {pipeline_mode = #tpu.pipeline_mode<synchronous>, transform_indices = @transform_6, window_bounds = array<i64: 1, 512>}, {pipeline_mode = #tpu.pipeline_mode<synchronous>, transform_indices = @transform_7, window_bounds = array<i64: 512, 10>}, {pipeline_mode = #tpu.pipeline_mode<synchronous>, transform_indices = @transform_8, window_bounds = array<i64: 1, 10>}, {transform_indices = @transform_9, window_bounds = array<i64: 2, 10>}, {transform_indices = @transform_10, window_bounds = array<i64: 2, 10>}]} {
    %c0 = arith.constant 0 : index
    %c0_0 = arith.constant 0 : index
    %c0_1 = arith.constant 0 : index
    %0 = vector.load %arg1[%c0, %c0_0, %c0_1] : memref<2x32x32xbf16, #tpu.memory_space<vmem>>, vector<2x32x32xbf16>
    %1 = vector.extract_strided_slice %0 {offsets = [0, 0, 0], sizes = [2, 28, 32], strides = [1, 1, 1]} : vector<2x32x32xbf16> to vector<2x28x32xbf16>
    %2 = vector.extract_strided_slice %0 {offsets = [0, 1, 0], sizes = [2, 28, 32], strides = [1, 1, 1]} : vector<2x32x32xbf16> to vector<2x28x32xbf16>
    %3 = vector.extract_strided_slice %0 {offsets = [0, 2, 0], sizes = [2, 28, 32], strides = [1, 1, 1]} : vector<2x32x32xbf16> to vector<2x28x32xbf16>
    %4 = vector.extract_strided_slice %0 {offsets = [0, 3, 0], sizes = [2, 28, 32], strides = [1, 1, 1]} : vector<2x32x32xbf16> to vector<2x28x32xbf16>
    %5 = vector.extract_strided_slice %0 {offsets = [0, 4, 0], sizes = [2, 28, 32], strides = [1, 1, 1]} : vector<2x32x32xbf16> to vector<2x28x32xbf16>
    %6 = tpu.concatenate %1, %2, %3, %4, %5 in 2 : vector<2x28x32xbf16>, vector<2x28x32xbf16>, vector<2x28x32xbf16>, vector<2x28x32xbf16>, vector<2x28x32xbf16> -> vector<2x28x160xbf16>
    %7 = vector.shape_cast %6 : vector<2x28x160xbf16> to vector<56x160xbf16>
    %c0_2 = arith.constant 0 : index
    %c0_3 = arith.constant 0 : index
    %8 = vector.load %arg2[%c0_2, %c0_3] : memref<160x896xbf16, #tpu.memory_space<vmem>>, vector<160x896xbf16>
    %cst = arith.constant dense<0.000000e+00> : vector<56x896xf32>
    %9 = tpu.matmul %7, %8, %cst {dimension_numbers = #tpu.dot_dimension_numbers<[1], [0], [0], [1], [0, 0, 1, 1], [], []>} : vector<56x160xbf16>, vector<160x896xbf16>, vector<56x896xf32> -> vector<56x896xf32>
    %c0_4 = arith.constant 0 : index
    %c0_5 = arith.constant 0 : index
    %10 = vector.load %arg3[%c0_4, %c0_5] : memref<1x896xf32, #tpu.memory_space<vmem>>, vector<1x896xf32>
    %11 = vector.broadcast %10 : vector<1x896xf32> to vector<56x896xf32>
    %12 = arith.addf %9, %11 : vector<56x896xf32>
    %cst_6 = arith.constant 0.000000e+00 : f32
    %13 = vector.broadcast %cst_6 : f32 to vector<56x896xf32>
    %14 = arith.maximumf %12, %13 : vector<56x896xf32>
    %15 = vector.extract_strided_slice %14 {offsets = [0, 0], sizes = [56, 448], strides = [1, 1]} : vector<56x896xf32> to vector<56x448xf32>
    %16 = vector.extract_strided_slice %14 {offsets = [0, 448], sizes = [56, 448], strides = [1, 1]} : vector<56x896xf32> to vector<56x448xf32>
    %17 = arith.maximumf %15, %16 : vector<56x448xf32>
    %18 = vector.shape_cast %17 : vector<56x448xf32> to vector<2x14x2x448xf32>
    %19 = vector.extract_strided_slice %18 {offsets = [0, 0, 0, 0], sizes = [2, 14, 1, 448], strides = [1, 1, 1, 1]} : vector<2x14x2x448xf32> to vector<2x14x1x448xf32>
    %20 = vector.shape_cast %19 : vector<2x14x1x448xf32> to vector<2x14x448xf32>
    %21 = vector.extract_strided_slice %18 {offsets = [0, 0, 1, 0], sizes = [2, 14, 1, 448], strides = [1, 1, 1, 1]} : vector<2x14x2x448xf32> to vector<2x14x1x448xf32>
    %22 = vector.shape_cast %21 : vector<2x14x1x448xf32> to vector<2x14x448xf32>
    %23 = arith.maximumf %20, %22 : vector<2x14x448xf32>
    %cst_7 = arith.constant 0.000000e+00 : f32
    %24 = vector.broadcast %cst_7 : f32 to vector<2x2x448xf32>
    %c0_8 = arith.constant 0 : index
    %c0_9 = arith.constant 0 : index
    %c0_10 = arith.constant 0 : index
    %25 = vector.load %arg12[%c0_8, %c0_9, %c0_10] : memref<2x18x448xf32, #tpu.memory_space<vmem>>, vector<2x2x448xf32>
    tpu.vector_store %arg12[%c0_8, %c0_9, %c0_10], %24 {strides = array<i32>} : memref<2x18x448xf32, #tpu.memory_space<vmem>>, vector<2x2x448xf32>,
    %c0_11 = arith.constant 0 : index
    %c16 = arith.constant 16 : index
    %c0_12 = arith.constant 0 : index
    %26 = vector.load %arg12[%c0_11, %c16, %c0_12] : memref<2x18x448xf32, #tpu.memory_space<vmem>>, vector<2x2x448xf32>
    tpu.vector_store %arg12[%c0_11, %c16, %c0_12], %24 {strides = array<i32>} : memref<2x18x448xf32, #tpu.memory_space<vmem>>, vector<2x2x448xf32>,
    %c0_13 = arith.constant 0 : index
    %c2 = arith.constant 2 : index
    %c0_14 = arith.constant 0 : index
    %27 = vector.load %arg12[%c0_13, %c2, %c0_14] : memref<2x18x448xf32, #tpu.memory_space<vmem>>, vector<2x14x448xf32>
    tpu.vector_store %arg12[%c0_13, %c2, %c0_14], %23 {strides = array<i32>} : memref<2x18x448xf32, #tpu.memory_space<vmem>>, vector<2x14x448xf32>,
    %c0_15 = arith.constant 0 : index
    %c0_16 = arith.constant 0 : index
    %c0_17 = arith.constant 0 : index
    %28 = vector.load %arg12[%c0_15, %c0_16, %c0_17] : memref<2x18x448xf32, #tpu.memory_space<vmem>>, vector<2x14x448xf32>
    %29 = vector.shape_cast %28 : vector<2x14x448xf32> to vector<28x448xf32>
    %30 = arith.truncf %29 : vector<28x448xf32> to vector<28x448xbf16>
    %c0_18 = arith.constant 0 : index
    %c0_19 = arith.constant 0 : index
    %c0_20 = arith.constant 0 : index
    %31 = vector.load %arg4[%c0_18, %c0_19, %c0_20] : memref<5x448x896xbf16, #tpu.memory_space<vmem>>, vector<1x448x896xbf16>
    %32 = vector.shape_cast %31 : vector<1x448x896xbf16> to vector<448x896xbf16>
    %cst_21 = arith.constant dense<0.000000e+00> : vector<28x896xf32>
    %33 = tpu.matmul %30, %32, %cst_21 {dimension_numbers = #tpu.dot_dimension_numbers<[1], [0], [0], [1], [0, 0, 1, 1], [], []>} : vector<28x448xbf16>, vector<448x896xbf16>, vector<28x896xf32> -> vector<28x896xf32>
    %c0_22 = arith.constant 0 : index
    %c1 = arith.constant 1 : index
    %c0_23 = arith.constant 0 : index
    %34 = vector.load %arg12[%c0_22, %c1, %c0_23] : memref<2x18x448xf32, #tpu.memory_space<vmem>>, vector<2x14x448xf32>
    %35 = vector.shape_cast %34 : vector<2x14x448xf32> to vector<28x448xf32>
    %36 = arith.truncf %35 : vector<28x448xf32> to vector<28x448xbf16>
    %c1_24 = arith.constant 1 : index
    %c0_25 = arith.constant 0 : index
    %c0_26 = arith.constant 0 : index
    %37 = vector.load %arg4[%c1_24, %c0_25, %c0_26] : memref<5x448x896xbf16, #tpu.memory_space<vmem>>, vector<1x448x896xbf16>
    %38 = vector.shape_cast %37 : vector<1x448x896xbf16> to vector<448x896xbf16>
    %cst_27 = arith.constant dense<0.000000e+00> : vector<28x896xf32>
    %39 = tpu.matmul %36, %38, %cst_27 {dimension_numbers = #tpu.dot_dimension_numbers<[1], [0], [0], [1], [0, 0, 1, 1], [], []>} : vector<28x448xbf16>, vector<448x896xbf16>, vector<28x896xf32> -> vector<28x896xf32>
    %40 = arith.addf %33, %39 : vector<28x896xf32>
    %c0_28 = arith.constant 0 : index
    %c2_29 = arith.constant 2 : index
    %c0_30 = arith.constant 0 : index
    %41 = vector.load %arg12[%c0_28, %c2_29, %c0_30] : memref<2x18x448xf32, #tpu.memory_space<vmem>>, vector<2x14x448xf32>
    %42 = vector.shape_cast %41 : vector<2x14x448xf32> to vector<28x448xf32>
    %43 = arith.truncf %42 : vector<28x448xf32> to vector<28x448xbf16>
    %c2_31 = arith.constant 2 : index
    %c0_32 = arith.constant 0 : index
    %c0_33 = arith.constant 0 : index
    %44 = vector.load %arg4[%c2_31, %c0_32, %c0_33] : memref<5x448x896xbf16, #tpu.memory_space<vmem>>, vector<1x448x896xbf16>
    %45 = vector.shape_cast %44 : vector<1x448x896xbf16> to vector<448x896xbf16>
    %cst_34 = arith.constant dense<0.000000e+00> : vector<28x896xf32>
    %46 = tpu.matmul %43, %45, %cst_34 {dimension_numbers = #tpu.dot_dimension_numbers<[1], [0], [0], [1], [0, 0, 1, 1], [], []>} : vector<28x448xbf16>, vector<448x896xbf16>, vector<28x896xf32> -> vector<28x896xf32>
    %47 = arith.addf %40, %46 : vector<28x896xf32>
    %c0_35 = arith.constant 0 : index
    %c3 = arith.constant 3 : index
    %c0_36 = arith.constant 0 : index
    %48 = vector.load %arg12[%c0_35, %c3, %c0_36] : memref<2x18x448xf32, #tpu.memory_space<vmem>>, vector<2x14x448xf32>
    %49 = vector.shape_cast %48 : vector<2x14x448xf32> to vector<28x448xf32>
    %50 = arith.truncf %49 : vector<28x448xf32> to vector<28x448xbf16>
    %c3_37 = arith.constant 3 : index
    %c0_38 = arith.constant 0 : index
    %c0_39 = arith.constant 0 : index
    %51 = vector.load %arg4[%c3_37, %c0_38, %c0_39] : memref<5x448x896xbf16, #tpu.memory_space<vmem>>, vector<1x448x896xbf16>
    %52 = vector.shape_cast %51 : vector<1x448x896xbf16> to vector<448x896xbf16>
    %cst_40 = arith.constant dense<0.000000e+00> : vector<28x896xf32>
    %53 = tpu.matmul %50, %52, %cst_40 {dimension_numbers = #tpu.dot_dimension_numbers<[1], [0], [0], [1], [0, 0, 1, 1], [], []>} : vector<28x448xbf16>, vector<448x896xbf16>, vector<28x896xf32> -> vector<28x896xf32>
    %54 = arith.addf %47, %53 : vector<28x896xf32>
    %c0_41 = arith.constant 0 : index
    %c4 = arith.constant 4 : index
    %c0_42 = arith.constant 0 : index
    %55 = vector.load %arg12[%c0_41, %c4, %c0_42] : memref<2x18x448xf32, #tpu.memory_space<vmem>>, vector<2x14x448xf32>
    %56 = vector.shape_cast %55 : vector<2x14x448xf32> to vector<28x448xf32>
    %57 = arith.truncf %56 : vector<28x448xf32> to vector<28x448xbf16>
    %c4_43 = arith.constant 4 : index
    %c0_44 = arith.constant 0 : index
    %c0_45 = arith.constant 0 : index
    %58 = vector.load %arg4[%c4_43, %c0_44, %c0_45] : memref<5x448x896xbf16, #tpu.memory_space<vmem>>, vector<1x448x896xbf16>
    %59 = vector.shape_cast %58 : vector<1x448x896xbf16> to vector<448x896xbf16>
    %cst_46 = arith.constant dense<0.000000e+00> : vector<28x896xf32>
    %60 = tpu.matmul %57, %59, %cst_46 {dimension_numbers = #tpu.dot_dimension_numbers<[1], [0], [0], [1], [0, 0, 1, 1], [], []>} : vector<28x448xbf16>, vector<448x896xbf16>, vector<28x896xf32> -> vector<28x896xf32>
    %61 = arith.addf %54, %60 : vector<28x896xf32>
    %c0_47 = arith.constant 0 : index
    %c0_48 = arith.constant 0 : index
    %62 = vector.load %arg5[%c0_47, %c0_48] : memref<1x896xf32, #tpu.memory_space<vmem>>, vector<1x896xf32>
    %63 = vector.broadcast %62 : vector<1x896xf32> to vector<28x896xf32>
    %64 = arith.addf %61, %63 : vector<28x896xf32>
    %cst_49 = arith.constant 0.000000e+00 : f32
    %65 = vector.broadcast %cst_49 : f32 to vector<28x896xf32>
    %66 = arith.maximumf %64, %65 : vector<28x896xf32>
    %67 = vector.extract_strided_slice %66 {offsets = [0, 0], sizes = [28, 448], strides = [1, 1]} : vector<28x896xf32> to vector<28x448xf32>
    %68 = vector.extract_strided_slice %66 {offsets = [0, 448], sizes = [28, 448], strides = [1, 1]} : vector<28x896xf32> to vector<28x448xf32>
    %69 = arith.maximumf %67, %68 : vector<28x448xf32>
    %70 = vector.shape_cast %69 : vector<28x448xf32> to vector<2x7x2x448xf32>
    %71 = vector.extract_strided_slice %70 {offsets = [0, 0, 0, 0], sizes = [2, 7, 1, 448], strides = [1, 1, 1, 1]} : vector<2x7x2x448xf32> to vector<2x7x1x448xf32>
    %72 = vector.shape_cast %71 : vector<2x7x1x448xf32> to vector<2x7x448xf32>
    %73 = vector.extract_strided_slice %70 {offsets = [0, 0, 1, 0], sizes = [2, 7, 1, 448], strides = [1, 1, 1, 1]} : vector<2x7x2x448xf32> to vector<2x7x1x448xf32>
    %74 = vector.shape_cast %73 : vector<2x7x1x448xf32> to vector<2x7x448xf32>
    %75 = arith.maximumf %72, %74 : vector<2x7x448xf32>
    %76 = vector.shape_cast %75 : vector<2x7x448xf32> to vector<2x3136xf32>
    %77 = arith.truncf %76 : vector<2x3136xf32> to vector<2x3136xbf16>
    %c0_50 = arith.constant 0 : index
    %c0_51 = arith.constant 0 : index
    %78 = vector.load %arg6[%c0_50, %c0_51] : memref<3136x512xbf16, #tpu.memory_space<vmem>>, vector<3136x512xbf16>
    %cst_52 = arith.constant dense<0.000000e+00> : vector<2x512xf32>
    %79 = tpu.matmul %77, %78, %cst_52 {dimension_numbers = #tpu.dot_dimension_numbers<[1], [0], [0], [1], [0, 0, 1, 1], [], []>} : vector<2x3136xbf16>, vector<3136x512xbf16>, vector<2x512xf32> -> vector<2x512xf32>
    %c0_53 = arith.constant 0 : index
    %c0_54 = arith.constant 0 : index
    %80 = vector.load %arg7[%c0_53, %c0_54] : memref<1x512xf32, #tpu.memory_space<vmem>>, vector<1x512xf32>
    %81 = vector.broadcast %80 : vector<1x512xf32> to vector<2x512xf32>
    %82 = arith.addf %79, %81 : vector<2x512xf32>
    %cst_55 = arith.constant 0.000000e+00 : f32
    %83 = vector.broadcast %cst_55 : f32 to vector<2x512xf32>
    %84 = arith.maximumf %82, %83 : vector<2x512xf32>
    %85 = arith.truncf %84 : vector<2x512xf32> to vector<2x512xbf16>
    %c0_56 = arith.constant 0 : index
    %c0_57 = arith.constant 0 : index
    %86 = vector.load %arg8[%c0_56, %c0_57] : memref<512x10xbf16, #tpu.memory_space<vmem>>, vector<512x10xbf16>
    %cst_58 = arith.constant dense<0.000000e+00> : vector<2x10xf32>
    %87 = tpu.matmul %85, %86, %cst_58 {dimension_numbers = #tpu.dot_dimension_numbers<[1], [0], [0], [1], [0, 0, 1, 1], [], []>} : vector<2x512xbf16>, vector<512x10xbf16>, vector<2x10xf32> -> vector<2x10xf32>
    %c0_59 = arith.constant 0 : index
    %c0_60 = arith.constant 0 : index
    %88 = vector.load %arg9[%c0_59, %c0_60] : memref<1x10xf32, #tpu.memory_space<vmem>>, vector<1x10xf32>
    %89 = vector.broadcast %88 : vector<1x10xf32> to vector<2x10xf32>
    %90 = arith.addf %87, %89 : vector<2x10xf32>
    %c0_61 = arith.constant 0 : index
    %c0_62 = arith.constant 0 : index
    %91 = vector.load %arg10[%c0_61, %c0_62] : memref<2x10xf32, #tpu.memory_space<vmem>>, vector<2x10xf32>
    tpu.vector_store %arg10[%c0_61, %c0_62], %90 {strides = array<i32>} : memref<2x10xf32, #tpu.memory_space<vmem>>, vector<2x10xf32>,
    %cst_63 = arith.constant dense<0xFF800000> : vector<2xf32>
    %92 = vector.multi_reduction <maximumf>, %90, %cst_63 [1] : vector<2x10xf32> to vector<2xf32>
    %93 = vector.shape_cast %92 : vector<2xf32> to vector<2x1xf32>
    %94 = vector.broadcast %93 : vector<2x1xf32> to vector<2x10xf32>
    %95 = arith.subf %90, %94 : vector<2x10xf32>
    %96 = math.exp %95 : vector<2x10xf32>
    %cst_64 = arith.constant dense<0.000000e+00> : vector<2xf32>
    %97 = vector.multi_reduction <add>, %96, %cst_64 [1] : vector<2x10xf32> to vector<2xf32>
    %98 = vector.shape_cast %97 : vector<2xf32> to vector<2x1xf32>
    %99 = tpu.reciprocal %98 {approx = true} : vector<2x1xf32> -> vector<2x1xf32>
    %100 = vector.broadcast %99 : vector<2x1xf32> to vector<2x10xf32>
    %101 = arith.mulf %96, %100 : vector<2x10xf32>
    %c0_65 = arith.constant 0 : index
    %c0_66 = arith.constant 0 : index
    %102 = vector.load %arg11[%c0_65, %c0_66] : memref<2x10xf32, #tpu.memory_space<vmem>>, vector<2x10xf32>
    tpu.vector_store %arg11[%c0_65, %c0_66], %101 {strides = array<i32>} : memref<2x10xf32, #tpu.memory_space<vmem>>, vector<2x10xf32>,
    return
  }
  func.func @transform_0(%arg0: i32) -> (i32, i32, i32) {
    %c0_i32 = arith.constant 0 : i32
    %c0_i32_0 = arith.constant 0 : i32
    %c0_i32_1 = arith.constant 0 : i32
    return %arg0, %c0_i32, %c0_i32_0 : i32, i32, i32
  }
  func.func @transform_1(%arg0: i32) -> (i32, i32) {
    %c0_i32 = arith.constant 0 : i32
    %c0_i32_0 = arith.constant 0 : i32
    %c0_i32_1 = arith.constant 0 : i32
    return %c0_i32, %c0_i32_0 : i32, i32
  }
  func.func @transform_2(%arg0: i32) -> (i32, i32) {
    %c0_i32 = arith.constant 0 : i32
    %c0_i32_0 = arith.constant 0 : i32
    %c0_i32_1 = arith.constant 0 : i32
    return %c0_i32, %c0_i32_0 : i32, i32
  }
  func.func @transform_3(%arg0: i32) -> (i32, i32, i32) {
    %c0_i32 = arith.constant 0 : i32
    %c0_i32_0 = arith.constant 0 : i32
    %c0_i32_1 = arith.constant 0 : i32
    %c0_i32_2 = arith.constant 0 : i32
    return %c0_i32, %c0_i32_0, %c0_i32_1 : i32, i32, i32
  }
  func.func @transform_4(%arg0: i32) -> (i32, i32) {
    %c0_i32 = arith.constant 0 : i32
    %c0_i32_0 = arith.constant 0 : i32
    %c0_i32_1 = arith.constant 0 : i32
    return %c0_i32, %c0_i32_0 : i32, i32
  }
  func.func @transform_5(%arg0: i32) -> (i32, i32) {
    %c0_i32 = arith.constant 0 : i32
    %c0_i32_0 = arith.constant 0 : i32
    %c0_i32_1 = arith.constant 0 : i32
    return %c0_i32, %c0_i32_0 : i32, i32
  }
  func.func @transform_6(%arg0: i32) -> (i32, i32) {
    %c0_i32 = arith.constant 0 : i32
    %c0_i32_0 = arith.constant 0 : i32
    %c0_i32_1 = arith.constant 0 : i32
    return %c0_i32, %c0_i32_0 : i32, i32
  }
  func.func @transform_7(%arg0: i32) -> (i32, i32) {
    %c0_i32 = arith.constant 0 : i32
    %c0_i32_0 = arith.constant 0 : i32
    %c0_i32_1 = arith.constant 0 : i32
    return %c0_i32, %c0_i32_0 : i32, i32
  }
  func.func @transform_8(%arg0: i32) -> (i32, i32) {
    %c0_i32 = arith.constant 0 : i32
    %c0_i32_0 = arith.constant 0 : i32
    %c0_i32_1 = arith.constant 0 : i32
    return %c0_i32, %c0_i32_0 : i32, i32
  }
  func.func @transform_9(%arg0: i32) -> (i32, i32) {
    %c0_i32 = arith.constant 0 : i32
    %c0_i32_0 = arith.constant 0 : i32
    return %arg0, %c0_i32 : i32, i32
  }
  func.func @transform_10(%arg0: i32) -> (i32, i32) {
    %c0_i32 = arith.constant 0 : i32
    %c0_i32_0 = arith.constant 0 : i32
    return %arg0, %c0_i32 : i32, i32
  }
}

</mosaic_0001>

<bundles_post_ra>
// kernel: tile.13
= control target key start
LH: loop header
LB: loop body
LE: loop exit
PB: predicated region body
PF: predicated region fallthrough
CT: control target
= control target key end

     0   :  { %s40_s0 = inlined_call_operand.vmem [shape: f32[32], index: 0, kind: input, shape index: {}]   ;;  %s41_s1 = inlined_call_operand.vmem [shape: f32[28,32], index: 1, kind: output, shape index: {}]  }
   0x1   :  { %v4_v0 = vld [vmem:[%s40_s0] ss:$0 sm:$0xff] }
   0x2   :  { %5 = vst [vmem:[%s41_s1] sm:$0xff] %v4_v0  ;;  %12 = vst [vmem:[%s41_s1 + $0x8] sm:$0xff] %v4_v0 }
   0x3   :  { %13 = vst [vmem:[%s41_s1 + $0x10] sm:$0xff] %v4_v0  ;;  %14 = vst [vmem:[%s41_s1 + $0x18] sm:$0xff] %v4_v0 }

// kernel: tile.14
= control target key start
LH: loop header
LB: loop body
LE: loop exit
PB: predicated region body
PF: predicated region fallthrough
CT: control target
= control target key end

     0   :  { %s85_s8 = smov 96   ;;  %vm3_vm0 = vcmask 261120   ;;  %s87_s15 = smov 64   ;;  %vm10_vm1 = vcmask 1048320   ;;  %vm17_vm2 = vcmask 785920   ;;  %vm24_vm3 = vcmask 523520   ;;  %s131_s0 = inlined_call_operand.vmem [shape: f32[28,32], index: 0, kind: input, shape index: {}]   ;;  %s132_s1 = inlined_call_operand.vmem [shape: f32[1,896], index: 1, kind: output, shape index: {}]  }
   0x1   :  { %v73_v0 = vld [vmem:[%s131_s0 + $0x3] ss:$4 sm:$0x7f]   ;;  %v74_v1 = vld [vmem:[%s131_s0 + $0x2] ss:$4 sm:$0x7f]  }
   0x2   :  { %8 = vrot.lane.b32.xlu0 %v73_v0, %s85_s8  ;;  %v75_v2 = vld [vmem:[%s131_s0 + $0x1] ss:$4 sm:$0x7f]   ;;  %v2_v3 = vld [vmem:[%s131_s0] ss:$4 sm:$0x7f]  }
   0x3   :  { %s86_s0 = smov 32   ;;  %4 = vst.msk [vmem:[#allocation0] ss:$8 sm:$0xf] %vm3_vm0, %v2_v3  }
   0x4   :  { %22 = vrot.lane.b32.xlu1 %v75_v2, %s86_s0  ;;  %5 = vst.msk [vmem:[#allocation0] ss:$8 sm:$0x70] %vm3_vm0, %v2_v3  }
   0x6   :  { %15 = vrot.lane.b32.xlu0 %v74_v1, %s87_s15 }
  0x74   :  { %v9_v4 = vpop.permute.xlu0 %8  }
  0x75   :  { %11 = vst.msk [vmem:[#allocation0] ss:$8 sm:$0xf] %vm10_vm1, %v9_v4   ;;  %12 = vst.msk [vmem:[#allocation0] ss:$8 sm:$0x70] %vm10_vm1, %v9_v4  }
  0x76   :  { %v23_v5 = vpop.permute.xlu1 %22  }
  0x78   :  { %v16_v6 = vpop.permute.xlu0 %15  }
  0x79   :  { %18 = vst.msk [vmem:[#allocation0] ss:$8 sm:$0xf] %vm17_vm2, %v16_v6   ;;  %19 = vst.msk [vmem:[#allocation0] ss:$8 sm:$0x70] %vm17_vm2, %v16_v6  }
  0x7a   :  { %25 = vst.msk [vmem:[#allocation0] ss:$8 sm:$0xf] %vm24_vm3, %v23_v5   ;;  %26 = vst.msk [vmem:[#allocation0] ss:$8 sm:$0x70] %vm24_vm3, %v23_v5  }
  0x81   :  { %v30_v7 = vld [vmem:[#allocation0] sm:$0x1]  ;;  %v34_v8 = vld [vmem:[#allocation0 + $0x8] sm:$0x1]  ;;  %v39_v9 = vld [vmem:[#allocation0 + $0x10] sm:$0x1] }
  0x82   :  { %32 = vst [vmem:[%s132_s1] sm:$0x1] %v30_v7  ;;  %76 = vst [vmem:[%s132_s1 + $0x1] sm:$0x1] %v34_v8  ;;  %v45_v10 = vld [vmem:[#allocation0 + $0x18] sm:$0x1] }
  0x83   :  { %77 = vst [vmem:[%s132_s1 + $0x2] sm:$0x1] %v39_v9  ;;  %v51_v11 = vld [vmem:[#allocation0 + $0x20] sm:$0x1]  ;;  %v57_v12 = vld [vmem:[#allocation0 + $0x28] sm:$0x1] }
  0x84   :  { %78 = vst [vmem:[%s132_s1 + $0x3] sm:$0x1] %v45_v10  ;;  %79 = vst [vmem:[%s132_s1 + $0x4] sm:$0x1] %v51_v11  ;;  %v63_v13 = vld [vmem:[#allocation0 + $0x30] sm:$0x1] }
  0x85   :  { %80 = vst [vmem:[%s132_s1 + $0x5] sm:$0x1] %v57_v12  ;;  %81 = vst [vmem:[%s132_s1 + $0x6] sm:$0x1] %v63_v13 }

// kernel: tile.18
= control target key start
LH: loop header
LB: loop body
LE: loop exit
PB: predicated region body
PF: predicated region fallthrough
CT: control target
= control target key end

     0   :  { %s28_s0 = inlined_call_operand.vmem [shape: f32[64], index: 0, kind: input, shape index: {}]   ;;  %s29_s1 = inlined_call_operand.vmem [shape: f32[14,64], index: 1, kind: output, shape index: {}]  }
   0x1   :  { %v4_v0 = vld [vmem:[%s28_s0] ss:$0 sm:$0xff] }
   0x2   :  { %5 = vst [vmem:[%s29_s1] sm:$0xff] %v4_v0  ;;  %8 = vst [vmem:[%s29_s1 + $0x8] sm:$0xff] %v4_v0 }

// kernel: tile.19
= control target key start
LH: loop header
LB: loop body
LE: loop exit
PB: predicated region body
PF: predicated region fallthrough
CT: control target
= control target key end

     0   :  { %vm3_vm0 = vcmask 523264   ;;  %s67_s8 = smov 64   ;;  %vm10_vm1 = vcmask 1048064   ;;  %s105_s0 = inlined_call_operand.vmem [shape: f32[14,64], index: 0, kind: input, shape index: {}]   ;;  %s106_s1 = inlined_call_operand.vmem [shape: f32[1,896], index: 1, kind: output, shape index: {}]  }
   0x1   :  { %v59_v0 = vld [vmem:[%s105_s0 + $0x1] ss:$2 sm:$0x7f]   ;;  %v2_v1 = vld [vmem:[%s105_s0] ss:$2 sm:$0x7f]  }
   0x2   :  { %8 = vrot.lane.b32.xlu0 %v59_v0, %s67_s8  ;;  %4 = vst.msk [vmem:[#allocation0] ss:$8 sm:$0xf] %vm3_vm0, %v2_v1   ;;  %5 = vst.msk [vmem:[#allocation0] ss:$8 sm:$0x70] %vm3_vm0, %v2_v1  }
  0x74   :  { %v9_v2 = vpop.permute.xlu0 %8  }
  0x75   :  { %11 = vst.msk [vmem:[#allocation0] ss:$8 sm:$0xf] %vm10_vm1, %v9_v2   ;;  %12 = vst.msk [vmem:[#allocation0] ss:$8 sm:$0x70] %vm10_vm1, %v9_v2  }
  0x7c   :  { %v16_v3 = vld [vmem:[#allocation0] sm:$0x1]  ;;  %v20_v4 = vld [vmem:[#allocation0 + $0x8] sm:$0x1]  ;;  %v25_v5 = vld [vmem:[#allocation0 + $0x10] sm:$0x1] }
  0x7d   :  { %18 = vst [vmem:[%s106_s1] sm:$0x1] %v16_v3  ;;  %60 = vst [vmem:[%s106_s1 + $0x1] sm:$0x1] %v20_v4  ;;  %v31_v6 = vld [vmem:[#allocation0 + $0x18] sm:$0x1] }
  0x7e   :  { %61 = vst [vmem:[%s106_s1 + $0x2] sm:$0x1] %v25_v5  ;;  %v37_v7 = vld [vmem:[#allocation0 + $0x20] sm:$0x1]  ;;  %v43_v8 = vld [vmem:[#allocation0 + $0x28] sm:$0x1] }
  0x7f   :  { %62 = vst [vmem:[%s106_s1 + $0x3] sm:$0x1] %v31_v6  ;;  %63 = vst [vmem:[%s106_s1 + $0x4] sm:$0x1] %v37_v7  ;;  %v49_v9 = vld [vmem:[#allocation0 + $0x30] sm:$0x1] }
  0x80   :  { %64 = vst [vmem:[%s106_s1 + $0x5] sm:$0x1] %v43_v8  ;;  %65 = vst [vmem:[%s106_s1 + $0x6] sm:$0x1] %v49_v9 }

// kernel: simple_cnn_forward.1
= control target key start
LH: loop header
LB: loop body
LE: loop exit
PB: predicated region body
PF: predicated region fallthrough
CT: control target
= control target key end

     0   :  { %16 = vsyncpa [#allocation4], 0  ;;  %vm65_vm0 = vsmask.f32 7424  ;;  %vm119_vm1 = vsmask.f32 6400  ;;  %s33577_s0 = inlined_call_operand.vmem [shape: bf16[2,32,32], index: 0, kind: input, shape index: {}]   ;;  %s33578_s1 = inlined_call_operand.vmem [shape: bf16[160,896], index: 1, kind: input, shape index: {}]   ;;  %s33579_s2 = inlined_call_operand.vmem [shape: f32[1,896], index: 2, kind: input, shape index: {}]   ;;  %s33580_s3 = inlined_call_operand.vmem [shape: bf16[5,448,896], index: 3, kind: input, shape index: {}]   ;;  %s33581_s4 = inlined_call_operand.vmem [shape: f32[1,896], index: 4, kind: input, shape index: {}]   ;;  %s33582_s5 = inlined_call_operand.vmem [shape: bf16[3136,512], index: 5, kind: input, shape index: {}]   ;;  %s33583_s6 = inlined_call_operand.vmem [shape: f32[1,512], index: 6, kind: input, shape index: {}]   ;;  %s33584_s7 = inlined_call_operand.vmem [shape: bf16[512,10], index: 7, kind: input, shape index: {}]   ;;  %s33585_s8 = inlined_call_operand.vmem [shape: f32[1,10], index: 8, kind: input, shape index: {}]   ;;  %s33586_s9 = inlined_call_operand.hbm [shape: f32[2,10], index: 9, kind: output, shape index: {0}]   ;;  %s33587_s10 = inlined_call_operand.hbm [shape: f32[2,10], index: 10, kind: output, shape index: {1}]  }
   0x1   :  { %v25800_v0 = vld [vmem:[%s33577_s0] sm:$0xff]   ;;  %v25805_v1 = vld [vmem:[%s33577_s0 + $0x8] sm:$0xff]   ;;  %v25814_v6 = vld [vmem:[%s33577_s0 + $0x10] sm:$0xff]   ;;  %vm104_vm2 = vcmask 1046528   ;;  %s25733_s27 = smov 32   ;;  %s25734_s30 = smov 96  }
   0x2   :  { %v67_v2 = vshrl.u32 %v25800_v0, 16  ;;  %v69_v3 = vshll.u32 %v25800_v0, 16  ;;  %v74_v4 = vshll.u32 %v25805_v1, 16  ;;  %v78_v5 = vshrl.u32 %v25805_v1, 16  ;;  %v25819_v7 = vld [vmem:[%s33577_s0 + $0x18] sm:$0xff]   ;;  %s25735_s21 = smov 64  }
   0x3   :  { %v105_v14 = vrot.slane %v25800_v0, 1  ;;  %v106_v17 = vrot.slane %v25805_v1, 1  ;;  %v84_v18 = vshll.u32 %v25814_v6, 16  ;;  %v22854_v19 = vld [vmem:[%s33578_s1 + $0x4] ss:$28 sps:$4 sm:$0xff]   ;;  %v82_v21 = vshrl.u32 %v25814_v6, 16 }
   0x4   :  { %v71_v8 = vrot.slane %v69_v3, 1  ;;  %v76_v9 = vrot.slane %v74_v4, 1  ;;  %v120_v10 = vrot.slane %v67_v2, 1  ;;  %v121_v11 = vrot.slane %v69_v3, 2  ;;  %v22856_v23 = vld [vmem:[%s33578_s1 + $0xc] ss:$28 sps:$4 sm:$0xff]   ;;  %806 = vmatprep.subr.bf16.mxu0 %v22854_v19 }
   0x5   :  { %v123_v12 = vrot.slane %v78_v5, 1  ;;  %v124_v13 = vrot.slane %v74_v4, 2  ;;  %v89_v22 = vshll.u32 %v25819_v7, 16  ;;  %v86_v25 = vrot.slane %v84_v18, 1  ;;  %v22858_v26 = vld [vmem:[%s33578_s1] ss:$28 sps:$4 sm:$0xff]   ;;  %877 = vmatprep.subr.bf16.mxu1 %v22856_v23 }
   0x6   :  { %v72_v15 = vor.u32 %v71_v8, %v67_v2  ;;  %v122_v16 = vor.u32 %v121_v11, %v120_v10  ;;  %v22859_v28 = vld [vmem:[%s33578_s1 + $0x8] ss:$28 sps:$4 sm:$0xff]   ;;  %v107_v29 = vsel %vm104_vm2, %v105_v14, %v106_v17  ;;  %v80_v30 = vor.u32 %v78_v5, %v76_v9  ;;  %807 = vmatpush1.bf16.msra.mxu0 %v22858_v26  ;;  %v22860_v33 = vld [vmem:[%s33578_s1 + $0x3c] ss:$28 sps:$4 sm:$0xff]   ;;  %v22866_v39 = vld [vmem:[%s33578_s1 + $0x74] ss:$28 sps:$4 sm:$0xff]  }
   0x7   :  { %v125_v20 = vor.u32 %v124_v13, %v123_v12  ;;  %v91_v31 = vrot.slane %v89_v22, 1  ;;  %v93_v32 = vshrl.u32 %v25819_v7, 16  ;;  %v87_v34 = vor.u32 %v86_v25, %v82_v21  ;;  %878 = vmatpush1.bf16.msra.mxu1 %v22859_v28  ;;  %v22862_v35 = vld [vmem:[%s33578_s1 + $0x44] ss:$28 sps:$4 sm:$0xff]   ;;  %v22864_v36 = vld [vmem:[%s33578_s1 + $0x38] ss:$28 sps:$4 sm:$0xff]   ;;  %808 = vmatprep.subr.bf16.mxu0 %v22860_v33 }
   0x8   :  { %v77_v24 = vsel %vm65_vm0, %v72_v15, %v76_v9  ;;  %v22865_v37 = vld [vmem:[%s33578_s1 + $0x40] ss:$28 sps:$4 sm:$0xff]   ;;  %v127_v38 = vrot.slane %v82_v21, 1  ;;  %v128_v40 = vrot.slane %v84_v18, 2  ;;  %879 = vmatprep.subr.bf16.mxu1 %v22862_v35  ;;  %v22870_v42 = vld [vmem:[%s33578_s1 + $0x70] ss:$28 sps:$4 sm:$0xff]  }
   0x9   :  { %96 = vrot.lane.b32.xlu0 %v77_v24, %s25733_s27  ;;  %v126_v27 = vsel %vm119_vm1, %v122_v16, %v125_v20  ;;  %v22868_v41 = vld [vmem:[%s33578_s1 + $0x7c] ss:$28 sps:$4 sm:$0xff]   ;;  %v130_v43 = vrot.slane %v93_v32, 1  ;;  %v131_v44 = vrot.slane %v89_v22, 2  ;;  %v92_v46 = vsel %vm65_vm0, %v87_v34, %v91_v31  ;;  %v22872_v49 = vld [vmem:[%s33578_s1 + $0xac] ss:$28 sps:$4 sm:$0xff]  }
   0xa   :  { %134 = vrot.lane.b32.xlu1 %v126_v27, %s25734_s30  ;;  %809 = vmatpush1.bf16.msra.mxu0 %v22864_v36  ;;  %v22871_v45 = vld [vmem:[%s33578_s1 + $0x78] ss:$28 sps:$4 sm:$0xff]   ;;  %v108_v47 = vrot.slane %v25814_v6, 1  ;;  %v109_v48 = vrot.slane %v25819_v7, 1  ;;  %v129_v51 = vor.u32 %v128_v40, %v127_v38  ;;  %v22876_v53 = vld [vmem:[%s33578_s1 + $0xa8] ss:$28 sps:$4 sm:$0xff]   ;;  %v95_v60 = vor.u32 %v93_v32, %v91_v31 }
   0xb   :  { %880 = vmatpush1.bf16.msra.mxu1 %v22865_v37  ;;  %810 = vmatprep.subr.bf16.mxu0 %v22866_v39  ;;  %v22874_v50 = vld [vmem:[%s33578_s1 + $0xb4] ss:$28 sps:$4 sm:$0xff]   ;;  %v132_v52 = vor.u32 %v131_v44, %v130_v43  ;;  %v22878_v56 = vld [vmem:[%s33578_s1 + $0xe4] ss:$28 sps:$4 sm:$0xff]   ;;  %v22880_v57 = vld [vmem:[%s33578_s1 + $0xec] ss:$28 sps:$4 sm:$0xff]   ;;  %v185_v24 = vlaneseq }
   0xc   :  { %881 = vmatprep.subr.bf16.mxu1 %v22868_v41  ;;  %v110_v54 = vsel %vm104_vm2, %v108_v47, %v109_v48  ;;  %v22877_v55 = vld [vmem:[%s33578_s1 + $0xb0] ss:$28 sps:$4 sm:$0xff]   ;;  %v22882_v58 = vld [vmem:[%s33578_s1 + $0xe0] ss:$28 sps:$4 sm:$0xff]   ;;  %v22883_v61 = vld [vmem:[%s33578_s1 + $0xe8] ss:$28 sps:$4 sm:$0xff]  }
   0xd   :  { %111 = vrot.lane.b32.xlu0 %v107_v29, %s25735_s21  ;;  %v133_v59 = vsel %vm119_vm1, %v129_v51, %v132_v52  ;;  %v22884_v62 = vld [vmem:[%s33578_s1 + $0x11c] ss:$28 sps:$4 sm:$0xff]   ;;  %v22886_v63 = vld [vmem:[%s33578_s1 + $0x124] ss:$28 sps:$4 sm:$0xff]   ;;  %v22890_v4 = vld [vmem:[%s33578_s1 + $0x154] ss:$28 sps:$4 sm:$0xff]  }
   0xe   :  { %98 = vrot.lane.b32.xlu1 %v80_v30, %s25733_s27  ;;  %811 = vmatpush1.bf16.msra.mxu0 %v22870_v42  ;;  %v22888_v2 = vld [vmem:[%s33578_s1 + $0x118] ss:$28 sps:$4 sm:$0xff]   ;;  %v22889_v3 = vld [vmem:[%s33578_s1 + $0x120] ss:$28 sps:$4 sm:$0xff]   ;;  %v22894_v8 = vld [vmem:[%s33578_s1 + $0x150] ss:$28 sps:$4 sm:$0xff]  }
   0xf   :  { %882 = vmatpush1.bf16.msra.mxu1 %v22871_v45  ;;  %812 = vmatprep.subr.bf16.mxu0 %v22872_v49  ;;  %v22892_v5 = vld [vmem:[%s33578_s1 + $0x15c] ss:$28 sps:$4 sm:$0xff]   ;;  %v22896_v10 = vld [vmem:[%s33578_s1 + $0x18c] ss:$28 sps:$4 sm:$0xff]   ;;  %v22898_v11 = vld [vmem:[%s33578_s1 + $0x194] ss:$28 sps:$4 sm:$0xff]  }
  0x10   :  { %883 = vmatprep.subr.bf16.mxu1 %v22874_v50  ;;  %v22895_v9 = vld [vmem:[%s33578_s1 + $0x158] ss:$28 sps:$4 sm:$0xff]   ;;  %v22900_v12 = vld [vmem:[%s33578_s1 + $0x188] ss:$28 sps:$4 sm:$0xff]   ;;  %v22901_v13 = vld [vmem:[%s33578_s1 + $0x190] ss:$28 sps:$4 sm:$0xff]  }
  0x11   :  { %113 = vrot.lane.b32.xlu0 %v106_v17, %s25735_s21  ;;  %v22902_v14 = vld [vmem:[%s33578_s1 + $0x1c4] ss:$28 sps:$4 sm:$0xff]   ;;  %v22904_v15 = vld [vmem:[%s33578_s1 + $0x1cc] ss:$28 sps:$4 sm:$0xff]   ;;  %v22908_v18 = vld [vmem:[%s33578_s1 + $0x1fc] ss:$28 sps:$4 sm:$0xff]  }
  0x12   :  { %100 = vrot.lane.b32.xlu1 %v92_v46, %s25733_s27  ;;  %813 = vmatpush1.bf16.msra.mxu0 %v22876_v53  ;;  %v22906_v16 = vld [vmem:[%s33578_s1 + $0x1c0] ss:$28 sps:$4 sm:$0xff]   ;;  %v22907_v17 = vld [vmem:[%s33578_s1 + $0x1c8] ss:$28 sps:$4 sm:$0xff]   ;;  %v22916_v22 = vld [vmem:[%s33578_s1 + $0x14] ss:$28 sps:$4 sm:$0xff]  }
  0x13   :  { %884 = vmatpush1.bf16.msra.mxu1 %v22877_v55  ;;  %814 = vmatprep.subr.bf16.mxu0 %v22878_v56  ;;  %v22910_v19 = vld [vmem:[%s33578_s1 + $0x204] ss:$28 sps:$4 sm:$0xff]   ;;  %v33588_v23 = vmov 0   ;;  %vm149_vm3 = vcmask 261120   ;;  %v25737_v25 = vmov 1983009808  }
  0x14   :  { %885 = vmatprep.subr.bf16.mxu1 %v22880_v57  ;;  %v22913_v21 = vld [vmem:[%s33578_s1 + $0x200] ss:$28 sps:$4 sm:$0xff]   ;;  %v183_v26 = vunpack.c.l.s4 %v25737_v25  ;;  %vm142_vm4 = vcmask 1045504   ;;  %v143_v27 = vrot.slane %v25800_v0, 2  ;;  %v144_v29 = vrot.slane %v25805_v1, 2 }
  0x15   :  { %136 = vrot.lane.b32.xlu0 %v125_v20, %s25734_s30  ;;  %v22912_v20 = vld [vmem:[%s33578_s1 + $0x1f8] ss:$28 sps:$4 sm:$0xff]   ;;  %v25973_v30 = vshrl.u32 %v185_v24, 7  ;;  %vm158_vm5 = vcmask 523264   ;;  %vm167_vm6 = vcmask 785408   ;;  %v146_v47 = vrot.slane %v25814_v6, 2 }
  0x16   :  { %115 = vrot.lane.b32.xlu1 %v110_v54, %s25735_s21  ;;  %815 = vmatpush1.bf16.msra.mxu0 %v22882_v58  ;;  %v184_v32 = vunpack.c.0.s8 %v183_v26  ;;  %v145_v34 = vsel %vm142_vm4, %v143_v27, %v144_v29  ;;  %v147_v51 = vrot.slane %v25819_v7, 2  ;;  %v22917_v7 = vld [vmem:[%s33578_s1 + $0x18] ss:$28 sps:$4 sm:$0xff]   ;;  %vm1716_vm7 = vcmask 517120  }
  0x17   :  { %886 = vmatpush1.bf16.msra.mxu1 %v22883_v61  ;;  %816 = vmatprep.subr.bf16.mxu0 %v22884_v62  ;;  %33601 = vst [vmem:[#allocation9_spill] sm:$0xff] %v25973_v30  ;;  %vm2206_vm8 = vcmask 1043459   ;;  %vm2208_vm9 = vcmask 1044484   ;;  %vm2210_vm10 = vcmask 1045509   ;;  %vm2212_vm11 = vcmask 1046534  }
  0x18   :  { %887 = vmatprep.subr.bf16.mxu1 %v22886_v63  ;;  %v25979_v36 = vsub.s32 %v184_v32, %v25973_v30  ;;  %vm2214_vm12 = vcmask 1047559   ;;  %vm2231_vm13 = vcmask 1041409   ;;  %vm2328_vm14 = vcmask 523266  }
  0x19   :  { %138 = vrot.lane.b32.xlu0 %v133_v59, %s25734_s30  ;;  %v148_v59 = vsel %vm142_vm4, %v146_v47, %v147_v51  ;;  %vm2233_vm15 = vcmask 1042434   ;;  %vm3066_vm0 = vcmask 1040384  }
  0x1a   :  { %102 = vrot.lane.b32.xlu1 %v95_v60, %s25733_s27  ;;  %817 = vmatpush1.bf16.msra.mxu0 %v22888_v2  ;;  %v22920_v2 = vld [vmem:[%s33578_s1 + $0x4c] ss:$28 sps:$4 sm:$0xff]   ;;  %vm26948_vm1 = vmor %vm3066_vm0, %vm2233_vm15 }
  0x1b   :  { %888 = vmatpush1.bf16.msra.mxu1 %v22889_v3  ;;  %818 = vmatprep.subr.bf16.mxu0 %v22890_v4  ;;  %vm3068_vm2 = vmor %vm26948_vm1, %vm2208_vm9 }
  0x1c   :  { %889 = vmatprep.subr.bf16.mxu1 %v22892_v5 }
  0x1d   :  { %117 = vrot.lane.b32.xlu0 %v109_v48, %s25735_s21 }
  0x1e   :  { %140 = vrot.lane.b32.xlu1 %v132_v52, %s25734_s30  ;;  %819 = vmatpush1.bf16.msra.mxu0 %v22894_v8 }
  0x1f   :  { %890 = vmatpush1.bf16.msra.mxu1 %v22895_v9  ;;  %820 = vmatprep.subr.bf16.mxu0 %v22896_v10 }
  0x20   :  { %891 = vmatprep.subr.bf16.mxu1 %v22898_v11 }
  0x22   :  { %821 = vmatpush1.bf16.msra.mxu0 %v22900_v12 }
  0x23   :  { %892 = vmatpush1.bf16.msra.mxu1 %v22901_v13  ;;  %822 = vmatprep.subr.bf16.mxu0 %v22902_v14  ;;  %v25684_v13 = vld [vmem:[%s33577_s0 + $0x18] sm:$0xff]  }
  0x24   :  { %893 = vmatprep.subr.bf16.mxu1 %v22904_v15  ;;  %v22918_v15 = vld [vmem:[%s33578_s1 + $0x48] ss:$28 sps:$4 sm:$0xff]  }
  0x26   :  { %823 = vmatpush1.bf16.msra.mxu0 %v22906_v16  ;;  %v22921_v16 = vld [vmem:[%s33578_s1 + $0x50] ss:$28 sps:$4 sm:$0xff]  }
  0x27   :  { %894 = vmatpush1.bf16.msra.mxu1 %v22907_v17  ;;  %824 = vmatprep.subr.bf16.mxu0 %v22908_v18 }
  0x28   :  { %895 = vmatprep.subr.bf16.mxu1 %v22910_v19 }
  0x2a   :  { %825 = vmatpush1.bf16.msra.mxu0 %v22912_v20 }
  0x2b   :  { %896 = vmatpush1.bf16.msra.mxu1 %v22913_v21  ;;  %948 = vmatprep.subr.bf16.mxu0 %v22916_v22  ;;  %v22924_v21 = vld [vmem:[%s33578_s1 + $0x84] ss:$28 sps:$4 sm:$0xff]  }
  0x2c   :  { %1019 = vmatprep.subr.bf16.mxu1 %v33588_v23 }
  0x7b   :  { %v97_v28 = vpop.permute.xlu0 %96 }
  0x7c   :  { %v135_v31 = vpop.permute.xlu1 %134  ;;  %v151_v33 = vsel %vm149_vm3, %v25800_v0, %v97_v28 }
  0x7f   :  { %v112_v35 = vpop.permute.xlu0 %111 }
  0x80   :  { %v160_v37 = vsel %vm158_vm5, %v151_v33, %v112_v35  ;;  %v99_v38 = vpop.permute.xlu1 %98  ;;  %v22925_v35 = vld [vmem:[%s33578_s1 + $0x88] ss:$28 sps:$4 sm:$0xff]  }
  0x81   :  { %v169_v39 = vsel %vm167_vm6, %v160_v37, %v135_v31  ;;  %v153_v42 = vsel %vm149_vm3, %v25805_v1, %v99_v38 }
  0x82   :  { %v180_v40 = vcombine.low %v169_v39, %v145_v34  ;;  %v181_v41 = vcombine.high %v169_v39, %v145_v34  ;;  %v22922_v34 = vld [vmem:[%s33578_s1 + $0x80] ss:$28 sps:$4 sm:$0xff]  }
  0x83   :  { %v114_v43 = vpop.permute.xlu0 %113 }
  0x84   :  { %v188_v44 = vrot.slane %v180_v40, %v25979_v36  ;;  %v195_v0 = vrot.slane %v181_v41, %v25979_v36  ;;  %v101_v45 = vpop.permute.xlu1 %100  ;;  %v162_v46 = vsel %vm158_vm5, %v153_v42, %v114_v43  ;;  %v22928_v40 = vld [vmem:[%s33578_s1 + $0xbc] ss:$28 sps:$4 sm:$0xff]  }
  0x85   :  { %v155_v50 = vsel %vm149_vm3, %v25814_v6, %v101_v45  ;;  %v22914_v6 = vld [vmem:[%s33578_s1 + $0x10] ss:$28 sps:$4 sm:$0xff]   ;;  %v22929_v45 = vld [vmem:[%s33578_s1 + $0xc0] ss:$28 sps:$4 sm:$0xff]  }
  0x86   :  { %v196_v48 = vcombine.high %v188_v44, %v188_v44  ;;  %v197_v49 = vcombine.high %v195_v0, %v195_v0 }
  0x87   :  { %v137_v52 = vpop.permute.xlu0 %136 }
  0x88   :  { %v367_v53 = vcombine.low %v188_v44, %v196_v48  ;;  %v368_v1 = vcombine.low %v195_v0, %v197_v49  ;;  %v171_v54 = vsel %vm167_vm6, %v162_v46, %v137_v52  ;;  %v116_v55 = vpop.permute.xlu1 %115  ;;  %v22926_v0 = vld [vmem:[%s33578_s1 + $0xb8] ss:$28 sps:$4 sm:$0xff]  }
  0x89   :  { %v198_v56 = vcombine.low %v171_v54, %v144_v29  ;;  %v199_v57 = vcombine.high %v171_v54, %v144_v29  ;;  %v164_v58 = vsel %vm158_vm5, %v155_v50, %v116_v55  ;;  %v22932_v49 = vld [vmem:[%s33578_s1 + $0xf4] ss:$28 sps:$4 sm:$0xff]   ;;  %v22934_v54 = vld [vmem:[%s33578_s1 + $0x128] ss:$28 sps:$4 sm:$0xff]  }
  0x8a   :  { %v375_v60 = vrot.slane %v367_v53, %v25979_v36  ;;  %v382_v61 = vrot.slane %v368_v1, %v25979_v36  ;;  %v22933_v52 = vld [vmem:[%s33578_s1 + $0xf8] ss:$28 sps:$4 sm:$0xff]   ;;  %v22936_v1 = vld [vmem:[%s33578_s1 + $0x12c] ss:$28 sps:$4 sm:$0xff]  }
  0x8b   :  { %v206_v62 = vrot.slane %v198_v56, %v25979_v36  ;;  %v139_v63 = vpop.permute.xlu0 %138  ;;  %v213_v3 = vrot.slane %v199_v57, %v25979_v36  ;;  %v22937_v55 = vld [vmem:[%s33578_s1 + $0x130] ss:$28 sps:$4 sm:$0xff]  }
  0x8c   :  { %v173_v4 = vsel %vm167_vm6, %v164_v58, %v139_v63  ;;  %v103_v5 = vpop.permute.xlu1 %102  ;;  %v26009_v8 = vcombine.high %v375_v60, %v382_v61  ;;  %v26011_v9 = vcombine.low %v375_v60, %v382_v61  ;;  %v22940_v58 = vld [vmem:[%s33578_s1 + $0x164] ss:$28 sps:$4 sm:$0xff]   ;;  %v22944_v61 = vld [vmem:[%s33578_s1 + $0x19c] ss:$28 sps:$4 sm:$0xff]   ;;  %v22946_v63 = vld [vmem:[%s33578_s1 + $0x1d0] ss:$28 sps:$4 sm:$0xff]  }
  0x8d   :  { %v214_v10 = vcombine.high %v206_v62, %v206_v62  ;;  %v215_v11 = vcombine.low %v173_v4, %v148_v59  ;;  %v216_v12 = vcombine.high %v173_v4, %v148_v59  ;;  %v157_v14 = vsel %vm149_vm3, %v25684_v13, %v103_v5  ;;  %v22938_v59 = vld [vmem:[%s33578_s1 + $0x160] ss:$28 sps:$4 sm:$0xff]   ;;  %v22941_v60 = vld [vmem:[%s33578_s1 + $0x168] ss:$28 sps:$4 sm:$0xff]   ;;  %v22953_v5 = vld [vmem:[%s33578_s1 + $0x210] ss:$28 sps:$4 sm:$0xff]  }
  0x8e   :  { %19493 = vmatprep.mubr.msk.bf16.mxu0 %vm149_vm3, %v26009_v8  ;;  %19497 = vmatprep.mubr.msk.bf16.mxu1 %vm149_vm3, %v26009_v8  ;;  %v22950_v4 = vld [vmem:[%s33578_s1 + $0x208] ss:$28 sps:$4 sm:$0xff]  }
  0x8f   :  { %v385_v17 = vcombine.low %v206_v62, %v214_v10  ;;  %v223_v18 = vrot.slane %v215_v11, %v25979_v36  ;;  %v230_v19 = vrot.slane %v216_v12, %v25979_v36  ;;  %839 = vmatmul.mubr.bf16.vlgmr.msra.gmra.mrb[0].mxu0 %v26011_v9  ;;  %910 = vmatmul.mubr.bf16.vlgmr.msra.gmra.mrb[0].mxu1 %v26011_v9  ;;  %v118_v20 = vpop.permute.xlu0 %117  ;;  %v22948_v62 = vld [vmem:[%s33578_s1 + $0x1d4] ss:$28 sps:$4 sm:$0xff]  }
  0x90   :  { %949 = vmatpush1.bf16.msra.mxu0 %v22914_v6  ;;  %1020 = vmatpush1.bf16.msra.mxu1 %v22917_v7  ;;  %v166_v22 = vsel %vm158_vm5, %v157_v14, %v118_v20  ;;  %v141_v24 = vpop.permute.xlu1 %140  ;;  %v22942_v6 = vld [vmem:[%s33578_s1 + $0x198] ss:$28 sps:$4 sm:$0xff]   ;;  %v22945_v7 = vld [vmem:[%s33578_s1 + $0x1a0] ss:$28 sps:$4 sm:$0xff]  }
  0x91   :  { %v231_v25 = vcombine.high %v223_v18, %v223_v18  ;;  %v386_v26 = vcombine.low %v213_v3, %v223_v18  ;;  %950 = vmatprep.subr.bf16.mxu0 %v22920_v2  ;;  %v393_v27 = vrot.slane %v385_v17, %v25979_v36  ;;  %v175_v28 = vsel %vm167_vm6, %v166_v22, %v141_v24  ;;  %v22949_v2 = vld [vmem:[%s33578_s1 + $0x1d8] ss:$28 sps:$4 sm:$0xff]   ;;  %v22952_v3 = vld [vmem:[%s33578_s1 + $0x20c] ss:$28 sps:$4 sm:$0xff]  }
  0x92   :  { %1021 = vmatprep.subr.bf16.mxu1 %v33588_v23  ;;  %v232_v29 = vcombine.high %v230_v19, %v230_v19  ;;  %v233_v32 = vcombine.low %v175_v28, %v147_v51  ;;  %v234_v33 = vcombine.high %v175_v28, %v147_v51  ;;  %v22930_v51 = vld [vmem:[%s33578_s1 + $0xf0] ss:$28 sps:$4 sm:$0xff]  }
  0x93   :  { %v400_v31 = vrot.slane %v386_v26, %v25979_v36  ;;  %v403_v37 = vcombine.low %v231_v25, %v230_v19 }
  0x94   :  { %951 = vmatpush1.bf16.msra.mxu0 %v22918_v15  ;;  %1022 = vmatpush1.bf16.msra.mxu1 %v22921_v16  ;;  %v241_v38 = vrot.slane %v233_v32, %v25979_v36  ;;  %v248_v39 = vrot.slane %v234_v33, %v25979_v36 }
  0x95   :  { %952 = vmatprep.subr.bf16.mxu0 %v22924_v21  ;;  %1023 = vmatprep.subr.bf16.mxu1 %v33588_v23  ;;  %v26051_v41 = vcombine.high %v393_v27, %v400_v31  ;;  %v26053_v42 = vcombine.low %v393_v27, %v400_v31  ;;  %v411_v46 = vrot.slane %v403_v37, %v25979_v36  ;;  %v26223_v37 = vsub.s32 0, %v25973_v30 }
  0x96   :  { %v249_v43 = vcombine.high %v241_v38, %v241_v38  ;;  %v404_v44 = vcombine.low %v232_v29, %v241_v38  ;;  %v26226_v38 = vsub.s32 2, %v25973_v30 }
  0x97   :  { %19494 = vmatprep.mubr.msk.bf16.mxu0 %vm149_vm3, %v26051_v41  ;;  %19498 = vmatprep.mubr.msk.bf16.mxu1 %vm149_vm3, %v26051_v41 }
  0x98   :  { %v418_v47 = vrot.slane %v404_v44, %v25979_v36  ;;  %v421_v48 = vcombine.low %v249_v43, %v248_v39  ;;  %953 = vmatpush1.bf16.msra.mxu0 %v22922_v34  ;;  %1024 = vmatpush1.bf16.msra.mxu1 %v22925_v35  ;;  %v26229_v39 = vsub.s32 1, %v25973_v30 }
  0x99   :  { %849 = vmatmul.mubr.bf16.gmra.mrb[4].mxu0 %v26053_v42  ;;  %920 = vmatmul.mubr.bf16.gmra.mrb[4].mxu1 %v26053_v42 }
  0x9a   :  { %954 = vmatprep.subr.bf16.mxu0 %v22928_v40  ;;  %1025 = vmatprep.subr.bf16.mxu1 %v33588_v23  ;;  %v26073_v50 = vcombine.high %v411_v46, %v418_v47  ;;  %v26082_v53 = vrot.slane %v421_v48, %v25979_v36  ;;  %v419_v56 = vcombine.low %v411_v46, %v418_v47 }
  0x9c   :  { %955 = vmatpush1.bf16.msra.mxu0 %v22926_v0  ;;  %1026 = vmatpush1.bf16.msra.mxu1 %v22929_v45  ;;  %v429_v57 = vcombine.high %v26082_v53, %v26082_v53 }
  0x9d   :  { %19495 = vmatprep.mubr.msk.bf16.mxu0 %vm149_vm3, %v26073_v50  ;;  %19499 = vmatprep.mubr.msk.bf16.mxu1 %vm149_vm3, %v26073_v50 }
  0x9e   :  { %956 = vmatprep.subr.bf16.mxu0 %v22932_v49  ;;  %1027 = vmatprep.subr.bf16.mxu1 %v33588_v23 }
  0xa0   :  { %957 = vmatpush1.bf16.msra.mxu0 %v22930_v51  ;;  %1028 = vmatpush1.bf16.msra.mxu1 %v22933_v52 }
  0xa1   :  { %859 = vmatmul.mubr.bf16.gmra.mrb[8].mxu0 %v419_v56  ;;  %930 = vmatmul.mubr.bf16.gmra.mrb[8].mxu1 %v419_v56 }
  0xa2   :  { %958 = vmatprep.subr.bf16.mxu0 %v22936_v1  ;;  %1029 = vmatprep.subr.bf16.mxu1 %v33588_v23 }
  0xa3   :  { %19496 = vmatprep.mubr.msk.bf16.mxu0 %vm149_vm3, %v429_v57  ;;  %19500 = vmatprep.mubr.msk.bf16.mxu1 %vm149_vm3, %v429_v57 }
  0xa4   :  { %959 = vmatpush1.bf16.msra.mxu0 %v22934_v54  ;;  %1030 = vmatpush1.bf16.msra.mxu1 %v22937_v55 }
  0xa5   :  { %960 = vmatprep.subr.bf16.mxu0 %v22940_v58  ;;  %1031 = vmatprep.subr.bf16.mxu1 %v33588_v23 }
  0xa8   :  { %961 = vmatpush1.bf16.msra.mxu0 %v22938_v59  ;;  %1032 = vmatpush1.bf16.msra.mxu1 %v22941_v60 }
  0xa9   :  { %869 = vmatmul.mubr.bf16.gmra.mrb[12].mxu0 %v26082_v53  ;;  %940 = vmatmul.mubr.bf16.gmra.mrb[12].mxu1 %v26082_v53 }
  0xaa   :  { %19501 = vmatprep.mubr.msk.bf16.mxu0 %vm149_vm3, %v26009_v8  ;;  %19505 = vmatprep.mubr.msk.bf16.mxu1 %vm149_vm3, %v26009_v8  ;;  %v26168_v8 = vld [vmem:[%s33579_s2] sm:$0xff] }
  0xab   :  { %962 = vmatprep.subr.bf16.mxu0 %v22944_v61  ;;  %1033 = vmatprep.subr.bf16.mxu1 %v33588_v23  ;;  %v26241_v43 = vrot.slane %v26168_v8, %v26223_v37  ;;  %v26245_v44 = vrot.slane %v26168_v8, %v26226_v38  ;;  %v26251_v46 = vrot.slane %v26168_v8, %v26229_v39 }
  0xac   :  { %963 = vmatpush1.bf16.msra.mxu0 %v22942_v6  ;;  %1034 = vmatpush1.bf16.msra.mxu1 %v22945_v7 }
  0xad   :  { %964 = vmatprep.subr.bf16.mxu0 %v22948_v62  ;;  %1035 = vmatprep.subr.bf16.mxu1 %v33588_v23 }
  0xb0   :  { %965 = vmatpush1.bf16.msra.mxu0 %v22946_v63  ;;  %1036 = vmatpush1.bf16.msra.mxu1 %v22949_v2 }
  0xb1   :  { %966 = vmatprep.subr.bf16.mxu0 %v22952_v3  ;;  %1037 = vmatprep.subr.bf16.mxu1 %v33588_v23  ;;  %v26287_v3 = vsub.s32 4, %v25973_v30 }
  0xb3   :  { %33602 = vst [vmem:[#allocation10_spill] sm:$0xff] %v26287_v3 }
  0xb4   :  { %967 = vmatpush1.bf16.msra.mxu0 %v22950_v4  ;;  %1038 = vmatpush1.bf16.msra.mxu1 %v22953_v5  ;;  %v26290_v4 = vsub.s32 6, %v25973_v30  ;;  %v33590_v5 = vsub.s32 5, %v25973_v30 }
  0xb7   :  { %981 = vmatmul.mubr.bf16.vlgmr.msra.gmra.mrb[16].mxu0 %v26011_v9  ;;  %1052 = vmatmul.mubr.bf16.vlgmr.msra.gmra.mrb[16].mxu1 %v26011_v9  ;;  %v26171_v9 = vsub.s32 3, %v25973_v30 }
  0xb8   :  { %19502 = vmatprep.mubr.msk.bf16.mxu0 %vm149_vm3, %v26051_v41  ;;  %19506 = vmatprep.mubr.msk.bf16.mxu1 %vm149_vm3, %v26051_v41 }
  0xb9   :  { %v26175_v10 = vrot.slane %v26168_v8, %v26171_v9 }
  0xbf   :  { %991 = vmatmul.mubr.bf16.gmra.mrb[20].mxu0 %v26053_v42  ;;  %1060 = vmatmul.mubr.bf16.gmra.mrb[20].mxu1 %v26053_v42 }
  0xc0   :  { %19503 = vmatprep.mubr.msk.bf16.mxu0 %vm149_vm3, %v26073_v50  ;;  %19507 = vmatprep.mubr.msk.bf16.mxu1 %vm149_vm3, %v26073_v50 }
  0xc7   :  { %1001 = vmatmul.mubr.bf16.gmra.mrb[24].mxu0 %v419_v56  ;;  %1068 = vmatmul.mubr.bf16.gmra.mrb[24].mxu1 %v419_v56 }
  0xc8   :  { %19504 = vmatprep.mubr.msk.bf16.mxu0 %vm149_vm3, %v429_v57  ;;  %19508 = vmatprep.mubr.msk.bf16.mxu1 %vm149_vm3, %v429_v57  ;;  %vm26980_vm3 = vmor %vm3068_vm2, %vm2212_vm11 }
  0xcf   :  { %1011 = vmatmul.mubr.bf16.gmra.mrb[28].mxu0 %v26082_v53  ;;  %1076 = vmatmul.mubr.bf16.gmra.mrb[28].mxu1 %v26082_v53 }
 0x162   :  { %v26177_v11 = vpop.f32.mrb[0].mxu0  ;;  %v26179_v12 = vpop.f32.mrb[0].mxu1 }
 0x163   :  { %v26181_v13 = vpop.f32.mrb[1].mxu0  ;;  %v913_v14 = vpop.f32.mrb[1].mxu1 }
 0x164   :  { %v26184_v15 = vadd.f32 %v913_v14, %v26175_v10  ;;  %v26186_v16 = vpop.f32.mrb[2].mxu0  ;;  %v26188_v17 = vpop.f32.mrb[2].mxu1  ;;  %v26295_v14 = vrot.slane %v26168_v8, %v26287_v3 }
 0x165   :  { %v26190_v18 = vpop.f32.mrb[3].mxu0  ;;  %v917_v19 = vpop.f32.mrb[3].mxu1 }
 0x166   :  { %v33595_v20 = vmax.f32 %v26184_v15, 0.0  ;;  %v26194_v21 = vadd.f32 %v917_v19, %v26175_v10  ;;  %v26299_v19 = vrot.slane %v26168_v8, %v26290_v4 }
 0x168   :  { %1160 = vrot.lane.b32.xlu0 %v33595_v20, %s25735_s21  ;;  %v33594_v22 = vmax.f32 %v26194_v21, 0.0 }
 0x16c   :  { %1168 = vrot.lane.b32.xlu0 %v33594_v22, %s25735_s21  ;;  %v26203_v24 = vpop.f32.mrb[4].mxu0  ;;  %v26205_v25 = vpop.f32.mrb[4].mxu1 }
 0x16d   :  { %v26207_v26 = vpop.f32.mrb[5].mxu0  ;;  %v923_v27 = vpop.f32.mrb[5].mxu1 }
 0x16e   :  { %v26210_v28 = vadd.f32 %v923_v27, %v26175_v10  ;;  %v26212_v29 = vpop.f32.mrb[6].mxu0  ;;  %v26214_v31 = vpop.f32.mrb[6].mxu1  ;;  %v26304_v27 = vrot.slane %v26168_v8, %v33590_v5 }
 0x16f   :  { %v26216_v32 = vpop.f32.mrb[7].mxu0  ;;  %v927_v33 = vpop.f32.mrb[7].mxu1 }
 0x170   :  { %v33593_v34 = vmax.f32 %v26210_v28, 0.0  ;;  %v26220_v35 = vadd.f32 %v927_v33, %v26175_v10 }
 0x172   :  { %1176 = vrot.lane.b32.xlu0 %v33593_v34, %s25735_s21  ;;  %v33592_v40 = vmax.f32 %v26220_v35, 0.0 }
 0x174   :  { %v26235_v41 = vpop.f32.mrb[8].mxu0  ;;  %v26237_v42 = vpop.f32.mrb[8].mxu1 }
 0x175   :  { %v26247_v0 = vpop.f32.mrb[9].mxu0  ;;  %v933_v45 = vpop.f32.mrb[9].mxu1 }
 0x176   :  { %v26254_v47 = vadd.f32 %v933_v45, %v26175_v10  ;;  %1184 = vrot.lane.b32.xlu0 %v33592_v40, %s25735_s21  ;;  %v864_v48 = vpop.f32.mrb[10].mxu0  ;;  %v935_v49 = vpop.f32.mrb[10].mxu1 }
 0x177   :  { %v26260_v50 = vadd.f32 %v864_v48, %v26241_v43  ;;  %v26263_v51 = vadd.f32 %v935_v49, %v26245_v44  ;;  %v866_v52 = vpop.f32.mrb[11].mxu0  ;;  %v26265_v53 = vpop.f32.mrb[11].mxu1 }
 0x178   :  { %v33591_v1 = vmax.f32 %v26254_v47, 0.0  ;;  %v26269_v54 = vadd.f32 %v866_v52, %v26251_v46 }
 0x17a   :  { %1192 = vrot.lane.b32.xlu0 %v33591_v1, %s25735_s21 }
 0x17c   :  { %v870_v55 = vpop.f32.mrb[12].mxu0  ;;  %v941_v56 = vpop.f32.mrb[12].mxu1 }
 0x17d   :  { %v26275_v57 = vadd.f32 %v870_v55, %v26241_v43  ;;  %v26278_v58 = vadd.f32 %v941_v56, %v26245_v44  ;;  %v872_v59 = vpop.f32.mrb[13].mxu0  ;;  %v943_v60 = vpop.f32.mrb[13].mxu1 }
 0x17e   :  { %v26281_v61 = vadd.f32 %v872_v59, %v26251_v46  ;;  %v26284_v6 = vadd.f32 %v943_v60, %v26175_v10  ;;  %v874_v7 = vpop.f32.mrb[14].mxu0  ;;  %v945_v62 = vpop.f32.mrb[14].mxu1 }
 0x17f   :  { %v875_v63 = vpop.f32.mrb[15].mxu0  ;;  %v946_v2 = vpop.f32.mrb[15].mxu1 }
 0x18a   :  { %v982_v33 = vpop.f32.mrb[16].mxu0  ;;  %v1053_v45 = vpop.f32.mrb[16].mxu1 }
 0x18b   :  { %v983_v48 = vadd.f32 %v982_v33, %v26295_v14  ;;  %v984_v49 = vpop.f32.mrb[17].mxu0  ;;  %v1055_v52 = vpop.f32.mrb[17].mxu1  ;;  %v1054_v55 = vadd.f32 %v1053_v45, %v26299_v19 }
 0x18c   :  { %v985_v56 = vadd.f32 %v984_v49, %v26304_v27  ;;  %v986_v59 = vpop.f32.mrb[18].mxu0  ;;  %v1056_v60 = vpop.f32.mrb[18].mxu1 }
 0x18d   :  { %v1087_v7 = vmax.f32 %v983_v48, 0.0  ;;  %v988_v62 = vpop.f32.mrb[19].mxu0  ;;  %v1058_v63 = vpop.f32.mrb[19].mxu1  ;;  %v1089_v8 = vmax.f32 %v1054_v55, 0.0  ;;  %v987_v33 = vadd.f32 %v986_v59, %v26295_v14  ;;  %v1057_v55 = vadd.f32 %v1056_v60, %v26299_v19 }
 0x18e   :  { %v1088_v2 = vmax.f32 %v985_v56, 0.0  ;;  %v989_v23 = vadd.f32 %v988_v62, %v26304_v27 }
 0x18f   :  { %1162 = vrot.lane.b32.xlu1 %v1087_v7, %s25735_s21  ;;  %v1094_v62 = vmax.f32 %v987_v33, 0.0 }
 0x190   :  { %v1095_v5 = vmax.f32 %v989_v23, 0.0  ;;  %1164 = vrot.lane.b32.xlu0 %v1088_v2, %s25735_s21 }
 0x192   :  { %v992_v52 = vpop.f32.mrb[20].mxu0  ;;  %v1061_v45 = vpop.f32.mrb[20].mxu1 }
 0x193   :  { %v994_v1 = vpop.f32.mrb[21].mxu0  ;;  %v1063_v49 = vpop.f32.mrb[21].mxu1  ;;  %1166 = vrot.lane.b32.xlu1 %v1089_v8, %s25735_s21  ;;  %v993_v8 = vadd.f32 %v992_v52, %v26295_v14  ;;  %v26332_v52 = vadd.f32 %v26265_v53, %v26175_v10  ;;  %v22959_v10 = vld [vmem:[%s33580_s3 + $0x65c] ss:$28 sps:$4 sm:$0xff]  }
 0x194   :  { %v995_v48 = vadd.f32 %v994_v1, %v26304_v27  ;;  %v996_v63 = vpop.f32.mrb[22].mxu0  ;;  %v1064_v56 = vpop.f32.mrb[22].mxu1  ;;  %1172 = vrot.lane.b32.xlu0 %v1095_v5, %s25735_s21  ;;  %v1096_v49 = vmax.f32 %v1057_v55, 0.0  ;;  %v22956_v5 = vld [vmem:[%s33580_s3 + $0x624] ss:$28 sps:$4 sm:$0xff]  }
 0x195   :  { %v998_v23 = vpop.f32.mrb[23].mxu0  ;;  %v1066_v7 = vpop.f32.mrb[23].mxu1  ;;  %4503 = vmatprep.subr.bf16.mxu0 %v22956_v5 }
 0x196   :  { %v1102_v2 = vmax.f32 %v995_v48, 0.0  ;;  %v999_v59 = vadd.f32 %v998_v23, %v26304_v27  ;;  %v22954_v48 = vld [vmem:[%s33580_s3 + $0x620] ss:$28 sps:$4 sm:$0xff]   ;;  %v1101_v7 = vmax.f32 %v993_v8, 0.0  ;;  %v22957_v8 = vld [vmem:[%s33580_s3 + $0x658] ss:$28 sps:$4 sm:$0xff]  }
 0x197   :  { %1170 = vrot.lane.b32.xlu1 %v1094_v62, %s25735_s21  ;;  %4504 = vmatpush1.bf16.msra.mxu0 %v22954_v48 }
 0x198   :  { %1180 = vrot.lane.b32.xlu0 %v1102_v2, %s25735_s21  ;;  %v1109_v1 = vmax.f32 %v999_v59, 0.0  ;;  %v1062_v2 = vadd.f32 %v1061_v45, %v26299_v19  ;;  %4505 = vmatprep.subr.bf16.mxu0 %v22959_v10  ;;  %v22960_v10 = vld [vmem:[%s33580_s3 + $0x690] ss:$28 sps:$4 sm:$0xff]  }
 0x19a   :  { %v1002_v40 = vpop.f32.mrb[24].mxu0  ;;  %v1069_v34 = vpop.f32.mrb[24].mxu1  ;;  %v1103_v22 = vmax.f32 %v1062_v2, 0.0 }
 0x19b   :  { %v1004_v60 = vpop.f32.mrb[25].mxu0  ;;  %v1071_v33 = vpop.f32.mrb[25].mxu1  ;;  %1174 = vrot.lane.b32.xlu1 %v1096_v49, %s25735_s21  ;;  %4506 = vmatpush1.bf16.msra.mxu0 %v22957_v8 }
 0x19c   :  { %v1005_v62 = vadd.f32 %v1004_v60, %v26304_v27  ;;  %v1006_v55 = vpop.f32.mrb[26].mxu0  ;;  %v1072_v23 = vpop.f32.mrb[26].mxu1  ;;  %1188 = vrot.lane.b32.xlu0 %v1109_v1, %s25735_s21  ;;  %v33597_v60 = vmax.f32 %v26332_v52, 0.0  ;;  %v997_v1 = vadd.f32 %v996_v63, %v26295_v14 }
 0x19d   :  { %v1008_v59 = vpop.f32.mrb[27].mxu0  ;;  %v1074_v49 = vpop.f32.mrb[27].mxu1 }
 0x19e   :  { %v1116_v33 = vmax.f32 %v1005_v62, 0.0  ;;  %v1108_v63 = vmax.f32 %v997_v1, 0.0  ;;  %v1003_v1 = vadd.f32 %v1002_v40, %v26295_v14  ;;  %v22965_v40 = vld [vmem:[%s33580_s3 + $0x6cc] ss:$28 sps:$4 sm:$0xff]  }
 0x19f   :  { %1178 = vrot.lane.b32.xlu1 %v1101_v7, %s25735_s21  ;;  %v1065_v7 = vadd.f32 %v1064_v56, %v26299_v19 }
 0x1a0   :  { %1196 = vrot.lane.b32.xlu0 %v1116_v33, %s25735_s21  ;;  %v33596_v33 = vmax.f32 %v26284_v6, 0.0 }
 0x1a1   :  { %v1110_v56 = vmax.f32 %v1065_v7, 0.0  ;;  %v1007_v7 = vadd.f32 %v1006_v55, %v26295_v14  ;;  %v22971_v55 = vld [vmem:[%s33580_s3 + $0x9a4] ss:$28 sps:$4 sm:$0xff]  }
 0x1a2   :  { %v1012_v5 = vpop.f32.mrb[28].mxu0  ;;  %v1077_v20 = vpop.f32.mrb[28].mxu1  ;;  %4556 = vmatprep.subr.bf16.mxu1 %v22971_v55  ;;  %v22990_v55 = vld [vmem:[%s33580_s3 + $0x7e0] ss:$28 sps:$4 sm:$0xff]  }
 0x1a3   :  { %v1014_v53 = vpop.f32.mrb[29].mxu0  ;;  %v1079_v45 = vpop.f32.mrb[29].mxu1  ;;  %1182 = vrot.lane.b32.xlu1 %v1103_v22, %s25735_s21  ;;  %v1009_v22 = vadd.f32 %v1008_v59, %v26304_v27 }
 0x1a4   :  { %v1016_v48 = vpop.f32.mrb[30].mxu0  ;;  %v1080_v62 = vpop.f32.mrb[30].mxu1  ;;  %1200 = vrot.lane.b32.xlu0 %v33597_v60, %s25735_s21  ;;  %v22962_v45 = vld [vmem:[%s33580_s3 + $0x694] ss:$28 sps:$4 sm:$0xff]   ;;  %v1015_v8 = vadd.f32 %v1014_v53, %v26304_v27  ;;  %v22963_v27 = vld [vmem:[%s33580_s3 + $0x6c8] ss:$28 sps:$4 sm:$0xff]   ;;  %v1073_v53 = vadd.f32 %v1072_v23, %v26299_v19 }
 0x1a5   :  { %v1017_v2 = vpop.f32.mrb[31].mxu0  ;;  %v1081_v49 = vpop.f32.mrb[31].mxu1  ;;  %4507 = vmatprep.subr.bf16.mxu0 %v22962_v45  ;;  %v1123_v59 = vmax.f32 %v1009_v22, 0.0  ;;  %v1115_v48 = vmax.f32 %v1003_v1, 0.0  ;;  %v1070_v62 = vadd.f32 %v1069_v34, %v26299_v19  ;;  %v1122_v34 = vmax.f32 %v1007_v7, 0.0 }
 0x1a6   :  { %4508 = vmatpush1.bf16.msra.mxu0 %v22960_v10  ;;  %v22968_v49 = vld [vmem:[%s33580_s3 + $0x704] ss:$28 sps:$4 sm:$0xff]   ;;  %v1124_v23 = vmax.f32 %v1073_v53, 0.0  ;;  %v1013_v10 = vadd.f32 %v1012_v5, %v26295_v14  ;;  %v1078_v1 = vadd.f32 %v1077_v20, %v26299_v19  ;;  %v22972_v14 = vld [vmem:[%s33580_s3 + $0x738] ss:$28 sps:$4 sm:$0xff]  }
 0x1a7   :  { %1186 = vrot.lane.b32.xlu1 %v1108_v63, %s25735_s21  ;;  %v1130_v63 = vmax.f32 %v1015_v8, 0.0  ;;  %v1117_v2 = vmax.f32 %v1070_v62, 0.0  ;;  %4509 = vmatprep.subr.bf16.mxu0 %v22965_v40  ;;  %v22966_v22 = vld [vmem:[%s33580_s3 + $0x700] ss:$28 sps:$4 sm:$0xff]   ;;  %v22975_v5 = vld [vmem:[%s33580_s3 + $0x9d8] ss:$28 sps:$4 sm:$0xff]  }
 0x1a8   :  { %1208 = vrot.lane.b32.xlu0 %v33596_v33, %s25735_s21  ;;  %v22969_v45 = vld [vmem:[%s33580_s3 + $0x9a0] ss:$28 sps:$4 sm:$0xff]   ;;  %v22980_v20 = vld [vmem:[%s33580_s3 + $0x774] ss:$28 sps:$4 sm:$0xff]   ;;  %v22986_v7 = vld [vmem:[%s33580_s3 + $0x7ac] ss:$28 sps:$4 sm:$0xff]  }
 0x1a9   :  { %4557 = vmatpush1.bf16.msra.mxu1 %v22969_v45  ;;  %v22977_v8 = vld [vmem:[%s33580_s3 + $0x9dc] ss:$28 sps:$4 sm:$0xff]   ;;  %v22983_v19 = vld [vmem:[%s33580_s3 + $0xa14] ss:$28 sps:$4 sm:$0xff]   ;;  %v22989_v40 = vld [vmem:[%s33580_s3 + $0xa4c] ss:$28 sps:$4 sm:$0xff]  }
 0x1aa   :  { %4510 = vmatpush1.bf16.msra.mxu0 %v22963_v27  ;;  %4558 = vmatprep.subr.bf16.mxu1 %v22977_v8  ;;  %v22978_v62 = vld [vmem:[%s33580_s3 + $0x770] ss:$28 sps:$4 sm:$0xff]   ;;  %v22984_v27 = vld [vmem:[%s33580_s3 + $0x7a8] ss:$28 sps:$4 sm:$0xff]   ;;  %v22998_v45 = vld [vmem:[%s33580_s3 + $0x81c] ss:$28 sps:$4 sm:$0xff]  }
 0x1ab   :  { %1190 = vrot.lane.b32.xlu1 %v1110_v56, %s25735_s21  ;;  %4511 = vmatprep.subr.bf16.mxu0 %v22968_v49  ;;  %v1129_v56 = vmax.f32 %v1013_v10, 0.0  ;;  %v22992_v53 = vld [vmem:[%s33580_s3 + $0x7e4] ss:$28 sps:$4 sm:$0xff]   ;;  %v22996_v10 = vld [vmem:[%s33580_s3 + $0x818] ss:$28 sps:$4 sm:$0xff]  }
 0x1ac   :  { %1204 = vrot.lane.b32.xlu0 %v1123_v59, %s25735_s21  ;;  %v22974_v59 = vld [vmem:[%s33580_s3 + $0x73c] ss:$28 sps:$4 sm:$0xff]   ;;  %v22995_v49 = vld [vmem:[%s33580_s3 + $0xa84] ss:$28 sps:$4 sm:$0xff]   ;;  %v23002_v8 = vld [vmem:[%s33580_s3 + $0x850] ss:$28 sps:$4 sm:$0xff]  }
 0x1ad   :  { %4559 = vmatpush1.bf16.msra.mxu1 %v22975_v5  ;;  %v23010_v5 = vld [vmem:[%s33580_s3 + $0x88c] ss:$28 sps:$4 sm:$0xff]  }
 0x1ae   :  { %4512 = vmatpush1.bf16.msra.mxu0 %v22966_v22  ;;  %4560 = vmatprep.subr.bf16.mxu1 %v22983_v19  ;;  %v22993_v22 = vld [vmem:[%s33580_s3 + $0xa80] ss:$28 sps:$4 sm:$0xff]   ;;  %v23011_v19 = vld [vmem:[%s33580_s3 + $0xb28] ss:$28 sps:$4 sm:$0xff]  }
 0x1af   :  { %1194 = vrot.lane.b32.xlu1 %v1115_v48, %s25735_s21  ;;  %v1131_v48 = vmax.f32 %v1078_v1, 0.0  ;;  %4513 = vmatprep.subr.bf16.mxu0 %v22974_v59  ;;  %v23004_v1 = vld [vmem:[%s33580_s3 + $0x854] ss:$28 sps:$4 sm:$0xff]  }
 0x1b0   :  { %1212 = vrot.lane.b32.xlu0 %v1130_v63, %s25735_s21  ;;  %v22981_v63 = vld [vmem:[%s33580_s3 + $0xa10] ss:$28 sps:$4 sm:$0xff]  }
 0x1b1   :  { %4561 = vmatpush1.bf16.msra.mxu1 %v22981_v63  ;;  %v23007_v59 = vld [vmem:[%s33580_s3 + $0xaf4] ss:$28 sps:$4 sm:$0xff]   ;;  %v23016_v63 = vld [vmem:[%s33580_s3 + $0x8c4] ss:$28 sps:$4 sm:$0xff]  }
 0x1b2   :  { %4514 = vmatpush1.bf16.msra.mxu0 %v22972_v14  ;;  %4562 = vmatprep.subr.bf16.mxu1 %v22989_v40  ;;  %v23005_v14 = vld [vmem:[%s33580_s3 + $0xaf0] ss:$28 sps:$4 sm:$0xff]   ;;  %v23017_v40 = vld [vmem:[%s33580_s3 + $0xb60] ss:$28 sps:$4 sm:$0xff]  }
 0x1b3   :  { %1198 = vrot.lane.b32.xlu1 %v1117_v2, %s25735_s21  ;;  %4515 = vmatprep.subr.bf16.mxu0 %v22980_v20  ;;  %v25738_v2 = vmov 0.0   ;;  %v23008_v20 = vld [vmem:[%s33580_s3 + $0x888] ss:$28 sps:$4 sm:$0xff]  }
 0x1b4   :  { %1713 = vst [vmem:[#allocation2] sm:$0x3] %v25738_v2  ;;  %1714 = vst [vmem:[#allocation2 + $0x8] sm:$0x3] %v25738_v2 }
 0x1b5   :  { %1715 = vst [vmem:[#allocation2 + $0x10] sm:$0x3] %v25738_v2  ;;  %1717 = vst.msk [vmem:[#allocation2 + $0x18] sm:$0x3] %vm1716_vm7, %v25738_v2 }
 0x1b6   :  { %4516 = vmatpush1.bf16.msra.mxu0 %v22978_v62  ;;  %1718 = vst [vmem:[#allocation2 + $0x60] sm:$0x3] %v25738_v2  ;;  %1719 = vst [vmem:[#allocation2 + $0x68] sm:$0x3] %v25738_v2 }
 0x1b7   :  { %1202 = vrot.lane.b32.xlu1 %v1122_v34, %s25735_s21  ;;  %1720 = vst [vmem:[#allocation2 + $0x70] sm:$0x3] %v25738_v2  ;;  %1721 = vst.msk [vmem:[#allocation2 + $0x78] sm:$0x3] %vm1716_vm7, %v25738_v2  ;;  %v22987_v34 = vld [vmem:[%s33580_s3 + $0xa48] ss:$28 sps:$4 sm:$0xff]   ;;  %4517 = vmatprep.subr.bf16.mxu0 %v22986_v7 }
 0x1b8   :  { %1722 = vst [vmem:[#allocation2 + $0x40] sm:$0x3] %v25738_v2  ;;  %1723 = vst [vmem:[#allocation2 + $0x48] sm:$0x3] %v25738_v2  ;;  %4563 = vmatpush1.bf16.msra.mxu1 %v22987_v34  ;;  %v23014_v7 = vld [vmem:[%s33580_s3 + $0x8c0] ss:$28 sps:$4 sm:$0xff]  }
 0x1b9   :  { %1724 = vst [vmem:[#allocation2 + $0x50] sm:$0x3] %v25738_v2  ;;  %1725 = vst.msk [vmem:[#allocation2 + $0x58] sm:$0x3] %vm1716_vm7, %v25738_v2  ;;  %4564 = vmatprep.subr.bf16.mxu1 %v22995_v49  ;;  %v23022_v34 = vld [vmem:[%s33580_s3 + $0x8fc] ss:$28 sps:$4 sm:$0xff]  }
 0x1ba   :  { %1726 = vst [vmem:[#allocation2 + $0xa0] sm:$0x3] %v25738_v2  ;;  %1727 = vst [vmem:[#allocation2 + $0xa8] sm:$0x3] %v25738_v2  ;;  %4518 = vmatpush1.bf16.msra.mxu0 %v22984_v27  ;;  %v23020_v49 = vld [vmem:[%s33580_s3 + $0x8f8] ss:$28 sps:$4 sm:$0xff]  }
 0x1bb   :  { %1206 = vrot.lane.b32.xlu1 %v1124_v23, %s25735_s21  ;;  %1728 = vst [vmem:[#allocation2 + $0xb0] sm:$0x3] %v25738_v2  ;;  %1729 = vst.msk [vmem:[#allocation2 + $0xb8] sm:$0x3] %vm1716_vm7, %v25738_v2  ;;  %4519 = vmatprep.subr.bf16.mxu0 %v22992_v53  ;;  %v23001_v23 = vld [vmem:[%s33580_s3 + $0xabc] ss:$28 sps:$4 sm:$0xff]  }
 0x1bc   :  { %4565 = vmatpush1.bf16.msra.mxu1 %v22993_v22  ;;  %v23019_v2 = vld [vmem:[%s33580_s3 + $0xb64] ss:$28 sps:$4 sm:$0xff]   ;;  %v23025_v53 = vld [vmem:[%s33580_s3 + $0xb9c] ss:$28 sps:$4 sm:$0xff]   ;;  %v23028_v22 = vld [vmem:[%s33580_s3 + $0x934] ss:$28 sps:$4 sm:$0xff]  }
 0x1bd   :  { %4566 = vmatprep.subr.bf16.mxu1 %v23001_v23  ;;  %v23026_v23 = vld [vmem:[%s33580_s3 + $0x930] ss:$28 sps:$4 sm:$0xff]  }
 0x1be   :  { %4520 = vmatpush1.bf16.msra.mxu0 %v22990_v55  ;;  %v23023_v55 = vld [vmem:[%s33580_s3 + $0xb98] ss:$28 sps:$4 sm:$0xff]  }
 0x1bf   :  { %1210 = vrot.lane.b32.xlu1 %v1129_v56, %s25735_s21  ;;  %v22999_v56 = vld [vmem:[%s33580_s3 + $0xab8] ss:$28 sps:$4 sm:$0xff]   ;;  %4521 = vmatprep.subr.bf16.mxu0 %v22998_v45 }
 0x1c0   :  { %4567 = vmatpush1.bf16.msra.mxu1 %v22999_v56  ;;  %v23031_v45 = vld [vmem:[%s33580_s3 + $0xbd4] ss:$28 sps:$4 sm:$0xff]   ;;  %v23032_v56 = vld [vmem:[%s33580_s3 + $0x968] ss:$28 sps:$4 sm:$0xff]  }
 0x1c1   :  { %4568 = vmatprep.subr.bf16.mxu1 %v23007_v59  ;;  %v23034_v59 = vld [vmem:[%s33580_s3 + $0x96c] ss:$28 sps:$4 sm:$0xff]  }
 0x1c2   :  { %4522 = vmatpush1.bf16.msra.mxu0 %v22996_v10  ;;  %v23029_v10 = vld [vmem:[%s33580_s3 + $0xbd0] ss:$28 sps:$4 sm:$0xff]  }
 0x1c3   :  { %1214 = vrot.lane.b32.xlu1 %v1131_v48, %s25735_s21  ;;  %4523 = vmatprep.subr.bf16.mxu0 %v23004_v1  ;;  %v23013_v48 = vld [vmem:[%s33580_s3 + $0xb2c] ss:$28 sps:$4 sm:$0xff]  }
 0x1c4   :  { %4569 = vmatpush1.bf16.msra.mxu1 %v23005_v14  ;;  %v23037_v14 = vld [vmem:[%s33580_s3 + $0xc0c] ss:$28 sps:$4 sm:$0xff]  }
 0x1c5   :  { %4570 = vmatprep.subr.bf16.mxu1 %v23013_v48  ;;  %v841_v48 = vadd.f32 %v26177_v11, %v26241_v43 }
 0x1c6   :  { %4524 = vmatpush1.bf16.msra.mxu0 %v23002_v8  ;;  %v23035_v8 = vld [vmem:[%s33580_s3 + $0xc08] ss:$28 sps:$4 sm:$0xff]  }
 0x1c7   :  { %4525 = vmatprep.subr.bf16.mxu0 %v23010_v5 }
 0x1c8   :  { %4571 = vmatpush1.bf16.msra.mxu1 %v23011_v19  ;;  %v843_v19 = vadd.f32 %v26181_v13, %v26251_v46  ;;  %v26560_v13 = vadd.f32 %v26205_v25, %v26245_v44 }
 0x1c9   :  { %4572 = vmatprep.subr.bf16.mxu1 %v23019_v2  ;;  %v26548_v2 = vadd.f32 %v26188_v17, %v26245_v44 }
 0x1ca   :  { %4526 = vmatpush1.bf16.msra.mxu0 %v23008_v20  ;;  %v912_v20 = vadd.f32 %v26179_v12, %v26245_v44  ;;  %v26556_v12 = vadd.f32 %v26203_v24, %v26241_v43  ;;  %v26572_v24 = vadd.f32 %v26212_v29, %v26241_v43  ;;  %v26589_v29 = vadd.f32 %v26235_v41, %v26241_v43 }
 0x1cb   :  { %4527 = vmatprep.subr.bf16.mxu0 %v23016_v63  ;;  %v845_v63 = vadd.f32 %v26186_v16, %v26241_v43  ;;  %v26564_v16 = vadd.f32 %v26207_v26, %v26251_v46  ;;  %v23059_v26 = vld [vmem:[%s33580_s3 + $0x634] ss:$28 sps:$4 sm:$0xff]  }
 0x1cc   :  { %4573 = vmatpush1.bf16.msra.mxu1 %v23017_v40  ;;  %v1085_v11 = vmax.f32 %v912_v20, 0.0 }
 0x1cd   :  { %4574 = vmatprep.subr.bf16.mxu1 %v23025_v53  ;;  %v1084_v53 = vmax.f32 %v843_v19, 0.0 }
 0x1ce   :  { %4528 = vmatpush1.bf16.msra.mxu0 %v23014_v7  ;;  %v847_v7 = vadd.f32 %v26190_v18, %v26251_v46  ;;  %v23056_v18 = vld [vmem:[%s33580_s3 + $0x62c] ss:$28 sps:$4 sm:$0xff]  }
 0x1cf   :  { %4529 = vmatprep.subr.bf16.mxu0 %v23022_v34  ;;  %v1083_v34 = vmax.f32 %v841_v48, 0.0 }
 0x1d0   :  { %4575 = vmatpush1.bf16.msra.mxu1 %v23023_v55  ;;  %v1092_v55 = vmax.f32 %v26548_v2, 0.0 }
 0x1d1   :  { %4576 = vmatprep.subr.bf16.mxu1 %v23031_v45 }
 0x1d2   :  { %4530 = vmatpush1.bf16.msra.mxu0 %v23020_v49  ;;  %v1090_v49 = vmax.f32 %v845_v63, 0.0 }
 0x1d3   :  { %4531 = vmatprep.subr.bf16.mxu0 %v23028_v22  ;;  %v1091_v22 = vmax.f32 %v847_v7, 0.0 }
 0x1d4   :  { %4577 = vmatpush1.bf16.msra.mxu1 %v23029_v10  ;;  %v26584_v10 = vadd.f32 %v26216_v32, %v26251_v46 }
 0x1d5   :  { %4578 = vmatprep.subr.bf16.mxu1 %v23037_v14 }
 0x1d6   :  { %4532 = vmatpush1.bf16.msra.mxu0 %v23026_v23  ;;  %v26580_v23 = vadd.f32 %v26214_v31, %v26245_v44  ;;  %v26597_v31 = vadd.f32 %v26247_v0, %v26251_v46 }
 0x1d7   :  { %4533 = vmatprep.subr.bf16.mxu0 %v23034_v59 }
 0x1d8   :  { %4579 = vmatpush1.bf16.msra.mxu1 %v23035_v8 }
 0x1d9   :  { %4609 = vmatprep.subr.bf16.mxu1 %v23056_v18 }
 0x1da   :  { %v1161_v62 = vpop.permute.xlu0 %1160  ;;  %4534 = vmatpush1.bf16.msra.mxu0 %v23032_v56 }
 0x1db   :  { %4715 = vmatprep.subr.bf16.mxu0 %v23059_v26 }
 0x1de   :  { %v26496_v27 = vpop.permute.xlu0 %1168 }
 0x1e4   :  { %v26525_v1 = vpop.permute.xlu0 %1176 }
 0x1e8   :  { %v26536_v5 = vpop.permute.xlu0 %1184 }
 0x1ec   :  { %v26552_v40 = vpop.permute.xlu0 %1192 }
 0x201   :  { %v1163_v17 = vpop.permute.xlu1 %1162 }
 0x202   :  { %v1216_v45 = vsel %vm158_vm5, %v1161_v62, %v1163_v17  ;;  %v1165_v25 = vpop.permute.xlu0 %1164  ;;  %v26593_v62 = vadd.f32 %v26237_v42, %v26245_v44  ;;  %v33603_v42 = vmax.f32 %v26184_v15, 0.0 }
 0x203   :  { %v1265_v56 = vmax.f32 %v1083_v34, %v1216_v45  ;;  %v1217_v59 = vsel %vm158_vm5, %v1163_v17, %v1165_v25 }
 0x204   :  { %v1266_v8 = vmax.f32 %v1084_v53, %v1217_v59 }
 0x205   :  { %v1167_v20 = vpop.permute.xlu1 %1166 }
 0x206   :  { %v1321_v19 = vcombine.low %v1265_v56, %v1266_v8  ;;  %v1322_v41 = vcombine.high %v1265_v56, %v1266_v8  ;;  %v1218_v43 = vsel %vm158_vm5, %v1165_v25, %v1167_v20  ;;  %v1268_v44 = vmax.f32 %v33603_v42, %v1167_v20  ;;  %v1173_v56 = vpop.permute.xlu0 %1172 }
 0x207   :  { %v1267_v7 = vmax.f32 %v1085_v11, %v1218_v43 }
 0x208   :  { %v1331_v8 = vrot.slane %v1321_v19, %v25979_v36  ;;  %v1338_v11 = vrot.slane %v1322_v41, %v25979_v36 }
 0x209   :  { %v1323_v25 = vcombine.low %v1267_v7, %v1268_v44  ;;  %v1324_v26 = vcombine.high %v1267_v7, %v1268_v44  ;;  %v1171_v59 = vpop.permute.xlu1 %1170 }
 0x20a   :  { %v1219_v20 = vsel %vm158_vm5, %v26496_v27, %v1171_v59  ;;  %v1220_v43 = vsel %vm158_vm5, %v1171_v59, %v1173_v56 }
 0x20b   :  { %v1345_v42 = vrot.slane %v1323_v25, %v25979_v36  ;;  %v1352_v33 = vrot.slane %v1324_v26, %v25979_v36  ;;  %v1269_v45 = vmax.f32 %v1090_v49, %v1219_v20  ;;  %v1270_v60 = vmax.f32 %v1091_v22, %v1220_v43 }
 0x20c   :  { %v33604_v49 = vmax.f32 %v26194_v21, 0.0 }
 0x20d   :  { %v1353_v19 = vcombine.low %v1331_v8, %v1345_v42  ;;  %v1354_v41 = vcombine.high %v1331_v8, %v1345_v42  ;;  %v1355_v18 = vcombine.low %v1338_v11, %v1352_v33  ;;  %v1356_v27 = vcombine.high %v1338_v11, %v1352_v33  ;;  %v1175_v53 = vpop.permute.xlu1 %1174 }
 0x20e   :  { %v1357_v59 = vcombine.low %v1269_v45, %v1270_v60  ;;  %v1358_v17 = vcombine.high %v1269_v45, %v1270_v60  ;;  %v1221_v25 = vsel %vm158_vm5, %v1173_v56, %v1175_v53  ;;  %v1272_v22 = vmax.f32 %v33604_v49, %v1175_v53  ;;  %v1181_v56 = vpop.permute.xlu0 %1180 }
 0x20f   :  { %v19509_v26 = vrot.slane %v1353_v19, 9  ;;  %v19510_v20 = vrot.slane %v1354_v41, 9  ;;  %v19511_v43 = vrot.slane %v1355_v18, 9  ;;  %v19512_v44 = vrot.slane %v1356_v27, 9 }
 0x210   :  { %v1367_v7 = vrot.slane %v1357_v59, %v25979_v36  ;;  %v1374_v15 = vrot.slane %v1358_v17, %v25979_v36  ;;  %v1271_v33 = vmax.f32 %v1092_v55, %v1221_v25 }
 0x211   :  { %v1685_v8 = vmax.f32 %v1353_v19, %v19509_v26  ;;  %v1686_v11 = vmax.f32 %v1354_v41, %v19510_v20  ;;  %v1687_v60 = vmax.f32 %v1355_v18, %v19511_v43  ;;  %v1688_v45 = vmax.f32 %v1356_v27, %v19512_v44  ;;  %v1179_v42 = vpop.permute.xlu1 %1178 }
 0x212   :  { %v1359_v21 = vcombine.low %v1271_v33, %v1272_v22  ;;  %v1360_v53 = vcombine.high %v1271_v33, %v1272_v22  ;;  %v1222_v49 = vsel %vm158_vm5, %v26525_v1, %v1179_v42  ;;  %v1223_v34 = vsel %vm158_vm5, %v1179_v42, %v1181_v56 }
 0x213   :  { %v1761_v59 = vrot.slane %v1685_v8, %v26223_v37  ;;  %v1765_v17 = vrot.slane %v1685_v8, %v26226_v38  ;;  %v1769_v2 = vrot.slane %v1685_v8, %v26287_v3  ;;  %v1773_v55 = vrot.slane %v1685_v8, %v26290_v4 }
 0x214   :  { %v1777_v18 = vrot.slane %v1686_v11, %v26223_v37  ;;  %v1781_v44 = vrot.slane %v1686_v11, %v26226_v38  ;;  %v1785_v19 = vrot.slane %v1686_v11, %v26287_v3  ;;  %v1789_v41 = vrot.slane %v1686_v11, %v26290_v4 }
 0x215   :  { %v1793_v1 = vrot.slane %v1687_v60, %v26223_v37  ;;  %v1797_v27 = vrot.slane %v1687_v60, %v26226_v38  ;;  %v1801_v25 = vrot.slane %v1687_v60, %v26287_v3  ;;  %v1805_v22 = vrot.slane %v1687_v60, %v26290_v4  ;;  %v1183_v26 = vpop.permute.xlu1 %1182 }
 0x216   :  { %v1809_v20 = vrot.slane %v1688_v45, %v26223_v37  ;;  %v1813_v43 = vrot.slane %v1688_v45, %v26226_v38  ;;  %v1817_v33 = vrot.slane %v1688_v45, %v26287_v3  ;;  %v1821_v8 = vrot.slane %v1688_v45, %v26290_v4 }
 0x217   :  { %v2207_v42 = vsel %vm2206_vm8, %v1777_v18, %v1761_v59  ;;  %v2216_v11 = vsel %vm2206_vm8, %v1781_v44, %v1765_v17  ;;  %v2221_v0 = vsel %vm2206_vm8, %v1785_v19, %v1769_v2  ;;  %v2226_v46 = vsel %vm2206_vm8, %v1789_v41, %v1773_v55  ;;  %v1189_v44 = vpop.permute.xlu0 %1188 }
 0x218   :  { %v2209_v63 = vsel %vm2208_vm9, %v1793_v1, %v2207_v42  ;;  %v2217_v60 = vsel %vm2208_vm9, %v1797_v27, %v2216_v11  ;;  %v2222_v14 = vsel %vm2208_vm9, %v1801_v25, %v2221_v0  ;;  %v2227_v48 = vsel %vm2208_vm9, %v1805_v22, %v2226_v46 }
 0x219   :  { %v2211_v32 = vsel %vm2210_vm10, %v1809_v20, %v2209_v63  ;;  %v2218_v45 = vsel %vm2210_vm10, %v1813_v43, %v2217_v60  ;;  %v2223_v59 = vsel %vm2210_vm10, %v1817_v33, %v2222_v14  ;;  %v2228_v17 = vsel %vm2210_vm10, %v1821_v8, %v2227_v48  ;;  %v1187_v18 = vpop.permute.xlu1 %1186 }
 0x21a   :  { %v1381_v2 = vrot.slane %v1359_v21, %v25979_v36  ;;  %v1388_v55 = vrot.slane %v1360_v53, %v25979_v36  ;;  %v33605_v19 = vmax.f32 %v26556_v12, 0.0  ;;  %v33606_v0 = vmax.f32 %v26564_v16, 0.0 }
 0x21b   :  { %v1224_v63 = vsel %vm158_vm5, %v1181_v56, %v1183_v26  ;;  %v33607_v1 = vmax.f32 %v26210_v28, 0.0  ;;  %v1225_v48 = vsel %vm158_vm5, %v26536_v5, %v1187_v18  ;;  %v1226_v21 = vsel %vm158_vm5, %v1187_v18, %v1189_v44 }
 0x21c   :  { %v1273_v41 = vmax.f32 %v33605_v19, %v1222_v49  ;;  %v1274_v46 = vmax.f32 %v33606_v0, %v1223_v34  ;;  %v1389_v53 = vcombine.low %v1367_v7, %v1381_v2  ;;  %v1390_v27 = vcombine.high %v1367_v7, %v1381_v2 }
 0x21d   :  { %v1276_v14 = vmax.f32 %v33607_v1, %v1183_v26  ;;  %v1391_v25 = vcombine.low %v1374_v15, %v1388_v55  ;;  %v1392_v12 = vcombine.high %v1374_v15, %v1388_v55  ;;  %v33608_v49 = vmax.f32 %v26560_v13, 0.0  ;;  %v1191_v33 = vpop.permute.xlu1 %1190 }
 0x21e   :  { %v1393_v16 = vcombine.low %v1273_v41, %v1274_v46  ;;  %v1394_v34 = vcombine.high %v1273_v41, %v1274_v46  ;;  %v33609_v28 = vmax.f32 %v26572_v24, 0.0  ;;  %v19513_v26 = vrot.slane %v1389_v53, 9 }
 0x21f   :  { %v1275_v56 = vmax.f32 %v33608_v49, %v1224_v63  ;;  %v19514_v5 = vrot.slane %v1390_v27, 9  ;;  %v19515_v20 = vrot.slane %v1391_v25, 9  ;;  %v19516_v43 = vrot.slane %v1392_v12, 9 }
 0x220   :  { %v26678_v22 = vmax.f32 %v33609_v28, %v1225_v48  ;;  %v1403_v7 = vrot.slane %v1393_v16, %v25979_v36  ;;  %v1410_v15 = vrot.slane %v1394_v34, %v25979_v36  ;;  %v1689_v11 = vmax.f32 %v1389_v53, %v19513_v26 }
 0x221   :  { %v1395_v8 = vcombine.low %v1275_v56, %v1276_v14  ;;  %v1396_v42 = vcombine.high %v1275_v56, %v1276_v14  ;;  %v1690_v60 = vmax.f32 %v1390_v27, %v19514_v5  ;;  %v1691_v18 = vmax.f32 %v1391_v25, %v19515_v20 }
 0x222   :  { %v1692_v13 = vmax.f32 %v1392_v12, %v19516_v43  ;;  %v33610_v55 = vmax.f32 %v26584_v10, 0.0  ;;  %v1227_v41 = vsel %vm158_vm5, %v1189_v44, %v1191_v33  ;;  %v1825_v0 = vrot.slane %v1689_v11, %v26223_v37 }
 0x223   :  { %v1417_v2 = vrot.slane %v1395_v8, %v25979_v36  ;;  %v1424_v24 = vrot.slane %v1396_v42, %v25979_v36  ;;  %v1829_v46 = vrot.slane %v1689_v11, %v26226_v38  ;;  %v1833_v63 = vrot.slane %v1689_v11, %v26287_v3 }
 0x224   :  { %v1278_v19 = vmax.f32 %v33610_v55, %v1226_v21  ;;  %v1837_v1 = vrot.slane %v1689_v11, %v26290_v4  ;;  %v1841_v14 = vrot.slane %v1690_v60, %v26223_v37  ;;  %v1845_v48 = vrot.slane %v1690_v60, %v26226_v38 }
 0x225   :  { %v1849_v53 = vrot.slane %v1690_v60, %v26287_v3  ;;  %v1853_v27 = vrot.slane %v1690_v60, %v26290_v4  ;;  %v1857_v10 = vrot.slane %v1691_v18, %v26223_v37  ;;  %v1861_v44 = vrot.slane %v1691_v18, %v26226_v38 }
 0x226   :  { %v1865_v21 = vrot.slane %v1691_v18, %v26287_v3  ;;  %v1869_v25 = vrot.slane %v1691_v18, %v26290_v4  ;;  %v1873_v12 = vrot.slane %v1692_v13, %v26223_v37  ;;  %v1877_v16 = vrot.slane %v1692_v13, %v26226_v38 }
 0x227   :  { %v1881_v34 = vrot.slane %v1692_v13, %v26287_v3  ;;  %v1885_v49 = vrot.slane %v1692_v13, %v26290_v4  ;;  %v2213_v56 = vsel %vm2212_vm11, %v1825_v0, %v2211_v32  ;;  %v2219_v28 = vsel %vm2212_vm11, %v1829_v46, %v2218_v45 }
 0x228   :  { %v2224_v26 = vsel %vm2212_vm11, %v1833_v63, %v2223_v59  ;;  %v2229_v5 = vsel %vm2212_vm11, %v1837_v1, %v2228_v17  ;;  %v2215_v20 = vsel %vm2214_vm12, %v1841_v14, %v2213_v56  ;;  %v2220_v43 = vsel %vm2214_vm12, %v1845_v48, %v2219_v28  ;;  %v1195_v48 = vpop.permute.xlu1 %1194 }
 0x229   :  { %v2225_v8 = vsel %vm2214_vm12, %v1849_v53, %v2224_v26  ;;  %v2230_v42 = vsel %vm2214_vm12, %v1853_v27, %v2229_v5  ;;  %v2232_v11 = vsel %vm2231_vm13, %v1873_v12, %v1857_v10  ;;  %v2240_v60 = vsel %vm2231_vm13, %v1877_v16, %v1861_v44  ;;  %2325 = vst [vmem:[#allocation2] sm:$0xfc] %v2215_v20 }
 0x22a   :  { %v2247_v32 = vsel %vm2231_vm13, %v1881_v34, %v1865_v21  ;;  %v2254_v45 = vsel %vm2231_vm13, %v1885_v49, %v1869_v25  ;;  %2326 = vst [vmem:[#allocation2 + $0x8] sm:$0xfc] %v2220_v43  ;;  %2327 = vst [vmem:[#allocation2 + $0x10] sm:$0xfc] %v2225_v8  ;;  %v1425_v59 = vcombine.low %v1403_v7, %v1417_v2  ;;  %v33611_v46 = vmax.f32 %v26580_v23, 0.0 }
 0x22b   :  { %2329 = vst.msk [vmem:[#allocation2 + $0x18] sm:$0xfc] %vm2328_vm14, %v2230_v42  ;;  %v1426_v17 = vcombine.high %v1403_v7, %v1417_v2  ;;  %v1427_v18 = vcombine.low %v1410_v15, %v1424_v24  ;;  %v1428_v13 = vcombine.high %v1410_v15, %v1424_v24  ;;  %v1429_v55 = vcombine.low %v26678_v22, %v1278_v19  ;;  %v1197_v24 = vpop.permute.xlu0 %1196 }
 0x22c   :  { %v1430_v0 = vcombine.high %v26678_v22, %v1278_v19  ;;  %v1279_v63 = vmax.f32 %v33611_v46, %v1227_v41  ;;  %v33612_v1 = vmax.f32 %v26220_v35, 0.0  ;;  %v19517_v53 = vrot.slane %v1425_v59, 9  ;;  %v1199_v43 = vpop.permute.xlu1 %1198 }
 0x22d   :  { %v19518_v27 = vrot.slane %v1426_v17, 9  ;;  %v19519_v10 = vrot.slane %v1427_v18, 9  ;;  %v19520_v44 = vrot.slane %v1428_v13, 9  ;;  %v1439_v21 = vrot.slane %v1429_v55, %v25979_v36 }
 0x22e   :  { %v1280_v14 = vmax.f32 %v33612_v1, %v1191_v33  ;;  %v1446_v7 = vrot.slane %v1430_v0, %v25979_v36  ;;  %v1693_v25 = vmax.f32 %v1425_v59, %v19517_v53  ;;  %v1228_v33 = vsel %vm158_vm5, %v26552_v40, %v1195_v48 }
 0x22f   :  { %v1694_v22 = vmax.f32 %v1426_v17, %v19518_v27  ;;  %v1695_v19 = vmax.f32 %v1427_v18, %v19519_v10  ;;  %v1696_v23 = vmax.f32 %v1428_v13, %v19520_v44  ;;  %v1229_v12 = vsel %vm158_vm5, %v1195_v48, %v1197_v24  ;;  %v1201_v10 = vpop.permute.xlu0 %1200 }
 0x230   :  { %v1431_v15 = vcombine.low %v1279_v63, %v1280_v14  ;;  %v1432_v2 = vcombine.high %v1279_v63, %v1280_v14  ;;  %v1889_v16 = vrot.slane %v1693_v25, %v26223_v37  ;;  %v1893_v34 = vrot.slane %v1693_v25, %v26226_v38 }
 0x231   :  { %v1897_v49 = vrot.slane %v1693_v25, %v26287_v3  ;;  %v1901_v56 = vrot.slane %v1693_v25, %v26290_v4  ;;  %v1905_v28 = vrot.slane %v1694_v22, %v26223_v37  ;;  %v1909_v26 = vrot.slane %v1694_v22, %v26226_v38 }
 0x232   :  { %v1453_v41 = vrot.slane %v1431_v15, %v25979_v36  ;;  %v1460_v35 = vrot.slane %v1432_v2, %v25979_v36  ;;  %v1913_v5 = vrot.slane %v1694_v22, %v26287_v3  ;;  %v1917_v20 = vrot.slane %v1694_v22, %v26290_v4  ;;  %v26761_v22 = vpop.permute.xlu1 %1202 }
 0x233   :  { %v1921_v40 = vrot.slane %v1695_v19, %v26223_v37  ;;  %v1925_v8 = vrot.slane %v1695_v19, %v26226_v38  ;;  %v1929_v42 = vrot.slane %v1695_v19, %v26287_v3  ;;  %v1933_v59 = vrot.slane %v1695_v19, %v26290_v4 }
 0x234   :  { %v1937_v17 = vrot.slane %v1696_v23, %v26223_v37  ;;  %v1941_v18 = vrot.slane %v1696_v23, %v26226_v38  ;;  %v1945_v13 = vrot.slane %v1696_v23, %v26287_v3  ;;  %v1949_v55 = vrot.slane %v1696_v23, %v26290_v4 }
 0x235   :  { %v2234_v0 = vsel %vm2233_vm15, %v1889_v16, %v2232_v11  ;;  %v2241_v46 = vsel %vm2233_vm15, %v1893_v34, %v2240_v60  ;;  %v2248_v63 = vsel %vm2233_vm15, %v1897_v49, %v2247_v32  ;;  %v2255_v1 = vsel %vm2233_vm15, %v1901_v56, %v2254_v45 }
 0x236   :  { %v2235_v14 = vsel %vm2206_vm8, %v1905_v28, %v2234_v0  ;;  %v2242_v48 = vsel %vm2206_vm8, %v1909_v26, %v2241_v46  ;;  %v2249_v53 = vsel %vm2206_vm8, %v1913_v5, %v2248_v63  ;;  %v2256_v27 = vsel %vm2206_vm8, %v1917_v20, %v2255_v1  ;;  %v1207_v0 = vpop.permute.xlu1 %1206 }
 0x237   :  { %v2236_v44 = vsel %vm2208_vm9, %v1921_v40, %v2235_v14  ;;  %v2243_v15 = vsel %vm2208_vm9, %v1925_v8, %v2242_v48  ;;  %v2250_v11 = vsel %vm2208_vm9, %v1929_v42, %v2249_v53  ;;  %v2257_v60 = vsel %vm2208_vm9, %v1933_v59, %v2256_v27 }
 0x238   :  { %v2237_v32 = vsel %vm2210_vm10, %v1937_v17, %v2236_v44  ;;  %v2244_v45 = vsel %vm2210_vm10, %v1941_v18, %v2243_v15  ;;  %v2251_v2 = vsel %vm2210_vm10, %v1945_v13, %v2250_v11  ;;  %v2258_v25 = vsel %vm2210_vm10, %v1949_v55, %v2257_v60  ;;  %v1209_v18 = vpop.permute.xlu0 %1208 }
 0x239   :  { %v1461_v19 = vcombine.low %v1439_v21, %v1453_v41  ;;  %v1462_v23 = vcombine.high %v1439_v21, %v1453_v41  ;;  %v1463_v16 = vcombine.low %v1446_v7, %v1460_v35  ;;  %v1464_v34 = vcombine.high %v1446_v7, %v1460_v35 }
 0x23a   :  { %v33613_v49 = vmax.f32 %v26589_v29, 0.0  ;;  %v33614_v28 = vmax.f32 %v26597_v31, 0.0  ;;  %v1230_v5 = vsel %vm158_vm5, %v1197_v24, %v1199_v43  ;;  %v33615_v20 = vmax.f32 %v26254_v47, 0.0 }
 0x23b   :  { %v19521_v8 = vrot.slane %v1461_v19, 9  ;;  %v19522_v42 = vrot.slane %v1462_v23, 9  ;;  %v19523_v59 = vrot.slane %v1463_v16, 9  ;;  %v19524_v17 = vrot.slane %v1464_v34, 9 }
 0x23c   :  { %v1281_v56 = vmax.f32 %v33613_v49, %v1228_v33  ;;  %v1282_v26 = vmax.f32 %v33614_v28, %v1229_v12  ;;  %v1284_v40 = vmax.f32 %v33615_v20, %v1199_v43  ;;  %v33616_v7 = vmax.f32 %v26593_v62, 0.0 }
 0x23d   :  { %v1231_v29 = vsel %vm158_vm5, %v1201_v10, %v26761_v22  ;;  %v1697_v31 = vmax.f32 %v1461_v19, %v19521_v8  ;;  %v1698_v35 = vmax.f32 %v1462_v23, %v19522_v42  ;;  %v1699_v33 = vmax.f32 %v1463_v16, %v19523_v59  ;;  %v1211_v42 = vpop.permute.xlu1 %1210 }
 0x23e   :  { %v1465_v13 = vcombine.low %v1281_v56, %v1282_v26  ;;  %v1466_v21 = vcombine.high %v1281_v56, %v1282_v26  ;;  %v1283_v41 = vmax.f32 %v33616_v7, %v1230_v5  ;;  %v1700_v24 = vmax.f32 %v1464_v34, %v19524_v17  ;;  %v1205_v34 = vpop.permute.xlu0 %1204 }
 0x23f   :  { %v1953_v46 = vrot.slane %v1697_v31, %v26223_v37  ;;  %v1957_v63 = vrot.slane %v1697_v31, %v26226_v38  ;;  %v1961_v62 = vrot.slane %v1697_v31, %v26287_v3  ;;  %v1965_v1 = vrot.slane %v1697_v31, %v26290_v4 }
 0x240   :  { %v1475_v47 = vrot.slane %v1465_v13, %v25979_v36  ;;  %v1482_v12 = vrot.slane %v1466_v21, %v25979_v36  ;;  %v1467_v43 = vcombine.low %v1283_v41, %v1284_v40  ;;  %v1468_v55 = vcombine.high %v1283_v41, %v1284_v40 }
 0x241   :  { %v1969_v14 = vrot.slane %v1698_v35, %v26223_v37  ;;  %v1973_v48 = vrot.slane %v1698_v35, %v26226_v38  ;;  %v1977_v53 = vrot.slane %v1698_v35, %v26287_v3  ;;  %v1981_v27 = vrot.slane %v1698_v35, %v26290_v4 }
 0x242   :  { %v1985_v10 = vrot.slane %v1699_v33, %v26223_v37  ;;  %v1989_v44 = vrot.slane %v1699_v33, %v26226_v38  ;;  %v1993_v15 = vrot.slane %v1699_v33, %v26287_v3  ;;  %v1997_v11 = vrot.slane %v1699_v33, %v26290_v4 }
 0x243   :  { %v2001_v60 = vrot.slane %v1700_v24, %v26223_v37  ;;  %v2005_v19 = vrot.slane %v1700_v24, %v26226_v38  ;;  %v2009_v23 = vrot.slane %v1700_v24, %v26287_v3  ;;  %v2013_v16 = vrot.slane %v1700_v24, %v26290_v4 }
 0x244   :  { %v2238_v49 = vsel %vm2212_vm11, %v1953_v46, %v2237_v32  ;;  %v2245_v56 = vsel %vm2212_vm11, %v1957_v63, %v2244_v45  ;;  %v2252_v28 = vsel %vm2212_vm11, %v1961_v62, %v2251_v2  ;;  %v2259_v26 = vsel %vm2212_vm11, %v1965_v1, %v2258_v25  ;;  %v26817_v63 = vpop.permute.xlu0 %1212 }
 0x245   :  { %v2239_v5 = vsel %vm2214_vm12, %v1969_v14, %v2238_v49  ;;  %v2246_v20 = vsel %vm2214_vm12, %v1973_v48, %v2245_v56  ;;  %v2253_v40 = vsel %vm2214_vm12, %v1977_v53, %v2252_v28  ;;  %v2260_v8 = vsel %vm2214_vm12, %v1981_v27, %v2259_v26 }
 0x246   :  { %v2261_v59 = vsel %vm2206_vm8, %v2001_v60, %v1985_v10  ;;  %v2266_v17 = vsel %vm2206_vm8, %v2005_v19, %v1989_v44  ;;  %v2271_v32 = vsel %vm2206_vm8, %v2009_v23, %v1993_v15  ;;  %v2276_v45 = vsel %vm2206_vm8, %v2013_v16, %v1997_v11  ;;  %2330 = vst [vmem:[#allocation2 + $0x20] sm:$0xff] %v2239_v5 }
 0x247   :  { %2331 = vst [vmem:[#allocation2 + $0x28] sm:$0xff] %v2246_v20  ;;  %2332 = vst [vmem:[#allocation2 + $0x30] sm:$0xff] %v2253_v40  ;;  %v1489_v2 = vrot.slane %v1467_v43, %v25979_v36  ;;  %v1496_v25 = vrot.slane %v1468_v55, %v25979_v36  ;;  %v1232_v13 = vsel %vm158_vm5, %v26761_v22, %v1205_v34  ;;  %v33617_v21 = vmax.f32 %v26260_v50, 0.0 }
 0x248   :  { %2333 = vst.msk [vmem:[#allocation2 + $0x38] sm:$0xff] %vm158_vm5, %v2260_v8  ;;  %v33618_v41 = vmax.f32 %v26269_v54, 0.0  ;;  %v1233_v35 = vsel %vm158_vm5, %v1205_v34, %v1207_v0  ;;  %v33619_v33 = vmax.f32 %v26332_v52, 0.0  ;;  %v1234_v46 = vsel %vm158_vm5, %v1209_v18, %v1211_v42 }
 0x249   :  { %v1285_v7 = vmax.f32 %v33617_v21, %v1231_v29  ;;  %v1497_v43 = vcombine.low %v1475_v47, %v1489_v2  ;;  %v1498_v55 = vcombine.high %v1475_v47, %v1489_v2  ;;  %v1499_v62 = vcombine.low %v1482_v12, %v1496_v25 }
 0x24a   :  { %v1286_v31 = vmax.f32 %v33618_v41, %v1232_v13  ;;  %v1288_v24 = vmax.f32 %v33619_v33, %v1207_v0  ;;  %v1500_v1 = vcombine.high %v1482_v12, %v1496_v25  ;;  %v33620_v50 = vmax.f32 %v26263_v51, 0.0 }
 0x24b   :  { %v1235_v54 = vsel %vm158_vm5, %v1211_v42, %v26817_v63  ;;  %v19525_v48 = vrot.slane %v1497_v43, 9  ;;  %v19526_v53 = vrot.slane %v1498_v55, 9  ;;  %v19527_v52 = vrot.slane %v1499_v62, 9 }
 0x24c   :  { %v1501_v22 = vcombine.low %v1285_v7, %v1286_v31  ;;  %v1502_v14 = vcombine.high %v1285_v7, %v1286_v31  ;;  %v1287_v29 = vmax.f32 %v33620_v50, %v1233_v35  ;;  %v19528_v0 = vrot.slane %v1500_v1, 9 }
 0x24d   :  { %v1701_v44 = vmax.f32 %v1497_v43, %v19525_v48  ;;  %v1702_v12 = vmax.f32 %v1498_v55, %v19526_v53  ;;  %v1703_v15 = vmax.f32 %v1499_v62, %v19527_v52  ;;  %v33621_v19 = vmax.f32 %v26275_v57, 0.0 }
 0x24e   :  { %v1511_v18 = vrot.slane %v1501_v22, %v25979_v36  ;;  %v1518_v27 = vrot.slane %v1502_v14, %v25979_v36  ;;  %v1503_v10 = vcombine.low %v1287_v29, %v1288_v24  ;;  %v1504_v47 = vcombine.high %v1287_v29, %v1288_v24  ;;  %v1215_v22 = vpop.permute.xlu1 %1214  ;;  %v23038_v29 = vld [vmem:[#allocation2] ss:$8 sps:$4 sm:$0xee]  }
 0x24f   :  { %v1704_v11 = vmax.f32 %v1500_v1, %v19528_v0  ;;  %v1289_v23 = vmax.f32 %v33621_v19, %v1234_v46  ;;  %v33622_v16 = vmax.f32 %v26281_v61, 0.0  ;;  %v2017_v49 = vrot.slane %v1701_v44, %v26223_v37 }
 0x250   :  { %v1525_v51 = vrot.slane %v1503_v10, %v25979_v36  ;;  %v1532_v60 = vrot.slane %v1504_v47, %v25979_v36  ;;  %v2021_v56 = vrot.slane %v1701_v44, %v26226_v38  ;;  %v2025_v28 = vrot.slane %v1701_v44, %v26287_v3 }
 0x251   :  { %v1290_v34 = vmax.f32 %v33622_v16, %v1235_v54  ;;  %v2029_v26 = vrot.slane %v1701_v44, %v26290_v4  ;;  %v2033_v5 = vrot.slane %v1702_v12, %v26223_v37  ;;  %v2037_v20 = vrot.slane %v1702_v12, %v26226_v38 }
 0x252   :  { %v2041_v40 = vrot.slane %v1702_v12, %v26287_v3  ;;  %v2045_v57 = vrot.slane %v1702_v12, %v26290_v4  ;;  %v2049_v8 = vrot.slane %v1703_v15, %v26223_v37  ;;  %v2053_v61 = vrot.slane %v1703_v15, %v26226_v38 }
 0x253   :  { %v2057_v42 = vrot.slane %v1703_v15, %v26287_v3  ;;  %v2061_v2 = vrot.slane %v1703_v15, %v26290_v4  ;;  %v2065_v25 = vrot.slane %v1704_v11, %v26223_v37  ;;  %v2069_v13 = vrot.slane %v1704_v11, %v26226_v38  ;;  %v23040_v15 = vld [vmem:[#allocation2 + $0x4] ss:$8 sps:$4 sm:$0xff]  }
 0x254   :  { %v2073_v21 = vrot.slane %v1704_v11, %v26287_v3  ;;  %v2077_v7 = vrot.slane %v1704_v11, %v26290_v4  ;;  %v2262_v41 = vsel %vm2208_vm9, %v2017_v49, %v2261_v59  ;;  %v2267_v31 = vsel %vm2208_vm9, %v2021_v56, %v2266_v17  ;;  %v23041_v11 = vld [vmem:[#allocation2 + $0x10] ss:$8 sps:$4 sm:$0xee]  }
 0x255   :  { %v2272_v35 = vsel %vm2208_vm9, %v2025_v28, %v2271_v32  ;;  %v2277_v33 = vsel %vm2208_vm9, %v2029_v26, %v2276_v45  ;;  %v2263_v24 = vsel %vm2210_vm10, %v2033_v5, %v2262_v41  ;;  %v2268_v46 = vsel %vm2210_vm10, %v2037_v20, %v2267_v31 }
 0x256   :  { %v2273_v43 = vsel %vm2210_vm10, %v2041_v40, %v2272_v35  ;;  %v2278_v55 = vsel %vm2210_vm10, %v2045_v57, %v2277_v33  ;;  %v2264_v62 = vsel %vm2212_vm11, %v2049_v8, %v2263_v24  ;;  %v2269_v1 = vsel %vm2212_vm11, %v2053_v61, %v2268_v46 }
 0x257   :  { %v2274_v59 = vsel %vm2212_vm11, %v2057_v42, %v2273_v43  ;;  %v2279_v17 = vsel %vm2212_vm11, %v2061_v2, %v2278_v55  ;;  %v2265_v32 = vsel %vm2214_vm12, %v2065_v25, %v2264_v62  ;;  %v2270_v45 = vsel %vm2214_vm12, %v2069_v13, %v2269_v1  ;;  %v23043_v43 = vld [vmem:[#allocation2 + $0x14] ss:$8 sps:$4 sm:$0xff]   ;;  %v23044_v55 = vld [vmem:[#allocation2 + $0x20] ss:$8 sps:$4 sm:$0xff]  }
 0x258   :  { %v2275_v14 = vsel %vm2214_vm12, %v2073_v21, %v2274_v59  ;;  %v2280_v50 = vsel %vm2214_vm12, %v2077_v7, %v2279_v17  ;;  %2334 = vst [vmem:[#allocation2 + $0x60] sm:$0xfc] %v2265_v32  ;;  %2335 = vst [vmem:[#allocation2 + $0x68] sm:$0xfc] %v2270_v45  ;;  %v1533_v54 = vcombine.low %v1511_v18, %v1525_v51  ;;  %v33623_v44 = vmax.f32 %v26284_v6, 0.0 }
 0x259   :  { %2336 = vst [vmem:[#allocation2 + $0x70] sm:$0xfc] %v2275_v14  ;;  %2337 = vst.msk [vmem:[#allocation2 + $0x78] sm:$0xfc] %vm2328_vm14, %v2280_v50  ;;  %v1534_v48 = vcombine.high %v1511_v18, %v1525_v51  ;;  %v1535_v53 = vcombine.low %v1518_v27, %v1532_v60  ;;  %v1536_v52 = vcombine.high %v1518_v27, %v1532_v60  ;;  %v33624_v27 = vmax.f32 %v26278_v58, 0.0 }
 0x25a   :  { %v1537_v0 = vcombine.low %v1289_v23, %v1290_v34  ;;  %v1538_v10 = vcombine.high %v1289_v23, %v1290_v34  ;;  %v1236_v47 = vsel %vm158_vm5, %v26817_v63, %v1215_v22  ;;  %v1292_v12 = vmax.f32 %v33623_v44, %v1215_v22  ;;  %v23046_v22 = vld [vmem:[#allocation2 + $0x24] ss:$8 sps:$4 sm:$0x77]   ;;  %v23047_v32 = vld [vmem:[#allocation2 + $0x30] ss:$8 sps:$4 sm:$0xff]  }
 0x25b   :  { %v19529_v19 = vrot.slane %v1533_v54, 9  ;;  %v19530_v16 = vrot.slane %v1534_v48, 9  ;;  %v19531_v49 = vrot.slane %v1535_v53, 9  ;;  %v19532_v56 = vrot.slane %v1536_v52, 9 }
 0x25c   :  { %v1547_v28 = vrot.slane %v1537_v0, %v25979_v36  ;;  %v1554_v18 = vrot.slane %v1538_v10, %v25979_v36  ;;  %v1291_v51 = vmax.f32 %v33624_v27, %v1236_v47  ;;  %v26873_v60 = vrot.slane %v23038_v29, %v25979_v36  ;;  %v23049_v0 = vld [vmem:[#allocation2 + $0x34] ss:$8 sps:$4 sm:$0x77]  }
 0x25d   :  { %v1705_v63 = vmax.f32 %v1533_v54, %v19529_v19  ;;  %v1706_v23 = vmax.f32 %v1534_v48, %v19530_v16  ;;  %v1707_v6 = vmax.f32 %v1535_v53, %v19531_v49  ;;  %v1708_v34 = vmax.f32 %v1536_v52, %v19532_v56 }
 0x25e   :  { %v1539_v26 = vcombine.low %v1291_v51, %v1292_v12  ;;  %v1540_v5 = vcombine.high %v1291_v51, %v1292_v12  ;;  %v26876_v20 = vrot.slane %v23040_v15, %v25979_v36  ;;  %v26879_v40 = vrot.slane %v23041_v11, %v25979_v36 }
 0x25f   :  { %v2081_v57 = vrot.slane %v1705_v63, %v26223_v37  ;;  %v2085_v58 = vrot.slane %v1705_v63, %v26226_v38  ;;  %v2089_v8 = vrot.slane %v1705_v63, %v26287_v3  ;;  %v2093_v61 = vrot.slane %v1705_v63, %v26290_v4  ;;  %v23050_v15 = vld [vmem:[#allocation2 + $0x60] ss:$8 sps:$4 sm:$0xee]  }
 0x260   :  { %v2097_v42 = vrot.slane %v1706_v23, %v26223_v37  ;;  %v2101_v2 = vrot.slane %v1706_v23, %v26226_v38  ;;  %v2105_v25 = vrot.slane %v1706_v23, %v26287_v3  ;;  %v2109_v13 = vrot.slane %v1706_v23, %v26290_v4 }
 0x261   :  { %v2113_v21 = vrot.slane %v1707_v6, %v26223_v37  ;;  %v2117_v7 = vrot.slane %v1707_v6, %v26226_v38  ;;  %v2121_v41 = vrot.slane %v1707_v6, %v26287_v3  ;;  %v2125_v31 = vrot.slane %v1707_v6, %v26290_v4 }
 0x262   :  { %v2129_v35 = vrot.slane %v1708_v34, %v26223_v37  ;;  %v2133_v33 = vrot.slane %v1708_v34, %v26226_v38  ;;  %v2137_v24 = vrot.slane %v1708_v34, %v26287_v3  ;;  %v2141_v46 = vrot.slane %v1708_v34, %v26290_v4 }
 0x263   :  { %v2281_v62 = vsel %vm2231_vm13, %v2097_v42, %v2081_v57  ;;  %v2288_v1 = vsel %vm2231_vm13, %v2101_v2, %v2085_v58  ;;  %v2295_v59 = vsel %vm2231_vm13, %v2105_v25, %v2089_v8  ;;  %v2302_v17 = vsel %vm2231_vm13, %v2109_v13, %v2093_v61 }
 0x264   :  { %v2282_v45 = vsel %vm2233_vm15, %v2113_v21, %v2281_v62  ;;  %v2289_v14 = vsel %vm2233_vm15, %v2117_v7, %v2288_v1  ;;  %v2296_v50 = vsel %vm2233_vm15, %v2121_v41, %v2295_v59  ;;  %v2303_v29 = vsel %vm2233_vm15, %v2125_v31, %v2302_v17 }
 0x265   :  { %v2283_v54 = vsel %vm2206_vm8, %v2129_v35, %v2282_v45  ;;  %v2290_v48 = vsel %vm2206_vm8, %v2133_v33, %v2289_v14  ;;  %v2297_v53 = vsel %vm2206_vm8, %v2137_v24, %v2296_v50  ;;  %v2304_v52 = vsel %vm2206_vm8, %v2141_v46, %v2303_v29 }
 0x266   :  { %v1561_v10 = vrot.slane %v1539_v26, %v25979_v36  ;;  %v1568_v47 = vrot.slane %v1540_v5, %v25979_v36  ;;  %v26912_v44 = vrot.slane %v23043_v43, %v25979_v36  ;;  %v2954_v12 = vcombine.low %v26873_v60, %v26879_v40  ;;  %v23052_v26 = vld [vmem:[#allocation2 + $0x70] ss:$8 sps:$4 sm:$0xee]  }
 0x267   :  { %v2955_v11 = vcombine.high %v26873_v60, %v26879_v40  ;;  %v26919_v19 = vrot.slane %v23044_v55, %v25979_v36  ;;  %v26922_v16 = vrot.slane %v23046_v22, %v25979_v36  ;;  %v26925_v49 = vrot.slane %v23047_v32, %v25979_v36 }
 0x268   :  { %v1569_v56 = vcombine.low %v1547_v28, %v1561_v10  ;;  %v1570_v27 = vcombine.high %v1547_v28, %v1561_v10  ;;  %v1571_v51 = vcombine.low %v1554_v18, %v1568_v47  ;;  %v1572_v63 = vcombine.high %v1554_v18, %v1568_v47 }
 0x269   :  { %v2956_v23 = vcombine.low %v26876_v20, %v26912_v44  ;;  %v2957_v6 = vcombine.high %v26876_v20, %v26912_v44  ;;  %v26932_v60 = vrot.slane %v23049_v0, %v25979_v36  ;;  %v2990_v34 = vcombine.low %v26919_v19, %v26925_v49 }
 0x26a   :  { %v19533_v5 = vrot.slane %v1569_v56, 9  ;;  %v19534_v40 = vrot.slane %v1570_v27, 9  ;;  %v19535_v57 = vrot.slane %v1571_v51, 9  ;;  %v19536_v58 = vrot.slane %v1572_v63, 9 }
 0x26b   :  { %v2991_v28 = vcombine.high %v26919_v19, %v26925_v49  ;;  %v2992_v18 = vcombine.low %v26922_v16, %v26932_v60  ;;  %v2993_v8 = vcombine.high %v26922_v16, %v26932_v60  ;;  %v26943_v61 = vrot.slane %v23050_v15, %v25979_v36  ;;  %v2900_v49 = vld [vmem:[#allocation2 + $0x70] sm:$0xfe] }
 0x26c   :  { %v1709_v42 = vmax.f32 %v1569_v56, %v19533_v5  ;;  %v1710_v2 = vmax.f32 %v1570_v27, %v19534_v40  ;;  %v1711_v25 = vmax.f32 %v1571_v51, %v19535_v57  ;;  %v1712_v13 = vmax.f32 %v1572_v63, %v19536_v58 }
 0x26d   :  { %v3018_v21 = vrot.slane %v23052_v26, %v25979_v36  ;;  %v19545_v41 = vrot.slane %v2954_v12, 9  ;;  %v3072_v31 = vrot.slane %v2955_v11, 7  ;;  %v3075_v35 = vrot.slane %v2956_v23, 7 }
 0x26e   :  { %v2145_v33 = vrot.slane %v1709_v42, %v26223_v37  ;;  %v2149_v24 = vrot.slane %v1709_v42, %v26226_v38  ;;  %v2153_v46 = vrot.slane %v1709_v42, %v26287_v3  ;;  %v2157_v43 = vrot.slane %v1709_v42, %v26290_v4  ;;  %v2898_v42 = vld [vmem:[#allocation2 + $0x60] sm:$0xfe] }
 0x26f   :  { %v2161_v55 = vrot.slane %v1710_v2, %v26223_v37  ;;  %v2165_v62 = vrot.slane %v1710_v2, %v26226_v38  ;;  %v2169_v1 = vrot.slane %v1710_v2, %v26287_v3  ;;  %v2173_v59 = vrot.slane %v1710_v2, %v26290_v4 }
 0x270   :  { %v2177_v17 = vrot.slane %v1711_v25, %v26223_v37  ;;  %v2181_v22 = vrot.slane %v1711_v25, %v26226_v38  ;;  %v2185_v32 = vrot.slane %v1711_v25, %v26287_v3  ;;  %v2189_v45 = vrot.slane %v1711_v25, %v26290_v4 }
 0x271   :  { %v2193_v14 = vrot.slane %v1712_v13, %v26223_v37  ;;  %v2197_v50 = vrot.slane %v1712_v13, %v26226_v38  ;;  %v2201_v29 = vrot.slane %v1712_v13, %v26287_v3  ;;  %v2205_v0 = vrot.slane %v1712_v13, %v26290_v4 }
 0x272   :  { %v2284_v10 = vsel %vm2208_vm9, %v2145_v33, %v2283_v54  ;;  %v2291_v47 = vsel %vm2208_vm9, %v2149_v24, %v2290_v48  ;;  %v2298_v12 = vsel %vm2208_vm9, %v2153_v46, %v2297_v53  ;;  %v2305_v15 = vsel %vm2208_vm9, %v2157_v43, %v2304_v52  ;;  %v2899_v33 = vld [vmem:[#allocation2 + $0x68] sm:$0xfe] }
 0x273   :  { %v2285_v11 = vsel %vm2210_vm10, %v2161_v55, %v2284_v10  ;;  %v2292_v16 = vsel %vm2210_vm10, %v2165_v62, %v2291_v47  ;;  %v2299_v56 = vsel %vm2210_vm10, %v2169_v1, %v2298_v12  ;;  %v2306_v27 = vsel %vm2210_vm10, %v2173_v59, %v2305_v15 }
 0x274   :  { %v2286_v54 = vsel %vm2212_vm11, %v2177_v17, %v2285_v11  ;;  %v2293_v48 = vsel %vm2212_vm11, %v2181_v22, %v2292_v16  ;;  %v2300_v53 = vsel %vm2212_vm11, %v2185_v32, %v2299_v56  ;;  %v2307_v52 = vsel %vm2212_vm11, %v2189_v45, %v2306_v27 }
 0x275   :  { %v2287_v63 = vsel %vm2214_vm12, %v2193_v14, %v2286_v54  ;;  %v2294_v23 = vsel %vm2214_vm12, %v2197_v50, %v2293_v48  ;;  %v2301_v60 = vsel %vm2214_vm12, %v2201_v29, %v2300_v53  ;;  %v2308_v26 = vsel %vm2214_vm12, %v2205_v0, %v2307_v52 }
 0x276   :  { %2338 = vst [vmem:[#allocation2 + $0x80] sm:$0xff] %v2287_v63  ;;  %2339 = vst [vmem:[#allocation2 + $0x88] sm:$0xff] %v2294_v23  ;;  %v3026_v5 = vcombine.low %v26943_v61, %v3018_v21  ;;  %v3027_v40 = vcombine.high %v26943_v61, %v3018_v21  ;;  %v3073_v57 = vsel %vm26980_vm3, %v19545_v41, %v3072_v31  ;;  %v3074_v58 = vrot.slane %v3072_v31, 2 }
 0x277   :  { %2340 = vst [vmem:[#allocation2 + $0x90] sm:$0xff] %v2301_v60  ;;  %2341 = vst.msk [vmem:[#allocation2 + $0x98] sm:$0xff] %vm158_vm5, %v2308_v26  ;;  %v3077_v2 = vrot.slane %v3075_v35, 2  ;;  %v3078_v25 = vrot.slane %v2957_v6, 7  ;;  %v3081_v13 = vrot.slane %v2990_v34, 7  ;;  %v3084_v7 = vrot.slane %v2991_v28, 7 }
 0x278   :  { %v3076_v24 = vsel %vm26980_vm3, %v3074_v58, %v3075_v35  ;;  %v3087_v61 = vrot.slane %v2992_v18, 7  ;;  %v3090_v21 = vrot.slane %v2993_v8, 7  ;;  %v19546_v46 = vrot.slane %v3026_v5, 9  ;;  %v2901_v34 = vld [vmem:[#allocation2 + $0x78] sm:$0xfe] }
 0x279   :  { %v3079_v41 = vsel %vm26980_vm3, %v3077_v2, %v3078_v25  ;;  %v3080_v31 = vrot.slane %v3078_v25, 2  ;;  %v3083_v43 = vrot.slane %v3081_v13, 2  ;;  %v3086_v55 = vrot.slane %v3084_v7, 2  ;;  %v23057_v25 = vld [vmem:[%s33580_s3 + $0x630] ss:$28 sps:$4 sm:$0xff]  }
 0x27a   :  { %v3089_v20 = vrot.slane %v3087_v61, 2  ;;  %v27007_v44 = vrot.slane %v3027_v40, 7  ;;  %v3114_v6 = vcombine.low %v3073_v57, %v3076_v24  ;;  %v3115_v19 = vcombine.high %v3073_v57, %v3076_v24 }
 0x27b   :  { %v3082_v28 = vsel %vm26980_vm3, %v3080_v31, %v3081_v13  ;;  %v3085_v18 = vsel %vm26980_vm3, %v3083_v43, %v3084_v7  ;;  %v3088_v8 = vsel %vm26980_vm3, %v3086_v55, %v3087_v61  ;;  %v2995_v35 = vcombine.high %v2898_v42, %v2899_v33  ;;  %v23054_v61 = vld [vmem:[%s33580_s3 + $0x628] ss:$28 sps:$4 sm:$0xff]  }
 0x27c   :  { %v3091_v62 = vsel %vm26980_vm3, %v3089_v20, %v3090_v21  ;;  %v3095_v1 = vsel %vm26980_vm3, %v19546_v46, %v27007_v44  ;;  %v3116_v59 = vcombine.low %v3079_v41, %v3082_v28  ;;  %v3124_v17 = vrot.slane %v3114_v6, %v25979_v36  ;;  %v23065_v46 = vld [vmem:[%s33580_s3 + $0x66c] ss:$28 sps:$4 sm:$0xff]   ;;  %v23062_v43 = vld [vmem:[%s33580_s3 + $0x664] ss:$28 sps:$4 sm:$0xff]  }
 0x27d   :  { %v3150_v22 = vcombine.low %v3085_v18, %v3088_v8  ;;  %v3152_v32 = vcombine.low %v3091_v62, %v3095_v1  ;;  %v3117_v45 = vcombine.high %v3079_v41, %v3082_v28  ;;  %v3131_v14 = vrot.slane %v3115_v19, %v25979_v36  ;;  %v23084_v47 = vld [vmem:[#allocation2 + $0x80] ss:$8 sps:$4 sm:$0xff]   ;;  %v23086_v56 = vld [vmem:[#allocation2 + $0x84] ss:$8 sps:$4 sm:$0x77]  }
 0x27e   :  { %v3138_v50 = vrot.slane %v3116_v59, %v25979_v36  ;;  %v3151_v29 = vcombine.high %v3085_v18, %v3088_v8  ;;  %v3153_v0 = vcombine.high %v3091_v62, %v3095_v1  ;;  %v2997_v10 = vcombine.high %v2900_v49, %v2901_v34  ;;  %v23087_v27 = vld [vmem:[#allocation2 + $0x90] ss:$8 sps:$4 sm:$0xff]   ;;  %v23089_v63 = vld [vmem:[#allocation2 + $0x94] ss:$8 sps:$4 sm:$0x77]  }
 0x27f   :  { %v3160_v12 = vrot.slane %v3150_v22, %v25979_v36  ;;  %v3174_v15 = vrot.slane %v3152_v32, %v25979_v36  ;;  %v3145_v11 = vrot.slane %v3117_v45, %v25979_v36  ;;  %v3011_v16 = vrot.slane %v2995_v35, %v25979_v36  ;;  %v23060_v28 = vld [vmem:[%s33580_s3 + $0x660] ss:$28 sps:$4 sm:$0xff]   ;;  %v23063_v18 = vld [vmem:[%s33580_s3 + $0x668] ss:$28 sps:$4 sm:$0xff]  }
 0x280   :  { %v3146_v54 = vcombine.low %v3124_v17, %v3138_v50  ;;  %v3147_v48 = vcombine.high %v3124_v17, %v3138_v50  ;;  %v3167_v53 = vrot.slane %v3151_v29, %v25979_v36  ;;  %v3181_v52 = vrot.slane %v3153_v0, %v25979_v36  ;;  %v23071_v1 = vld [vmem:[%s33580_s3 + $0x6a4] ss:$28 sps:$4 sm:$0xff]   ;;  %v23068_v32 = vld [vmem:[%s33580_s3 + $0x69c] ss:$28 sps:$4 sm:$0xff]  }
 0x281   :  { %v3182_v23 = vcombine.low %v3160_v12, %v3174_v15  ;;  %v3183_v60 = vcombine.high %v3160_v12, %v3174_v15  ;;  %v3148_v26 = vcombine.low %v3131_v14, %v3145_v11  ;;  %v3149_v5 = vcombine.high %v3131_v14, %v3145_v11  ;;  %v23069_v12 = vld [vmem:[%s33580_s3 + $0x6a0] ss:$28 sps:$4 sm:$0xff]  }
 0x282   :  { %v3184_v40 = vcombine.low %v3167_v53, %v3181_v52  ;;  %v3185_v57 = vcombine.high %v3167_v53, %v3181_v52  ;;  %v3025_v58 = vrot.slane %v2997_v10, %v25979_v36  ;;  %v3040_v42 = vrot.slane %v23084_v47, %v25979_v36  ;;  %v23066_v47 = vld [vmem:[%s33580_s3 + $0x698] ss:$28 sps:$4 sm:$0xff]  }
 0x283   :  { %v27031_v2 = vpack.c.bf16 %v3183_v60, %v3147_v48  ;;  %v27036_v13 = vpack.c.bf16 %v3182_v23, %v3146_v54  ;;  %v3047_v7 = vrot.slane %v23086_v56, %v25979_v36  ;;  %v3054_v33 = vrot.slane %v23087_v27, %v25979_v36  ;;  %v23077_v27 = vld [vmem:[%s33580_s3 + $0x6dc] ss:$28 sps:$4 sm:$0xff]   ;;  %v23074_v52 = vld [vmem:[%s33580_s3 + $0x6d4] ss:$28 sps:$4 sm:$0xff]  }
 0x284   :  { %v27040_v24 = vpack.c.bf16 %v3185_v57, %v3149_v5  ;;  %v27045_v21 = vpack.c.bf16 %v3184_v40, %v3148_v26  ;;  %v3028_v41 = vcombine.low %v3011_v16, %v3025_v58  ;;  %v3029_v31 = vcombine.high %v3011_v16, %v3025_v58  ;;  %v23072_v40 = vld [vmem:[%s33580_s3 + $0x6d0] ss:$28 sps:$4 sm:$0xff]   ;;  %v23075_v57 = vld [vmem:[%s33580_s3 + $0x6d8] ss:$28 sps:$4 sm:$0xff]  }
 0x285   :  { %4535 = vmatprep.mubr.bf16.mxu0 %v27031_v2  ;;  %v3061_v55 = vrot.slane %v23089_v63, %v25979_v36  ;;  %v3062_v20 = vcombine.low %v3040_v42, %v3054_v33  ;;  %v3063_v6 = vcombine.high %v3040_v42, %v3054_v33  ;;  %v3096_v19 = vrot.slane %v27007_v44, 2 }
 0x286   :  { %19967 = vmatprep.mubr.msk.bf16.mxu1 %vm158_vm5, %v27040_v24  ;;  %4536 = vmatmul.mubr.bf16.vlgmr.msra.gmra.mrb[32].mxu0 %v27036_v13  ;;  %v3097_v49 = vrot.slane %v3028_v41, 7  ;;  %v3100_v34 = vrot.slane %v3029_v31, 7 }
 0x287   :  { %4589 = vmatmul.mubr.bf16.vlgmr.msra.gmra.mrb[32].mxu1 %v27045_v21  ;;  %4716 = vmatpush1.bf16.msra.mxu0 %v23057_v25  ;;  %v3064_v8 = vcombine.low %v3047_v7, %v3061_v55  ;;  %v3065_v44 = vcombine.high %v3047_v7, %v3061_v55  ;;  %v3103_v35 = vrot.slane %v3062_v20, 7  ;;  %v3106_v62 = vrot.slane %v3063_v6, 7  ;;  %v23080_v25 = vld [vmem:[%s33580_s3 + $0x70c] ss:$28 sps:$4 sm:$0xff]   ;;  %v23083_v7 = vld [vmem:[%s33580_s3 + $0x714] ss:$28 sps:$4 sm:$0xff]  }
 0x288   :  { %4610 = vmatpush1.bf16.msra.mxu1 %v23054_v61  ;;  %4717 = vmatprep.subr.bf16.mxu0 %v23065_v46  ;;  %v3098_v59 = vsel %vm26980_vm3, %v3096_v19, %v3097_v49  ;;  %v3099_v17 = vrot.slane %v3097_v49, 2  ;;  %v3102_v22 = vrot.slane %v3100_v34, 2  ;;  %v23081_v20 = vld [vmem:[%s33580_s3 + $0x710] ss:$28 sps:$4 sm:$0xff]   ;;  %v23078_v19 = vld [vmem:[%s33580_s3 + $0x708] ss:$28 sps:$4 sm:$0xff]  }
 0x289   :  { %4611 = vmatprep.subr.bf16.mxu1 %v23062_v43  ;;  %v3105_v45 = vrot.slane %v3103_v35, 2  ;;  %v3108_v14 = vrot.slane %v3106_v62, 2  ;;  %v3109_v50 = vrot.slane %v3064_v8, 7  ;;  %v3112_v10 = vrot.slane %v3065_v44, 7  ;;  %v23092_v8 = vld [vmem:[%s33580_s3 + $0x744] ss:$28 sps:$4 sm:$0xff]  }
 0x28a   :  { %v3101_v29 = vsel %vm26980_vm3, %v3099_v17, %v3100_v34  ;;  %v3104_v0 = vsel %vm26980_vm3, %v3102_v22, %v3103_v35  ;;  %v23095_v44 = vld [vmem:[%s33580_s3 + $0x74c] ss:$28 sps:$4 sm:$0xff]   ;;  %v23096_v17 = vld [vmem:[%s33580_s3 + $0x778] ss:$28 sps:$4 sm:$0xff]   ;;  %v23099_v22 = vld [vmem:[%s33580_s3 + $0x780] ss:$28 sps:$4 sm:$0xff]  }
 0x28b   :  { %4718 = vmatpush1.bf16.msra.mxu0 %v23063_v18  ;;  %v3107_v15 = vsel %vm26980_vm3, %v3105_v45, %v3106_v62  ;;  %v3110_v11 = vsel %vm26980_vm3, %v3108_v14, %v3109_v50  ;;  %v3111_v16 = vrot.slane %v3109_v50, 2  ;;  %v3186_v56 = vcombine.low %v3098_v59, %v3101_v29  ;;  %v23093_v35 = vld [vmem:[%s33580_s3 + $0x748] ss:$28 sps:$4 sm:$0xff]   ;;  %v23090_v62 = vld [vmem:[%s33580_s3 + $0x740] ss:$28 sps:$4 sm:$0xff]  }
 0x28c   :  { %4612 = vmatpush1.bf16.msra.mxu1 %v23060_v28  ;;  %4719 = vmatprep.subr.bf16.mxu0 %v23071_v1  ;;  %v3188_v54 = vcombine.low %v3104_v0, %v3107_v15  ;;  %v3187_v48 = vcombine.high %v3098_v59, %v3101_v29  ;;  %v3189_v53 = vcombine.high %v3104_v0, %v3107_v15  ;;  %v23101_v1 = vld [vmem:[%s33580_s3 + $0x784] ss:$28 sps:$4 sm:$0xff]   ;;  %v23098_v59 = vld [vmem:[%s33580_s3 + $0x77c] ss:$28 sps:$4 sm:$0xff]   ;;  %v23102_v50 = vld [vmem:[%s33580_s3 + $0x7b0] ss:$28 sps:$4 sm:$0xff]  }
 0x28d   :  { %4613 = vmatprep.subr.bf16.mxu1 %v23068_v32  ;;  %v3113_v63 = vsel %vm26980_vm3, %v3111_v16, %v3112_v10  ;;  %v3196_v23 = vrot.slane %v3186_v56, %v25979_v36  ;;  %v23104_v32 = vld [vmem:[%s33580_s3 + $0x7b4] ss:$28 sps:$4 sm:$0xff]   ;;  %v23107_v45 = vld [vmem:[%s33580_s3 + $0x7bc] ss:$28 sps:$4 sm:$0xff]   ;;  %v23110_v29 = vld [vmem:[%s33580_s3 + $0x7ec] ss:$28 sps:$4 sm:$0xff]  }
 0x28e   :  { %v3210_v60 = vrot.slane %v3188_v54, %v25979_v36  ;;  %v3222_v26 = vcombine.low %v3110_v11, %v3113_v63  ;;  %v3217_v5 = vrot.slane %v3189_v53, %v25979_v36  ;;  %v3203_v58 = vrot.slane %v3187_v48, %v25979_v36  ;;  %v23105_v14 = vld [vmem:[%s33580_s3 + $0x7b8] ss:$28 sps:$4 sm:$0xff]   ;;  %v23562_v10 = vld [vmem:[#allocation2 + $0x4] ss:$8 sps:$4 sm:$0xff]   ;;  %v23566_v16 = vld [vmem:[#allocation2 + $0x20] ss:$8 sps:$4 sm:$0xff]  }
 0x28f   :  { %4720 = vmatpush1.bf16.msra.mxu0 %v23069_v12  ;;  %v3223_v42 = vcombine.high %v3110_v11, %v3113_v63  ;;  %v23113_v0 = vld [vmem:[%s33580_s3 + $0x7f4] ss:$28 sps:$4 sm:$0xff]   ;;  %v23108_v15 = vld [vmem:[%s33580_s3 + $0x7e8] ss:$28 sps:$4 sm:$0xff]   ;;  %v27193_v53 = vrot.slane %v23562_v10, %v25979_v36  ;;  %v23114_v63 = vld [vmem:[%s33580_s3 + $0x820] ss:$28 sps:$4 sm:$0xff]  }
 0x290   :  { %4614 = vmatpush1.bf16.msra.mxu1 %v23066_v47  ;;  %4721 = vmatprep.subr.bf16.mxu0 %v23077_v27  ;;  %v3219_v33 = vcombine.high %v3196_v23, %v3210_v60  ;;  %v3230_v61 = vrot.slane %v3222_v26, %v25979_v36  ;;  %v3221_v46 = vcombine.high %v3203_v58, %v3217_v5  ;;  %v23565_v47 = vld [vmem:[#allocation2 + $0x14] ss:$8 sps:$4 sm:$0xff]   ;;  %v23111_v12 = vld [vmem:[%s33580_s3 + $0x7f0] ss:$28 sps:$4 sm:$0xff]   ;;  %v23116_v27 = vld [vmem:[%s33580_s3 + $0x824] ss:$28 sps:$4 sm:$0xff]  }
 0x291   :  { %4615 = vmatprep.subr.bf16.mxu1 %v23074_v52  ;;  %v3237_v41 = vrot.slane %v3223_v42, %v25979_v36  ;;  %v3218_v31 = vcombine.low %v3196_v23, %v3210_v60  ;;  %v3220_v43 = vcombine.low %v3203_v58, %v3217_v5  ;;  %v23119_v11 = vld [vmem:[%s33580_s3 + $0x82c] ss:$28 sps:$4 sm:$0xff]   ;;  %v23569_v56 = vld [vmem:[#allocation2 + $0x30] ss:$8 sps:$4 sm:$0xff]   ;;  %v27196_v52 = vrot.slane %v23565_v47, %v25979_v36  ;;  %v23125_v23 = vld [vmem:[%s33580_s3 + $0x864] ss:$28 sps:$4 sm:$0xff]  }
 0x292   :  { %v3238_v55 = vcombine.high %v3230_v61, %v3230_v61  ;;  %v23568_v54 = vld [vmem:[#allocation2 + $0x24] ss:$8 sps:$4 sm:$0xff]   ;;  %v27205_v60 = vrot.slane %v23566_v16, %v25979_v36  ;;  %v27208_v26 = vrot.slane %v23569_v56, %v25979_v36  ;;  %v23655_v5 = vld [vmem:[#allocation2 + $0x34] ss:$8 sps:$4 sm:$0xff]  }
 0x293   :  { %4722 = vmatpush1.bf16.msra.mxu0 %v23075_v57  ;;  %v3239_v6 = vcombine.high %v3237_v41, %v3237_v41  ;;  %v27122_v34 = vpack.c.bf16 %v3230_v61, %v3218_v31  ;;  %v27126_v18 = vpack.c.bf16 %v3237_v41, %v3220_v43  ;;  %v23117_v48 = vld [vmem:[%s33580_s3 + $0x828] ss:$28 sps:$4 sm:$0xff]   ;;  %v23122_v57 = vld [vmem:[%s33580_s3 + $0x85c] ss:$28 sps:$4 sm:$0xff]   ;;  %v27214_v42 = vrot.slane %v23568_v54, %v25979_v36  ;;  %v23128_v31 = vld [vmem:[%s33580_s3 + $0x894] ss:$28 sps:$4 sm:$0xff]  }
 0x294   :  { %4616 = vmatpush1.bf16.msra.mxu1 %v23072_v40  ;;  %4723 = vmatprep.subr.bf16.mxu0 %v23083_v7  ;;  %v27120_v49 = vpack.c.bf16 %v3238_v55, %v3219_v33  ;;  %v23656_v40 = vld [vmem:[#allocation2 + $0x70] ss:$8 sps:$4 sm:$0xcc]   ;;  %v23123_v33 = vld [vmem:[%s33580_s3 + $0x860] ss:$28 sps:$4 sm:$0xff]   ;;  %v6447_v61 = vrot.slane %v23655_v5, %v25979_v36 }
 0x295   :  { %4617 = vmatprep.subr.bf16.mxu1 %v23080_v25  ;;  %v27124_v28 = vpack.c.bf16 %v3239_v6, %v3221_v46  ;;  %v23563_v58 = vld [vmem:[#allocation2 + $0x10] ss:$8 sps:$4 sm:$0xcc]   ;;  %v6414_v25 = vcombine.low %v27193_v53, %v27196_v52  ;;  %v6448_v46 = vcombine.low %v27205_v60, %v27208_v26  ;;  %v6476_v41 = vrot.slane %v23656_v40, %v25979_v36  ;;  %v23143_v47 = vld [vmem:[%s33580_s3 + $0x90c] ss:$28 sps:$4 sm:$0xff]  }
 0x296   :  { %4545 = vmatprep.mubr.bf16.mxu0 %v27120_v49  ;;  %v23120_v7 = vld [vmem:[%s33580_s3 + $0x858] ss:$28 sps:$4 sm:$0xff]   ;;  %v27235_v55 = vrot.slane %v23563_v58, %v25979_v36  ;;  %v6450_v6 = vcombine.low %v27214_v42, %v6447_v61  ;;  %v23135_v10 = vld [vmem:[%s33580_s3 + $0x8d0] ss:$28 sps:$4 sm:$0xff]   ;;  %v23141_v40 = vld [vmem:[%s33580_s3 + $0x908] ss:$28 sps:$4 sm:$0xff]  }
 0x297   :  { %4724 = vmatpush1.bf16.msra.mxu0 %v23081_v20  ;;  %19968 = vmatprep.mubr.msk.bf16.mxu1 %vm158_vm5, %v27124_v28  ;;  %v23131_v43 = vld [vmem:[%s33580_s3 + $0x89c] ss:$28 sps:$4 sm:$0xff]   ;;  %v23872_v54 = vld [vmem:[#allocation2] ss:$8 sps:$4 sm:$0x88]  }
 0x298   :  { %4618 = vmatpush1.bf16.msra.mxu1 %v23078_v19  ;;  %4546 = vmatmul.mubr.bf16.gmra.mrb[36].mxu0 %v27122_v34  ;;  %v23129_v20 = vld [vmem:[%s33580_s3 + $0x898] ss:$28 sps:$4 sm:$0xff]   ;;  %v20180_v19 = vcombine.high %v27235_v55, %v6414_v25 }
 0x299   :  { %4599 = vmatmul.mubr.bf16.gmra.mrb[36].mxu1 %v27126_v18  ;;  %4619 = vmatprep.subr.bf16.mxu1 %v23092_v8  ;;  %v23126_v8 = vld [vmem:[%s33580_s3 + $0x890] ss:$28 sps:$4 sm:$0xff]   ;;  %v23883_v5 = vld [vmem:[#allocation2 + $0x34] ss:$8 sps:$4 sm:$0xff]  }
 0x29a   :  { %4641 = vmatprep.mubr.bf16.mxu1 %v27031_v2  ;;  %4725 = vmatprep.subr.bf16.mxu0 %v23095_v44  ;;  %v23137_v44 = vld [vmem:[%s33580_s3 + $0x8d4] ss:$28 sps:$4 sm:$0xff]  }
 0x29b   :  { %4747 = vmatprep.mubr.bf16.mxu0 %v27031_v2  ;;  %4726 = vmatpush1.bf16.msra.mxu0 %v23093_v35  ;;  %v20182_v35 = vcombine.high %v27196_v52, %v6448_v46  ;;  %v23146_v46 = vld [vmem:[%s33580_s3 + $0x93c] ss:$28 sps:$4 sm:$0xff]  }
 0x29c   :  { %4620 = vmatpush1.bf16.msra.mxu1 %v23090_v62  ;;  %4727 = vmatprep.subr.bf16.mxu0 %v23101_v1  ;;  %v20186_v62 = vcombine.high %v6447_v61, %v6476_v41  ;;  %v23874_v1 = vld [vmem:[#allocation2 + $0x4] ss:$8 sps:$4 sm:$0xff]  }
 0x29d   :  { %4621 = vmatprep.subr.bf16.mxu1 %v23098_v59  ;;  %v23134_v59 = vld [vmem:[%s33580_s3 + $0x8cc] ss:$28 sps:$4 sm:$0xff]   ;;  %v23149_v61 = vld [vmem:[%s33580_s3 + $0x944] ss:$28 sps:$4 sm:$0xff]  }
 0x29f   :  { %4728 = vmatpush1.bf16.msra.mxu0 %v23099_v22  ;;  %v23877_v22 = vld [vmem:[#allocation2 + $0x14] ss:$8 sps:$4 sm:$0xff]  }
 0x2a0   :  { %4622 = vmatpush1.bf16.msra.mxu1 %v23096_v17  ;;  %4729 = vmatprep.subr.bf16.mxu0 %v23107_v45  ;;  %v20184_v17 = vcombine.high %v27208_v26, %v6450_v6  ;;  %v6540_v45 = vrot.slane %v20180_v19, %v25979_v36  ;;  %v8435_v25 = vrot.slane %v23877_v22, %v25979_v36  ;;  %v23886_v6 = vld [vmem:[#allocation2 + $0x60] ss:$8 sps:$4 sm:$0x88]   ;;  %v23888_v19 = vld [vmem:[#allocation2 + $0x64] ss:$8 sps:$4 sm:$0xff]  }
 0x2a1   :  { %4623 = vmatprep.subr.bf16.mxu1 %v23104_v32  ;;  %v23878_v32 = vld [vmem:[#allocation2 + $0x20] ss:$8 sps:$4 sm:$0xff]   ;;  %v23885_v22 = vld [vmem:[#allocation2 + $0x50] ss:$8 sps:$4 sm:$0x11]  }
 0x2a3   :  { %4730 = vmatpush1.bf16.msra.mxu0 %v23105_v14  ;;  %v6554_v14 = vrot.slane %v20182_v35, %v25979_v36  ;;  %v8414_v35 = vrot.slane %v23872_v54, %v25979_v36 }
 0x2a4   :  { %4624 = vmatpush1.bf16.msra.mxu1 %v23102_v50  ;;  %4731 = vmatprep.subr.bf16.mxu0 %v23113_v0  ;;  %v6590_v50 = vrot.slane %v20186_v62, %v25979_v36  ;;  %v23132_v0 = vld [vmem:[%s33580_s3 + $0x8c8] ss:$28 sps:$4 sm:$0xff]  }
 0x2a5   :  { %4625 = vmatprep.subr.bf16.mxu1 %v23110_v29  ;;  %v6576_v29 = vrot.slane %v20184_v17, %v25979_v36  ;;  %v23884_v17 = vld [vmem:[#allocation2 + $0x40] ss:$8 sps:$4 sm:$0x11]  }
 0x2a7   :  { %4732 = vmatpush1.bf16.msra.mxu0 %v23111_v12  ;;  %v6557_v12 = vcombine.low %v6540_v45, %v6554_v14  ;;  %v6593_v16 = vcombine.low %v6576_v29, %v6590_v50  ;;  %v6594_v56 = vcombine.high %v6576_v29, %v6590_v50  ;;  %v23153_v50 = vld [vmem:[%s33580_s3 + $0x978] ss:$28 sps:$4 sm:$0xff]  }
 0x2a8   :  { %4626 = vmatpush1.bf16.msra.mxu1 %v23108_v15  ;;  %4733 = vmatprep.subr.bf16.mxu0 %v23119_v11  ;;  %v6558_v15 = vcombine.high %v6540_v45, %v6554_v14  ;;  %v23140_v11 = vld [vmem:[%s33580_s3 + $0x904] ss:$28 sps:$4 sm:$0xff]   ;;  %v23889_v45 = vld [vmem:[#allocation2 + $0x70] ss:$8 sps:$4 sm:$0x88]  }
 0x2a9   :  { %4627 = vmatprep.subr.bf16.mxu1 %v23116_v27  ;;  %v23881_v27 = vld [vmem:[#allocation2 + $0x30] ss:$8 sps:$4 sm:$0xff]   ;;  %v27275_v58 = vpack.c.bf16 %v6593_v16, %v6557_v12  ;;  %v23891_v14 = vld [vmem:[#allocation2 + $0x74] ss:$8 sps:$4 sm:$0xff]   ;;  %v8516_v54 = vrot.slane %v23889_v45, %v25979_v36 }
 0x2aa   :  { %v8463_v41 = vrot.slane %v23881_v27, %v25979_v36  ;;  %v23161_v12 = vld [vmem:[%s33580_s3 + $0x9b4] ss:$28 sps:$4 sm:$0xff]   ;;  %v27316_v27 = vrot.slane %v23888_v19, %v25979_v36 }
 0x2ab   :  { %4734 = vmatpush1.bf16.msra.mxu0 %v23117_v48  ;;  %v23875_v48 = vld [vmem:[#allocation2 + $0x10] ss:$8 sps:$4 sm:$0x88]  }
 0x2ac   :  { %4628 = vmatpush1.bf16.msra.mxu1 %v23114_v63  ;;  %4735 = vmatprep.subr.bf16.mxu0 %v23125_v23  ;;  %v8421_v63 = vrot.slane %v23874_v1, %v25979_v36  ;;  %v23880_v23 = vld [vmem:[#allocation2 + $0x24] ss:$8 sps:$4 sm:$0xff]   ;;  %v8428_v62 = vrot.slane %v23875_v48, %v25979_v36  ;;  %v27320_v48 = vrot.slane %v23891_v14, %v25979_v36 }
 0x2ad   :  { %4629 = vmatprep.subr.bf16.mxu1 %v23122_v57  ;;  %v27273_v57 = vpack.c.bf16 %v6594_v56, %v6558_v15  ;;  %v8456_v1 = vrot.slane %v23880_v23, %v25979_v36  ;;  %v8502_v56 = vrot.slane %v23886_v6, %v25979_v36  ;;  %v8490_v23 = vrot.slane %v23885_v22, %v25979_v36 }
 0x2ae   :  { %v8438_v29 = vcombine.high %v8421_v63, %v8435_v25  ;;  %v8436_v15 = vcombine.high %v8414_v35, %v8428_v62  ;;  %v8525_v6 = vcombine.low %v27316_v27, %v27320_v48 }
 0x2af   :  { %4736 = vmatpush1.bf16.msra.mxu0 %v23123_v33  ;;  %v23138_v33 = vld [vmem:[%s33580_s3 + $0x900] ss:$28 sps:$4 sm:$0xff]  }
 0x2b0   :  { %4630 = vmatpush1.bf16.msra.mxu1 %v23120_v7  ;;  %4737 = vmatprep.subr.bf16.mxu0 %v23131_v43  ;;  %v8449_v7 = vrot.slane %v23878_v32, %v25979_v36  ;;  %v8437_v43 = vcombine.low %v8421_v63, %v8435_v25  ;;  %v23152_v32 = vld [vmem:[%s33580_s3 + $0x974] ss:$28 sps:$4 sm:$0xff]   ;;  %v8483_v63 = vrot.slane %v23884_v17, %v25979_v36  ;;  %v20615_v19 = vrot.slane %v8436_v15, 9 }
 0x2b1   :  { %4631 = vmatprep.subr.bf16.mxu1 %v23128_v31  ;;  %v23147_v31 = vld [vmem:[%s33580_s3 + $0x940] ss:$28 sps:$4 sm:$0xff]  }
 0x2b3   :  { %4738 = vmatpush1.bf16.msra.mxu0 %v23129_v20  ;;  %v8471_v20 = vcombine.low %v8449_v7, %v8463_v41 }
 0x2b4   :  { %4632 = vmatpush1.bf16.msra.mxu1 %v23126_v8  ;;  %4739 = vmatprep.subr.bf16.mxu0 %v23137_v44  ;;  %v23144_v8 = vld [vmem:[%s33580_s3 + $0x938] ss:$28 sps:$4 sm:$0xff]  }
 0x2b5   :  { %4633 = vmatprep.subr.bf16.mxu1 %v23134_v59  ;;  %v23155_v44 = vld [vmem:[%s33580_s3 + $0x97c] ss:$28 sps:$4 sm:$0xff]   ;;  %v8470_v59 = vrot.slane %v23883_v5, %v25979_v36  ;;  %v23158_v5 = vld [vmem:[%s33580_s3 + $0x9ac] ss:$28 sps:$4 sm:$0xff]  }
 0x2b7   :  { %4740 = vmatpush1.bf16.msra.mxu0 %v23135_v10  ;;  %v8588_v10 = vrot.slane %v8471_v20, 7  ;;  %v8473_v16 = vcombine.low %v8456_v1, %v8470_v59  ;;  %v8524_v20 = vcombine.high %v8502_v56, %v8516_v54 }
 0x2b8   :  { %4634 = vmatpush1.bf16.msra.mxu1 %v23132_v0  ;;  %4741 = vmatprep.subr.bf16.mxu0 %v23143_v47  ;;  %v8582_v0 = vrot.slane %v8437_v43, 7  ;;  %v23150_v47 = vld [vmem:[%s33580_s3 + $0x970] ss:$28 sps:$4 sm:$0xff]   ;;  %v23164_v43 = vld [vmem:[%s33580_s3 + $0x9e4] ss:$28 sps:$4 sm:$0xff]  }
 0x2b9   :  { %4635 = vmatprep.subr.bf16.mxu1 %v23140_v11  ;;  %v8472_v11 = vcombine.high %v8449_v7, %v8463_v41  ;;  %v8585_v7 = vrot.slane %v8438_v29, 7  ;;  %v8594_v41 = vrot.slane %v8473_v16, 7  ;;  %v20616_v14 = vrot.slane %v8524_v20, 9  ;;  %v23162_v29 = vld [vmem:[%s33580_s3 + $0x9e0] ss:$28 sps:$4 sm:$0xff]  }
 0x2ba   :  { %v8584_v25 = vrot.slane %v8582_v0, 2  ;;  %v23173_v16 = vld [vmem:[%s33580_s3 + $0xa24] ss:$28 sps:$4 sm:$0xff]   ;;  %v23174_v20 = vld [vmem:[%s33580_s3 + $0xa50] ss:$28 sps:$4 sm:$0xff]  }
 0x2bb   :  { %4742 = vmatpush1.bf16.msra.mxu0 %v23141_v40  ;;  %v8474_v40 = vcombine.high %v8456_v1, %v8470_v59  ;;  %v8587_v62 = vrot.slane %v8585_v7, 2  ;;  %v8596_v22 = vrot.slane %v8594_v41, 2 }
 0x2bc   :  { %4636 = vmatpush1.bf16.msra.mxu1 %v23138_v33  ;;  %4743 = vmatprep.subr.bf16.mxu0 %v23149_v61  ;;  %v8590_v33 = vrot.slane %v8588_v10, 2  ;;  %v23156_v61 = vld [vmem:[%s33580_s3 + $0x9a8] ss:$28 sps:$4 sm:$0xff]   ;;  %v27343_v35 = vsel %vm26980_vm3, %v8584_v25, %v8585_v7  ;;  %v23176_v25 = vld [vmem:[%s33580_s3 + $0xa54] ss:$28 sps:$4 sm:$0xff]  }
 0x2bd   :  { %4637 = vmatprep.subr.bf16.mxu1 %v23146_v46  ;;  %v8591_v46 = vrot.slane %v8472_v11, 7  ;;  %v8597_v59 = vrot.slane %v8474_v40, 7  ;;  %v27358_v45 = vsel %vm26980_vm3, %v8587_v62, %v8588_v10  ;;  %v23171_v40 = vld [vmem:[%s33580_s3 + $0xa20] ss:$28 sps:$4 sm:$0xff]   ;;  %v23180_v62 = vld [vmem:[%s33580_s3 + $0xa88] ss:$28 sps:$4 sm:$0xff]  }
 0x2bf   :  { %4744 = vmatpush1.bf16.msra.mxu0 %v23147_v31  ;;  %v23159_v31 = vld [vmem:[%s33580_s3 + $0x9b0] ss:$28 sps:$4 sm:$0xff]   ;;  %v27347_v1 = vsel %vm26980_vm3, %v8590_v33, %v8591_v46  ;;  %v8593_v17 = vrot.slane %v8591_v46, 2  ;;  %v8599_v15 = vrot.slane %v8597_v59, 2  ;;  %v27385_v54 = vsel %vm26980_vm3, %v8596_v22, %v8597_v59  ;;  %v23179_v33 = vld [vmem:[%s33580_s3 + $0xa5c] ss:$28 sps:$4 sm:$0xff]  }
 0x2c0   :  { %4638 = vmatpush1.bf16.msra.mxu1 %v23144_v8  ;;  %4745 = vmatprep.subr.bf16.mxu0 %v23155_v44  ;;  %v23167_v8 = vld [vmem:[%s33580_s3 + $0x9ec] ss:$28 sps:$4 sm:$0xff]   ;;  %v8491_v44 = vcombine.low %v8483_v63, %v8490_v23  ;;  %v8627_v10 = vcombine.high %v27358_v45, %v27347_v1  ;;  %v23185_v59 = vld [vmem:[%s33580_s3 + $0xa94] ss:$28 sps:$4 sm:$0xff]  }
 0x2c1   :  { %4639 = vmatprep.subr.bf16.mxu1 %v23152_v32  ;;  %v27354_v32 = vsel %vm26980_vm3, %v20615_v19, %v8582_v0  ;;  %v27381_v56 = vsel %vm26980_vm3, %v8593_v17, %v8594_v41 }
 0x2c2   :  { %v8625_v0 = vcombine.high %v27354_v32, %v27343_v35  ;;  %v8600_v11 = vrot.slane %v8491_v44, 7  ;;  %v8655_v23 = vrot.slane %v8627_v10, %v25979_v36  ;;  %v23182_v44 = vld [vmem:[%s33580_s3 + $0xa8c] ss:$28 sps:$4 sm:$0xff]   ;;  %v23186_v10 = vld [vmem:[%s33580_s3 + $0xac0] ss:$28 sps:$4 sm:$0xff]  }
 0x2c3   :  { %4746 = vmatpush1.bf16.msra.mxu0 %v23153_v50  ;;  %v27360_v50 = vrot.slane %v8525_v6, 7  ;;  %v23177_v6 = vld [vmem:[%s33580_s3 + $0xa58] ss:$28 sps:$4 sm:$0xff]  }
 0x2c4   :  { %4640 = vmatpush1.bf16.msra.mxu1 %v23150_v47  ;;  %4768 = vmatprep.subr.bf16.mxu0 %v23161_v12  ;;  %v23165_v47 = vld [vmem:[%s33580_s3 + $0x9e8] ss:$28 sps:$4 sm:$0xff]   ;;  %v23170_v12 = vld [vmem:[%s33580_s3 + $0xa1c] ss:$28 sps:$4 sm:$0xff]   ;;  %v8641_v63 = vrot.slane %v8625_v0, %v25979_v36  ;;  %v27408_v46 = vsel %vm26980_vm3, %v8599_v15, %v8600_v11 }
 0x2c5   :  { %4662 = vmatprep.subr.bf16.mxu1 %v23158_v5  ;;  %v23168_v5 = vld [vmem:[%s33580_s3 + $0xa18] ss:$28 sps:$4 sm:$0xff]   ;;  %v27401_v7 = vsel %vm26980_vm3, %v20616_v14, %v27360_v50  ;;  %v23183_v14 = vld [vmem:[%s33580_s3 + $0xa90] ss:$28 sps:$4 sm:$0xff]   ;;  %v23189_v15 = vld [vmem:[%s33580_s3 + $0xac8] ss:$28 sps:$4 sm:$0xff]  }
 0x2c6   :  { %4748 = vmatmul.mubr.bf16.vlgmr.msra.gmra.mrb[40].mxu0 %v27036_v13  ;;  %v8659_v41 = vcombine.high %v8641_v63, %v8655_v23  ;;  %v23194_v11 = vld [vmem:[%s33580_s3 + $0xafc] ss:$28 sps:$4 sm:$0xff]  }
 0x2c7   :  { %4642 = vmatmul.mubr.bf16.vlgmr.msra.gmra.mrb[40].mxu1 %v27036_v13  ;;  %4757 = vmatprep.mubr.bf16.mxu0 %v27120_v49 }
 0x2c8   :  { %4651 = vmatprep.mubr.bf16.mxu1 %v27120_v49  ;;  %4663 = vmatpush1.bf16.msra.mxu1 %v23156_v61  ;;  %v8658_v61 = vcombine.low %v8641_v63, %v8655_v23  ;;  %v23192_v63 = vld [vmem:[%s33580_s3 + $0xaf8] ss:$28 sps:$4 sm:$0xff]   ;;  %v23195_v23 = vld [vmem:[%s33580_s3 + $0xb00] ss:$28 sps:$4 sm:$0xff]  }
 0x2c9   :  { %4769 = vmatpush1.bf16.msra.mxu0 %v23159_v31  ;;  %4664 = vmatprep.subr.bf16.mxu1 %v23164_v43  ;;  %v8661_v31 = vcombine.high %v27381_v56, %v27385_v54  ;;  %v8663_v43 = vcombine.high %v27408_v46, %v27401_v7 }
 0x2ca   :  { %4770 = vmatprep.subr.bf16.mxu0 %v23167_v8 }
 0x2cb   :  { %v8677_v19 = vrot.slane %v8661_v31, %v25979_v36  ;;  %v8691_v8 = vrot.slane %v8663_v43, %v25979_v36  ;;  %v23209_v31 = vld [vmem:[%s33580_s3 + $0xb74] ss:$28 sps:$4 sm:$0xff]  }
 0x2cc   :  { %4665 = vmatpush1.bf16.msra.mxu1 %v23162_v29  ;;  %v23188_v29 = vld [vmem:[%s33580_s3 + $0xac4] ss:$28 sps:$4 sm:$0xff]   ;;  %v23207_v43 = vld [vmem:[%s33580_s3 + $0xb70] ss:$28 sps:$4 sm:$0xff]  }
 0x2cd   :  { %4771 = vmatpush1.bf16.msra.mxu0 %v23165_v47  ;;  %4666 = vmatprep.subr.bf16.mxu1 %v23170_v12  ;;  %v8694_v17 = vcombine.low %v8677_v19, %v8691_v8  ;;  %v8695_v22 = vcombine.high %v8677_v19, %v8691_v8  ;;  %v23191_v12 = vld [vmem:[%s33580_s3 + $0xacc] ss:$28 sps:$4 sm:$0xff]   ;;  %v23210_v19 = vld [vmem:[%s33580_s3 + $0xba0] ss:$28 sps:$4 sm:$0xff]  }
 0x2ce   :  { %4758 = vmatmul.mubr.bf16.gmra.mrb[44].mxu0 %v27122_v34  ;;  %4772 = vmatprep.subr.bf16.mxu0 %v23173_v16  ;;  %v23197_v16 = vld [vmem:[%s33580_s3 + $0xb04] ss:$28 sps:$4 sm:$0xff]  }
 0x2cf   :  { %4652 = vmatmul.mubr.bf16.gmra.mrb[44].mxu1 %v27122_v34  ;;  %19971 = vmatprep.mubr.msk.bf16.mxu0 %vm158_vm5, %v27040_v24  ;;  %v27443_v47 = vpack.c.bf16 %v8695_v22, %v8659_v41  ;;  %v27445_v0 = vpack.c.bf16 %v8694_v17, %v8658_v61  ;;  %v23206_v61 = vld [vmem:[%s33580_s3 + $0xb6c] ss:$28 sps:$4 sm:$0xff]   ;;  %v23219_v22 = vld [vmem:[%s33580_s3 + $0xbe0] ss:$28 sps:$4 sm:$0xff]  }
 0x2d0   :  { %4667 = vmatpush1.bf16.msra.mxu1 %v23168_v5  ;;  %19969 = vmatprep.mubr.msk.bf16.mxu1 %vm158_vm5, %v27040_v24  ;;  %v23200_v5 = vld [vmem:[%s33580_s3 + $0xb34] ss:$28 sps:$4 sm:$0xff]   ;;  %v23204_v41 = vld [vmem:[%s33580_s3 + $0xb68] ss:$28 sps:$4 sm:$0xff]  }
 0x2d1   :  { %4773 = vmatpush1.bf16.msra.mxu0 %v23171_v40  ;;  %4668 = vmatprep.subr.bf16.mxu1 %v23176_v25  ;;  %v23198_v40 = vld [vmem:[%s33580_s3 + $0xb30] ss:$28 sps:$4 sm:$0xff]   ;;  %v23203_v25 = vld [vmem:[%s33580_s3 + $0xb3c] ss:$28 sps:$4 sm:$0xff]   ;;  %v23213_v8 = vld [vmem:[%s33580_s3 + $0xba8] ss:$28 sps:$4 sm:$0xff]  }
 0x2d2   :  { %4774 = vmatprep.subr.bf16.mxu0 %v23179_v33  ;;  %v23201_v33 = vld [vmem:[%s33580_s3 + $0xb38] ss:$28 sps:$4 sm:$0xff]   ;;  %v23249_v17 = vld [vmem:[#allocation2 + $0x60] ss:$8 sps:$4 sm:$0xff]  }
 0x2d4   :  { %4669 = vmatpush1.bf16.msra.mxu1 %v23174_v20  ;;  %v23212_v20 = vld [vmem:[%s33580_s3 + $0xba4] ss:$28 sps:$4 sm:$0xff]  }
 0x2d5   :  { %4775 = vmatpush1.bf16.msra.mxu0 %v23177_v6  ;;  %4670 = vmatprep.subr.bf16.mxu1 %v23182_v44  ;;  %v23215_v6 = vld [vmem:[%s33580_s3 + $0xbac] ss:$28 sps:$4 sm:$0xff]   ;;  %v23218_v44 = vld [vmem:[%s33580_s3 + $0xbdc] ss:$28 sps:$4 sm:$0xff]  }
 0x2d6   :  { %4776 = vmatprep.subr.bf16.mxu0 %v23185_v59  ;;  %v23221_v59 = vld [vmem:[%s33580_s3 + $0xbe4] ss:$28 sps:$4 sm:$0xff]  }
 0x2d8   :  { %4671 = vmatpush1.bf16.msra.mxu1 %v23180_v62  ;;  %v23216_v62 = vld [vmem:[%s33580_s3 + $0xbd8] ss:$28 sps:$4 sm:$0xff]  }
 0x2d9   :  { %4777 = vmatpush1.bf16.msra.mxu0 %v23183_v14  ;;  %4672 = vmatprep.subr.bf16.mxu1 %v23188_v29  ;;  %v23224_v14 = vld [vmem:[%s33580_s3 + $0xc14] ss:$28 sps:$4 sm:$0xff]   ;;  %v23248_v29 = vld [vmem:[#allocation2 + $0x24] ss:$8 sps:$4 sm:$0x33]  }
 0x2da   :  { %4778 = vmatprep.subr.bf16.mxu0 %v23191_v12  ;;  %v23222_v12 = vld [vmem:[%s33580_s3 + $0xc10] ss:$28 sps:$4 sm:$0xff]  }
 0x2dc   :  { %4673 = vmatpush1.bf16.msra.mxu1 %v23186_v10  ;;  %v23227_v10 = vld [vmem:[%s33580_s3 + $0xc1c] ss:$28 sps:$4 sm:$0xff]  }
 0x2dd   :  { %4779 = vmatpush1.bf16.msra.mxu0 %v23189_v15  ;;  %4674 = vmatprep.subr.bf16.mxu1 %v23194_v11  ;;  %v23243_v15 = vld [vmem:[#allocation2] ss:$8 sps:$4 sm:$0xff]   ;;  %v23245_v11 = vld [vmem:[#allocation2 + $0x4] ss:$8 sps:$4 sm:$0xff]  }
 0x2de   :  { %4780 = vmatprep.subr.bf16.mxu0 %v23197_v16  ;;  %v27526_v16 = vrot.slane %v23249_v17, %v25979_v36 }
 0x2e0   :  { %4675 = vmatpush1.bf16.msra.mxu1 %v23192_v63  ;;  %v23225_v63 = vld [vmem:[%s33580_s3 + $0xc18] ss:$28 sps:$4 sm:$0xff]  }
 0x2e1   :  { %4781 = vmatpush1.bf16.msra.mxu0 %v23195_v23  ;;  %4676 = vmatprep.subr.bf16.mxu1 %v23200_v5  ;;  %v23228_v23 = vld [vmem:[%s33580_s3 + $0x7f8] ss:$28 sps:$4 sm:$0xff]   ;;  %v23246_v5 = vld [vmem:[#allocation2 + $0x20] ss:$8 sps:$4 sm:$0xff]  }
 0x2e2   :  { %4782 = vmatprep.subr.bf16.mxu0 %v23203_v25  ;;  %v23231_v25 = vld [vmem:[%s33580_s3 + $0x4] ss:$28 sps:$4 sm:$0xff]  }
 0x2e4   :  { %4677 = vmatpush1.bf16.msra.mxu1 %v23198_v40  ;;  %v2427_v40 = vrot.slane %v23248_v29, %v25979_v36  ;;  %v23241_v29 = vld [vmem:[%s33580_s3 + $0x74] ss:$28 sps:$4 sm:$0xff]  }
 0x2e5   :  { %4783 = vmatpush1.bf16.msra.mxu0 %v23201_v33  ;;  %4678 = vmatprep.subr.bf16.mxu1 %v23206_v61  ;;  %v23232_v33 = vld [vmem:[%s33580_s3 + $0x638] ss:$28 sps:$4 sm:$0xff]  }
 0x2e6   :  { %4784 = vmatprep.subr.bf16.mxu0 %v23209_v31  ;;  %v19537_v61 = vcombine.low %v2427_v40, %v27526_v16  ;;  %v2391_v31 = vrot.slane %v23245_v11, %v25979_v36  ;;  %v23239_v11 = vld [vmem:[%s33580_s3 + $0x70] ss:$28 sps:$4 sm:$0xff]   ;;  %v23256_v40 = vld [vmem:[%s33580_s3 + $0x6e0] ss:$28 sps:$4 sm:$0xff]  }
 0x2e8   :  { %4679 = vmatpush1.bf16.msra.mxu1 %v23204_v41  ;;  %v2384_v41 = vrot.slane %v23243_v15, %v25979_v36 }
 0x2e9   :  { %4785 = vmatpush1.bf16.msra.mxu0 %v23207_v43  ;;  %4680 = vmatprep.subr.bf16.mxu1 %v23212_v20  ;;  %v2420_v43 = vrot.slane %v23246_v5, %v25979_v36  ;;  %v23229_v20 = vld [vmem:[%s33580_s3] ss:$28 sps:$4 sm:$0xff]  }
 0x2ea   :  { %4786 = vmatprep.subr.bf16.mxu0 %v23215_v6  ;;  %v23233_v6 = vld [vmem:[%s33580_s3 + $0x830] ss:$28 sps:$4 sm:$0xff]  }
 0x2eb   :  { %v27573_v17 = vrot.slane %v2420_v43, %v25979_v36  ;;  %v23265_v43 = vld [vmem:[%s33580_s3 + $0x11c] ss:$28 sps:$4 sm:$0xff]  }
 0x2ec   :  { %4681 = vmatpush1.bf16.msra.mxu1 %v23210_v19  ;;  %v23236_v19 = vld [vmem:[%s33580_s3 + $0x3c] ss:$28 sps:$4 sm:$0xff]  }
 0x2ed   :  { %4787 = vmatpush1.bf16.msra.mxu0 %v23213_v8  ;;  %4682 = vmatprep.subr.bf16.mxu1 %v23218_v44  ;;  %v23237_v8 = vld [vmem:[%s33580_s3 + $0x670] ss:$28 sps:$4 sm:$0xff]   ;;  %v27559_v44 = vrot.slane %v19537_v61, %v25979_v36  ;;  %v23260_v61 = vld [vmem:[%s33580_s3 + $0xe4] ss:$28 sps:$4 sm:$0xff]  }
 0x2ee   :  { %4788 = vmatprep.subr.bf16.mxu0 %v23221_v59  ;;  %v27570_v59 = vrot.slane %v2391_v31, %v25979_v36  ;;  %v23262_v31 = vld [vmem:[%s33580_s3 + $0x910] ss:$28 sps:$4 sm:$0xff]  }
 0x2f0   :  { %4683 = vmatpush1.bf16.msra.mxu1 %v23216_v62  ;;  %v27567_v62 = vrot.slane %v2384_v41, %v25979_v36  ;;  %v23258_v41 = vld [vmem:[%s33580_s3 + $0xe0] ss:$28 sps:$4 sm:$0xff]  }
 0x2f1   :  { %4789 = vmatpush1.bf16.msra.mxu0 %v23219_v22  ;;  %4684 = vmatprep.subr.bf16.mxu1 %v23224_v14  ;;  %v23234_v22 = vld [vmem:[%s33580_s3 + $0x38] ss:$28 sps:$4 sm:$0xff]   ;;  %v23238_v14 = vld [vmem:[%s33580_s3 + $0x868] ss:$28 sps:$4 sm:$0xff]  }
 0x2f2   :  { %4790 = vmatprep.subr.bf16.mxu0 %v23227_v10  ;;  %v23242_v10 = vld [vmem:[%s33580_s3 + $0x6a8] ss:$28 sps:$4 sm:$0xff]   ;;  %v2549_v15 = vcombine.high %v27567_v62, %v27570_v59 }
 0x2f4   :  { %4685 = vmatpush1.bf16.msra.mxu1 %v23222_v12  ;;  %v2585_v12 = vcombine.high %v27573_v17, %v27559_v44 }
 0x2f5   :  { %4791 = vmatpush1.bf16.msra.mxu0 %v23225_v63  ;;  %22321 = vmatprep.subr.bf16.mxu1 %v23228_v23  ;;  %v23252_v63 = vld [vmem:[%s33580_s3 + $0x8a0] ss:$28 sps:$4 sm:$0xff]   ;;  %v23255_v23 = vld [vmem:[%s33580_s3 + $0xac] ss:$28 sps:$4 sm:$0xff]  }
 0x2f6   :  { %5933 = vmatprep.subr.bf16.mxu0 %v23231_v25  ;;  %v27601_v5 = vpack.c.bf16 %v2585_v12, %v2549_v15  ;;  %v23253_v25 = vld [vmem:[%s33580_s3 + $0xa8] ss:$28 sps:$4 sm:$0xff]   ;;  %v23276_v12 = vld [vmem:[%s33580_s3 + $0x7c0] ss:$28 sps:$4 sm:$0xff]  }
 0x2f7   :  { %4695 = vmatmul.mubr.bf16.vlgmr.msra.gmra.mrb[40].mxu1 %v27045_v21  ;;  %v23273_v15 = vld [vmem:[%s33580_s3 + $0x188] ss:$28 sps:$4 sm:$0xff]  }
 0x2f8   :  { %4801 = vmatmul.mubr.bf16.vlgmr.msra.gmra.mrb[40].mxu0 %v27045_v21  ;;  %19970 = vmatprep.mubr.msk.bf16.mxu1 %vm158_vm5, %v27124_v28 }
 0x2f9   :  { %19972 = vmatprep.mubr.msk.bf16.mxu0 %vm158_vm5, %v27124_v28  ;;  %22322 = vmatpush3.bf16.msra.mxu1 %v23232_v33  ;;  %v23257_v33 = vld [vmem:[%s33580_s3 + $0x8d8] ss:$28 sps:$4 sm:$0xff]  }
 0x2fa   :  { %5934 = vmatpush1.bf16.msra.mxu0 %v23229_v20  ;;  %22323 = vmatprep.subr.bf16.mxu1 %v23233_v6  ;;  %v23266_v20 = vld [vmem:[%s33580_s3 + $0x750] ss:$28 sps:$4 sm:$0xff]   ;;  %v23263_v6 = vld [vmem:[%s33580_s3 + $0x118] ss:$28 sps:$4 sm:$0xff]  }
 0x2fb   :  { %5935 = vmatprep.subr.bf16.mxu0 %v23236_v19  ;;  %v23267_v19 = vld [vmem:[%s33580_s3 + $0x948] ss:$28 sps:$4 sm:$0xff]  }
 0x2fd   :  { %22324 = vmatpush3.bf16.msra.mxu1 %v23237_v8  ;;  %v23270_v8 = vld [vmem:[%s33580_s3 + $0x154] ss:$28 sps:$4 sm:$0xff]  }
 0x2fe   :  { %5936 = vmatpush1.bf16.msra.mxu0 %v23234_v22  ;;  %22325 = vmatprep.subr.bf16.mxu1 %v23238_v14  ;;  %v23271_v22 = vld [vmem:[%s33580_s3 + $0x788] ss:$28 sps:$4 sm:$0xff]   ;;  %v23268_v14 = vld [vmem:[%s33580_s3 + $0x150] ss:$28 sps:$4 sm:$0xff]  }
 0x2ff   :  { %4705 = vmatmul.mubr.bf16.gmra.mrb[44].mxu1 %v27126_v18  ;;  %5937 = vmatprep.subr.bf16.mxu0 %v23241_v29  ;;  %v23272_v29 = vld [vmem:[%s33580_s3 + $0x980] ss:$28 sps:$4 sm:$0xff]  }
 0x300   :  { %4811 = vmatmul.mubr.bf16.gmra.mrb[44].mxu0 %v27126_v18  ;;  %4853 = vmatprep.mubr.bf16.mxu1 %v27031_v2  ;;  %v23261_v2 = vld [vmem:[%s33580_s3 + $0x718] ss:$28 sps:$4 sm:$0xff]  }
 0x301   :  { %22326 = vmatpush3.bf16.msra.mxu1 %v23242_v10  ;;  %5965 = vmatprep.mubr.bf16.mxu0 %v27601_v5  ;;  %v23275_v10 = vld [vmem:[%s33580_s3 + $0x18c] ss:$28 sps:$4 sm:$0xff]  }
 0x302   :  { %5938 = vmatpush1.bf16.msra.mxu0 %v23239_v11  ;;  %22327 = vmatprep.subr.bf16.mxu1 %v23252_v63  ;;  %v23279_v11 = vld [vmem:[%s33580_s3 + $0x1c4] ss:$28 sps:$4 sm:$0xff]   ;;  %v23280_v63 = vld [vmem:[%s33580_s3 + $0x9b8] ss:$28 sps:$4 sm:$0xff]  }
 0x303   :  { %5939 = vmatprep.subr.bf16.mxu0 %v23255_v23  ;;  %v33629_v23 = vmov 0  }
 0x305   :  { %22328 = vmatpush3.bf16.msra.mxu1 %v23256_v40  ;;  %v23277_v40 = vld [vmem:[%s33580_s3 + $0x1c0] ss:$28 sps:$4 sm:$0xff]  }
 0x306   :  { %5940 = vmatpush1.bf16.msra.mxu0 %v23253_v25  ;;  %22329 = vmatprep.subr.bf16.mxu1 %v23257_v33  ;;  %v23283_v25 = vld [vmem:[%s33580_s3 + $0x1fc] ss:$28 sps:$4 sm:$0xff]   ;;  %v23284_v33 = vld [vmem:[%s33580_s3 + $0x9f0] ss:$28 sps:$4 sm:$0xff]  }
 0x307   :  { %5941 = vmatprep.subr.bf16.mxu0 %v23260_v61  ;;  %v23281_v61 = vld [vmem:[%s33580_s3 + $0x1f8] ss:$28 sps:$4 sm:$0xff]  }
 0x309   :  { %22330 = vmatpush3.bf16.msra.mxu1 %v23261_v2  ;;  %v23287_v2 = vld [vmem:[%s33580_s3 + $0x234] ss:$28 sps:$4 sm:$0xff]  }
 0x30a   :  { %5942 = vmatpush1.bf16.msra.mxu0 %v23258_v41  ;;  %22331 = vmatprep.subr.bf16.mxu1 %v23262_v31  ;;  %v23288_v41 = vld [vmem:[%s33580_s3 + $0xa28] ss:$28 sps:$4 sm:$0xff]  }
 0x30b   :  { %5943 = vmatprep.subr.bf16.mxu0 %v23265_v43  ;;  %v23316_v31 = vld [vmem:[#allocation2 + $0x80] ss:$8 sps:$4 sm:$0xff]   ;;  %v23319_v43 = vld [vmem:[#allocation2 + $0x90] ss:$8 sps:$4 sm:$0xff]  }
 0x30d   :  { %22332 = vmatpush3.bf16.msra.mxu1 %v23266_v20  ;;  %v23292_v20 = vld [vmem:[%s33580_s3 + $0xa60] ss:$28 sps:$4 sm:$0xff]  }
 0x30e   :  { %5944 = vmatpush1.bf16.msra.mxu0 %v23263_v6  ;;  %22333 = vmatprep.subr.bf16.mxu1 %v23267_v19  ;;  %v23251_v6 = vld [vmem:[#allocation2 + $0x64] ss:$8 sps:$4 sm:$0xff]  }
 0x30f   :  { %5945 = vmatprep.subr.bf16.mxu0 %v23270_v8  ;;  %v23289_v19 = vld [vmem:[%s33580_s3 + $0x268] ss:$28 sps:$4 sm:$0xff]  }
 0x310   :  { %v23295_v8 = vld [vmem:[%s33580_s3 + $0x2a4] ss:$28 sps:$4 sm:$0xff]  }
 0x311   :  { %22334 = vmatpush3.bf16.msra.mxu1 %v23271_v22  ;;  %v23313_v22 = vld [vmem:[#allocation2 + $0x70] ss:$8 sps:$4 sm:$0xff]  }
 0x312   :  { %5946 = vmatpush1.bf16.msra.mxu0 %v23268_v14  ;;  %22335 = vmatprep.subr.bf16.mxu1 %v23272_v29  ;;  %v23315_v14 = vld [vmem:[#allocation2 + $0x74] ss:$8 sps:$4 sm:$0xff]   ;;  %v27712_v29 = vrot.slane %v23316_v31, %v25979_v36 }
 0x313   :  { %5947 = vmatprep.subr.bf16.mxu0 %v23275_v10  ;;  %v27715_v10 = vrot.slane %v23319_v43, %v25979_v36 }
 0x315   :  { %22336 = vmatpush3.bf16.msra.mxu1 %v23276_v12  ;;  %v23293_v12 = vld [vmem:[%s33580_s3 + $0x2a0] ss:$28 sps:$4 sm:$0xff]  }
 0x316   :  { %5948 = vmatpush1.bf16.msra.mxu0 %v23273_v15  ;;  %4870 = vmatprep.subr.bf16.mxu1 %v33629_v23  ;;  %v23299_v15 = vld [vmem:[%s33580_s3 + $0x2dc] ss:$28 sps:$4 sm:$0xff]  }
 0x317   :  { %5949 = vmatprep.subr.bf16.mxu0 %v23279_v11  ;;  %v27725_v11 = vrot.slane %v23251_v6, %v25979_v36  ;;  %v23301_v6 = vld [vmem:[%s33580_s3 + $0x310] ss:$28 sps:$4 sm:$0xff]  }
 0x318   :  { %4854 = vmatmul.mubr.bf16.vlgmr.msra.gmra.mrb[48].mxu1 %v27036_v13  ;;  %v23285_v13 = vld [vmem:[%s33580_s3 + $0x230] ss:$28 sps:$4 sm:$0xff]  }
 0x319   :  { %4861 = vmatprep.mubr.bf16.mxu1 %v27120_v49  ;;  %4871 = vmatpush1.bf16.msra.mxu1 %v23280_v63  ;;  %v23291_v49 = vld [vmem:[%s33580_s3 + $0x26c] ss:$28 sps:$4 sm:$0xff]   ;;  %v27728_v63 = vrot.slane %v23313_v22, %v25979_v36 }
 0x31a   :  { %5950 = vmatpush1.bf16.msra.mxu0 %v23277_v40  ;;  %4872 = vmatprep.subr.bf16.mxu1 %v33629_v23  ;;  %v27731_v40 = vrot.slane %v23315_v14, %v25979_v36 }
 0x31b   :  { %5951 = vmatprep.subr.bf16.mxu0 %v23283_v25  ;;  %v2514_v25 = vcombine.high %v27712_v29, %v27715_v10 }
 0x31c   :  { %v2480_v31 = vcombine.high %v27725_v11, %v27731_v40 }
 0x31d   :  { %4873 = vmatpush1.bf16.msra.mxu1 %v23284_v33  ;;  %v23300_v33 = vld [vmem:[%s33580_s3 + $0xad0] ss:$28 sps:$4 sm:$0xff]  }
 0x31e   :  { %5952 = vmatpush1.bf16.msra.mxu0 %v23281_v61  ;;  %4874 = vmatprep.subr.bf16.mxu1 %v33629_v23  ;;  %v23297_v61 = vld [vmem:[%s33580_s3 + $0x2d8] ss:$28 sps:$4 sm:$0xff]  }
 0x31f   :  { %5953 = vmatprep.subr.bf16.mxu0 %v23287_v2 }
 0x320   :  { %4862 = vmatmul.mubr.bf16.gmra.mrb[52].mxu1 %v27122_v34  ;;  %v23296_v34 = vld [vmem:[%s33580_s3 + $0xa98] ss:$28 sps:$4 sm:$0xff]  }
 0x321   :  { %4875 = vmatpush1.bf16.msra.mxu1 %v23288_v41  ;;  %19973 = vmatprep.mubr.msk.bf16.mxu1 %vm158_vm5, %v27040_v24  ;;  %v23318_v24 = vld [vmem:[#allocation2 + $0x84] ss:$8 sps:$4 sm:$0x33]   ;;  %v23303_v41 = vld [vmem:[%s33580_s3 + $0x314] ss:$28 sps:$4 sm:$0xff]  }
 0x322   :  { %5954 = vmatpush1.bf16.msra.mxu0 %v23285_v13  ;;  %4876 = vmatprep.subr.bf16.mxu1 %v33629_v23  ;;  %v27743_v2 = vrot.slane %v23318_v24, %v25979_v36  ;;  %v23304_v13 = vld [vmem:[%s33580_s3 + $0xb08] ss:$28 sps:$4 sm:$0xff]   ;;  %v23331_v24 = vld [vmem:[#allocation2 + $0x14] ss:$8 sps:$4 sm:$0xff]  }
 0x323   :  { %5955 = vmatprep.subr.bf16.mxu0 %v23291_v49  ;;  %v2478_v49 = vcombine.high %v27526_v16, %v27728_v63  ;;  %v19541_v16 = vcombine.low %v2480_v31, %v27712_v29 }
 0x324   :  { %v19543_v43 = vcombine.low %v2514_v25, %v27743_v2  ;;  %v23332_v25 = vld [vmem:[#allocation2 + $0x30] ss:$8 sps:$4 sm:$0xff]  }
 0x325   :  { %4877 = vmatpush1.bf16.msra.mxu1 %v23292_v20  ;;  %v23334_v20 = vld [vmem:[#allocation2 + $0x34] ss:$8 sps:$4 sm:$0x33]   ;;  %v19539_v22 = vcombine.low %v2478_v49, %v27725_v11 }
 0x326   :  { %5956 = vmatpush1.bf16.msra.mxu0 %v23289_v19  ;;  %4878 = vmatprep.subr.bf16.mxu1 %v33629_v23  ;;  %v23307_v19 = vld [vmem:[%s33580_s3 + $0x34c] ss:$28 sps:$4 sm:$0xff]   ;;  %v2632_v14 = vrot.slane %v19543_v43, %v25979_v36  ;;  %v23309_v49 = vld [vmem:[%s33580_s3 + $0x380] ss:$28 sps:$4 sm:$0xff]  }
 0x327   :  { %5957 = vmatprep.subr.bf16.mxu0 %v23295_v8  ;;  %v23329_v8 = vld [vmem:[#allocation2 + $0x10] ss:$8 sps:$4 sm:$0xff]   ;;  %v2598_v31 = vrot.slane %v19539_v22, %v25979_v36  ;;  %v2434_v22 = vrot.slane %v23332_v25, %v25979_v36 }
 0x328   :  { %v2640_v43 = vcombine.high %v2632_v14, %v2632_v14 }
 0x329   :  { %4879 = vmatpush1.bf16.msra.mxu1 %v23296_v34  ;;  %v23308_v34 = vld [vmem:[%s33580_s3 + $0xb40] ss:$28 sps:$4 sm:$0xff]   ;;  %v27822_v25 = vrot.slane %v2434_v22, %v25979_v36 }
 0x32a   :  { %5958 = vmatpush1.bf16.msra.mxu0 %v23293_v12  ;;  %4880 = vmatprep.subr.bf16.mxu1 %v33629_v23  ;;  %v23305_v12 = vld [vmem:[%s33580_s3 + $0x348] ss:$28 sps:$4 sm:$0xff]   ;;  %v23347_v22 = vld [vmem:[%s33580_s3 + $0x49c] ss:$28 sps:$4 sm:$0xff]  }
 0x32b   :  { %5959 = vmatprep.subr.bf16.mxu0 %v23299_v15  ;;  %v2612_v15 = vrot.slane %v19541_v16, %v25979_v36  ;;  %v2405_v16 = vrot.slane %v23331_v24, %v25979_v36 }
 0x32d   :  { %4881 = vmatpush1.bf16.msra.mxu1 %v23300_v33  ;;  %v2441_v33 = vrot.slane %v23334_v20, %v25979_v36 }
 0x32e   :  { %5960 = vmatpush1.bf16.msra.mxu0 %v23297_v61  ;;  %4882 = vmatprep.subr.bf16.mxu1 %v33629_v23  ;;  %v2584_v61 = vcombine.low %v27573_v17, %v27559_v44  ;;  %v2548_v44 = vcombine.low %v27567_v62, %v27570_v59  ;;  %v23323_v17 = vld [vmem:[%s33580_s3 + $0x3bc] ss:$28 sps:$4 sm:$0xff]   ;;  %v23324_v62 = vld [vmem:[%s33580_s3 + $0xbb0] ss:$28 sps:$4 sm:$0xff]  }
 0x32f   :  { %5961 = vmatprep.subr.bf16.mxu0 %v23303_v41  ;;  %v23311_v41 = vld [vmem:[%s33580_s3 + $0x384] ss:$28 sps:$4 sm:$0xff]   ;;  %v19538_v20 = vcombine.low %v2441_v33, %v27728_v63 }
 0x330   :  { %v27797_v30 = vpack.c.bf16 %v2584_v61, %v2548_v44  ;;  %v2620_v61 = vcombine.low %v2598_v31, %v2612_v15  ;;  %v23338_v44 = vld [vmem:[%s33580_s3 + $0xc20] ss:$28 sps:$4 sm:$0xff]  }
 0x331   :  { %4883 = vmatpush1.bf16.msra.mxu1 %v23304_v13  ;;  %v23312_v13 = vld [vmem:[%s33580_s3 + $0xb78] ss:$28 sps:$4 sm:$0xff]   ;;  %v27805_v59 = vrot.slane %v19538_v20, %v25979_v36 }
 0x332   :  { %5962 = vmatpush1.bf16.msra.mxu0 %v23301_v6  ;;  %4884 = vmatprep.subr.bf16.mxu1 %v33629_v23  ;;  %v2398_v6 = vrot.slane %v23329_v8, %v25979_v36  ;;  %v23321_v8 = vld [vmem:[%s33580_s3 + $0x3b8] ss:$28 sps:$4 sm:$0xff]  }
 0x333   :  { %5963 = vmatprep.subr.bf16.mxu0 %v23307_v19  ;;  %v2621_v19 = vcombine.high %v2598_v31, %v2612_v15  ;;  %v23337_v15 = vld [vmem:[%s33580_s3 + $0x42c] ss:$28 sps:$4 sm:$0xff]   ;;  %v27839_v31 = vpack.c.bf16 %v2632_v14, %v2620_v61  ;;  %v23341_v14 = vld [vmem:[%s33580_s3 + $0x464] ss:$28 sps:$4 sm:$0xff]   ;;  %v23353_v61 = vld [vmem:[%s33580_s3 + $0x4d4] ss:$28 sps:$4 sm:$0xff]  }
 0x334   :  { %v27816_v24 = vrot.slane %v2398_v6, %v25979_v36  ;;  %v23344_v6 = vld [vmem:[%s33580_s3 + $0xc] ss:$28 sps:$4 sm:$0xff]  }
 0x335   :  { %4885 = vmatpush1.bf16.msra.mxu1 %v23308_v34  ;;  %v27799_v33 = vpack.c.bf16 %v2640_v43, %v2621_v19  ;;  %v23327_v34 = vld [vmem:[%s33580_s3 + $0x3f4] ss:$28 sps:$4 sm:$0xff]   ;;  %v23342_v19 = vld [vmem:[%s33580_s3 + $0x8] ss:$28 sps:$4 sm:$0xff]  }
 0x336   :  { %5964 = vmatpush1.bf16.msra.mxu0 %v23305_v12  ;;  %4886 = vmatprep.subr.bf16.mxu1 %v33629_v23  ;;  %v27819_v12 = vrot.slane %v2405_v16, %v25979_v36  ;;  %v23339_v16 = vld [vmem:[%s33580_s3 + $0x460] ss:$28 sps:$4 sm:$0xff]  }
 0x337   :  { %5986 = vmatprep.subr.bf16.mxu0 %v23311_v41  ;;  %v23328_v41 = vld [vmem:[%s33580_s3 + $0xbe8] ss:$28 sps:$4 sm:$0xff]  }
 0x338   :  { %v2551_v43 = vcombine.high %v27816_v24, %v27819_v12 }
 0x339   :  { %5966 = vmatmul.mubr.bf16.vlgmr.msra.gmra.mrb[48].mxu0 %v27797_v30  ;;  %4887 = vmatpush1.bf16.msra.mxu1 %v23312_v13  ;;  %v23325_v13 = vld [vmem:[%s33580_s3 + $0x3f0] ss:$28 sps:$4 sm:$0xff]  }
 0x33a   :  { %5975 = vmatprep.mubr.bf16.mxu0 %v27799_v33  ;;  %5987 = vmatpush1.bf16.msra.mxu0 %v23309_v49  ;;  %v2587_v49 = vcombine.high %v27822_v25, %v27805_v59 }
 0x33b   :  { %4888 = vmatprep.subr.bf16.mxu1 %v33629_v23  ;;  %5988 = vmatprep.subr.bf16.mxu0 %v23323_v17  ;;  %v23335_v17 = vld [vmem:[%s33580_s3 + $0x428] ss:$28 sps:$4 sm:$0xff]  }
 0x33c   :  { %v27841_v20 = vpack.c.bf16 %v2587_v49, %v2551_v43  ;;  %v23362_v49 = vld [vmem:[%s33580_s3 + $0xb4] ss:$28 sps:$4 sm:$0xff]  }
 0x33d   :  { %4889 = vmatpush1.bf16.msra.mxu1 %v23324_v62  ;;  %v23350_v62 = vld [vmem:[%s33580_s3 + $0x44] ss:$28 sps:$4 sm:$0xff]   ;;  %v23393_v43 = vld [vmem:[#allocation2 + $0x94] ss:$8 sps:$4 sm:$0x33]  }
 0x33e   :  { %5989 = vmatpush1.bf16.msra.mxu0 %v23321_v8  ;;  %4890 = vmatprep.subr.bf16.mxu1 %v33629_v23  ;;  %v23348_v8 = vld [vmem:[%s33580_s3 + $0x40] ss:$28 sps:$4 sm:$0xff]  }
 0x33f   :  { %5990 = vmatprep.subr.bf16.mxu0 %v23327_v34  ;;  %v23345_v34 = vld [vmem:[%s33580_s3 + $0x498] ss:$28 sps:$4 sm:$0xff]  }
 0x341   :  { %5976 = vmatmul.mubr.bf16.gmra.mrb[52].mxu0 %v27839_v31  ;;  %4891 = vmatpush1.bf16.msra.mxu1 %v23328_v41  ;;  %v23356_v41 = vld [vmem:[%s33580_s3 + $0x7c] ss:$28 sps:$4 sm:$0xff]  }
 0x342   :  { %5991 = vmatpush1.bf16.msra.mxu0 %v23325_v13  ;;  %20171 = vmatprep.mubr.msk.bf16.mxu0 %vm158_vm5, %v27841_v20  ;;  %v23359_v13 = vld [vmem:[%s33580_s3 + $0x50c] ss:$28 sps:$4 sm:$0xff]  }
 0x343   :  { %4892 = vmatprep.subr.bf16.mxu1 %v33629_v23  ;;  %5992 = vmatprep.subr.bf16.mxu0 %v23337_v15  ;;  %v23360_v15 = vld [vmem:[%s33580_s3 + $0xb0] ss:$28 sps:$4 sm:$0xff]  }
 0x345   :  { %4893 = vmatpush1.bf16.msra.mxu1 %v23338_v44  ;;  %v23357_v44 = vld [vmem:[%s33580_s3 + $0x508] ss:$28 sps:$4 sm:$0xff]  }
 0x346   :  { %5993 = vmatpush1.bf16.msra.mxu0 %v23335_v17  ;;  %6039 = vmatprep.subr.bf16.mxu1 %v23344_v6  ;;  %v23365_v17 = vld [vmem:[%s33580_s3 + $0x544] ss:$28 sps:$4 sm:$0xff]  }
 0x347   :  { %5994 = vmatprep.subr.bf16.mxu0 %v23341_v14  ;;  %v23368_v14 = vld [vmem:[%s33580_s3 + $0xec] ss:$28 sps:$4 sm:$0xff]   ;;  %v23363_v6 = vld [vmem:[%s33580_s3 + $0x540] ss:$28 sps:$4 sm:$0xff]  }
 0x348   :  { %4903 = vmatmul.mubr.bf16.vlgmr.msra.gmra.mrb[56].mxu1 %v27045_v21  ;;  %v23354_v21 = vld [vmem:[%s33580_s3 + $0x78] ss:$28 sps:$4 sm:$0xff]  }
 0x349   :  { %19974 = vmatprep.mubr.msk.bf16.mxu1 %vm158_vm5, %v27124_v28  ;;  %6040 = vmatpush1.bf16.msra.mxu1 %v23342_v19  ;;  %v23351_v28 = vld [vmem:[%s33580_s3 + $0x4d0] ss:$28 sps:$4 sm:$0xff]   ;;  %v2512_v19 = vrot.slane %v23393_v43, %v25979_v36 }
 0x34a   :  { %5995 = vmatpush1.bf16.msra.mxu0 %v23339_v16  ;;  %6041 = vmatprep.subr.bf16.mxu1 %v23350_v62  ;;  %v23371_v16 = vld [vmem:[%s33580_s3 + $0x57c] ss:$28 sps:$4 sm:$0xff]   ;;  %v2513_v62 = vcombine.low %v27712_v29, %v27715_v10 }
 0x34b   :  { %5996 = vmatprep.subr.bf16.mxu0 %v23347_v22  ;;  %v23374_v22 = vld [vmem:[%s33580_s3 + $0x124] ss:$28 sps:$4 sm:$0xff]   ;;  %v23380_v29 = vld [vmem:[%s33580_s3 + $0x15c] ss:$28 sps:$4 sm:$0xff]  }
 0x34d   :  { %6042 = vmatpush1.bf16.msra.mxu1 %v23348_v8  ;;  %v2515_v8 = vcombine.low %v27743_v2, %v2512_v19  ;;  %v2479_v2 = vcombine.low %v27725_v11, %v27731_v40  ;;  %v23375_v11 = vld [vmem:[%s33580_s3 + $0x5b0] ss:$28 sps:$4 sm:$0xff]   ;;  %v19542_v19 = vcombine.high %v27731_v40, %v2513_v62 }
 0x34e   :  { %5997 = vmatpush1.bf16.msra.mxu0 %v23345_v34  ;;  %6043 = vmatprep.subr.bf16.mxu1 %v23356_v41  ;;  %v23372_v41 = vld [vmem:[%s33580_s3 + $0x120] ss:$28 sps:$4 sm:$0xff]   ;;  %v23384_v62 = vld [vmem:[%s33580_s3 + $0x190] ss:$28 sps:$4 sm:$0xff]  }
 0x34f   :  { %5998 = vmatprep.subr.bf16.mxu0 %v23353_v61  ;;  %v23369_v61 = vld [vmem:[%s33580_s3 + $0x578] ss:$28 sps:$4 sm:$0xff]   ;;  %v2619_v3 = vrot.slane %v19542_v19, %v25979_v36 }
 0x350   :  { %4911 = vmatmul.mubr.bf16.gmra.mrb[60].mxu1 %v27126_v18  ;;  %v23366_v18 = vld [vmem:[%s33580_s3 + $0xe8] ss:$28 sps:$4 sm:$0xff]  }
 0x351   :  { %6044 = vmatpush1.bf16.msra.mxu1 %v23354_v21  ;;  %6071 = vmatprep.mubr.bf16.mxu1 %v27601_v5 }
 0x352   :  { %5999 = vmatpush1.bf16.msra.mxu0 %v23351_v28  ;;  %6045 = vmatprep.subr.bf16.mxu1 %v23362_v49 }
 0x353   :  { %6000 = vmatprep.subr.bf16.mxu0 %v23359_v13 }
 0x355   :  { %6046 = vmatpush1.bf16.msra.mxu1 %v23360_v15  ;;  %v23377_v15 = vld [vmem:[%s33580_s3 + $0x5b4] ss:$28 sps:$4 sm:$0xff]  }
 0x356   :  { %6001 = vmatpush1.bf16.msra.mxu0 %v23357_v44  ;;  %6047 = vmatprep.subr.bf16.mxu1 %v23368_v14  ;;  %v23378_v44 = vld [vmem:[%s33580_s3 + $0x158] ss:$28 sps:$4 sm:$0xff]  }
 0x357   :  { %6002 = vmatprep.subr.bf16.mxu0 %v23365_v17 }
 0x359   :  { %6048 = vmatpush1.bf16.msra.mxu1 %v23366_v18  ;;  %v4537_v34 = vpop.f32.mrb[32].mxu0 }
 0x35a   :  { %6003 = vmatpush1.bf16.msra.mxu0 %v23363_v6  ;;  %v4590_v21 = vpop.f32.mrb[32].mxu1  ;;  %6049 = vmatprep.subr.bf16.mxu1 %v23374_v22  ;;  %v4539_v28 = vpop.f32.mrb[33].mxu0  ;;  %v23386_v6 = vld [vmem:[%s33580_s3 + $0x194] ss:$28 sps:$4 sm:$0xff]  }
 0x35b   :  { %v27939_v13 = vadd.f32 %v4590_v21, %v4537_v34  ;;  %6004 = vmatprep.subr.bf16.mxu0 %v23371_v16  ;;  %v4592_v49 = vpop.f32.mrb[33].mxu1  ;;  %v4541_v43 = vpop.f32.mrb[34].mxu0  ;;  %v19544_v16 = vcombine.high %v27715_v10, %v2515_v8  ;;  %v23383_v21 = vld [vmem:[%s33580_s3 + $0x5ec] ss:$28 sps:$4 sm:$0xff]  }
 0x35c   :  { %v27947_v17 = vadd.f32 %v4592_v49, %v4539_v28  ;;  %v4594_v14 = vpop.f32.mrb[34].mxu1  ;;  %v4543_v18 = vpop.f32.mrb[35].mxu0  ;;  %v19540_v49 = vcombine.high %v27728_v63, %v2479_v2  ;;  %v23381_v10 = vld [vmem:[%s33580_s3 + $0x5e8] ss:$28 sps:$4 sm:$0xff]   ;;  %v23390_v2 = vld [vmem:[%s33580_s3 + $0x10] ss:$28 sps:$4 sm:$0xff]  }
 0x35d   :  { %6050 = vmatpush1.bf16.msra.mxu1 %v23372_v41  ;;  %v27957_v22 = vadd.f32 %v4594_v14, %v4541_v43  ;;  %v4596_v34 = vpop.f32.mrb[35].mxu1  ;;  %v2639_v40 = vrot.slane %v19544_v16, %v25979_v36  ;;  %v23389_v8 = vld [vmem:[%s33580_s3 + $0x1cc] ss:$28 sps:$4 sm:$0xff]   ;;  %v23396_v14 = vld [vmem:[%s33580_s3 + $0x204] ss:$28 sps:$4 sm:$0xff]  }
 0x35e   :  { %6005 = vmatpush1.bf16.msra.mxu0 %v23369_v61  ;;  %v27962_v28 = vadd.f32 %v4596_v34, %v4543_v18  ;;  %6051 = vmatprep.subr.bf16.mxu1 %v23380_v29  ;;  %v2605_v63 = vrot.slane %v19540_v49, %v25979_v36  ;;  %v2586_v61 = vcombine.low %v27822_v25, %v27805_v59  ;;  %v23387_v41 = vld [vmem:[%s33580_s3 + $0x1c8] ss:$28 sps:$4 sm:$0xff]   ;;  %v23392_v29 = vld [vmem:[%s33580_s3 + $0x14] ss:$28 sps:$4 sm:$0xff]   ;;  %v23394_v25 = vld [vmem:[%s33580_s3 + $0x200] ss:$28 sps:$4 sm:$0xff]  }
 0x35f   :  { %6006 = vmatprep.subr.bf16.mxu0 %v23377_v15  ;;  %v2641_v15 = vcombine.high %v2639_v40, %v2639_v40  ;;  %v23399_v18 = vld [vmem:[%s33580_s3 + $0x4c] ss:$28 sps:$4 sm:$0xff]  }
 0x360   :  { %v2623_v43 = vcombine.high %v2605_v63, %v2619_v3  ;;  %v2622_v16 = vcombine.low %v2605_v63, %v2619_v3  ;;  %v23403_v3 = vld [vmem:[%s33580_s3 + $0x80] ss:$28 sps:$4 sm:$0xff]  }
 0x361   :  { %6052 = vmatpush1.bf16.msra.mxu1 %v23378_v44  ;;  %v2550_v44 = vcombine.low %v27816_v24, %v27819_v12  ;;  %v23397_v24 = vld [vmem:[%s33580_s3 + $0x48] ss:$28 sps:$4 sm:$0xff]   ;;  %v23402_v12 = vld [vmem:[%s33580_s3 + $0x23c] ss:$28 sps:$4 sm:$0xff]  }
 0x362   :  { %6007 = vmatpush1.bf16.msra.mxu0 %v23375_v11  ;;  %6053 = vmatprep.subr.bf16.mxu1 %v23386_v6  ;;  %v28001_v11 = vpack.c.bf16 %v2641_v15, %v2623_v43  ;;  %v23405_v6 = vld [vmem:[%s33580_s3 + $0x84] ss:$28 sps:$4 sm:$0xff]   ;;  %v23406_v15 = vld [vmem:[%s33580_s3 + $0x270] ss:$28 sps:$4 sm:$0xff]  }
 0x363   :  { %6008 = vmatprep.subr.bf16.mxu0 %v23383_v21  ;;  %v27990_v59 = vpack.c.bf16 %v2586_v61, %v2550_v44  ;;  %v23408_v44 = vld [vmem:[%s33580_s3 + $0x274] ss:$28 sps:$4 sm:$0xff]  }
 0x365   :  { %6054 = vmatpush1.bf16.msra.mxu1 %v23384_v62 }
 0x366   :  { %6009 = vmatpush1.bf16.msra.mxu0 %v23381_v10  ;;  %6055 = vmatprep.subr.bf16.mxu1 %v23389_v8  ;;  %v23400_v8 = vld [vmem:[%s33580_s3 + $0x238] ss:$28 sps:$4 sm:$0xff]  }
 0x367   :  { %6145 = vmatprep.subr.bf16.mxu0 %v23392_v29 }
 0x369   :  { %6019 = vmatmul.mubr.bf16.vlgmr.msra.gmra.mrb[48].mxu0 %v27990_v59  ;;  %6056 = vmatpush1.bf16.msra.mxu1 %v23387_v41 }
 0x36a   :  { %20172 = vmatprep.mubr.msk.bf16.mxu0 %vm158_vm5, %v28001_v11  ;;  %6146 = vmatpush1.bf16.msra.mxu0 %v23390_v2  ;;  %v28027_v2 = vpack.c.bf16 %v2639_v40, %v2622_v16  ;;  %v23409_v40 = vld [vmem:[%s33580_s3 + $0xb8] ss:$28 sps:$4 sm:$0xff]   ;;  %v23418_v16 = vld [vmem:[%s33580_s3 + $0x2e0] ss:$28 sps:$4 sm:$0xff]  }
 0x36b   :  { %6057 = vmatprep.subr.bf16.mxu1 %v23396_v14  ;;  %6147 = vmatprep.subr.bf16.mxu0 %v23399_v18  ;;  %v4547_v19 = vpop.f32.mrb[36].mxu0  ;;  %v23414_v18 = vld [vmem:[%s33580_s3 + $0x2ac] ss:$28 sps:$4 sm:$0xff]  }
 0x36c   :  { %v4600_v34 = vpop.f32.mrb[36].mxu1  ;;  %v4549_v21 = vpop.f32.mrb[37].mxu0 }
 0x36d   :  { %6058 = vmatpush1.bf16.msra.mxu1 %v23394_v25  ;;  %v28015_v49 = vadd.f32 %v4600_v34, %v4547_v19  ;;  %v4602_v10 = vpop.f32.mrb[37].mxu1  ;;  %v4551_v62 = vpop.f32.mrb[38].mxu0  ;;  %v23411_v25 = vld [vmem:[%s33580_s3 + $0xbc] ss:$28 sps:$4 sm:$0xff]   ;;  %v23420_v19 = vld [vmem:[%s33580_s3 + $0x2e4] ss:$28 sps:$4 sm:$0xff]  }
 0x36e   :  { %6148 = vmatpush1.bf16.msra.mxu0 %v23397_v24  ;;  %v28020_v61 = vadd.f32 %v4602_v10, %v4549_v21  ;;  %v4604_v41 = vpop.f32.mrb[38].mxu1  ;;  %6059 = vmatprep.subr.bf16.mxu1 %v23402_v12  ;;  %v4553_v63 = vpop.f32.mrb[39].mxu0  ;;  %v23417_v24 = vld [vmem:[%s33580_s3 + $0xf4] ss:$28 sps:$4 sm:$0xff]   ;;  %v23412_v12 = vld [vmem:[%s33580_s3 + $0x2a8] ss:$28 sps:$4 sm:$0xff]  }
 0x36f   :  { %v28025_v29 = vadd.f32 %v4604_v41, %v4551_v62  ;;  %6149 = vmatprep.subr.bf16.mxu0 %v23405_v6  ;;  %v4606_v43 = vpop.f32.mrb[39].mxu1  ;;  %v23415_v6 = vld [vmem:[%s33580_s3 + $0xf0] ss:$28 sps:$4 sm:$0xff]   ;;  %v23421_v21 = vld [vmem:[%s33580_s3 + $0x128] ss:$28 sps:$4 sm:$0xff]  }
 0x370   :  { %v28038_v14 = vadd.f32 %v4606_v43, %v4553_v63  ;;  %v23423_v34 = vld [vmem:[%s33580_s3 + $0x12c] ss:$28 sps:$4 sm:$0xff]   ;;  %v23426_v10 = vld [vmem:[%s33580_s3 + $0x31c] ss:$28 sps:$4 sm:$0xff]  }
 0x371   :  { %6029 = vmatmul.mubr.bf16.gmra.mrb[52].mxu0 %v28027_v2  ;;  %6060 = vmatpush1.bf16.msra.mxu1 %v23400_v8  ;;  %v23424_v62 = vld [vmem:[%s33580_s3 + $0x318] ss:$28 sps:$4 sm:$0xff]   ;;  %v23429_v8 = vld [vmem:[%s33580_s3 + $0x164] ss:$28 sps:$4 sm:$0xff]   ;;  %v23430_v63 = vld [vmem:[%s33580_s3 + $0x350] ss:$28 sps:$4 sm:$0xff]  }
 0x372   :  { %6150 = vmatpush1.bf16.msra.mxu0 %v23403_v3  ;;  %6177 = vmatprep.mubr.bf16.mxu0 %v27601_v5  ;;  %v23427_v41 = vld [vmem:[%s33580_s3 + $0x160] ss:$28 sps:$4 sm:$0xff]   ;;  %v23432_v3 = vld [vmem:[%s33580_s3 + $0x354] ss:$28 sps:$4 sm:$0xff]  }
 0x373   :  { %6061 = vmatprep.subr.bf16.mxu1 %v23408_v44  ;;  %6151 = vmatprep.subr.bf16.mxu0 %v23411_v25  ;;  %v23435_v43 = vld [vmem:[%s33580_s3 + $0x19c] ss:$28 sps:$4 sm:$0xff]   ;;  %v23438_v44 = vld [vmem:[%s33580_s3 + $0x38c] ss:$28 sps:$4 sm:$0xff]  }
 0x374   :  { %v23436_v25 = vld [vmem:[%s33580_s3 + $0x388] ss:$28 sps:$4 sm:$0xff]  }
 0x375   :  { %6062 = vmatpush1.bf16.msra.mxu1 %v23406_v15  ;;  %v23433_v15 = vld [vmem:[%s33580_s3 + $0x198] ss:$28 sps:$4 sm:$0xff]  }
 0x376   :  { %6152 = vmatpush1.bf16.msra.mxu0 %v23409_v40  ;;  %6063 = vmatprep.subr.bf16.mxu1 %v23414_v18  ;;  %v23441_v40 = vld [vmem:[%s33580_s3 + $0x1d4] ss:$28 sps:$4 sm:$0xff]  }
 0x377   :  { %6153 = vmatprep.subr.bf16.mxu0 %v23417_v24  ;;  %v23439_v18 = vld [vmem:[%s33580_s3 + $0x1d0] ss:$28 sps:$4 sm:$0xff]   ;;  %v23444_v24 = vld [vmem:[%s33580_s3 + $0x3c4] ss:$28 sps:$4 sm:$0xff]  }
 0x379   :  { %6064 = vmatpush1.bf16.msra.mxu1 %v23412_v12  ;;  %v23447_v12 = vld [vmem:[%s33580_s3 + $0x20c] ss:$28 sps:$4 sm:$0xff]  }
 0x37a   :  { %6154 = vmatpush1.bf16.msra.mxu0 %v23415_v6  ;;  %6065 = vmatprep.subr.bf16.mxu1 %v23420_v19  ;;  %v23442_v6 = vld [vmem:[%s33580_s3 + $0x3c0] ss:$28 sps:$4 sm:$0xff]   ;;  %v23445_v19 = vld [vmem:[%s33580_s3 + $0x208] ss:$28 sps:$4 sm:$0xff]  }
 0x37b   :  { %6155 = vmatprep.subr.bf16.mxu0 %v23423_v34  ;;  %v23448_v34 = vld [vmem:[%s33580_s3 + $0x3f8] ss:$28 sps:$4 sm:$0xff]  }
 0x37d   :  { %6066 = vmatpush1.bf16.msra.mxu1 %v23418_v16  ;;  %v23450_v16 = vld [vmem:[%s33580_s3 + $0x3fc] ss:$28 sps:$4 sm:$0xff]  }
 0x37e   :  { %6156 = vmatpush1.bf16.msra.mxu0 %v23421_v21  ;;  %6067 = vmatprep.subr.bf16.mxu1 %v23426_v10  ;;  %v23453_v21 = vld [vmem:[%s33580_s3 + $0x244] ss:$28 sps:$4 sm:$0xff]  }
 0x37f   :  { %6157 = vmatprep.subr.bf16.mxu0 %v23429_v8  ;;  %v23451_v10 = vld [vmem:[%s33580_s3 + $0x240] ss:$28 sps:$4 sm:$0xff]  }
 0x380   :  { %v23459_v8 = vld [vmem:[%s33580_s3 + $0x27c] ss:$28 sps:$4 sm:$0xff]  }
 0x381   :  { %6068 = vmatpush1.bf16.msra.mxu1 %v23424_v62  ;;  %v23456_v62 = vld [vmem:[%s33580_s3 + $0x434] ss:$28 sps:$4 sm:$0xff]  }
 0x382   :  { %6158 = vmatpush1.bf16.msra.mxu0 %v23427_v41  ;;  %6069 = vmatprep.subr.bf16.mxu1 %v23432_v3  ;;  %v23454_v41 = vld [vmem:[%s33580_s3 + $0x430] ss:$28 sps:$4 sm:$0xff]   ;;  %v23457_v3 = vld [vmem:[%s33580_s3 + $0x278] ss:$28 sps:$4 sm:$0xff]  }
 0x383   :  { %6159 = vmatprep.subr.bf16.mxu0 %v23435_v43  ;;  %v23460_v43 = vld [vmem:[%s33580_s3 + $0x468] ss:$28 sps:$4 sm:$0xff]  }
 0x385   :  { %6070 = vmatpush1.bf16.msra.mxu1 %v23430_v63  ;;  %v23462_v63 = vld [vmem:[%s33580_s3 + $0x46c] ss:$28 sps:$4 sm:$0xff]  }
 0x386   :  { %6160 = vmatpush1.bf16.msra.mxu0 %v23433_v15  ;;  %6092 = vmatprep.subr.bf16.mxu1 %v23438_v44  ;;  %v23465_v15 = vld [vmem:[%s33580_s3 + $0x2b4] ss:$28 sps:$4 sm:$0xff]  }
 0x387   :  { %6161 = vmatprep.subr.bf16.mxu0 %v23441_v40  ;;  %v23463_v44 = vld [vmem:[%s33580_s3 + $0x2b0] ss:$28 sps:$4 sm:$0xff]  }
 0x388   :  { %6072 = vmatmul.mubr.bf16.vlgmr.msra.gmra.mrb[40].mxu1 %v27797_v30  ;;  %v23471_v40 = vld [vmem:[%s33580_s3 + $0x2ec] ss:$28 sps:$4 sm:$0xff]  }
 0x389   :  { %6081 = vmatprep.mubr.bf16.mxu1 %v27799_v33  ;;  %6093 = vmatpush1.bf16.msra.mxu1 %v23436_v25  ;;  %v23468_v25 = vld [vmem:[%s33580_s3 + $0x4a4] ss:$28 sps:$4 sm:$0xff]  }
 0x38a   :  { %6162 = vmatpush1.bf16.msra.mxu0 %v23439_v18  ;;  %6094 = vmatprep.subr.bf16.mxu1 %v23444_v24  ;;  %v23466_v18 = vld [vmem:[%s33580_s3 + $0x4a0] ss:$28 sps:$4 sm:$0xff]   ;;  %v23469_v24 = vld [vmem:[%s33580_s3 + $0x2e8] ss:$28 sps:$4 sm:$0xff]  }
 0x38b   :  { %6163 = vmatprep.subr.bf16.mxu0 %v23447_v12  ;;  %v23474_v12 = vld [vmem:[%s33580_s3 + $0x4dc] ss:$28 sps:$4 sm:$0xff]  }
 0x38d   :  { %6095 = vmatpush1.bf16.msra.mxu1 %v23442_v6  ;;  %v23477_v6 = vld [vmem:[%s33580_s3 + $0x324] ss:$28 sps:$4 sm:$0xff]  }
 0x38e   :  { %6164 = vmatpush1.bf16.msra.mxu0 %v23445_v19  ;;  %6096 = vmatprep.subr.bf16.mxu1 %v23450_v16  ;;  %v23472_v19 = vld [vmem:[%s33580_s3 + $0x4d8] ss:$28 sps:$4 sm:$0xff]   ;;  %v23475_v16 = vld [vmem:[%s33580_s3 + $0x320] ss:$28 sps:$4 sm:$0xff]  }
 0x38f   :  { %6165 = vmatprep.subr.bf16.mxu0 %v23453_v21  ;;  %v23483_v21 = vld [vmem:[%s33580_s3 + $0x35c] ss:$28 sps:$4 sm:$0xff]  }
 0x390   :  { %6082 = vmatmul.mubr.bf16.gmra.mrb[44].mxu1 %v27839_v31 }
 0x391   :  { %6097 = vmatpush1.bf16.msra.mxu1 %v23448_v34  ;;  %20173 = vmatprep.mubr.msk.bf16.mxu1 %vm158_vm5, %v27841_v20  ;;  %v23480_v34 = vld [vmem:[%s33580_s3 + $0x514] ss:$28 sps:$4 sm:$0xff]  }
 0x392   :  { %6166 = vmatpush1.bf16.msra.mxu0 %v23451_v10  ;;  %6098 = vmatprep.subr.bf16.mxu1 %v23456_v62  ;;  %v23478_v10 = vld [vmem:[%s33580_s3 + $0x510] ss:$28 sps:$4 sm:$0xff]   ;;  %v23481_v62 = vld [vmem:[%s33580_s3 + $0x358] ss:$28 sps:$4 sm:$0xff]  }
 0x393   :  { %6167 = vmatprep.subr.bf16.mxu0 %v23459_v8  ;;  %v23486_v8 = vld [vmem:[%s33580_s3 + $0x54c] ss:$28 sps:$4 sm:$0xff]  }
 0x395   :  { %6099 = vmatpush1.bf16.msra.mxu1 %v23454_v41  ;;  %v23489_v41 = vld [vmem:[%s33580_s3 + $0x394] ss:$28 sps:$4 sm:$0xff]  }
 0x396   :  { %6168 = vmatpush1.bf16.msra.mxu0 %v23457_v3  ;;  %6100 = vmatprep.subr.bf16.mxu1 %v23462_v63  ;;  %v23484_v3 = vld [vmem:[%s33580_s3 + $0x548] ss:$28 sps:$4 sm:$0xff]   ;;  %v23487_v63 = vld [vmem:[%s33580_s3 + $0x390] ss:$28 sps:$4 sm:$0xff]  }
 0x397   :  { %6169 = vmatprep.subr.bf16.mxu0 %v23465_v15  ;;  %v23492_v15 = vld [vmem:[%s33580_s3 + $0x584] ss:$28 sps:$4 sm:$0xff]  }
 0x399   :  { %6101 = vmatpush1.bf16.msra.mxu1 %v23460_v43  ;;  %v23490_v43 = vld [vmem:[%s33580_s3 + $0x580] ss:$28 sps:$4 sm:$0xff]  }
 0x39a   :  { %6170 = vmatpush1.bf16.msra.mxu0 %v23463_v44  ;;  %6102 = vmatprep.subr.bf16.mxu1 %v23468_v25  ;;  %v23495_v44 = vld [vmem:[%s33580_s3 + $0x3cc] ss:$28 sps:$4 sm:$0xff]  }
 0x39b   :  { %6171 = vmatprep.subr.bf16.mxu0 %v23471_v40  ;;  %v23493_v25 = vld [vmem:[%s33580_s3 + $0x3c8] ss:$28 sps:$4 sm:$0xff]   ;;  %v23498_v40 = vld [vmem:[%s33580_s3 + $0x5bc] ss:$28 sps:$4 sm:$0xff]  }
 0x39d   :  { %6103 = vmatpush1.bf16.msra.mxu1 %v23466_v18  ;;  %v23501_v18 = vld [vmem:[%s33580_s3 + $0x404] ss:$28 sps:$4 sm:$0xff]  }
 0x39e   :  { %6172 = vmatpush1.bf16.msra.mxu0 %v23469_v24  ;;  %6104 = vmatprep.subr.bf16.mxu1 %v23474_v12  ;;  %v23496_v24 = vld [vmem:[%s33580_s3 + $0x5b8] ss:$28 sps:$4 sm:$0xff]   ;;  %v23499_v12 = vld [vmem:[%s33580_s3 + $0x400] ss:$28 sps:$4 sm:$0xff]  }
 0x39f   :  { %6173 = vmatprep.subr.bf16.mxu0 %v23477_v6  ;;  %v23502_v6 = vld [vmem:[%s33580_s3 + $0x5f0] ss:$28 sps:$4 sm:$0xff]  }
 0x3a1   :  { %6105 = vmatpush1.bf16.msra.mxu1 %v23472_v19  ;;  %v23504_v19 = vld [vmem:[%s33580_s3 + $0x5f4] ss:$28 sps:$4 sm:$0xff]  }
 0x3a2   :  { %6174 = vmatpush1.bf16.msra.mxu0 %v23475_v16  ;;  %6106 = vmatprep.subr.bf16.mxu1 %v23480_v34  ;;  %v23507_v16 = vld [vmem:[%s33580_s3 + $0x43c] ss:$28 sps:$4 sm:$0xff]  }
 0x3a3   :  { %6175 = vmatprep.subr.bf16.mxu0 %v23483_v21  ;;  %v23505_v34 = vld [vmem:[%s33580_s3 + $0x438] ss:$28 sps:$4 sm:$0xff]  }
 0x3a4   :  { %v23511_v21 = vld [vmem:[%s33580_s3 + $0x1d8] ss:$28 sps:$4 sm:$0xff]  }
 0x3a5   :  { %6107 = vmatpush1.bf16.msra.mxu1 %v23478_v10  ;;  %v23510_v10 = vld [vmem:[%s33580_s3 + $0x474] ss:$28 sps:$4 sm:$0xff]  }
 0x3a6   :  { %6176 = vmatpush1.bf16.msra.mxu0 %v23481_v62  ;;  %6108 = vmatprep.subr.bf16.mxu1 %v23486_v8  ;;  %v23512_v62 = vld [vmem:[%s33580_s3 + $0x18] ss:$28 sps:$4 sm:$0xff]  }
 0x3a7   :  { %6198 = vmatprep.subr.bf16.mxu0 %v23489_v41 }
 0x3a9   :  { %6178 = vmatmul.mubr.bf16.vlgmr.msra.gmra.mrb[40].mxu0 %v27797_v30  ;;  %6109 = vmatpush1.bf16.msra.mxu1 %v23484_v3 }
 0x3aa   :  { %6187 = vmatprep.mubr.bf16.mxu0 %v27799_v33  ;;  %6199 = vmatpush1.bf16.msra.mxu0 %v23487_v63 }
 0x3ab   :  { %6110 = vmatprep.subr.bf16.mxu1 %v23492_v15  ;;  %6200 = vmatprep.subr.bf16.mxu0 %v23495_v44 }
 0x3ad   :  { %6111 = vmatpush1.bf16.msra.mxu1 %v23490_v43 }
 0x3ae   :  { %6201 = vmatpush1.bf16.msra.mxu0 %v23493_v25  ;;  %6112 = vmatprep.subr.bf16.mxu1 %v23498_v40 }
 0x3af   :  { %6202 = vmatprep.subr.bf16.mxu0 %v23501_v18 }
 0x3b1   :  { %6188 = vmatmul.mubr.bf16.gmra.mrb[44].mxu0 %v27839_v31  ;;  %6113 = vmatpush1.bf16.msra.mxu1 %v23496_v24 }
 0x3b2   :  { %6203 = vmatpush1.bf16.msra.mxu0 %v23499_v12  ;;  %20175 = vmatprep.mubr.msk.bf16.mxu0 %vm158_vm5, %v27841_v20 }
 0x3b3   :  { %6114 = vmatprep.subr.bf16.mxu1 %v23504_v19  ;;  %6204 = vmatprep.subr.bf16.mxu0 %v23507_v16 }
 0x3b5   :  { %6115 = vmatpush1.bf16.msra.mxu1 %v23502_v6 }
 0x3b6   :  { %17 = vsyncpa [#allocation6], 0  ;;  %6205 = vmatpush1.bf16.msra.mxu0 %v23505_v34  ;;  %v23508_v8 = vld [vmem:[%s33580_s3 + $0x470] ss:$28 sps:$4 sm:$0xff]   ;;  %22349 = vmatprep.subr.bf16.mxu1 %v23511_v21  ;;  %v23513_v43 = vld [vmem:[%s33580_s3 + $0x4a8] ss:$28 sps:$4 sm:$0xff]  }
 0x3b7   :  { %v23516_v41 = vld [vmem:[%s33580_s3 + $0x210] ss:$28 sps:$4 sm:$0xff]   ;;  %6206 = vmatprep.subr.bf16.mxu0 %v23510_v10  ;;  %v23521_v15 = vld [vmem:[%s33580_s3 + $0x248] ss:$28 sps:$4 sm:$0xff]   ;;  %v23518_v40 = vld [vmem:[%s33580_s3 + $0x4e0] ss:$28 sps:$4 sm:$0xff]  }
 0x3b8   :  { %v23515_v3 = vld [vmem:[%s33580_s3 + $0x4ac] ss:$28 sps:$4 sm:$0xff]   ;;  %6125 = vmatmul.mubr.bf16.vlgmr.msra.gmra.mrb[40].mxu1 %v27990_v59  ;;  %v23520_v44 = vld [vmem:[%s33580_s3 + $0x4e4] ss:$28 sps:$4 sm:$0xff]   ;;  %v23525_v24 = vld [vmem:[%s33580_s3 + $0x51c] ss:$28 sps:$4 sm:$0xff]  }
 0x3b9   :  { %20174 = vmatprep.mubr.msk.bf16.mxu1 %vm158_vm5, %v28001_v11  ;;  %22350 = vmatpush3.bf16.msra.mxu1 %v23512_v62  ;;  %v23517_v63 = vld [vmem:[%s33580_s3 + $0x50] ss:$28 sps:$4 sm:$0xff]   ;;  %v23522_v25 = vld [vmem:[%s33580_s3 + $0x88] ss:$28 sps:$4 sm:$0xff]   ;;  %v23526_v18 = vld [vmem:[%s33580_s3 + $0x280] ss:$28 sps:$4 sm:$0xff]  }
 0x3ba   :  { %6207 = vmatpush1.bf16.msra.mxu0 %v23508_v8  ;;  %22351 = vmatprep.subr.bf16.mxu1 %v23516_v41  ;;  %v23527_v12 = vld [vmem:[%s33580_s3 + $0xc0] ss:$28 sps:$4 sm:$0xff]   ;;  %v23523_v6 = vld [vmem:[%s33580_s3 + $0x518] ss:$28 sps:$4 sm:$0xff]   ;;  %v23528_v34 = vld [vmem:[%s33580_s3 + $0x550] ss:$28 sps:$4 sm:$0xff]  }
 0x3bb   :  { %6208 = vmatprep.subr.bf16.mxu0 %v23515_v3  ;;  %v23531_v19 = vld [vmem:[%s33580_s3 + $0x2b8] ss:$28 sps:$4 sm:$0xff]   ;;  %v23536_v21 = vld [vmem:[%s33580_s3 + $0x2f0] ss:$28 sps:$4 sm:$0xff]   ;;  %v23533_v8 = vld [vmem:[%s33580_s3 + $0x588] ss:$28 sps:$4 sm:$0xff]  }
 0x3bc   :  { %v23530_v16 = vld [vmem:[%s33580_s3 + $0x554] ss:$28 sps:$4 sm:$0xff]   ;;  %v23535_v10 = vld [vmem:[%s33580_s3 + $0x58c] ss:$28 sps:$4 sm:$0xff]   ;;  %v23540_v3 = vld [vmem:[%s33580_s3 + $0x5c4] ss:$28 sps:$4 sm:$0xff]  }
 0x3bd   :  { %22352 = vmatpush3.bf16.msra.mxu1 %v23517_v63  ;;  %v23537_v62 = vld [vmem:[%s33580_s3 + $0x130] ss:$28 sps:$4 sm:$0xff]   ;;  %v23541_v41 = vld [vmem:[%s33580_s3 + $0x328] ss:$28 sps:$4 sm:$0xff]   ;;  %vm19377_vm4 = vcmask 74752  }
 0x3be   :  { %6209 = vmatpush1.bf16.msra.mxu0 %v23513_v43  ;;  %22353 = vmatprep.subr.bf16.mxu1 %v23521_v15  ;;  %v23560_v63 = vld [vmem:[#allocation2] ss:$8 sps:$4 sm:$0xcc]  }
 0x3bf   :  { %6210 = vmatprep.subr.bf16.mxu0 %v23520_v44  ;;  %v23571_v43 = vld [vmem:[#allocation2 + $0x60] ss:$8 sps:$4 sm:$0xcc]  }
 0x3c0   :  { %6135 = vmatmul.mubr.bf16.gmra.mrb[44].mxu1 %v28027_v2  ;;  %v23542_v15 = vld [vmem:[%s33580_s3 + $0x168] ss:$28 sps:$4 sm:$0xff]   ;;  %v23538_v44 = vld [vmem:[%s33580_s3 + $0x5c0] ss:$28 sps:$4 sm:$0xff]  }
 0x3c1   :  { %22354 = vmatpush3.bf16.msra.mxu1 %v23522_v25  ;;  %6283 = vmatprep.mubr.bf16.mxu1 %v27601_v5  ;;  %v23532_v5 = vld [vmem:[%s33580_s3 + $0xf8] ss:$28 sps:$4 sm:$0xff]   ;;  %v23546_v25 = vld [vmem:[%s33580_s3 + $0x360] ss:$28 sps:$4 sm:$0xff]   ;;  %v23964_v51 = vld [vmem:[%s33580_s3 + $0x15ac] ss:$28 sps:$4 sm:$0xff]  }
 0x3c2   :  { %6211 = vmatpush1.bf16.msra.mxu0 %v23518_v40  ;;  %22355 = vmatprep.subr.bf16.mxu1 %v23526_v18  ;;  %v23545_v40 = vld [vmem:[%s33580_s3 + $0x5fc] ss:$28 sps:$4 sm:$0xff]   ;;  %v6391_v18 = vrot.slane %v23560_v63, %v25979_v36 }
 0x3c3   :  { %6212 = vmatprep.subr.bf16.mxu0 %v23525_v24  ;;  %v6462_v24 = vrot.slane %v23571_v43, %v25979_v36  ;;  %v23559_v43 = vld [vmem:[%s33580_s3 + $0x408] ss:$28 sps:$4 sm:$0xff]  }
 0x3c5   :  { %22356 = vmatpush3.bf16.msra.mxu1 %v23527_v12  ;;  %v23547_v12 = vld [vmem:[%s33580_s3 + $0x1a0] ss:$28 sps:$4 sm:$0xff]  }
 0x3c6   :  { %6213 = vmatpush1.bf16.msra.mxu0 %v23523_v6  ;;  %22357 = vmatprep.subr.bf16.mxu1 %v23531_v19  ;;  %v23543_v6 = vld [vmem:[%s33580_s3 + $0x5f8] ss:$28 sps:$4 sm:$0xff]   ;;  %v6449_v19 = vcombine.high %v27205_v60, %v27208_v26 }
 0x3c7   :  { %6214 = vmatprep.subr.bf16.mxu0 %v23530_v16  ;;  %v23550_v16 = vld [vmem:[%s33580_s3 + $0xc44] ss:$28 sps:$4 sm:$0xff]   ;;  %v23551_v26 = vld [vmem:[%s33580_s3 + $0x398] ss:$28 sps:$4 sm:$0xff]  }
 0x3c9   :  { %22358 = vmatpush3.bf16.msra.mxu1 %v23532_v5  ;;  %v6413_v5 = vcombine.high %v6391_v18, %v27235_v55  ;;  %v23548_v55 = vld [vmem:[%s33580_s3 + $0xc40] ss:$28 sps:$4 sm:$0xff]  }
 0x3ca   :  { %6215 = vmatpush1.bf16.msra.mxu0 %v23528_v34  ;;  %22359 = vmatprep.subr.bf16.mxu1 %v23536_v21  ;;  %v6415_v34 = vcombine.high %v27193_v53, %v27196_v52  ;;  %v20185_v21 = vcombine.high %v27214_v42, %v6462_v24  ;;  %v23554_v52 = vld [vmem:[%s33580_s3 + $0xc7c] ss:$28 sps:$4 sm:$0xff]   ;;  %v23579_v24 = vld [vmem:[%s33580_s3 + $0xd24] ss:$28 sps:$4 sm:$0xff]  }
 0x3cb   :  { %6216 = vmatprep.subr.bf16.mxu0 %v23535_v10  ;;  %v23576_v18 = vld [vmem:[%s33580_s3 + $0x440] ss:$28 sps:$4 sm:$0xff]  }
 0x3cc   :  { %v20181_v10 = vcombine.low %v6415_v34, %v27205_v60 }
 0x3cd   :  { %22360 = vmatpush3.bf16.msra.mxu1 %v23537_v62  ;;  %v20183_v62 = vcombine.low %v6449_v19, %v27214_v42  ;;  %v23552_v42 = vld [vmem:[%s33580_s3 + $0xc78] ss:$28 sps:$4 sm:$0xff]   ;;  %v23584_v19 = vld [vmem:[%s33580_s3 + $0x4b0] ss:$28 sps:$4 sm:$0xff]  }
 0x3ce   :  { %6217 = vmatpush1.bf16.msra.mxu0 %v23533_v8  ;;  %22361 = vmatprep.subr.bf16.mxu1 %v23541_v41  ;;  %v20179_v8 = vcombine.low %v6413_v5, %v27193_v53  ;;  %v28374_v41 = vrot.slane %v20185_v21, %v25979_v36  ;;  %v28384_v60 = vrot.slane %v20181_v10, %v25979_v36  ;;  %v23581_v5 = vld [vmem:[%s33580_s3 + $0xd58] ss:$28 sps:$4 sm:$0xff]  }
 0x3cf   :  { %6218 = vmatprep.subr.bf16.mxu0 %v23540_v3  ;;  %v28387_v53 = vrot.slane %v20183_v62, %v25979_v36  ;;  %v23587_v21 = vld [vmem:[%s33580_s3 + $0xd94] ss:$28 sps:$4 sm:$0xff]  }
 0x3d0   :  { %v28397_v3 = vrot.slane %v20179_v8, %v25979_v36  ;;  %v23585_v8 = vld [vmem:[%s33580_s3 + $0xd90] ss:$28 sps:$4 sm:$0xff]  }
 0x3d1   :  { %22362 = vmatpush3.bf16.msra.mxu1 %v23542_v15  ;;  %v6592_v63 = vcombine.high %v28387_v53, %v28374_v41 }
 0x3d2   :  { %6219 = vmatpush1.bf16.msra.mxu0 %v23538_v44  ;;  %22363 = vmatprep.subr.bf16.mxu1 %v23546_v25  ;;  %v6556_v15 = vcombine.high %v28397_v3, %v28384_v60  ;;  %v23556_v44 = vld [vmem:[%s33580_s3 + $0xcb0] ss:$28 sps:$4 sm:$0xff]  }
 0x3d3   :  { %6220 = vmatprep.subr.bf16.mxu0 %v23545_v40  ;;  %v23575_v40 = vld [vmem:[%s33580_s3 + $0xcec] ss:$28 sps:$4 sm:$0xff]  }
 0x3d4   :  { %v28411_v25 = vpack.c.bf16 %v6592_v63, %v6556_v15  ;;  %v23589_v63 = vld [vmem:[%s33580_s3 + $0xdc8] ss:$28 sps:$4 sm:$0xff]  }
 0x3d5   :  { %22364 = vmatpush3.bf16.msra.mxu1 %v23547_v12  ;;  %v23577_v12 = vld [vmem:[%s33580_s3 + $0xd20] ss:$28 sps:$4 sm:$0xff]  }
 0x3d6   :  { %6221 = vmatpush1.bf16.msra.mxu0 %v23543_v6  ;;  %6300 = vmatprep.subr.bf16.mxu1 %v33629_v23  ;;  %v23583_v6 = vld [vmem:[%s33580_s3 + $0xd5c] ss:$28 sps:$4 sm:$0xff]   ;;  %v23595_v15 = vld [vmem:[%s33580_s3 + $0xe04] ss:$28 sps:$4 sm:$0xff]  }
 0x3d7   :  { %7912 = vmatprep.subr.bf16.mxu0 %v23550_v16 }
 0x3d8   :  { %6284 = vmatmul.mubr.bf16.vlgmr.msra.gmra.mrb[64].mxu1 %v27797_v30  ;;  %v23555_v30 = vld [vmem:[%s33580_s3 + $0x3d0] ss:$28 sps:$4 sm:$0xff]  }
 0x3d9   :  { %6231 = vmatmul.mubr.bf16.vlgmr.msra.gmra.mrb[40].mxu0 %v27990_v59  ;;  %6291 = vmatprep.mubr.bf16.mxu1 %v27799_v33  ;;  %v23558_v33 = vld [vmem:[%s33580_s3 + $0xcb4] ss:$28 sps:$4 sm:$0xff]  }
 0x3da   :  { %20176 = vmatprep.mubr.msk.bf16.mxu0 %vm158_vm5, %v28001_v11  ;;  %6301 = vmatpush1.bf16.msra.mxu1 %v23551_v26 }
 0x3db   :  { %7913 = vmatpush1.bf16.msra.mxu0 %v23548_v55  ;;  %6302 = vmatprep.subr.bf16.mxu1 %v33629_v23  ;;  %v23588_v55 = vld [vmem:[%s33580_s3 + $0x4e8] ss:$28 sps:$4 sm:$0xff]  }
 0x3dc   :  { %7914 = vmatprep.subr.bf16.mxu0 %v23554_v52 }
 0x3de   :  { %6303 = vmatpush1.bf16.msra.mxu1 %v23555_v30  ;;  %v23591_v30 = vld [vmem:[%s33580_s3 + $0xdcc] ss:$28 sps:$4 sm:$0xff]  }
 0x3df   :  { %7915 = vmatpush1.bf16.msra.mxu0 %v23552_v42  ;;  %6304 = vmatprep.subr.bf16.mxu1 %v33629_v23  ;;  %v23592_v42 = vld [vmem:[%s33580_s3 + $0x520] ss:$28 sps:$4 sm:$0xff]  }
 0x3e0   :  { %6292 = vmatmul.mubr.bf16.gmra.mrb[68].mxu1 %v27839_v31  ;;  %7916 = vmatprep.subr.bf16.mxu0 %v23558_v33  ;;  %v23573_v31 = vld [vmem:[%s33580_s3 + $0xce8] ss:$28 sps:$4 sm:$0xff]  }
 0x3e1   :  { %6241 = vmatmul.mubr.bf16.gmra.mrb[44].mxu0 %v28027_v2  ;;  %20177 = vmatprep.mubr.msk.bf16.mxu1 %vm158_vm5, %v27841_v20  ;;  %v23580_v20 = vld [vmem:[%s33580_s3 + $0x478] ss:$28 sps:$4 sm:$0xff]  }
 0x3e2   :  { %6305 = vmatpush1.bf16.msra.mxu1 %v23559_v43  ;;  %7944 = vmatprep.mubr.bf16.mxu0 %v28411_v25 }
 0x3e3   :  { %7917 = vmatpush1.bf16.msra.mxu0 %v23556_v44  ;;  %6306 = vmatprep.subr.bf16.mxu1 %v33629_v23 }
 0x3e4   :  { %7918 = vmatprep.subr.bf16.mxu0 %v23575_v40 }
 0x3e6   :  { %6307 = vmatpush1.bf16.msra.mxu1 %v23576_v18 }
 0x3e7   :  { %7919 = vmatpush1.bf16.msra.mxu0 %v23573_v31  ;;  %6308 = vmatprep.subr.bf16.mxu1 %v33629_v23  ;;  %v23596_v31 = vld [vmem:[%s33580_s3 + $0x558] ss:$28 sps:$4 sm:$0xff]  }
 0x3e8   :  { %7920 = vmatprep.subr.bf16.mxu0 %v23579_v24 }
 0x3ea   :  { %6309 = vmatpush1.bf16.msra.mxu1 %v23580_v20  ;;  %v23593_v20 = vld [vmem:[%s33580_s3 + $0xe00] ss:$28 sps:$4 sm:$0xff]  }
 0x3eb   :  { %7921 = vmatpush1.bf16.msra.mxu0 %v23577_v12  ;;  %v22337_v16 = vpop.f32.mrb[48].mxu1  ;;  %6310 = vmatprep.subr.bf16.mxu1 %v33629_v23  ;;  %v23599_v12 = vld [vmem:[%s33580_s3 + $0xe3c] ss:$28 sps:$4 sm:$0xff]  }
 0x3ec   :  { %v22338_v34 = vpop.f32.mrb[49].mxu1  ;;  %7922 = vmatprep.subr.bf16.mxu0 %v23583_v6  ;;  %v23600_v6 = vld [vmem:[%s33580_s3 + $0x590] ss:$28 sps:$4 sm:$0xff]  }
 0x3ed   :  { %v28450_v26 = vadd.f32 %v22338_v34, %v22337_v16  ;;  %v22340_v10 = vpop.f32.mrb[50].mxu1  ;;  %v23603_v16 = vld [vmem:[%s33580_s3 + $0xe74] ss:$28 sps:$4 sm:$0xff]  }
 0x3ee   :  { %6311 = vmatpush1.bf16.msra.mxu1 %v23584_v19  ;;  %v22341_v62 = vpop.f32.mrb[51].mxu1  ;;  %v23597_v19 = vld [vmem:[%s33580_s3 + $0xe38] ss:$28 sps:$4 sm:$0xff]   ;;  %v23601_v34 = vld [vmem:[%s33580_s3 + $0xe70] ss:$28 sps:$4 sm:$0xff]  }
 0x3ef   :  { %7923 = vmatpush1.bf16.msra.mxu0 %v23581_v5  ;;  %v28455_v52 = vadd.f32 %v22341_v62, %v22340_v10  ;;  %6312 = vmatprep.subr.bf16.mxu1 %v33629_v23  ;;  %v23604_v5 = vld [vmem:[%s33580_s3 + $0x5c8] ss:$28 sps:$4 sm:$0xff]   ;;  %v23608_v10 = vld [vmem:[%s33580_s3 + $0x600] ss:$28 sps:$4 sm:$0xff]  }
 0x3f0   :  { %7924 = vmatprep.subr.bf16.mxu0 %v23587_v21  ;;  %v23607_v21 = vld [vmem:[%s33580_s3 + $0xeac] ss:$28 sps:$4 sm:$0xff]  }
 0x3f1   :  { %v23605_v62 = vld [vmem:[%s33580_s3 + $0xea8] ss:$28 sps:$4 sm:$0xff]  }
 0x3f2   :  { %6313 = vmatpush1.bf16.msra.mxu1 %v23588_v55  ;;  %v23614_v55 = vld [vmem:[%s33580_s3 + $0xc4c] ss:$28 sps:$4 sm:$0xff]  }
 0x3f3   :  { %7925 = vmatpush1.bf16.msra.mxu0 %v23585_v8  ;;  %v22343_v33 = vpop.f32.mrb[52].mxu1  ;;  %6314 = vmatprep.subr.bf16.mxu1 %v33629_v23  ;;  %v23611_v8 = vld [vmem:[%s33580_s3 + $0xee4] ss:$28 sps:$4 sm:$0xff]  }
 0x3f4   :  { %v22344_v43 = vpop.f32.mrb[53].mxu1  ;;  %7926 = vmatprep.subr.bf16.mxu0 %v23591_v30  ;;  %v23612_v30 = vld [vmem:[%s33580_s3 + $0xc48] ss:$28 sps:$4 sm:$0xff]  }
 0x3f5   :  { %v28474_v44 = vadd.f32 %v22344_v43, %v22343_v33  ;;  %v22346_v40 = vpop.f32.mrb[54].mxu1  ;;  %v23620_v33 = vld [vmem:[%s33580_s3 + $0xc84] ss:$28 sps:$4 sm:$0xff]  }
 0x3f6   :  { %6315 = vmatpush1.bf16.msra.mxu1 %v23592_v42  ;;  %v22347_v18 = vpop.f32.mrb[55].mxu1  ;;  %v23609_v42 = vld [vmem:[%s33580_s3 + $0xee0] ss:$28 sps:$4 sm:$0xff]  }
 0x3f7   :  { %7927 = vmatpush1.bf16.msra.mxu0 %v23589_v63  ;;  %v28479_v24 = vadd.f32 %v22347_v18, %v22346_v40  ;;  %6316 = vmatprep.subr.bf16.mxu1 %v33629_v23  ;;  %v23617_v63 = vld [vmem:[%s33580_s3 + $0xf1c] ss:$28 sps:$4 sm:$0xff]   ;;  %v23640_v43 = vld [vmem:[#allocation2 + $0x80] ss:$8 sps:$4 sm:$0xff]  }
 0x3f8   :  { %7928 = vmatprep.subr.bf16.mxu0 %v23595_v15  ;;  %v23642_v15 = vld [vmem:[#allocation2 + $0x84] ss:$8 sps:$4 sm:$0xff]   ;;  %v23618_v40 = vld [vmem:[%s33580_s3 + $0xc80] ss:$28 sps:$4 sm:$0xff]   ;;  %v23615_v18 = vld [vmem:[%s33580_s3 + $0xf18] ss:$28 sps:$4 sm:$0xff]  }
 0x3fa   :  { %6317 = vmatpush1.bf16.msra.mxu1 %v23596_v31  ;;  %v23639_v31 = vld [vmem:[#allocation2 + $0x64] ss:$8 sps:$4 sm:$0xff]  }
 0x3fb   :  { %7929 = vmatpush1.bf16.msra.mxu0 %v23593_v20  ;;  %6318 = vmatprep.subr.bf16.mxu1 %v33629_v23  ;;  %v6497_v20 = vrot.slane %v23640_v43, %v25979_v36  ;;  %v6555_v43 = vcombine.low %v28397_v3, %v28384_v60  ;;  %v23648_v60 = vld [vmem:[%s33580_s3 + $0xd64] ss:$28 sps:$4 sm:$0xff]  }
 0x3fc   :  { %7930 = vmatprep.subr.bf16.mxu0 %v23599_v12  ;;  %v6504_v12 = vrot.slane %v23642_v15, %v25979_v36  ;;  %v23636_v15 = vld [vmem:[%s33580_s3 + $0xd28] ss:$28 sps:$4 sm:$0xff]  }
 0x3fe   :  { %6319 = vmatpush1.bf16.msra.mxu1 %v23600_v6  ;;  %v23624_v6 = vld [vmem:[%s33580_s3 + $0xcb8] ss:$28 sps:$4 sm:$0xff]  }
 0x3ff   :  { %7931 = vmatpush1.bf16.msra.mxu0 %v23597_v19  ;;  %6320 = vmatprep.subr.bf16.mxu1 %v33629_v23  ;;  %v23621_v19 = vld [vmem:[%s33580_s3 + $0xf50] ss:$28 sps:$4 sm:$0xff]  }
 0x400   :  { %7932 = vmatprep.subr.bf16.mxu0 %v23603_v16  ;;  %v23632_v16 = vld [vmem:[%s33580_s3 + $0xcf4] ss:$28 sps:$4 sm:$0xff]  }
 0x402   :  { %6321 = vmatpush1.bf16.msra.mxu1 %v23604_v5  ;;  %v6469_v5 = vrot.slane %v23639_v31, %v25979_v36  ;;  %v23643_v31 = vld [vmem:[%s33580_s3 + $0xff8] ss:$28 sps:$4 sm:$0xff]  }
 0x403   :  { %7933 = vmatpush1.bf16.msra.mxu0 %v23601_v34  ;;  %6322 = vmatprep.subr.bf16.mxu1 %v33629_v23  ;;  %v23629_v34 = vld [vmem:[%s33580_s3 + $0xf8c] ss:$28 sps:$4 sm:$0xff]  }
 0x404   :  { %7934 = vmatprep.subr.bf16.mxu0 %v23607_v21  ;;  %v6619_v21 = vrot.slane %v6497_v20, %v25979_v36 }
 0x406   :  { %6323 = vmatpush1.bf16.msra.mxu1 %v23608_v10  ;;  %v6639_v10 = vrot.slane %v6504_v12, %v25979_v36 }
 0x407   :  { %7935 = vmatpush1.bf16.msra.mxu0 %v23605_v62  ;;  %8018 = vmatprep.subr.bf16.mxu1 %v23614_v55  ;;  %v23630_v62 = vld [vmem:[%s33580_s3 + $0xcf0] ss:$28 sps:$4 sm:$0xff]   ;;  %v23627_v55 = vld [vmem:[%s33580_s3 + $0xf88] ss:$28 sps:$4 sm:$0xff]  }
 0x408   :  { %7936 = vmatprep.subr.bf16.mxu0 %v23611_v8  ;;  %v6605_v8 = vrot.slane %v6469_v5, %v25979_v36 }
 0x409   :  { %6333 = vmatmul.mubr.bf16.vlgmr.msra.gmra.mrb[72].mxu1 %v27990_v59  ;;  %v23626_v59 = vld [vmem:[%s33580_s3 + $0xcbc] ss:$28 sps:$4 sm:$0xff]  }
 0x40a   :  { %20178 = vmatprep.mubr.msk.bf16.mxu1 %vm158_vm5, %v28001_v11  ;;  %8019 = vmatpush1.bf16.msra.mxu1 %v23612_v30  ;;  %v23623_v11 = vld [vmem:[%s33580_s3 + $0xf54] ss:$28 sps:$4 sm:$0xff]   ;;  %v6591_v30 = vcombine.low %v28387_v53, %v28374_v41  ;;  %v23633_v41 = vld [vmem:[%s33580_s3 + $0xfc0] ss:$28 sps:$4 sm:$0xff]  }
 0x40b   :  { %7937 = vmatpush1.bf16.msra.mxu0 %v23609_v42  ;;  %8020 = vmatprep.subr.bf16.mxu1 %v23620_v33  ;;  %v23635_v42 = vld [vmem:[%s33580_s3 + $0xfc4] ss:$28 sps:$4 sm:$0xff]   ;;  %v6628_v33 = vcombine.high %v6605_v8, %v6619_v21 }
 0x40c   :  { %7938 = vmatprep.subr.bf16.mxu0 %v23617_v63  ;;  %v6647_v63 = vcombine.high %v6639_v10, %v6639_v10  ;;  %v28590_v53 = vpack.c.bf16 %v6591_v30, %v6555_v43  ;;  %v23669_v30 = vld [vmem:[%s33580_s3 + $0xe0c] ss:$28 sps:$4 sm:$0xff]  }
 0x40e   :  { %8021 = vmatpush1.bf16.msra.mxu1 %v23618_v40  ;;  %v23645_v40 = vld [vmem:[%s33580_s3 + $0xffc] ss:$28 sps:$4 sm:$0xff]   ;;  %v28598_v3 = vpack.c.bf16 %v6647_v63, %v6628_v33  ;;  %v23666_v63 = vld [vmem:[%s33580_s3 + $0x10a4] ss:$28 sps:$4 sm:$0xff]  }
 0x40f   :  { %7939 = vmatpush1.bf16.msra.mxu0 %v23615_v18  ;;  %8022 = vmatprep.subr.bf16.mxu1 %v23626_v59  ;;  %v23646_v18 = vld [vmem:[%s33580_s3 + $0xd60] ss:$28 sps:$4 sm:$0xff]  }
 0x410   :  { %7940 = vmatprep.subr.bf16.mxu0 %v23623_v11  ;;  %v23654_v11 = vld [vmem:[%s33580_s3 + $0xd9c] ss:$28 sps:$4 sm:$0xff]  }
 0x411   :  { %6341 = vmatmul.mubr.bf16.gmra.mrb[76].mxu1 %v28027_v2  ;;  %v23638_v2 = vld [vmem:[%s33580_s3 + $0xd2c] ss:$28 sps:$4 sm:$0xff]  }
 0x412   :  { %8023 = vmatpush1.bf16.msra.mxu1 %v23624_v6  ;;  %8050 = vmatprep.mubr.bf16.mxu1 %v28411_v25  ;;  %v6627_v6 = vcombine.low %v6605_v8, %v6619_v21  ;;  %v23658_v8 = vld [vmem:[%s33580_s3 + $0x1068] ss:$28 sps:$4 sm:$0xff]  }
 0x413   :  { %7941 = vmatpush1.bf16.msra.mxu0 %v23621_v19  ;;  %8024 = vmatprep.subr.bf16.mxu1 %v23632_v16  ;;  %v23651_v19 = vld [vmem:[%s33580_s3 + $0x1034] ss:$28 sps:$4 sm:$0xff]  }
 0x414   :  { %7942 = vmatprep.subr.bf16.mxu0 %v23629_v34  ;;  %v28626_v21 = vpack.c.bf16 %v6639_v10, %v6627_v6  ;;  %v23676_v6 = vld [vmem:[%s33580_s3 + $0x1110] ss:$28 sps:$4 sm:$0xff]  }
 0x416   :  { %8025 = vmatpush1.bf16.msra.mxu1 %v23630_v62  ;;  %v23652_v62 = vld [vmem:[%s33580_s3 + $0xd98] ss:$28 sps:$4 sm:$0xff]  }
 0x417   :  { %7943 = vmatpush1.bf16.msra.mxu0 %v23627_v55  ;;  %8026 = vmatprep.subr.bf16.mxu1 %v23638_v2  ;;  %v23663_v55 = vld [vmem:[%s33580_s3 + $0xdd4] ss:$28 sps:$4 sm:$0xff]  }
 0x418   :  { %7965 = vmatprep.subr.bf16.mxu0 %v23635_v42  ;;  %v23661_v2 = vld [vmem:[%s33580_s3 + $0xdd0] ss:$28 sps:$4 sm:$0xff]  }
 0x41a   :  { %7945 = vmatmul.mubr.bf16.vlgmr.msra.gmra.mrb[48].mxu0 %v28590_v53  ;;  %8027 = vmatpush1.bf16.msra.mxu1 %v23636_v15 }
 0x41b   :  { %7954 = vmatprep.mubr.bf16.mxu0 %v28598_v3  ;;  %7966 = vmatpush1.bf16.msra.mxu0 %v23633_v41  ;;  %v4904_v59 = vpop.f32.mrb[56].mxu1 }
 0x41c   :  { %v28612_v20 = vadd.f32 %v28450_v26, %v4904_v59  ;;  %v4906_v12 = vpop.f32.mrb[57].mxu1  ;;  %7967 = vmatprep.subr.bf16.mxu0 %v23645_v40  ;;  %8028 = vmatprep.subr.bf16.mxu1 %v23648_v60  ;;  %v23649_v26 = vld [vmem:[%s33580_s3 + $0x1030] ss:$28 sps:$4 sm:$0xff]   ;;  %v23667_v40 = vld [vmem:[%s33580_s3 + $0xe08] ss:$28 sps:$4 sm:$0xff]  }
 0x41d   :  { %v4907_v16 = vpop.f32.mrb[58].mxu1  ;;  %v23675_v60 = vld [vmem:[%s33580_s3 + $0xe44] ss:$28 sps:$4 sm:$0xff]   ;;  %v23670_v59 = vld [vmem:[%s33580_s3 + $0x10d8] ss:$28 sps:$4 sm:$0xff]  }
 0x41e   :  { %v28618_v5 = vadd.f32 %v28455_v52, %v4907_v16  ;;  %8029 = vmatpush1.bf16.msra.mxu1 %v23646_v18  ;;  %v4909_v34 = vpop.f32.mrb[59].mxu1  ;;  %v23660_v52 = vld [vmem:[%s33580_s3 + $0x106c] ss:$28 sps:$4 sm:$0xff]   ;;  %v23673_v18 = vld [vmem:[%s33580_s3 + $0xe40] ss:$28 sps:$4 sm:$0xff]  }
 0x41f   :  { %7968 = vmatpush1.bf16.msra.mxu0 %v23643_v31  ;;  %8030 = vmatprep.subr.bf16.mxu1 %v23654_v11  ;;  %v23681_v31 = vld [vmem:[%s33580_s3 + $0xe7c] ss:$28 sps:$4 sm:$0xff]   ;;  %v23678_v11 = vld [vmem:[%s33580_s3 + $0x1114] ss:$28 sps:$4 sm:$0xff]   ;;  %v23684_v16 = vld [vmem:[%s33580_s3 + $0x114c] ss:$28 sps:$4 sm:$0xff]  }
 0x420   :  { %7969 = vmatprep.subr.bf16.mxu0 %v23651_v19  ;;  %v23679_v12 = vld [vmem:[%s33580_s3 + $0xe78] ss:$28 sps:$4 sm:$0xff]   ;;  %v23685_v34 = vld [vmem:[%s33580_s3 + $0xeb0] ss:$28 sps:$4 sm:$0xff]  }
 0x421   :  { %v23687_v19 = vld [vmem:[%s33580_s3 + $0xeb4] ss:$28 sps:$4 sm:$0xff]  }
 0x422   :  { %7955 = vmatmul.mubr.bf16.gmra.mrb[52].mxu0 %v28626_v21  ;;  %8031 = vmatpush1.bf16.msra.mxu1 %v23652_v62  ;;  %v23682_v62 = vld [vmem:[%s33580_s3 + $0x1148] ss:$28 sps:$4 sm:$0xff]  }
 0x423   :  { %7970 = vmatpush1.bf16.msra.mxu0 %v23649_v26  ;;  %20607 = vmatprep.mubr.msk.bf16.mxu0 %vm158_vm5, %v27273_v57  ;;  %v4912_v10 = vpop.f32.mrb[60].mxu1  ;;  %v23693_v26 = vld [vmem:[%s33580_s3 + $0xeec] ss:$28 sps:$4 sm:$0xff]  }
 0x424   :  { %v28647_v42 = vadd.f32 %v28474_v44, %v4912_v10  ;;  %v4914_v33 = vpop.f32.mrb[61].mxu1  ;;  %7971 = vmatprep.subr.bf16.mxu0 %v23660_v52  ;;  %8032 = vmatprep.subr.bf16.mxu1 %v23663_v55  ;;  %v23664_v44 = vld [vmem:[%s33580_s3 + $0x10a0] ss:$28 sps:$4 sm:$0xff]   ;;  %v23691_v55 = vld [vmem:[%s33580_s3 + $0xee8] ss:$28 sps:$4 sm:$0xff]  }
 0x425   :  { %v4915_v43 = vpop.f32.mrb[62].mxu1  ;;  %v23690_v52 = vld [vmem:[%s33580_s3 + $0x1184] ss:$28 sps:$4 sm:$0xff]   ;;  %v23721_v33 = vld [vmem:[#allocation2 + $0x94] ss:$8 sps:$4 sm:$0xff]  }
 0x426   :  { %v28653_v15 = vadd.f32 %v28479_v24, %v4915_v43  ;;  %8033 = vmatpush1.bf16.msra.mxu1 %v23661_v2  ;;  %v4917_v41 = vpop.f32.mrb[63].mxu1  ;;  %v23672_v24 = vld [vmem:[%s33580_s3 + $0x10dc] ss:$28 sps:$4 sm:$0xff]   ;;  %v23699_v10 = vld [vmem:[%s33580_s3 + $0xf24] ss:$28 sps:$4 sm:$0xff]  }
 0x427   :  { %7972 = vmatpush1.bf16.msra.mxu0 %v23658_v8  ;;  %8034 = vmatprep.subr.bf16.mxu1 %v23669_v30  ;;  %v23688_v2 = vld [vmem:[%s33580_s3 + $0x1180] ss:$28 sps:$4 sm:$0xff]   ;;  %v23719_v30 = vld [vmem:[#allocation2 + $0x90] ss:$8 sps:$4 sm:$0xff]  }
 0x428   :  { %7973 = vmatprep.subr.bf16.mxu0 %v23666_v63  ;;  %v23696_v8 = vld [vmem:[%s33580_s3 + $0x11bc] ss:$28 sps:$4 sm:$0xff]  }
 0x429   :  { %v23697_v63 = vld [vmem:[%s33580_s3 + $0xf20] ss:$28 sps:$4 sm:$0xff]   ;;  %v23694_v43 = vld [vmem:[%s33580_s3 + $0x11b8] ss:$28 sps:$4 sm:$0xff]  }
 0x42a   :  { %8035 = vmatpush1.bf16.msra.mxu1 %v23667_v40  ;;  %v23705_v41 = vld [vmem:[%s33580_s3 + $0xf5c] ss:$28 sps:$4 sm:$0xff]  }
 0x42b   :  { %7974 = vmatpush1.bf16.msra.mxu0 %v23664_v44  ;;  %8036 = vmatprep.subr.bf16.mxu1 %v23675_v60  ;;  %v23718_v40 = vld [vmem:[#allocation2 + $0x74] ss:$8 sps:$4 sm:$0xff]   ;;  %v6511_v60 = vrot.slane %v23719_v30, %v25979_v36  ;;  %v23724_v30 = vld [vmem:[%s33580_s3 + $0x1004] ss:$28 sps:$4 sm:$0xff]  }
 0x42c   :  { %7975 = vmatprep.subr.bf16.mxu0 %v23672_v24  ;;  %v23702_v44 = vld [vmem:[%s33580_s3 + $0x11f4] ss:$28 sps:$4 sm:$0xff]   ;;  %v6518_v24 = vrot.slane %v23721_v33, %v25979_v36 }
 0x42e   :  { %8037 = vmatpush1.bf16.msra.mxu1 %v23673_v18  ;;  %v23703_v18 = vld [vmem:[%s33580_s3 + $0xf58] ss:$28 sps:$4 sm:$0xff]  }
 0x42f   :  { %7976 = vmatpush1.bf16.msra.mxu0 %v23670_v59  ;;  %8038 = vmatprep.subr.bf16.mxu1 %v23681_v31  ;;  %v23700_v59 = vld [vmem:[%s33580_s3 + $0x11f0] ss:$28 sps:$4 sm:$0xff]  }
 0x430   :  { %7977 = vmatprep.subr.bf16.mxu0 %v23678_v11  ;;  %v23711_v31 = vld [vmem:[%s33580_s3 + $0xf94] ss:$28 sps:$4 sm:$0xff]   ;;  %v6483_v11 = vrot.slane %v23718_v40, %v25979_v36 }
 0x432   :  { %8039 = vmatpush1.bf16.msra.mxu1 %v23679_v12  ;;  %v23708_v12 = vld [vmem:[%s33580_s3 + $0x122c] ss:$28 sps:$4 sm:$0xff]  }
 0x433   :  { %7978 = vmatpush1.bf16.msra.mxu0 %v23676_v6  ;;  %8040 = vmatprep.subr.bf16.mxu1 %v23687_v19  ;;  %v6626_v6 = vrot.slane %v6511_v60, %v25979_v36  ;;  %v6646_v19 = vrot.slane %v6518_v24, %v25979_v36  ;;  %v23733_v60 = vld [vmem:[%s33580_s3 + $0xcc4] ss:$28 sps:$4 sm:$0xff]   ;;  %v23728_v24 = vld [vmem:[%s33580_s3 + $0x1038] ss:$28 sps:$4 sm:$0xff]  }
 0x434   :  { %7979 = vmatprep.subr.bf16.mxu0 %v23684_v16  ;;  %v23709_v16 = vld [vmem:[%s33580_s3 + $0xf90] ss:$28 sps:$4 sm:$0xff]  }
 0x436   :  { %8041 = vmatpush1.bf16.msra.mxu1 %v23685_v34  ;;  %v23706_v34 = vld [vmem:[%s33580_s3 + $0x1228] ss:$28 sps:$4 sm:$0xff]  }
 0x437   :  { %7980 = vmatpush1.bf16.msra.mxu0 %v23682_v62  ;;  %8042 = vmatprep.subr.bf16.mxu1 %v23693_v26  ;;  %v23714_v62 = vld [vmem:[%s33580_s3 + $0xfcc] ss:$28 sps:$4 sm:$0xff]   ;;  %v6612_v26 = vrot.slane %v6483_v11, %v25979_v36  ;;  %v23739_v11 = vld [vmem:[%s33580_s3 + $0xcfc] ss:$28 sps:$4 sm:$0xff]  }
 0x438   :  { %7981 = vmatprep.subr.bf16.mxu0 %v23690_v52  ;;  %v23717_v52 = vld [vmem:[%s33580_s3 + $0xc54] ss:$28 sps:$4 sm:$0xff]  }
 0x439   :  { %v6629_v40 = vcombine.low %v6612_v26, %v6626_v6 }
 0x43a   :  { %8043 = vmatpush1.bf16.msra.mxu1 %v23691_v55  ;;  %v6630_v55 = vcombine.high %v6612_v26, %v6626_v6  ;;  %v23737_v6 = vld [vmem:[%s33580_s3 + $0xcf8] ss:$28 sps:$4 sm:$0xff]   ;;  %v23748_v26 = vld [vmem:[%s33580_s3 + $0x10e4] ss:$28 sps:$4 sm:$0xff]  }
 0x43b   :  { %7982 = vmatpush1.bf16.msra.mxu0 %v23688_v2  ;;  %8044 = vmatprep.subr.bf16.mxu1 %v23699_v10  ;;  %v6648_v2 = vcombine.high %v6646_v19, %v6646_v19  ;;  %v23712_v10 = vld [vmem:[%s33580_s3 + $0xfc8] ss:$28 sps:$4 sm:$0xff]  }
 0x43c   :  { %7983 = vmatprep.subr.bf16.mxu0 %v23696_v8  ;;  %v23715_v8 = vld [vmem:[%s33580_s3 + $0xc50] ss:$28 sps:$4 sm:$0xff]  }
 0x43d   :  { %v28767_v33 = vpack.c.bf16 %v6648_v2, %v6630_v55  ;;  %v23746_v55 = vld [vmem:[%s33580_s3 + $0x10e0] ss:$28 sps:$4 sm:$0xff]   ;;  %v23749_v2 = vld [vmem:[%s33580_s3 + $0xd68] ss:$28 sps:$4 sm:$0xff]  }
 0x43e   :  { %8045 = vmatpush1.bf16.msra.mxu1 %v23697_v63  ;;  %v23727_v63 = vld [vmem:[%s33580_s3 + $0xc8c] ss:$28 sps:$4 sm:$0xff]  }
 0x43f   :  { %7984 = vmatpush1.bf16.msra.mxu0 %v23694_v43  ;;  %8046 = vmatprep.subr.bf16.mxu1 %v23705_v41  ;;  %v23722_v43 = vld [vmem:[%s33580_s3 + $0x1000] ss:$28 sps:$4 sm:$0xff]   ;;  %v23725_v41 = vld [vmem:[%s33580_s3 + $0xc88] ss:$28 sps:$4 sm:$0xff]  }
 0x440   :  { %7985 = vmatprep.subr.bf16.mxu0 %v23702_v44  ;;  %v23730_v44 = vld [vmem:[%s33580_s3 + $0x103c] ss:$28 sps:$4 sm:$0xff]  }
 0x442   :  { %8047 = vmatpush1.bf16.msra.mxu1 %v23703_v18  ;;  %v28791_v18 = vpack.c.bf16 %v6646_v19, %v6629_v40  ;;  %v23742_v19 = vld [vmem:[%s33580_s3 + $0x10ac] ss:$28 sps:$4 sm:$0xff]  }
 0x443   :  { %7986 = vmatpush1.bf16.msra.mxu0 %v23700_v59  ;;  %8048 = vmatprep.subr.bf16.mxu1 %v23711_v31  ;;  %v23731_v59 = vld [vmem:[%s33580_s3 + $0xcc0] ss:$28 sps:$4 sm:$0xff]   ;;  %v23736_v31 = vld [vmem:[%s33580_s3 + $0x1074] ss:$28 sps:$4 sm:$0xff]  }
 0x444   :  { %7987 = vmatprep.subr.bf16.mxu0 %v23708_v12  ;;  %v23734_v12 = vld [vmem:[%s33580_s3 + $0x1070] ss:$28 sps:$4 sm:$0xff]  }
 0x445   :  { %v23758_v40 = vld [vmem:[%s33580_s3 + $0x1150] ss:$28 sps:$4 sm:$0xff]  }
 0x446   :  { %8049 = vmatpush1.bf16.msra.mxu1 %v23709_v16  ;;  %v23745_v16 = vld [vmem:[%s33580_s3 + $0xd34] ss:$28 sps:$4 sm:$0xff]  }
 0x447   :  { %7988 = vmatpush1.bf16.msra.mxu0 %v23706_v34  ;;  %8071 = vmatprep.subr.bf16.mxu1 %v23714_v62  ;;  %v23740_v34 = vld [vmem:[%s33580_s3 + $0x10a8] ss:$28 sps:$4 sm:$0xff]   ;;  %v23743_v62 = vld [vmem:[%s33580_s3 + $0xd30] ss:$28 sps:$4 sm:$0xff]  }
 0x448   :  { %8124 = vmatprep.subr.bf16.mxu0 %v23717_v52  ;;  %v23751_v52 = vld [vmem:[%s33580_s3 + $0xd6c] ss:$28 sps:$4 sm:$0xff]  }
 0x449   :  { %8051 = vmatmul.mubr.bf16.vlgmr.msra.gmra.mrb[40].mxu1 %v28590_v53 }
 0x44a   :  { %7998 = vmatmul.mubr.bf16.vlgmr.msra.gmra.mrb[48].mxu0 %v27275_v58  ;;  %8060 = vmatprep.mubr.bf16.mxu1 %v28598_v3 }
 0x44b   :  { %20608 = vmatprep.mubr.msk.bf16.mxu0 %vm158_vm5, %v28767_v33  ;;  %8072 = vmatpush1.bf16.msra.mxu1 %v23712_v10  ;;  %v23754_v10 = vld [vmem:[%s33580_s3 + $0x111c] ss:$28 sps:$4 sm:$0xff]  }
 0x44c   :  { %8125 = vmatpush1.bf16.msra.mxu0 %v23715_v8  ;;  %8073 = vmatprep.subr.bf16.mxu1 %v23724_v30  ;;  %v23757_v8 = vld [vmem:[%s33580_s3 + $0xda4] ss:$28 sps:$4 sm:$0xff]   ;;  %v23752_v30 = vld [vmem:[%s33580_s3 + $0x1118] ss:$28 sps:$4 sm:$0xff]  }
 0x44d   :  { %8126 = vmatprep.subr.bf16.mxu0 %v23727_v63  ;;  %v23755_v63 = vld [vmem:[%s33580_s3 + $0xda0] ss:$28 sps:$4 sm:$0xff]  }
 0x44f   :  { %8074 = vmatpush1.bf16.msra.mxu1 %v23722_v43  ;;  %v23760_v43 = vld [vmem:[%s33580_s3 + $0x1154] ss:$28 sps:$4 sm:$0xff]  }
 0x450   :  { %8127 = vmatpush1.bf16.msra.mxu0 %v23725_v41  ;;  %8075 = vmatprep.subr.bf16.mxu1 %v23730_v44  ;;  %v23763_v41 = vld [vmem:[%s33580_s3 + $0xddc] ss:$28 sps:$4 sm:$0xff]  }
 0x451   :  { %8061 = vmatmul.mubr.bf16.gmra.mrb[44].mxu1 %v28626_v21  ;;  %8128 = vmatprep.subr.bf16.mxu0 %v23733_v60  ;;  %v23761_v44 = vld [vmem:[%s33580_s3 + $0xdd8] ss:$28 sps:$4 sm:$0xff]   ;;  %v23766_v60 = vld [vmem:[%s33580_s3 + $0x118c] ss:$28 sps:$4 sm:$0xff]  }
 0x452   :  { %8008 = vmatmul.mubr.bf16.gmra.mrb[52].mxu0 %v28791_v18  ;;  %20609 = vmatprep.mubr.msk.bf16.mxu1 %vm158_vm5, %v27273_v57 }
 0x453   :  { %8076 = vmatpush1.bf16.msra.mxu1 %v23728_v24  ;;  %8156 = vmatprep.mubr.bf16.mxu0 %v28411_v25  ;;  %v23769_v24 = vld [vmem:[%s33580_s3 + $0xe14] ss:$28 sps:$4 sm:$0xff]  }
 0x454   :  { %8129 = vmatpush1.bf16.msra.mxu0 %v23731_v59  ;;  %8077 = vmatprep.subr.bf16.mxu1 %v23736_v31  ;;  %v23764_v59 = vld [vmem:[%s33580_s3 + $0x1188] ss:$28 sps:$4 sm:$0xff]   ;;  %v23767_v31 = vld [vmem:[%s33580_s3 + $0xe10] ss:$28 sps:$4 sm:$0xff]  }
 0x455   :  { %8130 = vmatprep.subr.bf16.mxu0 %v23739_v11  ;;  %v23772_v11 = vld [vmem:[%s33580_s3 + $0x11c4] ss:$28 sps:$4 sm:$0xff]  }
 0x457   :  { %8078 = vmatpush1.bf16.msra.mxu1 %v23734_v12  ;;  %v23775_v12 = vld [vmem:[%s33580_s3 + $0xe4c] ss:$28 sps:$4 sm:$0xff]  }
 0x458   :  { %8131 = vmatpush1.bf16.msra.mxu0 %v23737_v6  ;;  %8079 = vmatprep.subr.bf16.mxu1 %v23742_v19  ;;  %v23770_v6 = vld [vmem:[%s33580_s3 + $0x11c0] ss:$28 sps:$4 sm:$0xff]   ;;  %v23773_v19 = vld [vmem:[%s33580_s3 + $0xe48] ss:$28 sps:$4 sm:$0xff]  }
 0x459   :  { %8132 = vmatprep.subr.bf16.mxu0 %v23745_v16  ;;  %v23778_v16 = vld [vmem:[%s33580_s3 + $0x11fc] ss:$28 sps:$4 sm:$0xff]  }
 0x45b   :  { %8080 = vmatpush1.bf16.msra.mxu1 %v23740_v34  ;;  %v23781_v34 = vld [vmem:[%s33580_s3 + $0xe84] ss:$28 sps:$4 sm:$0xff]  }
 0x45c   :  { %8133 = vmatpush1.bf16.msra.mxu0 %v23743_v62  ;;  %8081 = vmatprep.subr.bf16.mxu1 %v23748_v26  ;;  %v23776_v62 = vld [vmem:[%s33580_s3 + $0x11f8] ss:$28 sps:$4 sm:$0xff]   ;;  %v23779_v26 = vld [vmem:[%s33580_s3 + $0xe80] ss:$28 sps:$4 sm:$0xff]  }
 0x45d   :  { %8134 = vmatprep.subr.bf16.mxu0 %v23751_v52  ;;  %v23784_v52 = vld [vmem:[%s33580_s3 + $0x1234] ss:$28 sps:$4 sm:$0xff]  }
 0x45f   :  { %8082 = vmatpush1.bf16.msra.mxu1 %v23746_v55  ;;  %v23787_v55 = vld [vmem:[%s33580_s3 + $0xebc] ss:$28 sps:$4 sm:$0xff]  }
 0x460   :  { %8135 = vmatpush1.bf16.msra.mxu0 %v23749_v2  ;;  %8083 = vmatprep.subr.bf16.mxu1 %v23754_v10  ;;  %v23782_v2 = vld [vmem:[%s33580_s3 + $0x1230] ss:$28 sps:$4 sm:$0xff]   ;;  %v23785_v10 = vld [vmem:[%s33580_s3 + $0xeb8] ss:$28 sps:$4 sm:$0xff]  }
 0x461   :  { %8136 = vmatprep.subr.bf16.mxu0 %v23757_v8  ;;  %v23791_v8 = vld [vmem:[%s33580_s3 + $0xe18] ss:$28 sps:$4 sm:$0xff]  }
 0x463   :  { %8084 = vmatpush1.bf16.msra.mxu1 %v23752_v30  ;;  %v23790_v30 = vld [vmem:[%s33580_s3 + $0xef4] ss:$28 sps:$4 sm:$0xff]  }
 0x464   :  { %8137 = vmatpush1.bf16.msra.mxu0 %v23755_v63  ;;  %8085 = vmatprep.subr.bf16.mxu1 %v23760_v43  ;;  %v23792_v63 = vld [vmem:[%s33580_s3 + $0xc58] ss:$28 sps:$4 sm:$0xff]   ;;  %v23788_v43 = vld [vmem:[%s33580_s3 + $0xef0] ss:$28 sps:$4 sm:$0xff]  }
 0x465   :  { %8138 = vmatprep.subr.bf16.mxu0 %v23763_v41  ;;  %v23796_v41 = vld [vmem:[%s33580_s3 + $0xe50] ss:$28 sps:$4 sm:$0xff]  }
 0x467   :  { %8086 = vmatpush1.bf16.msra.mxu1 %v23758_v40  ;;  %v23795_v40 = vld [vmem:[%s33580_s3 + $0xf2c] ss:$28 sps:$4 sm:$0xff]  }
 0x468   :  { %8139 = vmatpush1.bf16.msra.mxu0 %v23761_v44  ;;  %8087 = vmatprep.subr.bf16.mxu1 %v23766_v60  ;;  %v23797_v44 = vld [vmem:[%s33580_s3 + $0xc90] ss:$28 sps:$4 sm:$0xff]   ;;  %v23793_v60 = vld [vmem:[%s33580_s3 + $0xf28] ss:$28 sps:$4 sm:$0xff]  }
 0x469   :  { %8140 = vmatprep.subr.bf16.mxu0 %v23769_v24  ;;  %v23801_v24 = vld [vmem:[%s33580_s3 + $0xe88] ss:$28 sps:$4 sm:$0xff]  }
 0x46b   :  { %8088 = vmatpush1.bf16.msra.mxu1 %v23764_v59  ;;  %v23800_v59 = vld [vmem:[%s33580_s3 + $0xf64] ss:$28 sps:$4 sm:$0xff]  }
 0x46c   :  { %8141 = vmatpush1.bf16.msra.mxu0 %v23767_v31  ;;  %8089 = vmatprep.subr.bf16.mxu1 %v23772_v11  ;;  %v23802_v31 = vld [vmem:[%s33580_s3 + $0xcc8] ss:$28 sps:$4 sm:$0xff]   ;;  %v23798_v11 = vld [vmem:[%s33580_s3 + $0xf60] ss:$28 sps:$4 sm:$0xff]  }
 0x46d   :  { %8142 = vmatprep.subr.bf16.mxu0 %v23775_v12  ;;  %v23806_v12 = vld [vmem:[%s33580_s3 + $0xec0] ss:$28 sps:$4 sm:$0xff]  }
 0x46f   :  { %8090 = vmatpush1.bf16.msra.mxu1 %v23770_v6  ;;  %v23805_v6 = vld [vmem:[%s33580_s3 + $0xf9c] ss:$28 sps:$4 sm:$0xff]  }
 0x470   :  { %8143 = vmatpush1.bf16.msra.mxu0 %v23773_v19  ;;  %8091 = vmatprep.subr.bf16.mxu1 %v23778_v16  ;;  %v23807_v19 = vld [vmem:[%s33580_s3 + $0xd00] ss:$28 sps:$4 sm:$0xff]   ;;  %v23803_v16 = vld [vmem:[%s33580_s3 + $0xf98] ss:$28 sps:$4 sm:$0xff]  }
 0x471   :  { %8144 = vmatprep.subr.bf16.mxu0 %v23781_v34  ;;  %v23811_v34 = vld [vmem:[%s33580_s3 + $0xef8] ss:$28 sps:$4 sm:$0xff]  }
 0x473   :  { %8092 = vmatpush1.bf16.msra.mxu1 %v23776_v62  ;;  %v23810_v62 = vld [vmem:[%s33580_s3 + $0xfd4] ss:$28 sps:$4 sm:$0xff]  }
 0x474   :  { %8145 = vmatpush1.bf16.msra.mxu0 %v23779_v26  ;;  %8093 = vmatprep.subr.bf16.mxu1 %v23784_v52  ;;  %v23808_v26 = vld [vmem:[%s33580_s3 + $0xfd0] ss:$28 sps:$4 sm:$0xff]  }
 0x475   :  { %8146 = vmatprep.subr.bf16.mxu0 %v23787_v55  ;;  %v23815_v52 = vld [vmem:[%s33580_s3 + $0x100c] ss:$28 sps:$4 sm:$0xff]  }
 0x476   :  { %v23816_v55 = vld [vmem:[%s33580_s3 + $0xf30] ss:$28 sps:$4 sm:$0xff]  }
 0x477   :  { %8094 = vmatpush1.bf16.msra.mxu1 %v23782_v2  ;;  %v23817_v2 = vld [vmem:[%s33580_s3 + $0xd70] ss:$28 sps:$4 sm:$0xff]  }
 0x478   :  { %8147 = vmatpush1.bf16.msra.mxu0 %v23785_v10  ;;  %22377 = vmatprep.subr.bf16.mxu1 %v23791_v8  ;;  %v23813_v10 = vld [vmem:[%s33580_s3 + $0x1008] ss:$28 sps:$4 sm:$0xff]  }
 0x479   :  { %8148 = vmatprep.subr.bf16.mxu0 %v23790_v30  ;;  %v23821_v8 = vld [vmem:[%s33580_s3 + $0xf68] ss:$28 sps:$4 sm:$0xff]  }
 0x47a   :  { %8104 = vmatmul.mubr.bf16.vlgmr.msra.gmra.mrb[40].mxu1 %v27275_v58  ;;  %v23820_v30 = vld [vmem:[%s33580_s3 + $0x1044] ss:$28 sps:$4 sm:$0xff]  }
 0x47b   :  { %20610 = vmatprep.mubr.msk.bf16.mxu1 %vm158_vm5, %v28767_v33  ;;  %22378 = vmatpush3.bf16.msra.mxu1 %v23792_v63  ;;  %v23822_v63 = vld [vmem:[%s33580_s3 + $0xda8] ss:$28 sps:$4 sm:$0xff]  }
 0x47c   :  { %8149 = vmatpush1.bf16.msra.mxu0 %v23788_v43  ;;  %22379 = vmatprep.subr.bf16.mxu1 %v23796_v41  ;;  %v23818_v43 = vld [vmem:[%s33580_s3 + $0x1040] ss:$28 sps:$4 sm:$0xff]  }
 0x47d   :  { %8150 = vmatprep.subr.bf16.mxu0 %v23795_v40  ;;  %v23825_v41 = vld [vmem:[%s33580_s3 + $0x107c] ss:$28 sps:$4 sm:$0xff]  }
 0x47e   :  { %v23826_v40 = vld [vmem:[%s33580_s3 + $0xfa0] ss:$28 sps:$4 sm:$0xff]  }
 0x47f   :  { %22380 = vmatpush3.bf16.msra.mxu1 %v23797_v44  ;;  %v23827_v44 = vld [vmem:[%s33580_s3 + $0xde0] ss:$28 sps:$4 sm:$0xff]  }
 0x480   :  { %8151 = vmatpush1.bf16.msra.mxu0 %v23793_v60  ;;  %22381 = vmatprep.subr.bf16.mxu1 %v23801_v24  ;;  %v23823_v60 = vld [vmem:[%s33580_s3 + $0x1078] ss:$28 sps:$4 sm:$0xff]  }
 0x481   :  { %8152 = vmatprep.subr.bf16.mxu0 %v23800_v59  ;;  %v23830_v24 = vld [vmem:[%s33580_s3 + $0x10b4] ss:$28 sps:$4 sm:$0xff]  }
 0x482   :  { %8114 = vmatmul.mubr.bf16.gmra.mrb[44].mxu1 %v28791_v18  ;;  %v23831_v59 = vld [vmem:[%s33580_s3 + $0xfd8] ss:$28 sps:$4 sm:$0xff]  }
 0x483   :  { %22382 = vmatpush3.bf16.msra.mxu1 %v23802_v31  ;;  %8262 = vmatprep.mubr.bf16.mxu1 %v28411_v25  ;;  %v23812_v25 = vld [vmem:[%s33580_s3 + $0xd38] ss:$28 sps:$4 sm:$0xff]   ;;  %v23828_v31 = vld [vmem:[%s33580_s3 + $0x10b0] ss:$28 sps:$4 sm:$0xff]  }
 0x484   :  { %8153 = vmatpush1.bf16.msra.mxu0 %v23798_v11  ;;  %22383 = vmatprep.subr.bf16.mxu1 %v23806_v12  ;;  %v23834_v11 = vld [vmem:[%s33580_s3 + $0x10ec] ss:$28 sps:$4 sm:$0xff]  }
 0x485   :  { %8154 = vmatprep.subr.bf16.mxu0 %v23805_v6  ;;  %v23835_v12 = vld [vmem:[%s33580_s3 + $0x1010] ss:$28 sps:$4 sm:$0xff]   ;;  %v23832_v6 = vld [vmem:[%s33580_s3 + $0x10e8] ss:$28 sps:$4 sm:$0xff]  }
 0x487   :  { %22384 = vmatpush3.bf16.msra.mxu1 %v23807_v19  ;;  %v23838_v19 = vld [vmem:[%s33580_s3 + $0x1124] ss:$28 sps:$4 sm:$0xff]  }
 0x488   :  { %8155 = vmatpush1.bf16.msra.mxu0 %v23803_v16  ;;  %22385 = vmatprep.subr.bf16.mxu1 %v23811_v34  ;;  %v23842_v16 = vld [vmem:[%s33580_s3 + $0x115c] ss:$28 sps:$4 sm:$0xff]  }
 0x489   :  { %8177 = vmatprep.subr.bf16.mxu0 %v23810_v62  ;;  %v23843_v34 = vld [vmem:[%s33580_s3 + $0x1080] ss:$28 sps:$4 sm:$0xff]   ;;  %v23840_v62 = vld [vmem:[%s33580_s3 + $0x1158] ss:$28 sps:$4 sm:$0xff]  }
 0x48b   :  { %8157 = vmatmul.mubr.bf16.vlgmr.msra.gmra.mrb[40].mxu0 %v28590_v53  ;;  %22386 = vmatpush3.bf16.msra.mxu1 %v23812_v25  ;;  %v23844_v25 = vld [vmem:[%s33580_s3 + $0x1190] ss:$28 sps:$4 sm:$0xff]  }
 0x48c   :  { %8166 = vmatprep.mubr.bf16.mxu0 %v28598_v3  ;;  %8178 = vmatpush1.bf16.msra.mxu0 %v23808_v26  ;;  %v23850_v26 = vld [vmem:[%s33580_s3 + $0x11cc] ss:$28 sps:$4 sm:$0xff]  }
 0x48d   :  { %8179 = vmatprep.subr.bf16.mxu0 %v23815_v52  ;;  %22387 = vmatprep.subr.bf16.mxu1 %v23816_v55  ;;  %v23851_v55 = vld [vmem:[%s33580_s3 + $0x10f0] ss:$28 sps:$4 sm:$0xff]  }
 0x48f   :  { %22388 = vmatpush3.bf16.msra.mxu1 %v23817_v2 }
 0x490   :  { %8180 = vmatpush1.bf16.msra.mxu0 %v23813_v10  ;;  %22389 = vmatprep.subr.bf16.mxu1 %v23821_v8  ;;  %v23848_v10 = vld [vmem:[%s33580_s3 + $0x11c8] ss:$28 sps:$4 sm:$0xff]  }
 0x491   :  { %8181 = vmatprep.subr.bf16.mxu0 %v23820_v30 }
 0x493   :  { %8167 = vmatmul.mubr.bf16.gmra.mrb[44].mxu0 %v28626_v21  ;;  %22390 = vmatpush3.bf16.msra.mxu1 %v23822_v63  ;;  %v23854_v63 = vld [vmem:[%s33580_s3 + $0x1204] ss:$28 sps:$4 sm:$0xff]  }
 0x494   :  { %8182 = vmatpush1.bf16.msra.mxu0 %v23818_v43  ;;  %20611 = vmatprep.mubr.msk.bf16.mxu0 %vm158_vm5, %v27273_v57 }
 0x495   :  { %8183 = vmatprep.subr.bf16.mxu0 %v23825_v41  ;;  %22391 = vmatprep.subr.bf16.mxu1 %v23826_v40  ;;  %v23855_v40 = vld [vmem:[%s33580_s3 + $0x1128] ss:$28 sps:$4 sm:$0xff]  }
 0x497   :  { %22392 = vmatpush3.bf16.msra.mxu1 %v23827_v44 }
 0x498   :  { %8184 = vmatpush1.bf16.msra.mxu0 %v23823_v60  ;;  %8279 = vmatprep.subr.bf16.mxu1 %v33629_v23  ;;  %v23852_v60 = vld [vmem:[%s33580_s3 + $0x1200] ss:$28 sps:$4 sm:$0xff]  }
 0x499   :  { %8185 = vmatprep.subr.bf16.mxu0 %v23830_v24  ;;  %v23858_v24 = vld [vmem:[%s33580_s3 + $0x123c] ss:$28 sps:$4 sm:$0xff]  }
 0x49a   :  { %8263 = vmatmul.mubr.bf16.vlgmr.msra.gmra.mrb[80].mxu1 %v28590_v53  ;;  %v23839_v53 = vld [vmem:[%s33580_s3 + $0x1048] ss:$28 sps:$4 sm:$0xff]  }
 0x49b   :  { %8270 = vmatprep.mubr.bf16.mxu1 %v28598_v3  ;;  %8280 = vmatpush1.bf16.msra.mxu1 %v23831_v59  ;;  %v23836_v3 = vld [vmem:[%s33580_s3 + $0x1120] ss:$28 sps:$4 sm:$0xff]  }
 0x49c   :  { %8186 = vmatpush1.bf16.msra.mxu0 %v23828_v31  ;;  %8281 = vmatprep.subr.bf16.mxu1 %v33629_v23 }
 0x49d   :  { %8187 = vmatprep.subr.bf16.mxu0 %v23834_v11 }
 0x49f   :  { %8282 = vmatpush1.bf16.msra.mxu1 %v23835_v12  ;;  %v23856_v12 = vld [vmem:[%s33580_s3 + $0x1238] ss:$28 sps:$4 sm:$0xff]  }
 0x4a0   :  { %8188 = vmatpush1.bf16.msra.mxu0 %v23832_v6  ;;  %8283 = vmatprep.subr.bf16.mxu1 %v33629_v23 }
 0x4a1   :  { %8189 = vmatprep.subr.bf16.mxu0 %v23838_v19 }
 0x4a2   :  { %8271 = vmatmul.mubr.bf16.gmra.mrb[84].mxu1 %v28626_v21  ;;  %v23846_v21 = vld [vmem:[%s33580_s3 + $0x1194] ss:$28 sps:$4 sm:$0xff]  }
 0x4a3   :  { %8284 = vmatpush1.bf16.msra.mxu1 %v23839_v53  ;;  %20613 = vmatprep.mubr.msk.bf16.mxu1 %vm158_vm5, %v27273_v57  ;;  %v23847_v57 = vld [vmem:[%s33580_s3 + $0x10b8] ss:$28 sps:$4 sm:$0xff]  }
 0x4a4   :  { %8190 = vmatpush1.bf16.msra.mxu0 %v23836_v3  ;;  %8285 = vmatprep.subr.bf16.mxu1 %v33629_v23  ;;  %v8662_v3 = vcombine.low %v27408_v46, %v27401_v7  ;;  %v8660_v7 = vcombine.low %v27381_v56, %v27385_v54  ;;  %v23866_v46 = vld [vmem:[%s33580_s3 + $0x129c] ss:$28 sps:$4 sm:$0xff]   ;;  %v23870_v56 = vld [vmem:[%s33580_s3 + $0x12d4] ss:$28 sps:$4 sm:$0xff]  }
 0x4a5   :  { %8191 = vmatprep.subr.bf16.mxu0 %v23842_v16 }
 0x4a7   :  { %8286 = vmatpush1.bf16.msra.mxu1 %v23843_v34  ;;  %v23863_v34 = vld [vmem:[%s33580_s3 + $0x1198] ss:$28 sps:$4 sm:$0xff]  }
 0x4a8   :  { %8192 = vmatpush1.bf16.msra.mxu0 %v23840_v62  ;;  %8287 = vmatprep.subr.bf16.mxu1 %v33629_v23 }
 0x4a9   :  { %8193 = vmatprep.subr.bf16.mxu0 %v23846_v21  ;;  %v23860_v21 = vld [vmem:[%s33580_s3 + $0x1260] ss:$28 sps:$4 sm:$0xff]  }
 0x4ab   :  { %8288 = vmatpush1.bf16.msra.mxu1 %v23847_v57  ;;  %v22365_v52 = vpop.f32.mrb[64].mxu1  ;;  %v8626_v57 = vcombine.low %v27358_v45, %v27347_v1  ;;  %v23867_v1 = vld [vmem:[%s33580_s3 + $0x11d0] ss:$28 sps:$4 sm:$0xff]   ;;  %v23864_v45 = vld [vmem:[%s33580_s3 + $0x1298] ss:$28 sps:$4 sm:$0xff]  }
 0x4ac   :  { %8194 = vmatpush1.bf16.msra.mxu0 %v23844_v25  ;;  %v22366_v2 = vpop.f32.mrb[65].mxu1  ;;  %8289 = vmatprep.subr.bf16.mxu1 %v33629_v23  ;;  %v8624_v25 = vcombine.low %v27354_v32, %v27343_v35  ;;  %v29149_v32 = vrot.slane %v8660_v7, %v25979_v36  ;;  %v23979_v7 = vld [vmem:[#allocation2 + $0x94] ss:$8 sps:$4 sm:$0xff]  }
 0x4ad   :  { %v22367_v8 = vadd.f32 %v22366_v2, %v22365_v52  ;;  %8195 = vmatprep.subr.bf16.mxu0 %v23850_v26  ;;  %v22368_v30 = vpop.f32.mrb[66].mxu1  ;;  %v29134_v26 = vrot.slane %v8662_v3, %v25979_v36  ;;  %v29146_v35 = vrot.slane %v8626_v57, %v25979_v36  ;;  %v23871_v52 = vld [vmem:[%s33580_s3 + $0x1208] ss:$28 sps:$4 sm:$0xff]   ;;  %v23977_v57 = vld [vmem:[#allocation2 + $0x90] ss:$8 sps:$4 sm:$0xff]  }
 0x4ae   :  { %v22369_v43 = vpop.f32.mrb[67].mxu1  ;;  %v29156_v54 = vrot.slane %v8624_v25, %v25979_v36  ;;  %v23914_v3 = vld [vmem:[%s33580_s3 + $0x13e8] ss:$28 sps:$4 sm:$0xff]   ;;  %v23920_v25 = vld [vmem:[%s33580_s3 + $0x1420] ss:$28 sps:$4 sm:$0xff]  }
 0x4af   :  { %8290 = vmatpush1.bf16.msra.mxu1 %v23851_v55  ;;  %v22370_v41 = vadd.f32 %v22369_v43, %v22368_v30  ;;  %v29087_v44 = vadd.f32 %v22367_v8, %v28612_v20  ;;  %v23859_v20 = vld [vmem:[%s33580_s3 + $0x1160] ss:$28 sps:$4 sm:$0xff]   ;;  %v23868_v55 = vld [vmem:[%s33580_s3 + $0x12d0] ss:$28 sps:$4 sm:$0xff]  }
 0x4b0   :  { %8196 = vmatpush1.bf16.msra.mxu0 %v23848_v10  ;;  %8291 = vmatprep.subr.bf16.mxu1 %v33629_v23  ;;  %v8657_v2 = vcombine.high %v29156_v54, %v29146_v35  ;;  %v23894_v10 = vld [vmem:[%s33580_s3 + $0x130c] ss:$28 sps:$4 sm:$0xff]   ;;  %v23895_v30 = vld [vmem:[%s33580_s3 + $0x1240] ss:$28 sps:$4 sm:$0xff]  }
 0x4b1   :  { %8197 = vmatprep.subr.bf16.mxu0 %v23854_v63  ;;  %v29097_v59 = vadd.f32 %v22370_v41, %v28618_v5  ;;  %v23862_v5 = vld [vmem:[%s33580_s3 + $0x1264] ss:$28 sps:$4 sm:$0xff]   ;;  %v23901_v43 = vld [vmem:[%s33580_s3 + $0x126c] ss:$28 sps:$4 sm:$0xff]  }
 0x4b2   :  { %v23892_v63 = vld [vmem:[%s33580_s3 + $0x1308] ss:$28 sps:$4 sm:$0xff]  }
 0x4b3   :  { %8292 = vmatpush1.bf16.msra.mxu1 %v23855_v40  ;;  %v22371_v31 = vpop.f32.mrb[68].mxu1  ;;  %v23898_v41 = vld [vmem:[%s33580_s3 + $0x1344] ss:$28 sps:$4 sm:$0xff]  }
 0x4b4   :  { %8198 = vmatpush1.bf16.msra.mxu0 %v23852_v60  ;;  %v22372_v11 = vpop.f32.mrb[69].mxu1  ;;  %8293 = vmatprep.subr.bf16.mxu1 %v33629_v23  ;;  %v23899_v40 = vld [vmem:[%s33580_s3 + $0x1268] ss:$28 sps:$4 sm:$0xff]   ;;  %v23896_v60 = vld [vmem:[%s33580_s3 + $0x1340] ss:$28 sps:$4 sm:$0xff]  }
 0x4b5   :  { %v22373_v6 = vadd.f32 %v22372_v11, %v22371_v31  ;;  %8199 = vmatprep.subr.bf16.mxu0 %v23858_v24  ;;  %v22374_v19 = vpop.f32.mrb[70].mxu1  ;;  %v23907_v24 = vld [vmem:[%s33580_s3 + $0x12a4] ss:$28 sps:$4 sm:$0xff]   ;;  %v23904_v31 = vld [vmem:[%s33580_s3 + $0x137c] ss:$28 sps:$4 sm:$0xff]  }
 0x4b6   :  { %v22375_v53 = vpop.f32.mrb[71].mxu1  ;;  %v23902_v11 = vld [vmem:[%s33580_s3 + $0x1378] ss:$28 sps:$4 sm:$0xff]  }
 0x4b7   :  { %8294 = vmatpush1.bf16.msra.mxu1 %v23859_v20  ;;  %v22376_v16 = vadd.f32 %v22375_v53, %v22374_v19  ;;  %v29115_v62 = vadd.f32 %v22373_v6, %v28647_v42  ;;  %v23905_v20 = vld [vmem:[%s33580_s3 + $0x12a0] ss:$28 sps:$4 sm:$0xff]   ;;  %v23908_v6 = vld [vmem:[%s33580_s3 + $0x13b0] ss:$28 sps:$4 sm:$0xff]  }
 0x4b8   :  { %8200 = vmatpush1.bf16.msra.mxu0 %v23856_v12  ;;  %8295 = vmatprep.subr.bf16.mxu1 %v33629_v23  ;;  %v23913_v12 = vld [vmem:[%s33580_s3 + $0x12dc] ss:$28 sps:$4 sm:$0xff]   ;;  %v23919_v19 = vld [vmem:[%s33580_s3 + $0x1314] ss:$28 sps:$4 sm:$0xff]  }
 0x4b9   :  { %10013 = vmatprep.subr.bf16.mxu0 %v23862_v5  ;;  %v29129_v42 = vadd.f32 %v22376_v16, %v28653_v15  ;;  %v8693_v15 = vcombine.high %v29149_v32, %v29134_v26  ;;  %v23916_v5 = vld [vmem:[%s33580_s3 + $0x13ec] ss:$28 sps:$4 sm:$0xff]  }
 0x4ba   :  { %v23917_v53 = vld [vmem:[%s33580_s3 + $0x1310] ss:$28 sps:$4 sm:$0xff]  }
 0x4bb   :  { %8210 = vmatmul.mubr.bf16.vlgmr.msra.gmra.mrb[40].mxu0 %v27275_v58  ;;  %8296 = vmatpush1.bf16.msra.mxu1 %v23863_v34  ;;  %v29172_v8 = vpack.c.bf16 %v8693_v15, %v8657_v2  ;;  %v23925_v16 = vld [vmem:[%s33580_s3 + $0x134c] ss:$28 sps:$4 sm:$0xff]  }
 0x4bc   :  { %20612 = vmatprep.mubr.msk.bf16.mxu0 %vm158_vm5, %v28767_v33  ;;  %10014 = vmatpush1.bf16.msra.mxu0 %v23860_v21  ;;  %v23974_v34 = vld [vmem:[#allocation2 + $0x80] ss:$8 sps:$4 sm:$0xff]   ;;  %v23976_v21 = vld [vmem:[#allocation2 + $0x84] ss:$8 sps:$4 sm:$0xff]  }
 0x4bd   :  { %8297 = vmatprep.subr.bf16.mxu1 %v33629_v23  ;;  %10015 = vmatprep.subr.bf16.mxu0 %v23866_v46  ;;  %v23923_v46 = vld [vmem:[%s33580_s3 + $0x1348] ss:$28 sps:$4 sm:$0xff]   ;;  %v8544_v15 = vrot.slane %v23976_v21, %v25979_v36  ;;  %v23941_v21 = vld [vmem:[%s33580_s3 + $0x13f0] ss:$28 sps:$4 sm:$0xff]  }
 0x4be   :  { %v23980_v2 = vld [vmem:[#allocation2 + $0xa0] ss:$8 sps:$4 sm:$0x11]  }
 0x4bf   :  { %8298 = vmatpush1.bf16.msra.mxu1 %v23867_v1  ;;  %v23931_v1 = vld [vmem:[%s33580_s3 + $0x1384] ss:$28 sps:$4 sm:$0xff]  }
 0x4c0   :  { %10016 = vmatpush1.bf16.msra.mxu0 %v23864_v45  ;;  %8299 = vmatprep.subr.bf16.mxu1 %v33629_v23  ;;  %v23928_v45 = vld [vmem:[%s33580_s3 + $0x145c] ss:$28 sps:$4 sm:$0xff]  }
 0x4c1   :  { %10017 = vmatprep.subr.bf16.mxu0 %v23870_v56  ;;  %v8537_v56 = vrot.slane %v23974_v34, %v25979_v36 }
 0x4c3   :  { %8220 = vmatmul.mubr.bf16.gmra.mrb[44].mxu0 %v28791_v18  ;;  %8300 = vmatpush1.bf16.msra.mxu1 %v23871_v52  ;;  %v8551_v52 = vrot.slane %v23977_v57, %v25979_v36 }
 0x4c4   :  { %10018 = vmatpush1.bf16.msra.mxu0 %v23868_v55  ;;  %10045 = vmatprep.mubr.bf16.mxu0 %v29172_v8  ;;  %v8558_v55 = vrot.slane %v23979_v7, %v25979_v36 }
 0x4c5   :  { %8301 = vmatprep.subr.bf16.mxu1 %v33629_v23  ;;  %10019 = vmatprep.subr.bf16.mxu0 %v23894_v10  ;;  %v23929_v10 = vld [vmem:[%s33580_s3 + $0x1380] ss:$28 sps:$4 sm:$0xff]  }
 0x4c7   :  { %8302 = vmatpush1.bf16.msra.mxu1 %v23895_v30  ;;  %v23981_v30 = vld [vmem:[#allocation2 + $0xb0] ss:$8 sps:$4 sm:$0x11]  }
 0x4c8   :  { %10020 = vmatpush1.bf16.msra.mxu0 %v23892_v63  ;;  %10119 = vmatprep.subr.bf16.mxu1 %v23901_v43  ;;  %v23926_v43 = vld [vmem:[%s33580_s3 + $0x1458] ss:$28 sps:$4 sm:$0xff]  }
 0x4c9   :  { %10021 = vmatprep.subr.bf16.mxu0 %v23898_v41  ;;  %v23937_v41 = vld [vmem:[%s33580_s3 + $0x13bc] ss:$28 sps:$4 sm:$0xff]  }
 0x4ca   :  { %8312 = vmatmul.mubr.bf16.vlgmr.msra.gmra.mrb[88].mxu1 %v27275_v58  ;;  %v23910_v58 = vld [vmem:[%s33580_s3 + $0x13b4] ss:$28 sps:$4 sm:$0xff]  }
 0x4cb   :  { %20614 = vmatprep.mubr.msk.bf16.mxu1 %vm158_vm5, %v28767_v33  ;;  %10120 = vmatpush1.bf16.msra.mxu1 %v23899_v40  ;;  %v23911_v33 = vld [vmem:[%s33580_s3 + $0x12d8] ss:$28 sps:$4 sm:$0xff]  }
 0x4cc   :  { %10022 = vmatpush1.bf16.msra.mxu0 %v23896_v60  ;;  %10121 = vmatprep.subr.bf16.mxu1 %v23907_v24  ;;  %v23934_v24 = vld [vmem:[%s33580_s3 + $0x1494] ss:$28 sps:$4 sm:$0xff]  }
 0x4cd   :  { %10023 = vmatprep.subr.bf16.mxu0 %v23904_v31 }
 0x4cf   :  { %10122 = vmatpush1.bf16.msra.mxu1 %v23905_v20  ;;  %v8559_v20 = vcombine.low %v8537_v56, %v8551_v52 }
 0x4d0   :  { %10024 = vmatpush1.bf16.msra.mxu0 %v23902_v11  ;;  %10123 = vmatprep.subr.bf16.mxu1 %v23913_v12  ;;  %v8560_v11 = vcombine.high %v8537_v56, %v8551_v52  ;;  %v8561_v12 = vcombine.low %v8544_v15, %v8558_v55  ;;  %v23946_v56 = vld [vmem:[%s33580_s3 + $0x1504] ss:$28 sps:$4 sm:$0xff]  }
 0x4d1   :  { %10025 = vmatprep.subr.bf16.mxu0 %v23910_v58 }
 0x4d2   :  { %8320 = vmatmul.mubr.bf16.gmra.mrb[92].mxu1 %v28791_v18  ;;  %v23922_v18 = vld [vmem:[%s33580_s3 + $0x1424] ss:$28 sps:$4 sm:$0xff]   ;;  %v8613_v34 = vrot.slane %v8560_v11, 7  ;;  %v8616_v7 = vrot.slane %v8561_v12, 7 }
 0x4d3   :  { %10124 = vmatpush1.bf16.msra.mxu1 %v23911_v33  ;;  %10151 = vmatprep.mubr.bf16.mxu1 %v29172_v8  ;;  %v23953_v11 = vld [vmem:[%s33580_s3 + $0x1460] ss:$28 sps:$4 sm:$0xff]  }
 0x4d4   :  { %10026 = vmatpush1.bf16.msra.mxu0 %v23908_v6  ;;  %10125 = vmatprep.subr.bf16.mxu1 %v23919_v19  ;;  %v8562_v6 = vcombine.high %v8544_v15, %v8558_v55  ;;  %v8571_v19 = vrot.slane %v23980_v2, %v25979_v36  ;;  %v8615_v2 = vrot.slane %v8613_v34, 2 }
 0x4d5   :  { %10027 = vmatprep.subr.bf16.mxu0 %v23916_v5  ;;  %v8578_v5 = vrot.slane %v23981_v30, %v25979_v36 }
 0x4d7   :  { %10126 = vmatpush1.bf16.msra.mxu1 %v23917_v53  ;;  %v23932_v53 = vld [vmem:[%s33580_s3 + $0x1490] ss:$28 sps:$4 sm:$0xff]   ;;  %v8579_v57 = vcombine.low %v8571_v19, %v8578_v5  ;;  %v23961_v19 = vld [vmem:[%s33580_s3 + $0x149c] ss:$28 sps:$4 sm:$0xff]  }
 0x4d8   :  { %10028 = vmatpush1.bf16.msra.mxu0 %v23914_v3  ;;  %10127 = vmatprep.subr.bf16.mxu1 %v23925_v16  ;;  %v23940_v3 = vld [vmem:[%s33580_s3 + $0x14cc] ss:$28 sps:$4 sm:$0xff]   ;;  %v8526_v16 = vcombine.high %v27316_v27, %v27320_v48  ;;  %v23958_v5 = vld [vmem:[%s33580_s3 + $0x1574] ss:$28 sps:$4 sm:$0xff]  }
 0x4d9   :  { %10029 = vmatprep.subr.bf16.mxu0 %v23922_v18  ;;  %v8610_v18 = vrot.slane %v8559_v20, 7  ;;  %v23949_v27 = vld [vmem:[%s33580_s3 + $0x142c] ss:$28 sps:$4 sm:$0xff]  }
 0x4da   :  { %v8607_v52 = vrot.slane %v8526_v16, 7  ;;  %v23959_v16 = vld [vmem:[%s33580_s3 + $0x1498] ss:$28 sps:$4 sm:$0xff]  }
 0x4db   :  { %10128 = vmatpush1.bf16.msra.mxu1 %v23923_v46  ;;  %v8619_v46 = vrot.slane %v8562_v6, 7  ;;  %v8612_v55 = vrot.slane %v8610_v18, 2  ;;  %v23950_v6 = vld [vmem:[%s33580_s3 + $0x1538] ss:$28 sps:$4 sm:$0xff]  }
 0x4dc   :  { %10030 = vmatpush1.bf16.msra.mxu0 %v23920_v25  ;;  %v6334_v63 = vpop.f32.mrb[72].mxu1  ;;  %10129 = vmatprep.subr.bf16.mxu1 %v23931_v1  ;;  %v23938_v1 = vld [vmem:[%s33580_s3 + $0x14c8] ss:$28 sps:$4 sm:$0xff]   ;;  %v8609_v20 = vrot.slane %v8607_v52, 2 }
 0x4dd   :  { %v29268_v40 = vadd.f32 %v6334_v63, %v29087_v44  ;;  %v6336_v60 = vpop.f32.mrb[73].mxu1  ;;  %10031 = vmatprep.subr.bf16.mxu0 %v23928_v45  ;;  %v23935_v44 = vld [vmem:[%s33580_s3 + $0x13b8] ss:$28 sps:$4 sm:$0xff]   ;;  %v8618_v63 = vrot.slane %v8616_v7, 2  ;;  %v29328_v12 = vsel %vm26980_vm3, %v8612_v55, %v8613_v34 }
 0x4de   :  { %v6337_v31 = vpop.f32.mrb[74].mxu1  ;;  %v23944_v60 = vld [vmem:[%s33580_s3 + $0x1500] ss:$28 sps:$4 sm:$0xff]  }
 0x4df   :  { %v29274_v58 = vadd.f32 %v6337_v31, %v29097_v59  ;;  %10130 = vmatpush1.bf16.msra.mxu1 %v23929_v10  ;;  %v6339_v33 = vpop.f32.mrb[75].mxu1  ;;  %v23943_v59 = vld [vmem:[%s33580_s3 + $0x13f4] ss:$28 sps:$4 sm:$0xff]   ;;  %v8606_v31 = vrot.slane %v27360_v50, 2 }
 0x4e0   :  { %10032 = vmatpush1.bf16.msra.mxu0 %v23926_v43  ;;  %10131 = vmatprep.subr.bf16.mxu1 %v23937_v41  ;;  %v8621_v43 = vrot.slane %v8619_v46, 2  ;;  %v8622_v41 = vrot.slane %v8579_v57, 7  ;;  %v29332_v33 = vsel %vm26980_vm3, %v8615_v2, %v8616_v7  ;;  %v8656_v2 = vcombine.low %v29156_v54, %v29146_v35  ;;  %v23987_v35 = vld [vmem:[%s33580_s3 + $0x1544] ss:$28 sps:$4 sm:$0xff]  }
 0x4e1   :  { %10033 = vmatprep.subr.bf16.mxu0 %v23934_v24  ;;  %v23952_v24 = vld [vmem:[%s33580_s3 + $0x153c] ss:$28 sps:$4 sm:$0xff]   ;;  %v29364_v34 = vsel %vm26980_vm3, %v8606_v31, %v8607_v52  ;;  %v23988_v31 = vld [vmem:[%s33580_s3 + $0x1650] ss:$28 sps:$4 sm:$0xff]  }
 0x4e2   :  { %v29340_v50 = vsel %vm26980_vm3, %v8621_v43, %v8622_v41  ;;  %v23982_v43 = vld [vmem:[%s33580_s3 + $0x1618] ss:$28 sps:$4 sm:$0xff]  }
 0x4e3   :  { %10132 = vmatpush1.bf16.msra.mxu1 %v23935_v44  ;;  %v29336_v44 = vsel %vm26980_vm3, %v8618_v63, %v8619_v46  ;;  %v23985_v63 = vld [vmem:[%s33580_s3 + $0x1540] ss:$28 sps:$4 sm:$0xff]  }
 0x4e4   :  { %10034 = vmatpush1.bf16.msra.mxu0 %v23932_v53  ;;  %v6342_v25 = vpop.f32.mrb[76].mxu1  ;;  %10133 = vmatprep.subr.bf16.mxu1 %v23943_v59  ;;  %v29353_v53 = vsel %vm26980_vm3, %v8609_v20, %v8610_v18  ;;  %v8698_v59 = vcombine.low %v29328_v12, %v29332_v33  ;;  %v23956_v18 = vld [vmem:[%s33580_s3 + $0x1570] ss:$28 sps:$4 sm:$0xff]   ;;  %v23993_v41 = vld [vmem:[%s33580_s3 + $0x157c] ss:$28 sps:$4 sm:$0xff]  }
 0x4e5   :  { %v29302_v48 = vadd.f32 %v6342_v25, %v29115_v62  ;;  %v6344_v45 = vpop.f32.mrb[77].mxu1  ;;  %10035 = vmatprep.subr.bf16.mxu0 %v23940_v3  ;;  %v23947_v62 = vld [vmem:[%s33580_s3 + $0x1428] ss:$28 sps:$4 sm:$0xff]   ;;  %v8732_v3 = vcombine.low %v29336_v44, %v29340_v50  ;;  %v8696_v57 = vcombine.low %v29364_v34, %v29353_v53  ;;  %v23965_v25 = vld [vmem:[%s33580_s3 + $0x14d0] ss:$28 sps:$4 sm:$0xff]  }
 0x4e6   :  { %v6345_v15 = vpop.f32.mrb[78].mxu1  ;;  %v8720_v7 = vrot.slane %v8698_v59, %v25979_v36  ;;  %v24005_v59 = vld [vmem:[%s33580_s3 + $0x15ec] ss:$28 sps:$4 sm:$0xff]  }
 0x4e7   :  { %v29308_v10 = vadd.f32 %v6345_v15, %v29129_v42  ;;  %10134 = vmatpush1.bf16.msra.mxu1 %v23941_v21  ;;  %v6347_v30 = vpop.f32.mrb[79].mxu1  ;;  %v23955_v42 = vld [vmem:[%s33580_s3 + $0x1464] ss:$28 sps:$4 sm:$0xff]   ;;  %v23967_v21 = vld [vmem:[%s33580_s3 + $0x14d4] ss:$28 sps:$4 sm:$0xff]   ;;  %v8740_v46 = vrot.slane %v8732_v3, %v25979_v36  ;;  %v8706_v45 = vrot.slane %v8696_v57, %v25979_v36 }
 0x4e8   :  { %10036 = vmatpush1.bf16.msra.mxu0 %v23938_v1  ;;  %10135 = vmatprep.subr.bf16.mxu1 %v23949_v27  ;;  %v23962_v1 = vld [vmem:[%s33580_s3 + $0x15a8] ss:$28 sps:$4 sm:$0xff]   ;;  %v24008_v57 = vld [vmem:[%s33580_s3 + $0x16fc] ss:$28 sps:$4 sm:$0xff]  }
 0x4e9   :  { %10037 = vmatprep.subr.bf16.mxu0 %v23946_v56  ;;  %v23973_v27 = vld [vmem:[%s33580_s3 + $0x150c] ss:$28 sps:$4 sm:$0xff]   ;;  %v8692_v56 = vcombine.low %v29149_v32, %v29134_v26  ;;  %v23970_v15 = vld [vmem:[%s33580_s3 + $0x15e4] ss:$28 sps:$4 sm:$0xff]   ;;  %v8729_v52 = vcombine.high %v8706_v45, %v8720_v7  ;;  %v8748_v55 = vcombine.high %v8740_v46, %v8740_v46 }
 0x4ea   :  { %v23971_v30 = vld [vmem:[%s33580_s3 + $0x1508] ss:$28 sps:$4 sm:$0xff]   ;;  %v23968_v26 = vld [vmem:[%s33580_s3 + $0x15e0] ss:$28 sps:$4 sm:$0xff]  }
 0x4eb   :  { %10136 = vmatpush1.bf16.msra.mxu1 %v23947_v62  ;;  %v29402_v32 = vpack.c.bf16 %v8692_v56, %v8656_v2  ;;  %v23984_v62 = vld [vmem:[%s33580_s3 + $0x161c] ss:$28 sps:$4 sm:$0xff]   ;;  %v29410_v54 = vpack.c.bf16 %v8748_v55, %v8729_v52  ;;  %v24002_v3 = vld [vmem:[%s33580_s3 + $0x16c4] ss:$28 sps:$4 sm:$0xff]   ;;  %v24020_v56 = vld [vmem:[%s33580_s3 + $0x176c] ss:$28 sps:$4 sm:$0xff]  }
 0x4ec   :  { %10038 = vmatpush1.bf16.msra.mxu0 %v23944_v60  ;;  %10137 = vmatprep.subr.bf16.mxu1 %v23955_v42  ;;  %v8728_v60 = vcombine.low %v8706_v45, %v8720_v7  ;;  %v23990_v42 = vld [vmem:[%s33580_s3 + $0x1654] ss:$28 sps:$4 sm:$0xff]   ;;  %v24018_v52 = vld [vmem:[%s33580_s3 + $0x1768] ss:$28 sps:$4 sm:$0xff]  }
 0x4ed   :  { %10039 = vmatprep.subr.bf16.mxu0 %v23952_v24  ;;  %v23991_v24 = vld [vmem:[%s33580_s3 + $0x1578] ss:$28 sps:$4 sm:$0xff]   ;;  %v24029_v55 = vld [vmem:[%s33580_s3 + $0x16cc] ss:$28 sps:$4 sm:$0xff]   ;;  %v24026_v2 = vld [vmem:[%s33580_s3 + $0x17a4] ss:$28 sps:$4 sm:$0xff]  }
 0x4ee   :  { %v29432_v20 = vpack.c.bf16 %v8740_v46, %v8728_v60  ;;  %v24006_v7 = vld [vmem:[%s33580_s3 + $0x16f8] ss:$28 sps:$4 sm:$0xff]  }
 0x4ef   :  { %10138 = vmatpush1.bf16.msra.mxu1 %v23953_v11  ;;  %v23996_v11 = vld [vmem:[%s33580_s3 + $0x168c] ss:$28 sps:$4 sm:$0xff]   ;;  %v24017_v46 = vld [vmem:[%s33580_s3 + $0x165c] ss:$28 sps:$4 sm:$0xff]   ;;  %v24023_v45 = vld [vmem:[%s33580_s3 + $0x1694] ss:$28 sps:$4 sm:$0xff]  }
 0x4f0   :  { %10040 = vmatpush1.bf16.msra.mxu0 %v23950_v6  ;;  %10139 = vmatprep.subr.bf16.mxu1 %v23961_v19  ;;  %v23999_v6 = vld [vmem:[%s33580_s3 + $0x15b4] ss:$28 sps:$4 sm:$0xff]  }
 0x4f1   :  { %10041 = vmatprep.subr.bf16.mxu0 %v23958_v5  ;;  %v23997_v19 = vld [vmem:[%s33580_s3 + $0x15b0] ss:$28 sps:$4 sm:$0xff]   ;;  %v23994_v5 = vld [vmem:[%s33580_s3 + $0x1688] ss:$28 sps:$4 sm:$0xff]  }
 0x4f2   :  { %v24038_v60 = vld [vmem:[%s33580_s3 + $0x1814] ss:$28 sps:$4 sm:$0xff]  }
 0x4f3   :  { %10140 = vmatpush1.bf16.msra.mxu1 %v23959_v16  ;;  %v24003_v16 = vld [vmem:[%s33580_s3 + $0x15e8] ss:$28 sps:$4 sm:$0xff]  }
 0x4f4   :  { %10042 = vmatpush1.bf16.msra.mxu0 %v23956_v18  ;;  %10141 = vmatprep.subr.bf16.mxu1 %v23967_v21  ;;  %v24000_v18 = vld [vmem:[%s33580_s3 + $0x16c0] ss:$28 sps:$4 sm:$0xff]  }
 0x4f5   :  { %10043 = vmatprep.subr.bf16.mxu0 %v23964_v51  ;;  %v24011_v21 = vld [vmem:[%s33580_s3 + $0x1624] ss:$28 sps:$4 sm:$0xff]  }
 0x4f6   :  { %v24009_v51 = vld [vmem:[%s33580_s3 + $0x1620] ss:$28 sps:$4 sm:$0xff]  }
 0x4f7   :  { %10142 = vmatpush1.bf16.msra.mxu1 %v23965_v25  ;;  %v24014_v25 = vld [vmem:[%s33580_s3 + $0x1734] ss:$28 sps:$4 sm:$0xff]  }
 0x4f8   :  { %10044 = vmatpush1.bf16.msra.mxu0 %v23962_v1  ;;  %10143 = vmatprep.subr.bf16.mxu1 %v23973_v27  ;;  %v24015_v1 = vld [vmem:[%s33580_s3 + $0x1658] ss:$28 sps:$4 sm:$0xff]   ;;  %v24012_v27 = vld [vmem:[%s33580_s3 + $0x1730] ss:$28 sps:$4 sm:$0xff]  }
 0x4f9   :  { %10066 = vmatprep.subr.bf16.mxu0 %v23970_v15  ;;  %v24021_v15 = vld [vmem:[%s33580_s3 + $0x1690] ss:$28 sps:$4 sm:$0xff]  }
 0x4fb   :  { %10046 = vmatmul.mubr.bf16.vlgmr.msra.gmra.mrb[48].mxu0 %v29402_v32  ;;  %10144 = vmatpush1.bf16.msra.mxu1 %v23971_v30  ;;  %v24027_v30 = vld [vmem:[%s33580_s3 + $0x16c8] ss:$28 sps:$4 sm:$0xff]  }
 0x4fc   :  { %10055 = vmatprep.mubr.bf16.mxu0 %v29410_v54  ;;  %10067 = vmatpush1.bf16.msra.mxu0 %v23968_v26  ;;  %v24024_v26 = vld [vmem:[%s33580_s3 + $0x17a0] ss:$28 sps:$4 sm:$0xff]  }
 0x4fd   :  { %10068 = vmatprep.subr.bf16.mxu0 %v23984_v62  ;;  %10145 = vmatprep.subr.bf16.mxu1 %v23987_v35  ;;  %v24035_v62 = vld [vmem:[%s33580_s3 + $0x1704] ss:$28 sps:$4 sm:$0xff]   ;;  %v24032_v35 = vld [vmem:[%s33580_s3 + $0x17dc] ss:$28 sps:$4 sm:$0xff]  }
 0x4ff   :  { %10146 = vmatpush1.bf16.msra.mxu1 %v23985_v63  ;;  %v24033_v63 = vld [vmem:[%s33580_s3 + $0x1700] ss:$28 sps:$4 sm:$0xff]  }
 0x500   :  { %10069 = vmatpush1.bf16.msra.mxu0 %v23982_v43  ;;  %10147 = vmatprep.subr.bf16.mxu1 %v23993_v41  ;;  %v24030_v43 = vld [vmem:[%s33580_s3 + $0x17d8] ss:$28 sps:$4 sm:$0xff]  }
 0x501   :  { %10070 = vmatprep.subr.bf16.mxu0 %v23990_v42  ;;  %v24041_v41 = vld [vmem:[%s33580_s3 + $0x173c] ss:$28 sps:$4 sm:$0xff]   ;;  %v8699_v42 = vcombine.high %v29328_v12, %v29332_v33  ;;  %v8697_v12 = vcombine.high %v29364_v34, %v29353_v53  ;;  %v24044_v33 = vld [vmem:[%s33580_s3 + $0x184c] ss:$28 sps:$4 sm:$0xff]  }
 0x502   :  { %v24050_v53 = vld [vmem:[%s33580_s3 + $0x17ac] ss:$28 sps:$4 sm:$0xff]  }
 0x503   :  { %10056 = vmatmul.mubr.bf16.gmra.mrb[52].mxu0 %v29432_v20  ;;  %10148 = vmatpush1.bf16.msra.mxu1 %v23991_v24  ;;  %v8733_v24 = vcombine.high %v29336_v44, %v29340_v50  ;;  %v8727_v44 = vrot.slane %v8699_v42, %v25979_v36  ;;  %v8713_v34 = vrot.slane %v8697_v12, %v25979_v36  ;;  %v24081_v42 = vld [vmem:[%s33580_s3 + $0x12b0] ss:$28 sps:$4 sm:$0xff]   ;;  %v24082_v12 = vld [vmem:[%s33580_s3 + $0x13c0] ss:$28 sps:$4 sm:$0xff]  }
 0x504   :  { %10071 = vmatpush1.bf16.msra.mxu0 %v23988_v31  ;;  %21037 = vmatprep.mubr.msk.bf16.mxu0 %vm158_vm5, %v27443_v47  ;;  %v24039_v31 = vld [vmem:[%s33580_s3 + $0x1738] ss:$28 sps:$4 sm:$0xff]  }
 0x505   :  { %10072 = vmatprep.subr.bf16.mxu0 %v23996_v11  ;;  %10149 = vmatprep.subr.bf16.mxu1 %v23999_v6  ;;  %v24036_v11 = vld [vmem:[%s33580_s3 + $0x1810] ss:$28 sps:$4 sm:$0xff]   ;;  %v8747_v50 = vrot.slane %v8733_v24, %v25979_v36  ;;  %v24077_v24 = vld [vmem:[%s33580_s3 + $0x1388] ss:$28 sps:$4 sm:$0xff]  }
 0x506   :  { %v24047_v6 = vld [vmem:[%s33580_s3 + $0x1774] ss:$28 sps:$4 sm:$0xff]  }
 0x507   :  { %10150 = vmatpush1.bf16.msra.mxu1 %v23997_v19  ;;  %v24045_v19 = vld [vmem:[%s33580_s3 + $0x1770] ss:$28 sps:$4 sm:$0xff]  }
 0x508   :  { %10073 = vmatpush1.bf16.msra.mxu0 %v23994_v5  ;;  %10172 = vmatprep.subr.bf16.mxu1 %v24005_v59  ;;  %v24042_v5 = vld [vmem:[%s33580_s3 + $0x1848] ss:$28 sps:$4 sm:$0xff]   ;;  %v24053_v59 = vld [vmem:[%s33580_s3 + $0x1274] ss:$28 sps:$4 sm:$0xff]  }
 0x509   :  { %10074 = vmatprep.subr.bf16.mxu0 %v24002_v3  ;;  %v8731_v3 = vcombine.high %v8713_v34, %v8727_v44 }
 0x50a   :  { %10152 = vmatmul.mubr.bf16.vlgmr.msra.gmra.mrb[40].mxu1 %v29402_v32 }
 0x50b   :  { %10161 = vmatprep.mubr.bf16.mxu1 %v29410_v54  ;;  %10173 = vmatpush1.bf16.msra.mxu1 %v24003_v16  ;;  %v8749_v16 = vcombine.high %v8747_v50, %v8747_v50 }
 0x50c   :  { %10075 = vmatpush1.bf16.msra.mxu0 %v24000_v18  ;;  %10174 = vmatprep.subr.bf16.mxu1 %v24011_v21  ;;  %v24048_v18 = vld [vmem:[%s33580_s3 + $0x17a8] ss:$28 sps:$4 sm:$0xff]   ;;  %v24051_v21 = vld [vmem:[%s33580_s3 + $0x1270] ss:$28 sps:$4 sm:$0xff]  }
 0x50d   :  { %10076 = vmatprep.subr.bf16.mxu0 %v24008_v57  ;;  %v24056_v57 = vld [vmem:[%s33580_s3 + $0x17e4] ss:$28 sps:$4 sm:$0xff]  }
 0x50f   :  { %10175 = vmatpush1.bf16.msra.mxu1 %v24009_v51  ;;  %v24059_v51 = vld [vmem:[%s33580_s3 + $0x12ac] ss:$28 sps:$4 sm:$0xff]  }
 0x510   :  { %10077 = vmatpush1.bf16.msra.mxu0 %v24006_v7  ;;  %10176 = vmatprep.subr.bf16.mxu1 %v24017_v46  ;;  %v29577_v7 = vpack.c.bf16 %v8749_v16, %v8731_v3  ;;  %v24054_v46 = vld [vmem:[%s33580_s3 + $0x17e0] ss:$28 sps:$4 sm:$0xff]   ;;  %v24099_v3 = vld [vmem:[%s33580_s3 + $0x146c] ss:$28 sps:$4 sm:$0xff]  }
 0x511   :  { %10078 = vmatprep.subr.bf16.mxu0 %v24014_v25  ;;  %v24057_v25 = vld [vmem:[%s33580_s3 + $0x12a8] ss:$28 sps:$4 sm:$0xff]   ;;  %v24101_v16 = vld [vmem:[%s33580_s3 + $0x1390] ss:$28 sps:$4 sm:$0xff]  }
 0x512   :  { %10162 = vmatmul.mubr.bf16.gmra.mrb[44].mxu1 %v29432_v20 }
 0x513   :  { %10177 = vmatpush1.bf16.msra.mxu1 %v24015_v1  ;;  %21039 = vmatprep.mubr.msk.bf16.mxu1 %vm158_vm5, %v27443_v47  ;;  %v24062_v1 = vld [vmem:[%s33580_s3 + $0x181c] ss:$28 sps:$4 sm:$0xff]  }
 0x514   :  { %10079 = vmatpush1.bf16.msra.mxu0 %v24012_v27  ;;  %10178 = vmatprep.subr.bf16.mxu1 %v24023_v45  ;;  %v8730_v27 = vcombine.low %v8713_v34, %v8727_v44  ;;  %v24065_v45 = vld [vmem:[%s33580_s3 + $0x12e4] ss:$28 sps:$4 sm:$0xff]   ;;  %v24089_v44 = vld [vmem:[%s33580_s3 + $0x13fc] ss:$28 sps:$4 sm:$0xff]   ;;  %v24092_v34 = vld [vmem:[%s33580_s3 + $0x1430] ss:$28 sps:$4 sm:$0xff]  }
 0x515   :  { %10080 = vmatprep.subr.bf16.mxu0 %v24020_v56  ;;  %v24060_v56 = vld [vmem:[%s33580_s3 + $0x1818] ss:$28 sps:$4 sm:$0xff]  }
 0x517   :  { %10179 = vmatpush1.bf16.msra.mxu1 %v24021_v15  ;;  %v24063_v15 = vld [vmem:[%s33580_s3 + $0x12e0] ss:$28 sps:$4 sm:$0xff]  }
 0x518   :  { %10081 = vmatpush1.bf16.msra.mxu0 %v24018_v52  ;;  %10180 = vmatprep.subr.bf16.mxu1 %v24029_v55  ;;  %v29600_v52 = vpack.c.bf16 %v8747_v50, %v8730_v27  ;;  %v24068_v55 = vld [vmem:[%s33580_s3 + $0x1854] ss:$28 sps:$4 sm:$0xff]   ;;  %v24091_v50 = vld [vmem:[%s33580_s3 + $0x1320] ss:$28 sps:$4 sm:$0xff]  }
 0x519   :  { %10082 = vmatprep.subr.bf16.mxu0 %v24026_v2  ;;  %v24071_v2 = vld [vmem:[%s33580_s3 + $0x131c] ss:$28 sps:$4 sm:$0xff]  }
 0x51a   :  { %v24111_v27 = vld [vmem:[%s33580_s3 + $0x1400] ss:$28 sps:$4 sm:$0xff]  }
 0x51b   :  { %10181 = vmatpush1.bf16.msra.mxu1 %v24027_v30  ;;  %v24066_v30 = vld [vmem:[%s33580_s3 + $0x1850] ss:$28 sps:$4 sm:$0xff]  }
 0x51c   :  { %10083 = vmatpush1.bf16.msra.mxu0 %v24024_v26  ;;  %10182 = vmatprep.subr.bf16.mxu1 %v24035_v62  ;;  %v24069_v26 = vld [vmem:[%s33580_s3 + $0x1318] ss:$28 sps:$4 sm:$0xff]  }
 0x51d   :  { %10084 = vmatprep.subr.bf16.mxu0 %v24032_v35  ;;  %v24075_v62 = vld [vmem:[%s33580_s3 + $0x1438] ss:$28 sps:$4 sm:$0xff]  }
 0x51e   :  { %v24074_v35 = vld [vmem:[%s33580_s3 + $0x1354] ss:$28 sps:$4 sm:$0xff]  }
 0x51f   :  { %10183 = vmatpush1.bf16.msra.mxu1 %v24033_v63  ;;  %v24076_v63 = vld [vmem:[%s33580_s3 + $0x1278] ss:$28 sps:$4 sm:$0xff]  }
 0x520   :  { %10085 = vmatpush1.bf16.msra.mxu0 %v24030_v43  ;;  %10184 = vmatprep.subr.bf16.mxu1 %v24041_v41  ;;  %v24072_v43 = vld [vmem:[%s33580_s3 + $0x1350] ss:$28 sps:$4 sm:$0xff]  }
 0x521   :  { %10086 = vmatprep.subr.bf16.mxu0 %v24038_v60  ;;  %v24080_v41 = vld [vmem:[%s33580_s3 + $0x1470] ss:$28 sps:$4 sm:$0xff]  }
 0x522   :  { %v24079_v60 = vld [vmem:[%s33580_s3 + $0x138c] ss:$28 sps:$4 sm:$0xff]  }
 0x523   :  { %10185 = vmatpush1.bf16.msra.mxu1 %v24039_v31  ;;  %v24085_v31 = vld [vmem:[%s33580_s3 + $0x14a8] ss:$28 sps:$4 sm:$0xff]  }
 0x524   :  { %10087 = vmatpush1.bf16.msra.mxu0 %v24036_v11  ;;  %10186 = vmatprep.subr.bf16.mxu1 %v24047_v6  ;;  %v24084_v11 = vld [vmem:[%s33580_s3 + $0x13c4] ss:$28 sps:$4 sm:$0xff]  }
 0x525   :  { %10088 = vmatprep.subr.bf16.mxu0 %v24044_v33  ;;  %v24086_v6 = vld [vmem:[%s33580_s3 + $0x12e8] ss:$28 sps:$4 sm:$0xff]   ;;  %v24090_v33 = vld [vmem:[%s33580_s3 + $0x14e0] ss:$28 sps:$4 sm:$0xff]  }
 0x527   :  { %10187 = vmatpush1.bf16.msra.mxu1 %v24045_v19  ;;  %v24087_v19 = vld [vmem:[%s33580_s3 + $0x13f8] ss:$28 sps:$4 sm:$0xff]  }
 0x528   :  { %10089 = vmatpush1.bf16.msra.mxu0 %v24042_v5  ;;  %10188 = vmatprep.subr.bf16.mxu1 %v24050_v53  ;;  %v24095_v5 = vld [vmem:[%s33580_s3 + $0x1518] ss:$28 sps:$4 sm:$0xff]  }
 0x529   :  { %10225 = vmatprep.subr.bf16.mxu0 %v24053_v59  ;;  %v24094_v53 = vld [vmem:[%s33580_s3 + $0x1434] ss:$28 sps:$4 sm:$0xff]  }
 0x52a   :  { %v24100_v59 = vld [vmem:[%s33580_s3 + $0x1550] ss:$28 sps:$4 sm:$0xff]  }
 0x52b   :  { %10099 = vmatmul.mubr.bf16.vlgmr.msra.gmra.mrb[48].mxu0 %v27445_v0  ;;  %10189 = vmatpush1.bf16.msra.mxu1 %v24048_v18  ;;  %v24097_v18 = vld [vmem:[%s33580_s3 + $0x1468] ss:$28 sps:$4 sm:$0xff]  }
 0x52c   :  { %21038 = vmatprep.mubr.msk.bf16.mxu0 %vm158_vm5, %v29577_v7  ;;  %10226 = vmatpush1.bf16.msra.mxu0 %v24051_v21  ;;  %v24105_v21 = vld [vmem:[%s33580_s3 + $0x1588] ss:$28 sps:$4 sm:$0xff]  }
 0x52d   :  { %10190 = vmatprep.subr.bf16.mxu1 %v24056_v57  ;;  %10227 = vmatprep.subr.bf16.mxu0 %v24059_v51  ;;  %v24104_v57 = vld [vmem:[%s33580_s3 + $0x14a4] ss:$28 sps:$4 sm:$0xff]  }
 0x52e   :  { %v24106_v51 = vld [vmem:[%s33580_s3 + $0x13c8] ss:$28 sps:$4 sm:$0xff]  }
 0x52f   :  { %10191 = vmatpush1.bf16.msra.mxu1 %v24054_v46  ;;  %v24102_v46 = vld [vmem:[%s33580_s3 + $0x14a0] ss:$28 sps:$4 sm:$0xff]  }
 0x530   :  { %10228 = vmatpush1.bf16.msra.mxu0 %v24057_v25  ;;  %10192 = vmatprep.subr.bf16.mxu1 %v24062_v1  ;;  %v24110_v25 = vld [vmem:[%s33580_s3 + $0x15c0] ss:$28 sps:$4 sm:$0xff]  }
 0x531   :  { %10229 = vmatprep.subr.bf16.mxu0 %v24065_v45  ;;  %v24109_v1 = vld [vmem:[%s33580_s3 + $0x14dc] ss:$28 sps:$4 sm:$0xff]  }
 0x532   :  { %v24107_v45 = vld [vmem:[%s33580_s3 + $0x14d8] ss:$28 sps:$4 sm:$0xff]  }
 0x533   :  { %10109 = vmatmul.mubr.bf16.gmra.mrb[52].mxu0 %v29600_v52  ;;  %10193 = vmatpush1.bf16.msra.mxu1 %v24060_v56  ;;  %v24114_v56 = vld [vmem:[%s33580_s3 + $0x1514] ss:$28 sps:$4 sm:$0xff]  }
 0x534   :  { %10230 = vmatpush1.bf16.msra.mxu0 %v24063_v15  ;;  %10257 = vmatprep.mubr.bf16.mxu0 %v29172_v8  ;;  %v24115_v15 = vld [vmem:[%s33580_s3 + $0x15f8] ss:$28 sps:$4 sm:$0xff]  }
 0x535   :  { %10194 = vmatprep.subr.bf16.mxu1 %v24068_v55  ;;  %10231 = vmatprep.subr.bf16.mxu0 %v24071_v2  ;;  %v24112_v55 = vld [vmem:[%s33580_s3 + $0x1510] ss:$28 sps:$4 sm:$0xff]  }
 0x536   :  { %v24118_v2 = vld [vmem:[%s33580_s3 + $0x154c] ss:$28 sps:$4 sm:$0xff]  }
 0x537   :  { %10195 = vmatpush1.bf16.msra.mxu1 %v24066_v30  ;;  %v24119_v30 = vld [vmem:[%s33580_s3 + $0x1630] ss:$28 sps:$4 sm:$0xff]  }
 0x538   :  { %10232 = vmatpush1.bf16.msra.mxu0 %v24069_v26  ;;  %22405 = vmatprep.subr.bf16.mxu1 %v24075_v62  ;;  %v24116_v26 = vld [vmem:[%s33580_s3 + $0x1548] ss:$28 sps:$4 sm:$0xff]  }
 0x539   :  { %10233 = vmatprep.subr.bf16.mxu0 %v24074_v35  ;;  %v24122_v62 = vld [vmem:[%s33580_s3 + $0x1584] ss:$28 sps:$4 sm:$0xff]  }
 0x53a   :  { %10205 = vmatmul.mubr.bf16.vlgmr.msra.gmra.mrb[40].mxu1 %v27445_v0  ;;  %v24123_v35 = vld [vmem:[%s33580_s3 + $0x1668] ss:$28 sps:$4 sm:$0xff]  }
 0x53b   :  { %21040 = vmatprep.mubr.msk.bf16.mxu1 %vm158_vm5, %v29577_v7  ;;  %22406 = vmatpush3.bf16.msra.mxu1 %v24076_v63  ;;  %v24120_v63 = vld [vmem:[%s33580_s3 + $0x1580] ss:$28 sps:$4 sm:$0xff]  }
 0x53c   :  { %10234 = vmatpush1.bf16.msra.mxu0 %v24072_v43  ;;  %22407 = vmatprep.subr.bf16.mxu1 %v24080_v41  ;;  %v24126_v43 = vld [vmem:[%s33580_s3 + $0x15bc] ss:$28 sps:$4 sm:$0xff]  }
 0x53d   :  { %10235 = vmatprep.subr.bf16.mxu0 %v24079_v60  ;;  %v24127_v41 = vld [vmem:[%s33580_s3 + $0x16a0] ss:$28 sps:$4 sm:$0xff]   ;;  %v24124_v60 = vld [vmem:[%s33580_s3 + $0x15b8] ss:$28 sps:$4 sm:$0xff]  }
 0x53f   :  { %22408 = vmatpush3.bf16.msra.mxu1 %v24081_v42  ;;  %v24130_v42 = vld [vmem:[%s33580_s3 + $0x15f4] ss:$28 sps:$4 sm:$0xff]  }
 0x540   :  { %10236 = vmatpush1.bf16.msra.mxu0 %v24077_v24  ;;  %22409 = vmatprep.subr.bf16.mxu1 %v24085_v31  ;;  %v24131_v24 = vld [vmem:[%s33580_s3 + $0x16d8] ss:$28 sps:$4 sm:$0xff]   ;;  %v24128_v31 = vld [vmem:[%s33580_s3 + $0x15f0] ss:$28 sps:$4 sm:$0xff]  }
 0x541   :  { %10237 = vmatprep.subr.bf16.mxu0 %v24084_v11  ;;  %v24134_v11 = vld [vmem:[%s33580_s3 + $0x162c] ss:$28 sps:$4 sm:$0xff]  }
 0x542   :  { %10215 = vmatmul.mubr.bf16.gmra.mrb[44].mxu1 %v29600_v52 }
 0x543   :  { %22410 = vmatpush3.bf16.msra.mxu1 %v24086_v6  ;;  %10363 = vmatprep.mubr.bf16.mxu1 %v29172_v8  ;;  %v24096_v8 = vld [vmem:[%s33580_s3 + $0x1358] ss:$28 sps:$4 sm:$0xff]   ;;  %v24135_v6 = vld [vmem:[%s33580_s3 + $0x1710] ss:$28 sps:$4 sm:$0xff]  }
 0x544   :  { %10238 = vmatpush1.bf16.msra.mxu0 %v24082_v12  ;;  %22411 = vmatprep.subr.bf16.mxu1 %v24090_v33  ;;  %v24132_v12 = vld [vmem:[%s33580_s3 + $0x1628] ss:$28 sps:$4 sm:$0xff]  }
 0x545   :  { %10239 = vmatprep.subr.bf16.mxu0 %v24089_v44 }
 0x547   :  { %22412 = vmatpush3.bf16.msra.mxu1 %v24091_v50 }
 0x548   :  { %10240 = vmatpush1.bf16.msra.mxu0 %v24087_v19  ;;  %22413 = vmatprep.subr.bf16.mxu1 %v24095_v5 }
 0x549   :  { %10241 = vmatprep.subr.bf16.mxu0 %v24094_v53  ;;  %v24136_v53 = vld [vmem:[%s33580_s3 + $0x1660] ss:$28 sps:$4 sm:$0xff]  }
 0x54b   :  { %22414 = vmatpush3.bf16.msra.mxu1 %v24096_v8 }
 0x54c   :  { %10242 = vmatpush1.bf16.msra.mxu0 %v24092_v34  ;;  %22415 = vmatprep.subr.bf16.mxu1 %v24100_v59  ;;  %v24142_v34 = vld [vmem:[%s33580_s3 + $0x169c] ss:$28 sps:$4 sm:$0xff]  }
 0x54d   :  { %10243 = vmatprep.subr.bf16.mxu0 %v24099_v3  ;;  %v24143_v59 = vld [vmem:[%s33580_s3 + $0x1780] ss:$28 sps:$4 sm:$0xff]   ;;  %v24140_v3 = vld [vmem:[%s33580_s3 + $0x1698] ss:$28 sps:$4 sm:$0xff]  }
 0x54f   :  { %22416 = vmatpush3.bf16.msra.mxu1 %v24101_v16 }
 0x550   :  { %10244 = vmatpush1.bf16.msra.mxu0 %v24097_v18  ;;  %22417 = vmatprep.subr.bf16.mxu1 %v24105_v21 }
 0x551   :  { %10245 = vmatprep.subr.bf16.mxu0 %v24104_v57 }
 0x553   :  { %22418 = vmatpush3.bf16.msra.mxu1 %v24106_v51 }
 0x554   :  { %10246 = vmatpush1.bf16.msra.mxu0 %v24102_v46  ;;  %22419 = vmatprep.subr.bf16.mxu1 %v24110_v25  ;;  %v24144_v46 = vld [vmem:[%s33580_s3 + $0x16d0] ss:$28 sps:$4 sm:$0xff]  }
 0x555   :  { %10247 = vmatprep.subr.bf16.mxu0 %v24109_v1  ;;  %v24150_v1 = vld [vmem:[%s33580_s3 + $0x170c] ss:$28 sps:$4 sm:$0xff]  }
 0x557   :  { %22420 = vmatpush3.bf16.msra.mxu1 %v24111_v27  ;;  %v24151_v27 = vld [vmem:[%s33580_s3 + $0x17f0] ss:$28 sps:$4 sm:$0xff]  }
 0x558   :  { %10248 = vmatpush1.bf16.msra.mxu0 %v24107_v45  ;;  %10380 = vmatprep.subr.bf16.mxu1 %v33629_v23  ;;  %v24148_v45 = vld [vmem:[%s33580_s3 + $0x1708] ss:$28 sps:$4 sm:$0xff]  }
 0x559   :  { %10249 = vmatprep.subr.bf16.mxu0 %v24114_v56  ;;  %v24182_v56 = vld [vmem:[#allocation2 + $0x40] ss:$8 sps:$4 sm:$0x33]  }
 0x55a   :  { %10364 = vmatmul.mubr.bf16.vlgmr.msra.gmra.mrb[96].mxu1 %v29402_v32 }
 0x55b   :  { %10371 = vmatprep.mubr.bf16.mxu1 %v29410_v54  ;;  %10381 = vmatpush1.bf16.msra.mxu1 %v24115_v15  ;;  %v24154_v15 = vld [vmem:[%s33580_s3 + $0x1744] ss:$28 sps:$4 sm:$0xff]  }
 0x55c   :  { %10250 = vmatpush1.bf16.msra.mxu0 %v24112_v55  ;;  %10382 = vmatprep.subr.bf16.mxu1 %v33629_v23  ;;  %v24183_v55 = vld [vmem:[#allocation2 + $0x64] ss:$8 sps:$4 sm:$0xff]  }
 0x55d   :  { %10251 = vmatprep.subr.bf16.mxu0 %v24118_v2  ;;  %v24155_v2 = vld [vmem:[%s33580_s3 + $0x1828] ss:$28 sps:$4 sm:$0xff]  }
 0x55f   :  { %10383 = vmatpush1.bf16.msra.mxu1 %v24119_v30  ;;  %v24152_v30 = vld [vmem:[%s33580_s3 + $0x1740] ss:$28 sps:$4 sm:$0xff]  }
 0x560   :  { %10252 = vmatpush1.bf16.msra.mxu0 %v24116_v26  ;;  %10384 = vmatprep.subr.bf16.mxu1 %v33629_v23  ;;  %v24158_v26 = vld [vmem:[%s33580_s3 + $0x177c] ss:$28 sps:$4 sm:$0xff]  }
 0x561   :  { %10253 = vmatprep.subr.bf16.mxu0 %v24122_v62  ;;  %v10567_v62 = vrot.slane %v24182_v56, %v25979_v36  ;;  %v24187_v56 = vld [vmem:[%s33580_s3 + $0x1930] ss:$28 sps:$4 sm:$0xff]  }
 0x562   :  { %10372 = vmatmul.mubr.bf16.gmra.mrb[100].mxu1 %v29432_v20 }
 0x563   :  { %10385 = vmatpush1.bf16.msra.mxu1 %v24123_v35  ;;  %21043 = vmatprep.mubr.msk.bf16.mxu1 %vm158_vm5, %v27443_v47  ;;  %v29850_v35 = vrot.slane %v24183_v55, %v25979_v36  ;;  %v24195_v55 = vld [vmem:[%s33580_s3 + $0x196c] ss:$28 sps:$4 sm:$0xff]  }
 0x564   :  { %10254 = vmatpush1.bf16.msra.mxu0 %v24120_v63  ;;  %10386 = vmatprep.subr.bf16.mxu1 %v33629_v23  ;;  %v24159_v63 = vld [vmem:[%s33580_s3 + $0x1860] ss:$28 sps:$4 sm:$0xff]  }
 0x565   :  { %10255 = vmatprep.subr.bf16.mxu0 %v24126_v43  ;;  %v24179_v43 = vld [vmem:[#allocation2 + $0x20] ss:$8 sps:$4 sm:$0xff]  }
 0x567   :  { %10387 = vmatpush1.bf16.msra.mxu1 %v24127_v41  ;;  %v24181_v41 = vld [vmem:[#allocation2 + $0x24] ss:$8 sps:$4 sm:$0xff]  }
 0x568   :  { %10256 = vmatpush1.bf16.msra.mxu0 %v24124_v60  ;;  %10388 = vmatprep.subr.bf16.mxu1 %v33629_v23  ;;  %v24156_v60 = vld [vmem:[%s33580_s3 + $0x1778] ss:$28 sps:$4 sm:$0xff]  }
 0x569   :  { %10278 = vmatprep.subr.bf16.mxu0 %v24130_v42  ;;  %v24165_v42 = vld [vmem:[%s33580_s3 + $0x188c] ss:$28 sps:$4 sm:$0xff]  }
 0x56b   :  { %10258 = vmatmul.mubr.bf16.vlgmr.msra.gmra.mrb[40].mxu0 %v29402_v32  ;;  %10389 = vmatpush1.bf16.msra.mxu1 %v24131_v24  ;;  %v24138_v32 = vld [vmem:[%s33580_s3 + $0x1664] ss:$28 sps:$4 sm:$0xff]   ;;  %v24162_v24 = vld [vmem:[%s33580_s3 + $0x17b4] ss:$28 sps:$4 sm:$0xff]  }
 0x56c   :  { %10267 = vmatprep.mubr.bf16.mxu0 %v29410_v54  ;;  %10279 = vmatpush1.bf16.msra.mxu0 %v24128_v31  ;;  %v24139_v54 = vld [vmem:[%s33580_s3 + $0x1748] ss:$28 sps:$4 sm:$0xff]  }
 0x56d   :  { %v22393_v33 = vpop.f32.mrb[80].mxu1  ;;  %10280 = vmatprep.subr.bf16.mxu0 %v24134_v11  ;;  %10390 = vmatprep.subr.bf16.mxu1 %v33629_v23  ;;  %v24178_v31 = vld [vmem:[#allocation2 + $0x4] ss:$8 sps:$4 sm:$0xff]   ;;  %v21045_v11 = vcombine.low %v10567_v62, %v29850_v35  ;;  %v24198_v62 = vld [vmem:[%s33580_s3 + $0x18bc] ss:$28 sps:$4 sm:$0xff]  }
 0x56e   :  { %v22394_v44 = vpop.f32.mrb[81].mxu1 }
 0x56f   :  { %v29787_v50 = vadd.f32 %v22394_v44, %v22393_v33  ;;  %v22396_v19 = vpop.f32.mrb[82].mxu1  ;;  %10391 = vmatpush1.bf16.msra.mxu1 %v24135_v6  ;;  %v24163_v6 = vld [vmem:[%s33580_s3 + $0x1888] ss:$28 sps:$4 sm:$0xff]   ;;  %v10540_v33 = vrot.slane %v24181_v41, %v25979_v36  ;;  %v24196_v41 = vld [vmem:[%s33580_s3 + $0x18b8] ss:$28 sps:$4 sm:$0xff]  }
 0x570   :  { %10281 = vmatpush1.bf16.msra.mxu0 %v24132_v12  ;;  %v22397_v5 = vpop.f32.mrb[83].mxu1  ;;  %10392 = vmatprep.subr.bf16.mxu1 %v33629_v23  ;;  %v10533_v12 = vrot.slane %v24179_v43, %v25979_v36  ;;  %v24171_v44 = vld [vmem:[%s33580_s3 + $0x18c4] ss:$28 sps:$4 sm:$0xff]  }
 0x571   :  { %v29796_v8 = vadd.f32 %v22397_v5, %v22396_v19  ;;  %10282 = vmatprep.subr.bf16.mxu0 %v24138_v32  ;;  %v24160_v32 = vld [vmem:[%s33580_s3 + $0x17b0] ss:$28 sps:$4 sm:$0xff]   ;;  %v29882_v5 = vrot.slane %v21045_v11, %v25979_v36  ;;  %v24199_v43 = vld [vmem:[%s33580_s3 + $0x19a0] ss:$28 sps:$4 sm:$0xff]   ;;  %v24205_v11 = vld [vmem:[%s33580_s3 + $0x19d8] ss:$28 sps:$4 sm:$0xff]  }
 0x572   :  { %v24168_v19 = vld [vmem:[%s33580_s3 + $0x17ec] ss:$28 sps:$4 sm:$0xff]  }
 0x573   :  { %10268 = vmatmul.mubr.bf16.gmra.mrb[44].mxu0 %v29432_v20  ;;  %10393 = vmatpush1.bf16.msra.mxu1 %v24139_v54  ;;  %v24146_v20 = vld [vmem:[%s33580_s3 + $0x16d4] ss:$28 sps:$4 sm:$0xff]   ;;  %v10513_v54 = vrot.slane %v24178_v31, %v25979_v36 }
 0x574   :  { %10283 = vmatpush1.bf16.msra.mxu0 %v24136_v53  ;;  %21041 = vmatprep.mubr.msk.bf16.mxu0 %vm158_vm5, %v27443_v47  ;;  %v24147_v47 = vld [vmem:[%s33580_s3 + $0x17b8] ss:$28 sps:$4 sm:$0xff]   ;;  %v24169_v53 = vld [vmem:[%s33580_s3 + $0x18c0] ss:$28 sps:$4 sm:$0xff]  }
 0x575   :  { %v22399_v16 = vpop.f32.mrb[84].mxu1  ;;  %10284 = vmatprep.subr.bf16.mxu0 %v24142_v34  ;;  %10394 = vmatprep.subr.bf16.mxu1 %v33629_v23  ;;  %v29891_v34 = vrot.slane %v10533_v12, %v25979_v36 }
 0x576   :  { %v22400_v18 = vpop.f32.mrb[85].mxu1 }
 0x577   :  { %v29814_v21 = vadd.f32 %v22400_v18, %v22399_v16  ;;  %v22402_v57 = vpop.f32.mrb[86].mxu1  ;;  %10395 = vmatpush1.bf16.msra.mxu1 %v24143_v59  ;;  %v29894_v59 = vrot.slane %v10540_v33, %v25979_v36  ;;  %v24177_v16 = vld [vmem:[%s33580_s3 + $0x18fc] ss:$28 sps:$4 sm:$0xff]   ;;  %v29906_v18 = vrot.slane %v10513_v54, %v25979_v36  ;;  %v24219_v54 = vld [vmem:[%s33580_s3 + $0x1a4c] ss:$28 sps:$4 sm:$0xff]  }
 0x578   :  { %10285 = vmatpush1.bf16.msra.mxu0 %v24140_v3  ;;  %v22403_v51 = vpop.f32.mrb[87].mxu1  ;;  %10396 = vmatprep.subr.bf16.mxu1 %v33629_v23  ;;  %v24166_v3 = vld [vmem:[%s33580_s3 + $0x17e8] ss:$28 sps:$4 sm:$0xff]  }
 0x579   :  { %v29823_v25 = vadd.f32 %v22403_v51, %v22402_v57  ;;  %10286 = vmatprep.subr.bf16.mxu0 %v24146_v20  ;;  %v24174_v20 = vld [vmem:[%s33580_s3 + $0x1824] ss:$28 sps:$4 sm:$0xff]   ;;  %v10716_v57 = vcombine.high %v29894_v59, %v29882_v5  ;;  %v10680_v51 = vcombine.high %v29906_v18, %v29891_v34 }
 0x57b   :  { %10397 = vmatpush1.bf16.msra.mxu1 %v24147_v47  ;;  %v24175_v47 = vld [vmem:[%s33580_s3 + $0x18f8] ss:$28 sps:$4 sm:$0xff]  }
 0x57c   :  { %10287 = vmatpush1.bf16.msra.mxu0 %v24144_v46  ;;  %10398 = vmatprep.subr.bf16.mxu1 %v33629_v23  ;;  %v24172_v46 = vld [vmem:[%s33580_s3 + $0x1820] ss:$28 sps:$4 sm:$0xff]  }
 0x57d   :  { %10288 = vmatprep.subr.bf16.mxu0 %v24150_v1  ;;  %v24189_v1 = vld [vmem:[%s33580_s3 + $0x1934] ss:$28 sps:$4 sm:$0xff]  }
 0x57f   :  { %10399 = vmatpush1.bf16.msra.mxu1 %v24151_v27  ;;  %v29921_v27 = vpack.c.bf16 %v10716_v57, %v10680_v51 }
 0x580   :  { %10289 = vmatpush1.bf16.msra.mxu0 %v24148_v45  ;;  %10400 = vmatprep.subr.bf16.mxu1 %v33629_v23  ;;  %v24186_v45 = vld [vmem:[%s33580_s3 + $0x185c] ss:$28 sps:$4 sm:$0xff]  }
 0x581   :  { %10290 = vmatprep.subr.bf16.mxu0 %v24154_v15  ;;  %v24184_v15 = vld [vmem:[%s33580_s3 + $0x1858] ss:$28 sps:$4 sm:$0xff]  }
 0x583   :  { %10401 = vmatpush1.bf16.msra.mxu1 %v24155_v2  ;;  %v24192_v2 = vld [vmem:[%s33580_s3 + $0x1884] ss:$28 sps:$4 sm:$0xff]  }
 0x584   :  { %10291 = vmatpush1.bf16.msra.mxu0 %v24152_v30  ;;  %10402 = vmatprep.subr.bf16.mxu1 %v33629_v23  ;;  %v24193_v30 = vld [vmem:[%s33580_s3 + $0x1968] ss:$28 sps:$4 sm:$0xff]  }
 0x585   :  { %10292 = vmatprep.subr.bf16.mxu0 %v24158_v26  ;;  %v24190_v26 = vld [vmem:[%s33580_s3 + $0x1880] ss:$28 sps:$4 sm:$0xff]  }
 0x587   :  { %10403 = vmatpush1.bf16.msra.mxu1 %v24159_v63  ;;  %v24201_v63 = vld [vmem:[%s33580_s3 + $0x19a4] ss:$28 sps:$4 sm:$0xff]  }
 0x588   :  { %10293 = vmatpush1.bf16.msra.mxu0 %v24156_v60  ;;  %12142 = vmatprep.subr.bf16.mxu1 %v24165_v42  ;;  %v24207_v60 = vld [vmem:[%s33580_s3 + $0x19dc] ss:$28 sps:$4 sm:$0xff]  }
 0x589   :  { %10294 = vmatprep.subr.bf16.mxu0 %v24162_v24 }
 0x58a   :  { %10413 = vmatmul.mubr.bf16.vlgmr.msra.gmra.mrb[104].mxu1 %v27445_v0 }
 0x58b   :  { %21044 = vmatprep.mubr.msk.bf16.mxu1 %vm158_vm5, %v29577_v7  ;;  %12143 = vmatpush1.bf16.msra.mxu1 %v24163_v6 }
 0x58c   :  { %10295 = vmatpush1.bf16.msra.mxu0 %v24160_v32  ;;  %12144 = vmatprep.subr.bf16.mxu1 %v24171_v44  ;;  %v24202_v32 = vld [vmem:[%s33580_s3 + $0x18f0] ss:$28 sps:$4 sm:$0xff]  }
 0x58d   :  { %10296 = vmatprep.subr.bf16.mxu0 %v24168_v19  ;;  %v24213_v44 = vld [vmem:[%s33580_s3 + $0x1a14] ss:$28 sps:$4 sm:$0xff]   ;;  %v24208_v19 = vld [vmem:[%s33580_s3 + $0x1928] ss:$28 sps:$4 sm:$0xff]  }
 0x58f   :  { %12145 = vmatpush1.bf16.msra.mxu1 %v24169_v53 }
 0x590   :  { %10297 = vmatpush1.bf16.msra.mxu0 %v24166_v3  ;;  %12146 = vmatprep.subr.bf16.mxu1 %v24177_v16 }
 0x591   :  { %10298 = vmatprep.subr.bf16.mxu0 %v24174_v20  ;;  %v24217_v20 = vld [vmem:[%s33580_s3 + $0x1a48] ss:$28 sps:$4 sm:$0xff]  }
 0x592   :  { %10421 = vmatmul.mubr.bf16.gmra.mrb[108].mxu1 %v29600_v52 }
 0x593   :  { %12147 = vmatpush1.bf16.msra.mxu1 %v24175_v47  ;;  %12174 = vmatprep.mubr.bf16.mxu1 %v29921_v27 }
 0x594   :  { %10299 = vmatpush1.bf16.msra.mxu0 %v24172_v46  ;;  %12148 = vmatprep.subr.bf16.mxu1 %v24189_v1  ;;  %v24214_v46 = vld [vmem:[%s33580_s3 + $0x1960] ss:$28 sps:$4 sm:$0xff]  }
 0x595   :  { %10300 = vmatprep.subr.bf16.mxu0 %v24186_v45  ;;  %v24222_v1 = vld [vmem:[%s33580_s3 + $0x199c] ss:$28 sps:$4 sm:$0xff]  }
 0x596   :  { %v24220_v45 = vld [vmem:[%s33580_s3 + $0x1998] ss:$28 sps:$4 sm:$0xff]  }
 0x597   :  { %12149 = vmatpush1.bf16.msra.mxu1 %v24187_v56  ;;  %v24231_v56 = vld [vmem:[%s33580_s3 + $0x1abc] ss:$28 sps:$4 sm:$0xff]  }
 0x598   :  { %10301 = vmatpush1.bf16.msra.mxu0 %v24184_v15  ;;  %12150 = vmatprep.subr.bf16.mxu1 %v24195_v55  ;;  %v24229_v15 = vld [vmem:[%s33580_s3 + $0x1ab8] ss:$28 sps:$4 sm:$0xff]   ;;  %v24269_v55 = vld [vmem:[#allocation2 + $0x80] ss:$8 sps:$4 sm:$0xff]  }
 0x599   :  { %12036 = vmatprep.subr.bf16.mxu0 %v24192_v2  ;;  %v24226_v2 = vld [vmem:[%s33580_s3 + $0x19d0] ss:$28 sps:$4 sm:$0xff]  }
 0x59b   :  { %10311 = vmatmul.mubr.bf16.vlgmr.msra.gmra.mrb[40].mxu0 %v27445_v0  ;;  %12151 = vmatpush1.bf16.msra.mxu1 %v24193_v30  ;;  %v24204_v0 = vld [vmem:[%s33580_s3 + $0x18f4] ss:$28 sps:$4 sm:$0xff]  }
 0x59c   :  { %21042 = vmatprep.mubr.msk.bf16.mxu0 %vm158_vm5, %v29577_v7  ;;  %12037 = vmatpush1.bf16.msra.mxu0 %v24190_v26  ;;  %v24237_v30 = vld [vmem:[%s33580_s3 + $0x1af4] ss:$28 sps:$4 sm:$0xff]   ;;  %v24271_v26 = vld [vmem:[#allocation2 + $0x84] ss:$8 sps:$4 sm:$0xff]  }
 0x59d   :  { %v8313_v42 = vpop.f32.mrb[88].mxu1  ;;  %12038 = vmatprep.subr.bf16.mxu0 %v24198_v62  ;;  %12152 = vmatprep.subr.bf16.mxu1 %v24201_v63  ;;  %v24234_v62 = vld [vmem:[%s33580_s3 + $0x1a0c] ss:$28 sps:$4 sm:$0xff]   ;;  %v24272_v63 = vld [vmem:[#allocation2 + $0x90] ss:$8 sps:$4 sm:$0xff]  }
 0x59e   :  { %v8314_v24 = vadd.f32 %v29787_v50, %v8313_v42  ;;  %v8315_v31 = vpop.f32.mrb[89].mxu1  ;;  %v24210_v50 = vld [vmem:[%s33580_s3 + $0x192c] ss:$28 sps:$4 sm:$0xff]  }
 0x59f   :  { %v8316_v7 = vpop.f32.mrb[90].mxu1  ;;  %12153 = vmatpush1.bf16.msra.mxu1 %v24199_v43  ;;  %v24274_v43 = vld [vmem:[#allocation2 + $0x94] ss:$8 sps:$4 sm:$0xff]   ;;  %v24243_v42 = vld [vmem:[%s33580_s3 + $0x1b2c] ss:$28 sps:$4 sm:$0xff]   ;;  %v30058_v31 = vrot.slane %v24269_v55, %v25979_v36 }
 0x5a0   :  { %v29972_v6 = vadd.f32 %v8314_v24, %v29268_v40  ;;  %v8317_v12 = vadd.f32 %v29796_v8, %v8316_v7  ;;  %12039 = vmatpush1.bf16.msra.mxu0 %v24196_v41  ;;  %v8318_v33 = vpop.f32.mrb[91].mxu1  ;;  %12154 = vmatprep.subr.bf16.mxu1 %v24207_v60  ;;  %v24211_v8 = vld [vmem:[%s33580_s3 + $0x1a10] ss:$28 sps:$4 sm:$0xff]   ;;  %v24232_v60 = vld [vmem:[%s33580_s3 + $0x1a08] ss:$28 sps:$4 sm:$0xff]   ;;  %v30061_v7 = vrot.slane %v24271_v26, %v25979_v36 }
 0x5a1   :  { %12040 = vmatprep.subr.bf16.mxu0 %v24204_v0  ;;  %v24235_v41 = vld [vmem:[%s33580_s3 + $0x1af0] ss:$28 sps:$4 sm:$0xff]   ;;  %v24240_v0 = vld [vmem:[%s33580_s3 + $0x1a44] ss:$28 sps:$4 sm:$0xff]   ;;  %v24268_v24 = vld [vmem:[#allocation2 + $0x74] ss:$8 sps:$4 sm:$0xff]  }
 0x5a2   :  { %v29985_v40 = vadd.f32 %v8317_v12, %v29274_v58  ;;  %v30067_v12 = vrot.slane %v24274_v43, %v25979_v36  ;;  %v24241_v33 = vld [vmem:[%s33580_s3 + $0x1b28] ss:$28 sps:$4 sm:$0xff]   ;;  %v24289_v26 = vld [vmem:[#allocation2 + $0x30] ss:$8 sps:$4 sm:$0xff]  }
 0x5a3   :  { %10321 = vmatmul.mubr.bf16.gmra.mrb[44].mxu0 %v29600_v52  ;;  %12155 = vmatpush1.bf16.msra.mxu1 %v24205_v11  ;;  %v24216_v52 = vld [vmem:[%s33580_s3 + $0x1964] ss:$28 sps:$4 sm:$0xff]   ;;  %v30064_v11 = vrot.slane %v24272_v63, %v25979_v36  ;;  %v10715_v63 = vcombine.low %v29894_v59, %v29882_v5  ;;  %v10679_v59 = vcombine.low %v29906_v18, %v29891_v34 }
 0x5a4   :  { %12041 = vmatpush1.bf16.msra.mxu0 %v24202_v32  ;;  %12068 = vmatprep.mubr.bf16.mxu0 %v29921_v27  ;;  %v24275_v32 = vld [vmem:[#allocation2 + $0xa0] ss:$8 sps:$4 sm:$0x33]  }
 0x5a5   :  { %v8321_v58 = vpop.f32.mrb[92].mxu1  ;;  %12042 = vmatprep.subr.bf16.mxu0 %v24210_v50  ;;  %12156 = vmatprep.subr.bf16.mxu1 %v24213_v44  ;;  %v24238_v50 = vld [vmem:[%s33580_s3 + $0x1a40] ss:$28 sps:$4 sm:$0xff]   ;;  %v24256_v43 = vld [vmem:[%s33580_s3 + $0x1ae8] ss:$28 sps:$4 sm:$0xff]  }
 0x5a6   :  { %v8322_v53 = vadd.f32 %v29814_v21, %v8321_v58  ;;  %v8323_v3 = vpop.f32.mrb[93].mxu1  ;;  %v24225_v21 = vld [vmem:[%s33580_s3 + $0x1a84] ss:$28 sps:$4 sm:$0xff]   ;;  %v10629_v58 = vcombine.high %v30061_v7, %v30067_v12 }
 0x5a7   :  { %v8324_v16 = vpop.f32.mrb[94].mxu1  ;;  %12157 = vmatpush1.bf16.msra.mxu1 %v24211_v8  ;;  %v24249_v44 = vld [vmem:[%s33580_s3 + $0x1b64] ss:$28 sps:$4 sm:$0xff]   ;;  %v24246_v8 = vld [vmem:[%s33580_s3 + $0x1a7c] ss:$28 sps:$4 sm:$0xff]  }
 0x5a8   :  { %v30006_v57 = vadd.f32 %v8322_v53, %v29302_v48  ;;  %v8325_v47 = vadd.f32 %v29823_v25, %v8324_v16  ;;  %12043 = vmatpush1.bf16.msra.mxu0 %v24208_v19  ;;  %v8326_v51 = vpop.f32.mrb[95].mxu1  ;;  %12158 = vmatprep.subr.bf16.mxu1 %v24219_v54  ;;  %v24223_v25 = vld [vmem:[%s33580_s3 + $0x1a80] ss:$28 sps:$4 sm:$0xff]   ;;  %v30082_v19 = vrot.slane %v24268_v24, %v25979_v36  ;;  %v24244_v3 = vld [vmem:[%s33580_s3 + $0x1a78] ss:$28 sps:$4 sm:$0xff]  }
 0x5a9   :  { %12044 = vmatprep.subr.bf16.mxu0 %v24216_v52  ;;  %v10627_v54 = vcombine.high %v30058_v31, %v30064_v11  ;;  %v24247_v52 = vld [vmem:[%s33580_s3 + $0x1b60] ss:$28 sps:$4 sm:$0xff]   ;;  %v30092_v53 = vrot.slane %v24275_v32, %v25979_v36  ;;  %v10547_v32 = vrot.slane %v24289_v26, %v25979_v36  ;;  %v24293_v26 = vld [vmem:[%s33580_s3 + $0x1bc8] ss:$28 sps:$4 sm:$0xff]  }
 0x5aa   :  { %v30019_v48 = vadd.f32 %v8325_v47, %v29308_v10  ;;  %v24228_v10 = vld [vmem:[%s33580_s3 + $0x19d4] ss:$28 sps:$4 sm:$0xff]   ;;  %v24255_v16 = vld [vmem:[%s33580_s3 + $0x1b9c] ss:$28 sps:$4 sm:$0xff]   ;;  %v10593_v47 = vcombine.high %v29850_v35, %v30082_v19  ;;  %v24281_v34 = vld [vmem:[%s33580_s3 + $0x1c44] ss:$28 sps:$4 sm:$0xff]  }
 0x5ab   :  { %12159 = vmatpush1.bf16.msra.mxu1 %v24217_v20  ;;  %v24252_v20 = vld [vmem:[%s33580_s3 + $0x1ab4] ss:$28 sps:$4 sm:$0xff]   ;;  %v21049_v51 = vcombine.low %v10627_v54, %v30061_v7  ;;  %v24278_v54 = vld [vmem:[%s33580_s3 + $0x1b5c] ss:$28 sps:$4 sm:$0xff]  }
 0x5ac   :  { %12045 = vmatpush1.bf16.msra.mxu0 %v24214_v46  ;;  %12160 = vmatprep.subr.bf16.mxu1 %v24225_v21  ;;  %v21051_v46 = vcombine.low %v10629_v58, %v30092_v53  ;;  %v24292_v21 = vld [vmem:[#allocation2 + $0x50] ss:$8 sps:$4 sm:$0x33]   ;;  %v24288_v24 = vld [vmem:[#allocation2 + $0x14] ss:$8 sps:$4 sm:$0xff]  }
 0x5ad   :  { %12046 = vmatprep.subr.bf16.mxu0 %v24222_v1  ;;  %v24253_v1 = vld [vmem:[%s33580_s3 + $0x1b98] ss:$28 sps:$4 sm:$0xff]   ;;  %v10574_v55 = vrot.slane %v24292_v21, %v25979_v36  ;;  %v10520_v58 = vrot.slane %v24288_v24, %v25979_v36 }
 0x5ae   :  { %v24261_v35 = vld [vmem:[%s33580_s3 + $0x1bd4] ss:$28 sps:$4 sm:$0xff]  }
 0x5af   :  { %12161 = vmatpush1.bf16.msra.mxu1 %v24223_v25  ;;  %v21047_v25 = vcombine.low %v10593_v47, %v30058_v31  ;;  %v21046_v5 = vcombine.low %v10574_v55, %v30082_v19  ;;  %v24276_v47 = vld [vmem:[%s33580_s3 + $0x1b58] ss:$28 sps:$4 sm:$0xff]  }
 0x5b0   :  { %12047 = vmatpush1.bf16.msra.mxu0 %v24220_v45  ;;  %12162 = vmatprep.subr.bf16.mxu1 %v24231_v56  ;;  %v24250_v45 = vld [vmem:[%s33580_s3 + $0x1ab0] ss:$28 sps:$4 sm:$0xff]   ;;  %v24305_v24 = vld [vmem:[%s33580_s3 + $0x1c38] ss:$28 sps:$4 sm:$0xff]  }
 0x5b1   :  { %12048 = vmatprep.subr.bf16.mxu0 %v24228_v10  ;;  %v24258_v56 = vld [vmem:[%s33580_s3 + $0x1aec] ss:$28 sps:$4 sm:$0xff]   ;;  %v10743_v10 = vrot.slane %v21049_v51, %v25979_v36  ;;  %v24284_v21 = vld [vmem:[%s33580_s3 + $0x1b94] ss:$28 sps:$4 sm:$0xff]  }
 0x5b2   :  { %v24298_v55 = vld [vmem:[%s33580_s3 + $0x1cb4] ss:$28 sps:$4 sm:$0xff]  }
 0x5b3   :  { %12163 = vmatpush1.bf16.msra.mxu1 %v24229_v15  ;;  %v10763_v15 = vrot.slane %v21051_v46, %v25979_v36  ;;  %v24287_v46 = vld [vmem:[%s33580_s3 + $0x1c7c] ss:$28 sps:$4 sm:$0xff]  }
 0x5b4   :  { %12049 = vmatpush1.bf16.msra.mxu0 %v24226_v2  ;;  %12164 = vmatprep.subr.bf16.mxu1 %v24237_v30  ;;  %v24259_v2 = vld [vmem:[%s33580_s3 + $0x1bd0] ss:$28 sps:$4 sm:$0xff]   ;;  %v10729_v30 = vrot.slane %v21047_v25, %v25979_v36 }
 0x5b5   :  { %12050 = vmatprep.subr.bf16.mxu0 %v24234_v62  ;;  %v24291_v62 = vld [vmem:[#allocation2 + $0x34] ss:$8 sps:$4 sm:$0xff]  }
 0x5b6   :  { %v10751_v51 = vcombine.low %v10729_v30, %v10743_v10 }
 0x5b7   :  { %12165 = vmatpush1.bf16.msra.mxu1 %v24235_v41  ;;  %v24267_v41 = vld [vmem:[%s33580_s3 + $0x1c0c] ss:$28 sps:$4 sm:$0xff]  }
 0x5b8   :  { %12051 = vmatpush1.bf16.msra.mxu0 %v24232_v60  ;;  %12166 = vmatprep.subr.bf16.mxu1 %v24243_v42  ;;  %v24264_v60 = vld [vmem:[%s33580_s3 + $0x1b24] ss:$28 sps:$4 sm:$0xff]   ;;  %v10752_v42 = vcombine.high %v10729_v30, %v10743_v10  ;;  %v30196_v10 = vpack.c.bf16 %v10763_v15, %v10751_v51  ;;  %v24295_v30 = vld [vmem:[%s33580_s3 + $0x1bcc] ss:$28 sps:$4 sm:$0xff]  }
 0x5b9   :  { %12052 = vmatprep.subr.bf16.mxu0 %v24240_v0  ;;  %v10771_v0 = vcombine.high %v10763_v15, %v10763_v15  ;;  %v24296_v15 = vld [vmem:[%s33580_s3 + $0x1cb0] ss:$28 sps:$4 sm:$0xff]   ;;  %v24326_v51 = vld [vmem:[%s33580_s3 + $0x1dc8] ss:$28 sps:$4 sm:$0xff]  }
 0x5bb   :  { %12167 = vmatpush1.bf16.msra.mxu1 %v24241_v33  ;;  %v24265_v33 = vld [vmem:[%s33580_s3 + $0x1c08] ss:$28 sps:$4 sm:$0xff]   ;;  %v30154_v18 = vpack.c.bf16 %v10771_v0, %v10752_v42  ;;  %v24308_v0 = vld [vmem:[%s33580_s3 + $0x1d20] ss:$28 sps:$4 sm:$0xff]  }
 0x5bc   :  { %12053 = vmatpush1.bf16.msra.mxu0 %v24238_v50  ;;  %12168 = vmatprep.subr.bf16.mxu1 %v24249_v44  ;;  %v10554_v50 = vrot.slane %v24291_v62, %v25979_v36  ;;  %v24262_v44 = vld [vmem:[%s33580_s3 + $0x1b20] ss:$28 sps:$4 sm:$0xff]   ;;  %v24304_v62 = vld [vmem:[%s33580_s3 + $0x1cec] ss:$28 sps:$4 sm:$0xff]  }
 0x5bd   :  { %12054 = vmatprep.subr.bf16.mxu0 %v24246_v8  ;;  %v30149_v8 = vpack.c.bf16 %v10715_v63, %v10679_v59  ;;  %v24301_v63 = vld [vmem:[%s33580_s3 + $0x1c04] ss:$28 sps:$4 sm:$0xff]   ;;  %v24313_v59 = vld [vmem:[%s33580_s3 + $0x1c74] ss:$28 sps:$4 sm:$0xff]  }
 0x5be   :  { %v24310_v42 = vld [vmem:[%s33580_s3 + $0x1d24] ss:$28 sps:$4 sm:$0xff]  }
 0x5bf   :  { %12169 = vmatpush1.bf16.msra.mxu1 %v24247_v52  ;;  %v30161_v52 = vrot.slane %v21046_v5, %v25979_v36  ;;  %v24316_v5 = vld [vmem:[%s33580_s3 + $0x1d5c] ss:$28 sps:$4 sm:$0xff]  }
 0x5c0   :  { %12055 = vmatpush1.bf16.msra.mxu0 %v24244_v3  ;;  %12170 = vmatprep.subr.bf16.mxu1 %v24255_v16  ;;  %v24279_v3 = vld [vmem:[%s33580_s3 + $0x1c40] ss:$28 sps:$4 sm:$0xff]   ;;  %v30169_v16 = vrot.slane %v10547_v32, %v25979_v36  ;;  %v24311_v32 = vld [vmem:[%s33580_s3 + $0x1c70] ss:$28 sps:$4 sm:$0xff]  }
 0x5c1   :  { %12056 = vmatprep.subr.bf16.mxu0 %v24252_v20  ;;  %v30172_v20 = vrot.slane %v10554_v50, %v25979_v36  ;;  %v24319_v50 = vld [vmem:[%s33580_s3 + $0x1cac] ss:$28 sps:$4 sm:$0xff]  }
 0x5c3   :  { %12171 = vmatpush1.bf16.msra.mxu1 %v24253_v1  ;;  %v30184_v1 = vrot.slane %v10520_v58, %v25979_v36  ;;  %v10718_v25 = vcombine.high %v30172_v20, %v30161_v52  ;;  %v24317_v58 = vld [vmem:[%s33580_s3 + $0x1ca8] ss:$28 sps:$4 sm:$0xff]  }
 0x5c4   :  { %12057 = vmatpush1.bf16.msra.mxu0 %v24250_v45  ;;  %12172 = vmatprep.subr.bf16.mxu1 %v24261_v35  ;;  %v24285_v45 = vld [vmem:[%s33580_s3 + $0x1c78] ss:$28 sps:$4 sm:$0xff]  }
 0x5c5   :  { %12058 = vmatprep.subr.bf16.mxu0 %v24258_v56  ;;  %v10682_v35 = vcombine.high %v30184_v1, %v30169_v16  ;;  %v24282_v56 = vld [vmem:[%s33580_s3 + $0x1b90] ss:$28 sps:$4 sm:$0xff]  }
 0x5c7   :  { %12173 = vmatpush1.bf16.msra.mxu1 %v24259_v2  ;;  %v30201_v2 = vpack.c.bf16 %v10718_v25, %v10682_v35  ;;  %v24334_v25 = vld [vmem:[%s33580_s3 + $0x1e04] ss:$28 sps:$4 sm:$0xff]   ;;  %v10626_v35 = vcombine.low %v30058_v31, %v30064_v11  ;;  %v24340_v31 = vld [vmem:[%s33580_s3 + $0x1e3c] ss:$28 sps:$4 sm:$0xff]  }
 0x5c8   :  { %12059 = vmatpush1.bf16.msra.mxu0 %v24256_v43  ;;  %12195 = vmatprep.subr.bf16.mxu1 %v24267_v41  ;;  %v24302_v43 = vld [vmem:[%s33580_s3 + $0x1ce8] ss:$28 sps:$4 sm:$0xff]   ;;  %v24299_v41 = vld [vmem:[%s33580_s3 + $0x1c00] ss:$28 sps:$4 sm:$0xff]  }
 0x5c9   :  { %12060 = vmatprep.subr.bf16.mxu0 %v24264_v60  ;;  %v24307_v60 = vld [vmem:[%s33580_s3 + $0x1c3c] ss:$28 sps:$4 sm:$0xff]  }
 0x5ca   :  { %12175 = vmatmul.mubr.bf16.vlgmr.msra.gmra.mrb[40].mxu1 %v30149_v8 }
 0x5cb   :  { %12184 = vmatprep.mubr.bf16.mxu1 %v30154_v18  ;;  %12196 = vmatpush1.bf16.msra.mxu1 %v24265_v33  ;;  %v24314_v33 = vld [vmem:[%s33580_s3 + $0x1d58] ss:$28 sps:$4 sm:$0xff]  }
 0x5cc   :  { %12061 = vmatpush1.bf16.msra.mxu0 %v24262_v44  ;;  %12197 = vmatprep.subr.bf16.mxu1 %v24281_v34  ;;  %v24322_v44 = vld [vmem:[%s33580_s3 + $0x1d94] ss:$28 sps:$4 sm:$0xff]  }
 0x5cd   :  { %12062 = vmatprep.subr.bf16.mxu0 %v24278_v54  ;;  %v24320_v34 = vld [vmem:[%s33580_s3 + $0x1d90] ss:$28 sps:$4 sm:$0xff]  }
 0x5ce   :  { %v24351_v54 = vld [vmem:[#allocation2 + $0xb0] ss:$8 sps:$4 sm:$0x33]  }
 0x5cf   :  { %12198 = vmatpush1.bf16.msra.mxu1 %v24279_v3  ;;  %v24328_v3 = vld [vmem:[%s33580_s3 + $0x1dcc] ss:$28 sps:$4 sm:$0xff]  }
 0x5d0   :  { %12063 = vmatpush1.bf16.msra.mxu0 %v24276_v47  ;;  %12199 = vmatprep.subr.bf16.mxu1 %v24287_v46  ;;  %v24325_v47 = vld [vmem:[%s33580_s3 + $0x1ce4] ss:$28 sps:$4 sm:$0xff]   ;;  %v10645_v46 = vrot.slane %v24351_v54, %v25979_v36  ;;  %v24357_v54 = vld [vmem:[%s33580_s3 + $0x18d0] ss:$28 sps:$4 sm:$0xff]  }
 0x5d1   :  { %12064 = vmatprep.subr.bf16.mxu0 %v24284_v21  ;;  %v24323_v21 = vld [vmem:[%s33580_s3 + $0x1ce0] ss:$28 sps:$4 sm:$0xff]  }
 0x5d2   :  { %12185 = vmatmul.mubr.bf16.gmra.mrb[44].mxu1 %v30196_v10 }
 0x5d3   :  { %12200 = vmatpush1.bf16.msra.mxu1 %v24285_v45  ;;  %21475 = vmatprep.mubr.msk.bf16.mxu1 %vm158_vm5, %v30201_v2  ;;  %v24331_v45 = vld [vmem:[%s33580_s3 + $0x1d1c] ss:$28 sps:$4 sm:$0xff]  }
 0x5d4   :  { %12065 = vmatpush1.bf16.msra.mxu0 %v24282_v56  ;;  %12201 = vmatprep.subr.bf16.mxu1 %v24298_v55  ;;  %v10628_v56 = vcombine.low %v30061_v7, %v30067_v12  ;;  %v24332_v55 = vld [vmem:[%s33580_s3 + $0x1e00] ss:$28 sps:$4 sm:$0xff]   ;;  %v24337_v7 = vld [vmem:[%s33580_s3 + $0x1d54] ss:$28 sps:$4 sm:$0xff]  }
 0x5d5   :  { %12066 = vmatprep.subr.bf16.mxu0 %v24295_v30  ;;  %v10646_v30 = vcombine.low %v30092_v53, %v10645_v46  ;;  %v24338_v53 = vld [vmem:[%s33580_s3 + $0x1e38] ss:$28 sps:$4 sm:$0xff]   ;;  %v24362_v46 = vld [vmem:[%s33580_s3 + $0x1908] ss:$28 sps:$4 sm:$0xff]  }
 0x5d7   :  { %12202 = vmatpush1.bf16.msra.mxu1 %v24296_v15  ;;  %v24329_v15 = vld [vmem:[%s33580_s3 + $0x1d18] ss:$28 sps:$4 sm:$0xff]  }
 0x5d8   :  { %12067 = vmatpush1.bf16.msra.mxu0 %v24293_v26  ;;  %12203 = vmatprep.subr.bf16.mxu1 %v24304_v62  ;;  %v21048_v26 = vcombine.high %v30082_v19, %v10626_v35  ;;  %v21050_v62 = vcombine.high %v30064_v11, %v10628_v56  ;;  %v24343_v11 = vld [vmem:[%s33580_s3 + $0x1d8c] ss:$28 sps:$4 sm:$0xff]   ;;  %v24367_v56 = vld [vmem:[%s33580_s3 + $0x1940] ss:$28 sps:$4 sm:$0xff]  }
 0x5d9   :  { %12089 = vmatprep.subr.bf16.mxu0 %v24301_v63  ;;  %v21052_v63 = vcombine.high %v30067_v12, %v10646_v30  ;;  %v24344_v12 = vld [vmem:[%s33580_s3 + $0x1e70] ss:$28 sps:$4 sm:$0xff]   ;;  %v24371_v30 = vld [vmem:[%s33580_s3 + $0x1b38] ss:$28 sps:$4 sm:$0xff]  }
 0x5da   :  { %v10736_v19 = vrot.slane %v21048_v26, %v25979_v36  ;;  %v24365_v35 = vld [vmem:[%s33580_s3 + $0x1e6c] ss:$28 sps:$4 sm:$0xff]  }
 0x5db   :  { %12069 = vmatmul.mubr.bf16.vlgmr.msra.gmra.mrb[48].mxu0 %v30149_v8  ;;  %12204 = vmatpush1.bf16.msra.mxu1 %v24302_v43  ;;  %v24335_v43 = vld [vmem:[%s33580_s3 + $0x1d50] ss:$28 sps:$4 sm:$0xff]  }
 0x5dc   :  { %12078 = vmatprep.mubr.bf16.mxu0 %v30154_v18  ;;  %12090 = vmatpush1.bf16.msra.mxu0 %v24299_v41  ;;  %v24346_v41 = vld [vmem:[%s33580_s3 + $0x1e74] ss:$28 sps:$4 sm:$0xff]   ;;  %v24375_v26 = vld [vmem:[%s33580_s3 + $0x18cc] ss:$28 sps:$4 sm:$0xff]  }
 0x5dd   :  { %12091 = vmatprep.subr.bf16.mxu0 %v24307_v60  ;;  %12205 = vmatprep.subr.bf16.mxu1 %v24310_v42  ;;  %v10750_v60 = vrot.slane %v21050_v62, %v25979_v36  ;;  %v10770_v42 = vrot.slane %v21052_v63, %v25979_v36  ;;  %v24376_v62 = vld [vmem:[%s33580_s3 + $0x1b70] ss:$28 sps:$4 sm:$0xff]   ;;  %v24373_v63 = vld [vmem:[%s33580_s3 + $0x18c8] ss:$28 sps:$4 sm:$0xff]  }
 0x5df   :  { %12206 = vmatpush1.bf16.msra.mxu1 %v24308_v0  ;;  %v10717_v0 = vcombine.low %v30172_v20, %v30161_v52  ;;  %v10772_v52 = vcombine.high %v10770_v42, %v10770_v42  ;;  %v24352_v20 = vld [vmem:[%s33580_s3 + $0x1898] ss:$28 sps:$4 sm:$0xff]  }
 0x5e0   :  { %12092 = vmatpush1.bf16.msra.mxu0 %v24305_v24  ;;  %12207 = vmatprep.subr.bf16.mxu1 %v24316_v5  ;;  %v24341_v24 = vld [vmem:[%s33580_s3 + $0x1d88] ss:$28 sps:$4 sm:$0xff]   ;;  %v24350_v5 = vld [vmem:[%s33580_s3 + $0x1a58] ss:$28 sps:$4 sm:$0xff]  }
 0x5e1   :  { %12093 = vmatprep.subr.bf16.mxu0 %v24313_v59  ;;  %v24349_v59 = vld [vmem:[%s33580_s3 + $0x1dc4] ss:$28 sps:$4 sm:$0xff]  }
 0x5e3   :  { %12079 = vmatmul.mubr.bf16.gmra.mrb[52].mxu0 %v30196_v10  ;;  %12208 = vmatpush1.bf16.msra.mxu1 %v24314_v33  ;;  %v10754_v33 = vcombine.high %v10736_v19, %v10750_v60 }
 0x5e4   :  { %12094 = vmatpush1.bf16.msra.mxu0 %v24311_v32  ;;  %21473 = vmatprep.mubr.msk.bf16.mxu0 %vm158_vm5, %v30201_v2  ;;  %v10681_v32 = vcombine.low %v30184_v1, %v30169_v16  ;;  %v24355_v1 = vld [vmem:[%s33580_s3 + $0x1dfc] ss:$28 sps:$4 sm:$0xff]  }
 0x5e5   :  { %12095 = vmatprep.subr.bf16.mxu0 %v24319_v50  ;;  %12209 = vmatprep.subr.bf16.mxu1 %v24322_v44  ;;  %v24347_v50 = vld [vmem:[%s33580_s3 + $0x1dc0] ss:$28 sps:$4 sm:$0xff]   ;;  %v30349_v16 = vpack.c.bf16 %v10772_v52, %v10754_v33  ;;  %v24395_v33 = vld [vmem:[%s33580_s3 + $0x1c50] ss:$28 sps:$4 sm:$0xff]  }
 0x5e6   :  { %v30344_v44 = vpack.c.bf16 %v10717_v0, %v10681_v32  ;;  %v24383_v0 = vld [vmem:[%s33580_s3 + $0x1938] ss:$28 sps:$4 sm:$0xff]   ;;  %v24392_v32 = vld [vmem:[%s33580_s3 + $0x19a8] ss:$28 sps:$4 sm:$0xff]  }
 0x5e7   :  { %12210 = vmatpush1.bf16.msra.mxu1 %v24320_v34  ;;  %v24356_v34 = vld [vmem:[%s33580_s3 + $0x1a90] ss:$28 sps:$4 sm:$0xff]   ;;  %v24398_v52 = vld [vmem:[%s33580_s3 + $0x19e4] ss:$28 sps:$4 sm:$0xff]  }
 0x5e8   :  { %12096 = vmatpush1.bf16.msra.mxu0 %v24317_v58  ;;  %12211 = vmatprep.subr.bf16.mxu1 %v24328_v3  ;;  %v24353_v58 = vld [vmem:[%s33580_s3 + $0x1df8] ss:$28 sps:$4 sm:$0xff]   ;;  %v10753_v3 = vcombine.low %v10736_v19, %v10750_v60  ;;  %v24378_v19 = vld [vmem:[%s33580_s3 + $0x1900] ss:$28 sps:$4 sm:$0xff]  }
 0x5e9   :  { %12097 = vmatprep.subr.bf16.mxu0 %v24325_v47  ;;  %v24361_v47 = vld [vmem:[%s33580_s3 + $0x1ac8] ss:$28 sps:$4 sm:$0xff]   ;;  %v24385_v60 = vld [vmem:[%s33580_s3 + $0x193c] ss:$28 sps:$4 sm:$0xff]  }
 0x5eb   :  { %12212 = vmatpush1.bf16.msra.mxu1 %v24326_v51  ;;  %v24360_v51 = vld [vmem:[%s33580_s3 + $0x1e34] ss:$28 sps:$4 sm:$0xff]  }
 0x5ec   :  { %12098 = vmatpush1.bf16.msra.mxu0 %v24323_v21  ;;  %12213 = vmatprep.subr.bf16.mxu1 %v24334_v25  ;;  %v24358_v21 = vld [vmem:[%s33580_s3 + $0x1e30] ss:$28 sps:$4 sm:$0xff]   ;;  %v30375_v25 = vpack.c.bf16 %v10770_v42, %v10753_v3  ;;  %v24387_v42 = vld [vmem:[%s33580_s3 + $0x1a20] ss:$28 sps:$4 sm:$0xff]   ;;  %v24407_v3 = vld [vmem:[%s33580_s3 + $0x1cf8] ss:$28 sps:$4 sm:$0xff]  }
 0x5ed   :  { %12099 = vmatprep.subr.bf16.mxu0 %v24331_v45  ;;  %v24366_v45 = vld [vmem:[%s33580_s3 + $0x1b00] ss:$28 sps:$4 sm:$0xff]  }
 0x5ef   :  { %12214 = vmatpush1.bf16.msra.mxu1 %v24332_v55  ;;  %v24363_v55 = vld [vmem:[%s33580_s3 + $0x1e68] ss:$28 sps:$4 sm:$0xff]  }
 0x5f0   :  { %12100 = vmatpush1.bf16.msra.mxu0 %v24329_v15  ;;  %12215 = vmatprep.subr.bf16.mxu1 %v24340_v31  ;;  %v24370_v15 = vld [vmem:[%s33580_s3 + $0x1894] ss:$28 sps:$4 sm:$0xff]  }
 0x5f1   :  { %12101 = vmatprep.subr.bf16.mxu0 %v24337_v7  ;;  %v24372_v31 = vld [vmem:[%s33580_s3 + $0x1978] ss:$28 sps:$4 sm:$0xff]   ;;  %v24368_v7 = vld [vmem:[%s33580_s3 + $0x1890] ss:$28 sps:$4 sm:$0xff]  }
 0x5f3   :  { %12216 = vmatpush1.bf16.msra.mxu1 %v24338_v53  ;;  %v24377_v53 = vld [vmem:[%s33580_s3 + $0x19b0] ss:$28 sps:$4 sm:$0xff]  }
 0x5f4   :  { %12102 = vmatpush1.bf16.msra.mxu0 %v24335_v43  ;;  %12217 = vmatprep.subr.bf16.mxu1 %v24346_v41  ;;  %v24381_v43 = vld [vmem:[%s33580_s3 + $0x1ba8] ss:$28 sps:$4 sm:$0xff]  }
 0x5f5   :  { %12103 = vmatprep.subr.bf16.mxu0 %v24343_v11  ;;  %v24380_v41 = vld [vmem:[%s33580_s3 + $0x1904] ss:$28 sps:$4 sm:$0xff]  }
 0x5f6   :  { %v24382_v11 = vld [vmem:[%s33580_s3 + $0x19e8] ss:$28 sps:$4 sm:$0xff]  }
 0x5f7   :  { %12218 = vmatpush1.bf16.msra.mxu1 %v24344_v12  ;;  %v24386_v12 = vld [vmem:[%s33580_s3 + $0x1be0] ss:$28 sps:$4 sm:$0xff]  }
 0x5f8   :  { %12104 = vmatpush1.bf16.msra.mxu0 %v24341_v24  ;;  %22433 = vmatprep.subr.bf16.mxu1 %v24350_v5  ;;  %v24390_v24 = vld [vmem:[%s33580_s3 + $0x1974] ss:$28 sps:$4 sm:$0xff]  }
 0x5f9   :  { %12105 = vmatprep.subr.bf16.mxu0 %v24349_v59  ;;  %v24391_v5 = vld [vmem:[%s33580_s3 + $0x1c18] ss:$28 sps:$4 sm:$0xff]   ;;  %v24394_v59 = vld [vmem:[%s33580_s3 + $0x19ac] ss:$28 sps:$4 sm:$0xff]  }
 0x5fa   :  { %12228 = vmatmul.mubr.bf16.vlgmr.msra.gmra.mrb[40].mxu1 %v30344_v44 }
 0x5fb   :  { %21476 = vmatprep.mubr.msk.bf16.mxu1 %vm158_vm5, %v30349_v16  ;;  %22434 = vmatpush3.bf16.msra.mxu1 %v24352_v20  ;;  %v24399_v20 = vld [vmem:[%s33580_s3 + $0x1c88] ss:$28 sps:$4 sm:$0xff]  }
 0x5fc   :  { %12106 = vmatpush1.bf16.msra.mxu0 %v24347_v50  ;;  %22435 = vmatprep.subr.bf16.mxu1 %v24356_v34  ;;  %v24396_v50 = vld [vmem:[%s33580_s3 + $0x19e0] ss:$28 sps:$4 sm:$0xff]  }
 0x5fd   :  { %12107 = vmatprep.subr.bf16.mxu0 %v24355_v1  ;;  %v24402_v34 = vld [vmem:[%s33580_s3 + $0x1a1c] ss:$28 sps:$4 sm:$0xff]  }
 0x5fe   :  { %v24403_v1 = vld [vmem:[%s33580_s3 + $0x1cc0] ss:$28 sps:$4 sm:$0xff]  }
 0x5ff   :  { %22436 = vmatpush3.bf16.msra.mxu1 %v24357_v54  ;;  %v24400_v54 = vld [vmem:[%s33580_s3 + $0x1a18] ss:$28 sps:$4 sm:$0xff]  }
 0x600   :  { %12108 = vmatpush1.bf16.msra.mxu0 %v24353_v58  ;;  %22437 = vmatprep.subr.bf16.mxu1 %v24361_v47  ;;  %v24406_v58 = vld [vmem:[%s33580_s3 + $0x1a54] ss:$28 sps:$4 sm:$0xff]  }
 0x601   :  { %12109 = vmatprep.subr.bf16.mxu0 %v24360_v51  ;;  %v24404_v47 = vld [vmem:[%s33580_s3 + $0x1a50] ss:$28 sps:$4 sm:$0xff]  }
 0x602   :  { %12238 = vmatmul.mubr.bf16.gmra.mrb[44].mxu1 %v30375_v25  ;;  %v24410_v51 = vld [vmem:[%s33580_s3 + $0x1a8c] ss:$28 sps:$4 sm:$0xff]  }
 0x603   :  { %22438 = vmatpush3.bf16.msra.mxu1 %v24362_v46  ;;  %12386 = vmatprep.mubr.bf16.mxu1 %v29921_v27  ;;  %v24411_v46 = vld [vmem:[%s33580_s3 + $0x1d30] ss:$28 sps:$4 sm:$0xff]  }
 0x604   :  { %12110 = vmatpush1.bf16.msra.mxu0 %v24358_v21  ;;  %22439 = vmatprep.subr.bf16.mxu1 %v24366_v45  ;;  %v24408_v21 = vld [vmem:[%s33580_s3 + $0x1a88] ss:$28 sps:$4 sm:$0xff]  }
 0x605   :  { %12111 = vmatprep.subr.bf16.mxu0 %v24365_v35  ;;  %v24414_v35 = vld [vmem:[%s33580_s3 + $0x1ac4] ss:$28 sps:$4 sm:$0xff]  }
 0x607   :  { %22440 = vmatpush3.bf16.msra.mxu1 %v24367_v56 }
 0x608   :  { %12112 = vmatpush1.bf16.msra.mxu0 %v24363_v55  ;;  %22441 = vmatprep.subr.bf16.mxu1 %v24371_v30 }
 0x609   :  { %12248 = vmatprep.subr.bf16.mxu0 %v24370_v15  ;;  %v24415_v15 = vld [vmem:[%s33580_s3 + $0x1d68] ss:$28 sps:$4 sm:$0xff]  }
 0x60b   :  { %12122 = vmatmul.mubr.bf16.vlgmr.msra.gmra.mrb[48].mxu0 %v30344_v44  ;;  %22442 = vmatpush3.bf16.msra.mxu1 %v24372_v31 }
 0x60c   :  { %21474 = vmatprep.mubr.msk.bf16.mxu0 %vm158_vm5, %v30349_v16  ;;  %12249 = vmatpush1.bf16.msra.mxu0 %v24368_v7  ;;  %v24412_v7 = vld [vmem:[%s33580_s3 + $0x1ac0] ss:$28 sps:$4 sm:$0xff]  }
 0x60d   :  { %12250 = vmatprep.subr.bf16.mxu0 %v24375_v26  ;;  %22443 = vmatprep.subr.bf16.mxu1 %v24376_v62  ;;  %v24418_v62 = vld [vmem:[%s33580_s3 + $0x1afc] ss:$28 sps:$4 sm:$0xff]  }
 0x60f   :  { %22444 = vmatpush3.bf16.msra.mxu1 %v24377_v53  ;;  %v24419_v53 = vld [vmem:[%s33580_s3 + $0x1da0] ss:$28 sps:$4 sm:$0xff]  }
 0x610   :  { %12251 = vmatpush1.bf16.msra.mxu0 %v24373_v63  ;;  %22445 = vmatprep.subr.bf16.mxu1 %v24381_v43  ;;  %v24416_v63 = vld [vmem:[%s33580_s3 + $0x1af8] ss:$28 sps:$4 sm:$0xff]  }
 0x611   :  { %12252 = vmatprep.subr.bf16.mxu0 %v24380_v41  ;;  %v24422_v41 = vld [vmem:[%s33580_s3 + $0x1b34] ss:$28 sps:$4 sm:$0xff]  }
 0x613   :  { %12132 = vmatmul.mubr.bf16.gmra.mrb[52].mxu0 %v30375_v25  ;;  %22446 = vmatpush3.bf16.msra.mxu1 %v24382_v11 }
 0x614   :  { %12253 = vmatpush1.bf16.msra.mxu0 %v24378_v19  ;;  %12280 = vmatprep.mubr.bf16.mxu0 %v29921_v27  ;;  %v24388_v27 = vld [vmem:[%s33580_s3 + $0x1970] ss:$28 sps:$4 sm:$0xff]  }
 0x615   :  { %12254 = vmatprep.subr.bf16.mxu0 %v24385_v60  ;;  %22447 = vmatprep.subr.bf16.mxu1 %v24386_v12  ;;  %v24423_v12 = vld [vmem:[%s33580_s3 + $0x1dd8] ss:$28 sps:$4 sm:$0xff]  }
 0x617   :  { %22448 = vmatpush3.bf16.msra.mxu1 %v24387_v42 }
 0x618   :  { %12255 = vmatpush1.bf16.msra.mxu0 %v24383_v0  ;;  %12403 = vmatprep.subr.bf16.mxu1 %v33629_v23  ;;  %v24420_v0 = vld [vmem:[%s33580_s3 + $0x1b30] ss:$28 sps:$4 sm:$0xff]  }
 0x619   :  { %12256 = vmatprep.subr.bf16.mxu0 %v24390_v24 }
 0x61a   :  { %12387 = vmatmul.mubr.bf16.vlgmr.msra.gmra.mrb[112].mxu1 %v30149_v8 }
 0x61b   :  { %12394 = vmatprep.mubr.bf16.mxu1 %v30154_v18  ;;  %12404 = vmatpush1.bf16.msra.mxu1 %v24391_v5  ;;  %v24426_v5 = vld [vmem:[%s33580_s3 + $0x1b6c] ss:$28 sps:$4 sm:$0xff]  }
 0x61c   :  { %12257 = vmatpush1.bf16.msra.mxu0 %v24388_v27  ;;  %12405 = vmatprep.subr.bf16.mxu1 %v33629_v23  ;;  %v24427_v27 = vld [vmem:[%s33580_s3 + $0x1e10] ss:$28 sps:$4 sm:$0xff]  }
 0x61d   :  { %12258 = vmatprep.subr.bf16.mxu0 %v24394_v59  ;;  %v24424_v59 = vld [vmem:[%s33580_s3 + $0x1b68] ss:$28 sps:$4 sm:$0xff]  }
 0x61f   :  { %12406 = vmatpush1.bf16.msra.mxu1 %v24395_v33  ;;  %v24430_v33 = vld [vmem:[%s33580_s3 + $0x1ba4] ss:$28 sps:$4 sm:$0xff]  }
 0x620   :  { %12259 = vmatpush1.bf16.msra.mxu0 %v24392_v32  ;;  %12407 = vmatprep.subr.bf16.mxu1 %v33629_v23  ;;  %v24431_v32 = vld [vmem:[%s33580_s3 + $0x1e48] ss:$28 sps:$4 sm:$0xff]  }
 0x621   :  { %12260 = vmatprep.subr.bf16.mxu0 %v24398_v52  ;;  %v24428_v52 = vld [vmem:[%s33580_s3 + $0x1ba0] ss:$28 sps:$4 sm:$0xff]  }
 0x622   :  { %12395 = vmatmul.mubr.bf16.gmra.mrb[116].mxu1 %v30196_v10 }
 0x623   :  { %12408 = vmatpush1.bf16.msra.mxu1 %v24399_v20  ;;  %21479 = vmatprep.mubr.msk.bf16.mxu1 %vm158_vm5, %v30201_v2  ;;  %v24434_v20 = vld [vmem:[%s33580_s3 + $0x1bdc] ss:$28 sps:$4 sm:$0xff]  }
 0x624   :  { %12261 = vmatpush1.bf16.msra.mxu0 %v24396_v50  ;;  %12409 = vmatprep.subr.bf16.mxu1 %v33629_v23  ;;  %v24435_v50 = vld [vmem:[%s33580_s3 + $0x1e80] ss:$28 sps:$4 sm:$0xff]  }
 0x625   :  { %12262 = vmatprep.subr.bf16.mxu0 %v24402_v34  ;;  %v24432_v34 = vld [vmem:[%s33580_s3 + $0x1bd8] ss:$28 sps:$4 sm:$0xff]  }
 0x627   :  { %12410 = vmatpush1.bf16.msra.mxu1 %v24403_v1  ;;  %v24438_v1 = vld [vmem:[%s33580_s3 + $0x1c14] ss:$28 sps:$4 sm:$0xff]  }
 0x628   :  { %12263 = vmatpush1.bf16.msra.mxu0 %v24400_v54  ;;  %12411 = vmatprep.subr.bf16.mxu1 %v33629_v23  ;;  %v24436_v54 = vld [vmem:[%s33580_s3 + $0x1c10] ss:$28 sps:$4 sm:$0xff]  }
 0x629   :  { %12264 = vmatprep.subr.bf16.mxu0 %v24406_v58  ;;  %v24441_v58 = vld [vmem:[%s33580_s3 + $0x1c4c] ss:$28 sps:$4 sm:$0xff]  }
 0x62b   :  { %12412 = vmatpush1.bf16.msra.mxu1 %v24407_v3  ;;  %v24439_v3 = vld [vmem:[%s33580_s3 + $0x1c48] ss:$28 sps:$4 sm:$0xff]  }
 0x62c   :  { %12265 = vmatpush1.bf16.msra.mxu0 %v24404_v47  ;;  %12413 = vmatprep.subr.bf16.mxu1 %v33629_v23  ;;  %v24444_v47 = vld [vmem:[%s33580_s3 + $0x1c84] ss:$28 sps:$4 sm:$0xff]  }
 0x62d   :  { %v22421_v45 = vpop.f32.mrb[96].mxu1  ;;  %12266 = vmatprep.subr.bf16.mxu0 %v24410_v51  ;;  %v24445_v51 = vld [vmem:[%s33580_s3 + $0x1cb8] ss:$28 sps:$4 sm:$0xff]  }
 0x62e   :  { %v22422_v56 = vpop.f32.mrb[97].mxu1 }
 0x62f   :  { %v30512_v55 = vadd.f32 %v22422_v56, %v22421_v45  ;;  %v22424_v30 = vpop.f32.mrb[98].mxu1  ;;  %12414 = vmatpush1.bf16.msra.mxu1 %v24411_v46  ;;  %v24450_v46 = vld [vmem:[%s33580_s3 + $0x1cf4] ss:$28 sps:$4 sm:$0xff]  }
 0x630   :  { %12267 = vmatpush1.bf16.msra.mxu0 %v24408_v21  ;;  %v22425_v31 = vpop.f32.mrb[99].mxu1  ;;  %12415 = vmatprep.subr.bf16.mxu1 %v33629_v23  ;;  %v24448_v21 = vld [vmem:[%s33580_s3 + $0x1cf0] ss:$28 sps:$4 sm:$0xff]  }
 0x631   :  { %v30521_v26 = vadd.f32 %v22425_v31, %v22424_v30  ;;  %12268 = vmatprep.subr.bf16.mxu0 %v24414_v35  ;;  %v24456_v35 = vld [vmem:[%s33580_s3 + $0x1d64] ss:$28 sps:$4 sm:$0xff]  }
 0x633   :  { %12416 = vmatpush1.bf16.msra.mxu1 %v24415_v15 }
 0x634   :  { %12269 = vmatpush1.bf16.msra.mxu0 %v24412_v7  ;;  %12417 = vmatprep.subr.bf16.mxu1 %v33629_v23 }
 0x635   :  { %v22427_v43 = vpop.f32.mrb[100].mxu1  ;;  %12270 = vmatprep.subr.bf16.mxu0 %v24418_v62 }
 0x636   :  { %v22428_v11 = vpop.f32.mrb[101].mxu1 }
 0x637   :  { %v30536_v19 = vadd.f32 %v22428_v11, %v22427_v43  ;;  %v22430_v60 = vpop.f32.mrb[102].mxu1  ;;  %12418 = vmatpush1.bf16.msra.mxu1 %v24419_v53  ;;  %v24454_v53 = vld [vmem:[%s33580_s3 + $0x1d60] ss:$28 sps:$4 sm:$0xff]   ;;  %v24462_v43 = vld [vmem:[%s33580_s3 + $0x1dd4] ss:$28 sps:$4 sm:$0xff]  }
 0x638   :  { %12271 = vmatpush1.bf16.msra.mxu0 %v24416_v63  ;;  %v22431_v42 = vpop.f32.mrb[103].mxu1  ;;  %12419 = vmatprep.subr.bf16.mxu1 %v33629_v23  ;;  %v24459_v63 = vld [vmem:[%s33580_s3 + $0x1d9c] ss:$28 sps:$4 sm:$0xff]  }
 0x639   :  { %v30545_v24 = vadd.f32 %v22431_v42, %v22430_v60  ;;  %12272 = vmatprep.subr.bf16.mxu0 %v24422_v41 }
 0x63b   :  { %12420 = vmatpush1.bf16.msra.mxu1 %v24423_v12 }
 0x63c   :  { %12273 = vmatpush1.bf16.msra.mxu0 %v24420_v0  ;;  %12421 = vmatprep.subr.bf16.mxu1 %v33629_v23  ;;  %v24460_v0 = vld [vmem:[%s33580_s3 + $0x1dd0] ss:$28 sps:$4 sm:$0xff]  }
 0x63d   :  { %12274 = vmatprep.subr.bf16.mxu0 %v24426_v5  ;;  %v24465_v5 = vld [vmem:[%s33580_s3 + $0x1e0c] ss:$28 sps:$4 sm:$0xff]  }
 0x63f   :  { %12422 = vmatpush1.bf16.msra.mxu1 %v24427_v27  ;;  %v24466_v27 = vld [vmem:[%s33580_s3 + $0x1e40] ss:$28 sps:$4 sm:$0xff]  }
 0x640   :  { %12275 = vmatpush1.bf16.msra.mxu0 %v24424_v59  ;;  %12423 = vmatprep.subr.bf16.mxu1 %v33629_v23  ;;  %v24469_v59 = vld [vmem:[%s33580_s3 + $0x1e78] ss:$28 sps:$4 sm:$0xff]  }
 0x641   :  { %12276 = vmatprep.subr.bf16.mxu0 %v24430_v33  ;;  %v30681_v33 = vld [vmem:[%s33581_s4] sm:$0xff] }
 0x643   :  { %12424 = vmatpush1.bf16.msra.mxu1 %v24431_v32  ;;  %v12497_v32 = vrot.slane %v30681_v33, %v26171_v9 }
 0x644   :  { %12277 = vmatpush1.bf16.msra.mxu0 %v24428_v52  ;;  %12425 = vmatprep.subr.bf16.mxu1 %v33629_v23 }
 0x645   :  { %12278 = vmatprep.subr.bf16.mxu0 %v24434_v20 }
 0x647   :  { %12426 = vmatpush1.bf16.msra.mxu1 %v24435_v50 }
 0x648   :  { %12279 = vmatpush1.bf16.msra.mxu0 %v24432_v34 }
 0x649   :  { %12301 = vmatprep.subr.bf16.mxu0 %v24438_v1 }
 0x64a   :  { %12436 = vmatmul.mubr.bf16.vlgmr.msra.gmra.mrb[120].mxu1 %v30344_v44 }
 0x64b   :  { %12281 = vmatmul.mubr.bf16.vlgmr.msra.gmra.mrb[40].mxu0 %v30149_v8  ;;  %21480 = vmatprep.mubr.msk.bf16.mxu1 %vm158_vm5, %v30349_v16  ;;  %v24442_v8 = vld [vmem:[%s33580_s3 + $0x1c80] ss:$28 sps:$4 sm:$0xff]  }
 0x64c   :  { %12290 = vmatprep.mubr.bf16.mxu0 %v30154_v18  ;;  %12302 = vmatpush1.bf16.msra.mxu0 %v24436_v54  ;;  %v24447_v18 = vld [vmem:[%s33580_s3 + $0x1cbc] ss:$28 sps:$4 sm:$0xff]  }
 0x64d   :  { %12303 = vmatprep.subr.bf16.mxu0 %v24441_v58  ;;  %v30702_v58 = vrot.slane %v30681_v33, %v26226_v38 }
 0x650   :  { %12304 = vmatpush1.bf16.msra.mxu0 %v24439_v3 }
 0x651   :  { %12305 = vmatprep.subr.bf16.mxu0 %v24444_v47 }
 0x652   :  { %12444 = vmatmul.mubr.bf16.gmra.mrb[124].mxu1 %v30375_v25 }
 0x653   :  { %12291 = vmatmul.mubr.bf16.gmra.mrb[44].mxu0 %v30196_v10  ;;  %v24453_v10 = vld [vmem:[%s33580_s3 + $0x1d2c] ss:$28 sps:$4 sm:$0xff]  }
 0x654   :  { %12306 = vmatpush1.bf16.msra.mxu0 %v24442_v8  ;;  %21477 = vmatprep.mubr.msk.bf16.mxu0 %vm158_vm5, %v30201_v2  ;;  %v24451_v2 = vld [vmem:[%s33580_s3 + $0x1d28] ss:$28 sps:$4 sm:$0xff]  }
 0x655   :  { %12307 = vmatprep.subr.bf16.mxu0 %v24447_v18 }
 0x658   :  { %12308 = vmatpush1.bf16.msra.mxu0 %v24445_v51 }
 0x659   :  { %12309 = vmatprep.subr.bf16.mxu0 %v24450_v46 }
 0x65c   :  { %12310 = vmatpush1.bf16.msra.mxu0 %v24448_v21 }
 0x65d   :  { %v10414_v45 = vpop.f32.mrb[104].mxu1  ;;  %12311 = vmatprep.subr.bf16.mxu0 %v24453_v10 }
 0x65e   :  { %v10415_v56 = vadd.f32 %v30512_v55, %v10414_v45  ;;  %v10416_v30 = vpop.f32.mrb[105].mxu1 }
 0x65f   :  { %v10417_v15 = vpop.f32.mrb[106].mxu1 }
 0x660   :  { %v30627_v31 = vadd.f32 %v10415_v56, %v29972_v6  ;;  %v10418_v7 = vadd.f32 %v30521_v26, %v10417_v15  ;;  %12312 = vmatpush1.bf16.msra.mxu0 %v24451_v2  ;;  %v10419_v62 = vpop.f32.mrb[107].mxu1  ;;  %v24457_v6 = vld [vmem:[%s33580_s3 + $0x1d98] ss:$28 sps:$4 sm:$0xff]  }
 0x661   :  { %12313 = vmatprep.subr.bf16.mxu0 %v24456_v35 }
 0x662   :  { %v30637_v55 = vadd.f32 %v10418_v7, %v29985_v40 }
 0x664   :  { %12314 = vmatpush1.bf16.msra.mxu0 %v24454_v53 }
 0x665   :  { %v10422_v26 = vpop.f32.mrb[108].mxu1  ;;  %12315 = vmatprep.subr.bf16.mxu0 %v24459_v63 }
 0x666   :  { %v10423_v41 = vadd.f32 %v30536_v19, %v10422_v26  ;;  %v10424_v11 = vpop.f32.mrb[109].mxu1 }
 0x667   :  { %v10425_v60 = vpop.f32.mrb[110].mxu1 }
 0x668   :  { %v30647_v12 = vadd.f32 %v10423_v41, %v30006_v57  ;;  %v10426_v40 = vadd.f32 %v30545_v24, %v10425_v60  ;;  %12316 = vmatpush1.bf16.msra.mxu0 %v24457_v6  ;;  %v10427_v42 = vpop.f32.mrb[111].mxu1  ;;  %v24463_v57 = vld [vmem:[%s33580_s3 + $0x1e08] ss:$28 sps:$4 sm:$0xff]  }
 0x669   :  { %12317 = vmatprep.subr.bf16.mxu0 %v24462_v43  ;;  %v24468_v24 = vld [vmem:[%s33580_s3 + $0x1e44] ss:$28 sps:$4 sm:$0xff]  }
 0x66a   :  { %v30657_v19 = vadd.f32 %v10426_v40, %v30019_v48  ;;  %v24471_v48 = vld [vmem:[%s33580_s3 + $0x1e7c] ss:$28 sps:$4 sm:$0xff]  }
 0x66c   :  { %12318 = vmatpush1.bf16.msra.mxu0 %v24460_v0 }
 0x66d   :  { %12319 = vmatprep.subr.bf16.mxu0 %v24465_v5 }
 0x670   :  { %12320 = vmatpush1.bf16.msra.mxu0 %v24463_v57 }
 0x671   :  { %12321 = vmatprep.subr.bf16.mxu0 %v24468_v24 }
 0x674   :  { %12322 = vmatpush1.bf16.msra.mxu0 %v24466_v27 }
 0x675   :  { %12323 = vmatprep.subr.bf16.mxu0 %v24471_v48 }
 0x678   :  { %12324 = vmatpush1.bf16.msra.mxu0 %v24469_v59 }
 0x67b   :  { %12334 = vmatmul.mubr.bf16.vlgmr.msra.gmra.mrb[40].mxu0 %v30344_v44 }
 0x67c   :  { %21478 = vmatprep.mubr.msk.bf16.mxu0 %vm158_vm5, %v30349_v16 }
 0x683   :  { %12344 = vmatmul.mubr.bf16.gmra.mrb[44].mxu0 %v30375_v25 }
 0x6cd   :  { %v30685_v52 = vpop.f32.mrb[40].mxu1 }
 0x6ce   :  { %v12231_v20 = vpop.f32.mrb[41].mxu1 }
 0x6cf   :  { %v30687_v50 = vadd.f32 %v12497_v32, %v12231_v20  ;;  %v30689_v34 = vpop.f32.mrb[42].mxu1  ;;  %v30754_v20 = vrot.slane %v30681_v33, %v26290_v4 }
 0x6d0   :  { %v12235_v44 = vpop.f32.mrb[43].mxu1 }
 0x6d1   :  { %v12548_v16 = vmax.f32 %v30687_v50, 0.0  ;;  %v30692_v1 = vadd.f32 %v12497_v32, %v12235_v44 }
 0x6d3   :  { %12589 = vrot.lane.b32.xlu0 %v12548_v16, %s25735_s21  ;;  %v12555_v25 = vmax.f32 %v30692_v1, 0.0 }
 0x6d5   :  { %v30698_v54 = vpop.f32.mrb[44].mxu1 }
 0x6d6   :  { %v12241_v3 = vpop.f32.mrb[45].mxu1 }
 0x6d7   :  { %v30704_v47 = vadd.f32 %v12497_v32, %v12241_v3  ;;  %12597 = vrot.lane.b32.xlu0 %v12555_v25, %s25735_s21  ;;  %v12243_v8 = vpop.f32.mrb[46].mxu1 }
 0x6d8   :  { %v30710_v18 = vadd.f32 %v30702_v58, %v12243_v8  ;;  %v12245_v51 = vpop.f32.mrb[47].mxu1 }
 0x6d9   :  { %v12562_v46 = vmax.f32 %v30704_v47, 0.0  ;;  %v30713_v21 = vadd.f32 %v12497_v32, %v12245_v51 }
 0x6db   :  { %12605 = vrot.lane.b32.xlu0 %v12562_v46, %s25735_s21 }
 0x6de   :  { %v12123_v10 = vpop.f32.mrb[48].mxu0 }
 0x6df   :  { %v30719_v2 = vadd.f32 %v12123_v10, %v27939_v13  ;;  %v12125_v45 = vpop.f32.mrb[49].mxu0  ;;  %v24472_v10 = vld [vmem:[%s33582_s5] ss:$16 sps:$4 sm:$0xff]  }
 0x6e0   :  { %v30722_v35 = vadd.f32 %v12125_v45, %v27947_v17  ;;  %v12127_v56 = vpop.f32.mrb[50].mxu0  ;;  %v30738_v17 = vrot.slane %v30681_v33, %v26223_v37  ;;  %v24474_v45 = vld [vmem:[%s33582_s5 + $0x4] ss:$16 sps:$4 sm:$0xff]  }
 0x6e1   :  { %v30725_v30 = vadd.f32 %v12127_v56, %v27957_v22  ;;  %v12129_v15 = vpop.f32.mrb[51].mxu0  ;;  %v24475_v56 = vld [vmem:[%s33582_s5 + $0x8] ss:$16 sps:$4 sm:$0xff]   ;;  %17960 = vmatprep.subr.bf16.mxu1 %v24474_v45  ;;  %v24507_v45 = vld [vmem:[%s33582_s5 + $0xac] ss:$16 sps:$4 sm:$0xff]  }
 0x6e2   :  { %v30728_v7 = vadd.f32 %v12129_v15, %v27962_v28  ;;  %v30743_v28 = vrot.slane %v30681_v33, %v26229_v39  ;;  %17961 = vmatpush1.bf16.msra.mxu1 %v24472_v10  ;;  %v24504_v10 = vld [vmem:[%s33582_s5 + $0xa4] ss:$16 sps:$4 sm:$0xff]  }
 0x6e6   :  { %v12133_v62 = vpop.f32.mrb[52].mxu0 }
 0x6e7   :  { %v30731_v53 = vadd.f32 %v12133_v62, %v28015_v49  ;;  %v12135_v63 = vpop.f32.mrb[53].mxu0  ;;  %v24480_v62 = vld [vmem:[%s33582_s5 + $0x24] ss:$16 sps:$4 sm:$0xff]  }
 0x6e8   :  { %v30734_v13 = vadd.f32 %v12135_v63, %v28020_v61  ;;  %v12137_v6 = vpop.f32.mrb[54].mxu0  ;;  %v24483_v63 = vld [vmem:[%s33582_s5 + $0x2c] ss:$16 sps:$4 sm:$0xff]   ;;  %17962 = vmatprep.subr.bf16.mxu1 %v24480_v62 }
 0x6e9   :  { %v22518_v22 = vadd.f32 %v12137_v6, %v28025_v29  ;;  %v12139_v26 = vpop.f32.mrb[55].mxu0 }
 0x6ea   :  { %v22520_v43 = vadd.f32 %v12139_v26, %v28038_v14  ;;  %v24481_v26 = vld [vmem:[%s33582_s5 + $0x28] ss:$16 sps:$4 sm:$0xff]  }
 0x6eb   :  { %v30747_v49 = vadd.f32 %v22518_v22, %v30738_v17 }
 0x6ec   :  { %v30750_v61 = vadd.f32 %v22520_v43, %v30743_v28  ;;  %v24486_v43 = vld [vmem:[%s33582_s5 + $0x44] ss:$16 sps:$4 sm:$0xff]  }
 0x6ed   :  { %v22449_v41 = vpop.f32.mrb[112].mxu1 }
 0x6ee   :  { %v22450_v11 = vpop.f32.mrb[113].mxu1 }
 0x6ef   :  { %v22451_v60 = vadd.f32 %v22450_v11, %v22449_v41  ;;  %v22452_v40 = vpop.f32.mrb[114].mxu1 }
 0x6f0   :  { %v22453_v42 = vpop.f32.mrb[115].mxu1 }
 0x6f1   :  { %v22454_v0 = vadd.f32 %v22453_v42, %v22452_v40 }
 0x6f5   :  { %v22455_v29 = vpop.f32.mrb[116].mxu1 }
 0x6f6   :  { %v22456_v5 = vpop.f32.mrb[117].mxu1 }
 0x6f7   :  { %v22457_v57 = vadd.f32 %v22456_v5, %v22455_v29  ;;  %v22458_v24 = vpop.f32.mrb[118].mxu1  ;;  %v24484_v5 = vld [vmem:[%s33582_s5 + $0x40] ss:$16 sps:$4 sm:$0xff]  }
 0x6f8   :  { %v22459_v27 = vpop.f32.mrb[119].mxu1 }
 0x6f9   :  { %v22460_v48 = vadd.f32 %v22459_v27, %v22458_v24  ;;  %v24492_v24 = vld [vmem:[%s33582_s5 + $0x64] ss:$16 sps:$4 sm:$0xff]  }
 0x71d   :  { %v12437_v59 = vpop.f32.mrb[120].mxu1 }
 0x71e   :  { %v12438_v14 = vadd.f32 %v22451_v60, %v12437_v59  ;;  %v12439_v32 = vpop.f32.mrb[121].mxu1  ;;  %v24489_v60 = vld [vmem:[%s33582_s5 + $0x4c] ss:$16 sps:$4 sm:$0xff]  }
 0x71f   :  { %v12440_v44 = vpop.f32.mrb[122].mxu1 }
 0x720   :  { %v12458_v3 = vadd.f32 %v12438_v14, %v30627_v31  ;;  %v12441_v8 = vadd.f32 %v22454_v0, %v12440_v44  ;;  %v12442_v51 = vpop.f32.mrb[123].mxu1  ;;  %v24477_v31 = vld [vmem:[%s33582_s5 + $0xc] ss:$16 sps:$4 sm:$0xff]   ;;  %v24490_v14 = vld [vmem:[%s33582_s5 + $0x60] ss:$16 sps:$4 sm:$0xff]  }
 0x721   :  { %18493 = vmatprep.subr.bf16.mxu0 %v24477_v31  ;;  %v24498_v44 = vld [vmem:[%s33582_s5 + $0x84] ss:$16 sps:$4 sm:$0xff]   ;;  %v24499_v51 = vld [vmem:[%s33582_s5 + $0x88] ss:$16 sps:$4 sm:$0xff]   ;;  %v33630_v31 = vld [vmem:[#allocation10_spill] sm:$0xff] }
 0x722   :  { %v30767_v4 = vadd.f32 %v12441_v8, %v30637_v55  ;;  %v12523_v15 = vadd.f32 %v30754_v20, %v12458_v3  ;;  %v24478_v55 = vld [vmem:[%s33582_s5 + $0x20] ss:$16 sps:$4 sm:$0xff]   ;;  %18494 = vmatpush1.bf16.msra.mxu0 %v24475_v56  ;;  %v24501_v3 = vld [vmem:[%s33582_s5 + $0x8c] ss:$16 sps:$4 sm:$0xff]   ;;  %v12501_v62 = vrot.slane %v30681_v33, %v33630_v31  ;;  %v24517_v31 = vld [vmem:[%s33582_s5 + $0xe8] ss:$16 sps:$4 sm:$0xff]  }
 0x723   :  { %18495 = vmatprep.subr.bf16.mxu0 %v24483_v63  ;;  %17963 = vmatpush1.bf16.msra.mxu1 %v24478_v55  ;;  %v24496_v8 = vld [vmem:[%s33582_s5 + $0x80] ss:$16 sps:$4 sm:$0xff]   ;;  %v33631_v63 = vld [vmem:[#allocation9_spill] sm:$0xff] }
 0x724   :  { %v12551_v6 = vmax.f32 %v12523_v15, 0.0  ;;  %17964 = vmatprep.subr.bf16.mxu1 %v24486_v43  ;;  %v24502_v56 = vld [vmem:[%s33582_s5 + $0xa0] ss:$16 sps:$4 sm:$0xff]   ;;  %v24505_v15 = vld [vmem:[%s33582_s5 + $0xa8] ss:$16 sps:$4 sm:$0xff]  }
 0x725   :  { %v12445_v22 = vpop.f32.mrb[124].mxu1 }
 0x726   :  { %v12446_v41 = vadd.f32 %v22457_v57, %v12445_v22  ;;  %v12447_v11 = vpop.f32.mrb[125].mxu1  ;;  %12595 = vrot.lane.b32.xlu1 %v12551_v6, %s25735_s21  ;;  %18496 = vmatpush1.bf16.msra.mxu0 %v24481_v26  ;;  %v24487_v57 = vld [vmem:[%s33582_s5 + $0x48] ss:$16 sps:$4 sm:$0xff]   ;;  %v33632_v6 = vsub.s32 5, %v33631_v63 }
 0x727   :  { %v12448_v40 = vpop.f32.mrb[126].mxu1  ;;  %18497 = vmatprep.subr.bf16.mxu0 %v24489_v60  ;;  %17965 = vmatpush1.bf16.msra.mxu1 %v24484_v5 }
 0x728   :  { %v12472_v42 = vadd.f32 %v12446_v41, %v30647_v12  ;;  %v12449_v0 = vadd.f32 %v22460_v48, %v12448_v40  ;;  %v12450_v29 = vpop.f32.mrb[127].mxu1  ;;  %v24495_v48 = vld [vmem:[%s33582_s5 + $0x6c] ss:$16 sps:$4 sm:$0xff]   ;;  %17966 = vmatprep.subr.bf16.mxu1 %v24492_v24  ;;  %v12505_v55 = vrot.slane %v30681_v33, %v33632_v6  ;;  %v24520_v6 = vld [vmem:[%s33582_s5 + $0x100] ss:$16 sps:$4 sm:$0xff]  }
 0x72a   :  { %v12479_v27 = vadd.f32 %v12449_v0, %v30657_v19  ;;  %v12537_v12 = vadd.f32 %v30754_v20, %v12472_v42  ;;  %18498 = vmatpush1.bf16.msra.mxu0 %v24487_v57  ;;  %v24493_v19 = vld [vmem:[%s33582_s5 + $0x68] ss:$16 sps:$4 sm:$0xff]  }
 0x72b   :  { %18499 = vmatprep.subr.bf16.mxu0 %v24495_v48  ;;  %17967 = vmatpush1.bf16.msra.mxu1 %v24490_v14  ;;  %v24510_v48 = vld [vmem:[%s33582_s5 + $0xc4] ss:$16 sps:$4 sm:$0xff]  }
 0x72c   :  { %v12565_v59 = vmax.f32 %v12537_v12, 0.0  ;;  %v30811_v32 = vadd.f32 %v30754_v20, %v12479_v27  ;;  %17968 = vmatprep.subr.bf16.mxu1 %v24498_v44  ;;  %v24508_v12 = vld [vmem:[%s33582_s5 + $0xc0] ss:$16 sps:$4 sm:$0xff]   ;;  %v12530_v44 = vadd.f32 %v30754_v20, %v30767_v4  ;;  %v24519_v20 = vld [vmem:[%s33582_s5 + $0xec] ss:$16 sps:$4 sm:$0xff]  }
 0x72d   :  { %v24514_v4 = vld [vmem:[%s33582_s5 + $0xe0] ss:$16 sps:$4 sm:$0xff]  }
 0x72e   :  { %12611 = vrot.lane.b32.xlu1 %v12565_v59, %s25735_s21  ;;  %18500 = vmatpush1.bf16.msra.mxu0 %v24493_v19 }
 0x72f   :  { %18501 = vmatprep.subr.bf16.mxu0 %v24501_v3  ;;  %17969 = vmatpush1.bf16.msra.mxu1 %v24496_v8  ;;  %v24511_v3 = vld [vmem:[%s33582_s5 + $0xc8] ss:$16 sps:$4 sm:$0xff]   ;;  %v24513_v8 = vld [vmem:[%s33582_s5 + $0xcc] ss:$16 sps:$4 sm:$0xff]  }
 0x730   :  { %17970 = vmatprep.subr.bf16.mxu1 %v24504_v10 }
 0x732   :  { %18502 = vmatpush1.bf16.msra.mxu0 %v24499_v51 }
 0x733   :  { %18503 = vmatprep.subr.bf16.mxu0 %v24507_v45  ;;  %17971 = vmatpush1.bf16.msra.mxu1 %v24502_v56  ;;  %v24516_v56 = vld [vmem:[%s33582_s5 + $0xe4] ss:$16 sps:$4 sm:$0xff]  }
 0x734   :  { %17972 = vmatprep.subr.bf16.mxu1 %v24510_v48  ;;  %v24544_v48 = vld [vmem:[%s33582_s5 + $0x180] ss:$16 sps:$4 sm:$0xff]  }
 0x736   :  { %18504 = vmatpush1.bf16.msra.mxu0 %v24505_v15  ;;  %v12558_v15 = vmax.f32 %v12530_v44, 0.0  ;;  %v24555_v44 = vld [vmem:[%s33582_s5 + $0x1ac] ss:$16 sps:$4 sm:$0xff]  }
 0x737   :  { %18505 = vmatprep.subr.bf16.mxu0 %v24513_v8  ;;  %17973 = vmatpush1.bf16.msra.mxu1 %v24508_v12  ;;  %v24549_v12 = vld [vmem:[%s33582_s5 + $0x18c] ss:$16 sps:$4 sm:$0xff]   ;;  %v24553_v8 = vld [vmem:[%s33582_s5 + $0x1a8] ss:$16 sps:$4 sm:$0xff]  }
 0x738   :  { %17974 = vmatprep.subr.bf16.mxu1 %v24516_v56  ;;  %v24556_v56 = vld [vmem:[%s33582_s5 + $0x1c0] ss:$16 sps:$4 sm:$0xff]  }
 0x73a   :  { %18506 = vmatpush1.bf16.msra.mxu0 %v24511_v3  ;;  %v24550_v3 = vld [vmem:[%s33582_s5 + $0x1a0] ss:$16 sps:$4 sm:$0xff]  }
 0x73b   :  { %18507 = vmatprep.subr.bf16.mxu0 %v24519_v20  ;;  %17975 = vmatpush1.bf16.msra.mxu1 %v24514_v4  ;;  %v24559_v20 = vld [vmem:[%s33582_s5 + $0x1c8] ss:$16 sps:$4 sm:$0xff]   ;;  %v24564_v4 = vld [vmem:[%s33582_s5 + $0x1e4] ss:$16 sps:$4 sm:$0xff]  }
 0x73e   :  { %18508 = vmatpush1.bf16.msra.mxu0 %v24517_v31  ;;  %v24562_v31 = vld [vmem:[%s33582_s5 + $0x1e0] ss:$16 sps:$4 sm:$0xff]  }
 0x74e   :  { %v12335_v22 = vpop.f32.mrb[40].mxu0 }
 0x74f   :  { %v12521_v26 = vadd.f32 %v12501_v62, %v12335_v22  ;;  %v12337_v43 = vpop.f32.mrb[41].mxu0  ;;  %v24523_v22 = vld [vmem:[%s33582_s5 + $0x108] ss:$16 sps:$4 sm:$0xff]  }
 0x750   :  { %v12522_v41 = vadd.f32 %v12505_v55, %v12337_v43  ;;  %v12339_v11 = vpop.f32.mrb[42].mxu0  ;;  %v24526_v43 = vld [vmem:[%s33582_s5 + $0x120] ss:$16 sps:$4 sm:$0xff]  }
 0x751   :  { %v12549_v60 = vmax.f32 %v12521_v26, 0.0  ;;  %v12528_v40 = vadd.f32 %v12501_v62, %v12339_v11  ;;  %v12341_v42 = vpop.f32.mrb[43].mxu0  ;;  %v24525_v26 = vld [vmem:[%s33582_s5 + $0x10c] ss:$16 sps:$4 sm:$0xff]   ;;  %v24529_v11 = vld [vmem:[%s33582_s5 + $0x128] ss:$16 sps:$4 sm:$0xff]  }
 0x752   :  { %v12550_v0 = vmax.f32 %v12522_v41, 0.0  ;;  %v12529_v51 = vadd.f32 %v12505_v55, %v12341_v42  ;;  %18509 = vmatprep.subr.bf16.mxu0 %v24525_v26  ;;  %v24528_v41 = vld [vmem:[%s33582_s5 + $0x124] ss:$16 sps:$4 sm:$0xff]   ;;  %v24537_v42 = vld [vmem:[%s33582_s5 + $0x14c] ss:$16 sps:$4 sm:$0xff]  }
 0x753   :  { %12591 = vrot.lane.b32.xlu1 %v12549_v60, %s25735_s21  ;;  %v12556_v29 = vmax.f32 %v12528_v40, 0.0  ;;  %18510 = vmatpush1.bf16.msra.mxu0 %v24523_v22  ;;  %v24531_v60 = vld [vmem:[%s33582_s5 + $0x12c] ss:$16 sps:$4 sm:$0xff]   ;;  %v24534_v40 = vld [vmem:[%s33582_s5 + $0x144] ss:$16 sps:$4 sm:$0xff]   ;;  %v12590_v22 = vpop.permute.xlu0 %12589 }
 0x754   :  { %12593 = vrot.lane.b32.xlu0 %v12550_v0, %s25735_s21  ;;  %18511 = vmatprep.subr.bf16.mxu0 %v24531_v60  ;;  %v24532_v0 = vld [vmem:[%s33582_s5 + $0x140] ss:$16 sps:$4 sm:$0xff]  }
 0x756   :  { %v12345_v5 = vpop.f32.mrb[44].mxu0 }
 0x757   :  { %v12535_v57 = vadd.f32 %v12501_v62, %v12345_v5  ;;  %12599 = vrot.lane.b32.xlu1 %v12556_v29, %s25735_s21  ;;  %v12347_v24 = vpop.f32.mrb[45].mxu0  ;;  %18512 = vmatpush1.bf16.msra.mxu0 %v24529_v11  ;;  %v24535_v29 = vld [vmem:[%s33582_s5 + $0x148] ss:$16 sps:$4 sm:$0xff]   ;;  %v24540_v5 = vld [vmem:[%s33582_s5 + $0x164] ss:$16 sps:$4 sm:$0xff]   ;;  %v12598_v26 = vpop.permute.xlu0 %12597  ;;  %v12517_v11 = vadd.f32 %v30719_v2, %v30738_v17 }
 0x758   :  { %v12536_v33 = vadd.f32 %v12505_v55, %v12347_v24  ;;  %v12349_v27 = vpop.f32.mrb[46].mxu0  ;;  %18513 = vmatprep.subr.bf16.mxu0 %v24537_v42  ;;  %v24538_v24 = vld [vmem:[%s33582_s5 + $0x160] ss:$16 sps:$4 sm:$0xff]  }
 0x759   :  { %v12563_v59 = vmax.f32 %v12535_v57, 0.0  ;;  %v30855_v14 = vadd.f32 %v12501_v62, %v12349_v27  ;;  %v12351_v19 = vpop.f32.mrb[47].mxu0  ;;  %v12557_v62 = vmax.f32 %v12529_v51, 0.0  ;;  %v24543_v57 = vld [vmem:[%s33582_s5 + $0x16c] ss:$16 sps:$4 sm:$0xff]  }
 0x75a   :  { %v12564_v10 = vmax.f32 %v12536_v33, 0.0  ;;  %v30865_v45 = vadd.f32 %v12505_v55, %v12351_v19  ;;  %v24522_v55 = vld [vmem:[%s33582_s5 + $0x104] ss:$16 sps:$4 sm:$0xff]   ;;  %v24541_v33 = vld [vmem:[%s33582_s5 + $0x168] ss:$16 sps:$4 sm:$0xff]  }
 0x75b   :  { %12607 = vrot.lane.b32.xlu1 %v12563_v59, %s25735_s21  ;;  %17976 = vmatprep.subr.bf16.mxu1 %v24522_v55  ;;  %v24546_v27 = vld [vmem:[%s33582_s5 + $0x184] ss:$16 sps:$4 sm:$0xff]   ;;  %v24547_v59 = vld [vmem:[%s33582_s5 + $0x188] ss:$16 sps:$4 sm:$0xff]   ;;  %v24573_v55 = vld [vmem:[%s33582_s5 + $0x20c] ss:$16 sps:$4 sm:$0xff]   ;;  %v12606_v42 = vpop.permute.xlu0 %12605 }
 0x75c   :  { %12609 = vrot.lane.b32.xlu0 %v12564_v10, %s25735_s21  ;;  %17977 = vmatpush1.bf16.msra.mxu1 %v24520_v6  ;;  %v24552_v19 = vld [vmem:[%s33582_s5 + $0x1a4] ss:$16 sps:$4 sm:$0xff]   ;;  %v24561_v10 = vld [vmem:[%s33582_s5 + $0x1cc] ss:$16 sps:$4 sm:$0xff]  }
 0x75d   :  { %17978 = vmatprep.subr.bf16.mxu1 %v24528_v41  ;;  %18514 = vmatpush1.bf16.msra.mxu0 %v24535_v29  ;;  %v24558_v51 = vld [vmem:[%s33582_s5 + $0x1c4] ss:$16 sps:$4 sm:$0xff]   ;;  %v12519_v41 = vadd.f32 %v30702_v58, %v30685_v52  ;;  %v30993_v29 = vadd.f32 %v30702_v58, %v30689_v34  ;;  %v12524_v52 = vadd.f32 %v30725_v30, %v30738_v17 }
 0x75e   :  { %18515 = vmatprep.subr.bf16.mxu0 %v24543_v57  ;;  %v24570_v6 = vld [vmem:[%s33582_s5 + $0x204] ss:$16 sps:$4 sm:$0xff]   ;;  %v12531_v30 = vadd.f32 %v30731_v53, %v30738_v17 }
 0x75f   :  { %12603 = vrot.lane.b32.xlu1 %v12558_v15, %s25735_s21  ;;  %v24567_v15 = vld [vmem:[%s33582_s5 + $0x1ec] ss:$16 sps:$4 sm:$0xff]  }
 0x760   :  { %12601 = vrot.lane.b32.xlu0 %v12557_v62, %s25735_s21  ;;  %17979 = vmatpush1.bf16.msra.mxu1 %v24526_v43  ;;  %v24565_v62 = vld [vmem:[%s33582_s5 + $0x1e8] ss:$16 sps:$4 sm:$0xff]  }
 0x761   :  { %17980 = vmatprep.subr.bf16.mxu1 %v24534_v40  ;;  %18516 = vmatpush1.bf16.msra.mxu0 %v24541_v33  ;;  %v12518_v40 = vadd.f32 %v30722_v35, %v30743_v28  ;;  %v31002_v35 = vadd.f32 %v30728_v7, %v30743_v28 }
 0x762   :  { %18517 = vmatprep.subr.bf16.mxu0 %v24549_v12 }
 0x763   :  { %v12546_v33 = vmax.f32 %v12518_v40, 0.0  ;;  %v12553_v50 = vmax.f32 %v31002_v35, 0.0 }
 0x764   :  { %17981 = vmatpush1.bf16.msra.mxu1 %v24532_v0  ;;  %v12547_v0 = vmax.f32 %v12519_v41, 0.0 }
 0x765   :  { %17982 = vmatprep.subr.bf16.mxu1 %v24540_v5  ;;  %18518 = vmatpush1.bf16.msra.mxu0 %v24547_v59  ;;  %v12545_v5 = vmax.f32 %v12517_v11, 0.0 }
 0x766   :  { %18519 = vmatprep.subr.bf16.mxu0 %v24555_v44 }
 0x768   :  { %17983 = vmatpush1.bf16.msra.mxu1 %v24538_v24  ;;  %v12533_v24 = vadd.f32 %v30702_v58, %v30698_v54 }
 0x769   :  { %17984 = vmatprep.subr.bf16.mxu1 %v24546_v27  ;;  %18520 = vmatpush1.bf16.msra.mxu0 %v24553_v8 }
 0x76a   :  { %18521 = vmatprep.subr.bf16.mxu0 %v24561_v10  ;;  %v12554_v10 = vmax.f32 %v30993_v29, 0.0 }
 0x76c   :  { %17985 = vmatpush1.bf16.msra.mxu1 %v24544_v48 }
 0x76d   :  { %17986 = vmatprep.subr.bf16.mxu1 %v24552_v19  ;;  %18522 = vmatpush1.bf16.msra.mxu0 %v24559_v20  ;;  %v12532_v19 = vadd.f32 %v30734_v13, %v30743_v28  ;;  %v12552_v20 = vmax.f32 %v12524_v52, 0.0  ;;  %v12559_v13 = vmax.f32 %v12531_v30, 0.0 }
 0x76e   :  { %18523 = vmatprep.subr.bf16.mxu0 %v24567_v15 }
 0x76f   :  { %v12560_v28 = vmax.f32 %v12532_v19, 0.0 }
 0x770   :  { %17987 = vmatpush1.bf16.msra.mxu1 %v24550_v3 }
 0x771   :  { %17988 = vmatprep.subr.bf16.mxu1 %v24558_v51  ;;  %18524 = vmatpush1.bf16.msra.mxu0 %v24565_v62  ;;  %v25739_v62 = vmov 1934713408  }
 0x772   :  { %18534 = vmatprep.subr.bf16.mxu0 %v24573_v55 }
 0x774   :  { %17989 = vmatpush1.bf16.msra.mxu1 %v24556_v56  ;;  %v12561_v56 = vmax.f32 %v12533_v24, 0.0 }
 0x775   :  { %17990 = vmatprep.subr.bf16.mxu1 %v24564_v4 }
 0x778   :  { %17991 = vmatpush1.bf16.msra.mxu1 %v24562_v31 }
 0x779   :  { %18001 = vmatprep.subr.bf16.mxu1 %v24570_v6  ;;  %v31019_v6 = vunpack.c.l.s4 %v25739_v62 }
 0x798   :  { %v12596_v43 = vpop.permute.xlu1 %12595 }
 0x799   :  { %v12652_v59 = vmax.f32 %v12548_v16, %v12596_v43 }
 0x7a0   :  { %v12612_v60 = vpop.permute.xlu1 %12611 }
 0x7a1   :  { %v12660_v40 = vmax.f32 %v12562_v46, %v12612_v60 }
 0x7c5   :  { %v12592_v57 = vpop.permute.xlu1 %12591 }
 0x7c6   :  { %v12621_v2 = vsel %vm158_vm5, %v12590_v22, %v12592_v57  ;;  %v12594_v27 = vpop.permute.xlu0 %12593 }
 0x7c7   :  { %v12649_v12 = vmax.f32 %v12545_v5, %v12621_v2  ;;  %v12622_v34 = vsel %vm158_vm5, %v12592_v57, %v12594_v27  ;;  %v12623_v48 = vsel %vm158_vm5, %v12594_v27, %v12596_v43 }
 0x7c8   :  { %v12650_v54 = vmax.f32 %v12546_v33, %v12622_v34  ;;  %v12651_v58 = vmax.f32 %v12547_v0, %v12623_v48 }
 0x7c9   :  { %v12600_v44 = vpop.permute.xlu1 %12599 }
 0x7ca   :  { %v12681_v3 = vcombine.low %v12649_v12, %v12650_v54  ;;  %v12682_v7 = vcombine.high %v12649_v12, %v12650_v54  ;;  %v12683_v8 = vcombine.low %v12651_v58, %v12652_v59  ;;  %v12684_v51 = vcombine.high %v12651_v58, %v12652_v59 }
 0x7cb   :  { %v12624_v15 = vsel %vm158_vm5, %v12598_v26, %v12600_v44 }
 0x7cc   :  { %v12691_v16 = vrot.slane %v12681_v3, %v25979_v36  ;;  %v12698_v4 = vrot.slane %v12682_v7, %v25979_v36  ;;  %v12705_v53 = vrot.slane %v12683_v8, %v25979_v36  ;;  %v12712_v17 = vrot.slane %v12684_v51, %v25979_v36 }
 0x7cd   :  { %v12608_v31 = vpop.permute.xlu1 %12607  ;;  %v12653_v52 = vmax.f32 %v12552_v20, %v12624_v15 }
 0x7ce   :  { %v12713_v55 = vcombine.low %v12691_v16, %v12705_v53  ;;  %v12714_v22 = vcombine.high %v12691_v16, %v12705_v53  ;;  %v12715_v43 = vcombine.low %v12698_v4, %v12712_v17  ;;  %v12716_v41 = vcombine.high %v12698_v4, %v12712_v17  ;;  %v12610_v11 = vpop.permute.xlu0 %12609 }
 0x7cf   :  { %v12627_v0 = vsel %vm158_vm5, %v12606_v42, %v12608_v31  ;;  %v12628_v29 = vsel %vm158_vm5, %v12608_v31, %v12610_v11  ;;  %v12629_v5 = vsel %vm158_vm5, %v12610_v11, %v12612_v60 }
 0x7d0   :  { %v21481_v57 = vrot.slane %v12713_v55, 9  ;;  %v21482_v26 = vrot.slane %v12714_v22, 9  ;;  %v21483_v24 = vrot.slane %v12715_v43, 9  ;;  %v21484_v33 = vrot.slane %v12716_v41, 9 }
 0x7d1   :  { %v12657_v2 = vmax.f32 %v12559_v13, %v12627_v0  ;;  %v12658_v27 = vmax.f32 %v12560_v28, %v12628_v29  ;;  %v12659_v35 = vmax.f32 %v12561_v56, %v12629_v5  ;;  %v12604_v12 = vpop.permute.xlu1 %12603 }
 0x7d2   :  { %v12863_v34 = vmax.f32 %v12713_v55, %v21481_v57  ;;  %v12864_v48 = vmax.f32 %v12714_v22, %v21482_v26  ;;  %v12865_v59 = vmax.f32 %v12715_v43, %v21483_v24  ;;  %v12866_v47 = vmax.f32 %v12716_v41, %v21484_v33  ;;  %v12602_v46 = vpop.permute.xlu0 %12601 }
 0x7d3   :  { %v12753_v54 = vcombine.low %v12657_v2, %v12658_v27  ;;  %v12754_v42 = vcombine.high %v12657_v2, %v12658_v27  ;;  %v12755_v58 = vcombine.low %v12659_v35, %v12660_v40  ;;  %v12756_v30 = vcombine.high %v12659_v35, %v12660_v40 }
 0x7d4   :  { %v12893_v19 = vrot.slane %v12864_v48, 7  ;;  %v12900_v60 = vrot.slane %v12866_v47, 7  ;;  %v12656_v3 = vmax.f32 %v12555_v25, %v12604_v12  ;;  %v12625_v7 = vsel %vm158_vm5, %v12600_v44, %v12602_v46 }
 0x7d5   :  { %v12763_v8 = vrot.slane %v12753_v54, %v25979_v36  ;;  %v12770_v51 = vrot.slane %v12754_v42, %v25979_v36  ;;  %v12777_v56 = vrot.slane %v12755_v58, %v25979_v36  ;;  %v12784_v20 = vrot.slane %v12756_v30, %v25979_v36 }
 0x7d6   :  { %v12894_v16 = vsel %vm2231_vm13, %v12893_v19, %v12863_v34  ;;  %v12901_v4 = vsel %vm2231_vm13, %v12900_v60, %v12865_v59  ;;  %v12626_v53 = vsel %vm158_vm5, %v12602_v46, %v12604_v12  ;;  %v12654_v17 = vmax.f32 %v12553_v50, %v12625_v7 }
 0x7d7   :  { %v12902_v1 = vsel %vm2206_vm8, %v12900_v60, %v12901_v4  ;;  %v12785_v25 = vcombine.low %v12763_v8, %v12777_v56  ;;  %v12786_v13 = vcombine.high %v12763_v8, %v12777_v56  ;;  %v12787_v44 = vcombine.low %v12770_v51, %v12784_v20 }
 0x7d8   :  { %v12903_v28 = vsel %vm2210_vm10, %v12900_v60, %v12902_v1  ;;  %v31038_v15 = vcombine.high %v12770_v51, %v12784_v20  ;;  %v12655_v31 = vmax.f32 %v12554_v10, %v12626_v53  ;;  %v12717_v62 = vcombine.low %v12653_v52, %v12654_v17 }
 0x7d9   :  { %v21490_v55 = vrot.slane %v12786_v13, 9  ;;  %v21491_v22 = vrot.slane %v12787_v44, 9  ;;  %v12718_v43 = vcombine.high %v12653_v52, %v12654_v17  ;;  %v21489_v0 = vrot.slane %v12785_v25, 9 }
 0x7da   :  { %v12719_v41 = vcombine.low %v12655_v31, %v12656_v3  ;;  %v12720_v11 = vcombine.high %v12655_v31, %v12656_v3  ;;  %v12727_v40 = vrot.slane %v12717_v62, %v25979_v36  ;;  %v12895_v26 = vsel %vm2206_vm8, %v12893_v19, %v12894_v16 }
 0x7db   :  { %v12873_v50 = vmax.f32 %v12787_v44, %v21491_v22  ;;  %v12734_v29 = vrot.slane %v12718_v43, %v25979_v36  ;;  %v12949_v10 = vunpack.c.0.s8 %v31019_v6  ;;  %v12872_v24 = vmax.f32 %v12786_v13, %v21490_v55 }
 0x7dc   :  { %v12741_v5 = vrot.slane %v12719_v41, %v25979_v36  ;;  %v12748_v57 = vrot.slane %v12720_v11, %v25979_v36  ;;  %v12896_v52 = vsel %vm2210_vm10, %v12893_v19, %v12895_v26  ;;  %v12904_v2 = vsel %vm2214_vm12, %v12900_v60, %v12903_v28 }
 0x7dd   :  { %v12923_v33 = vrot.slane %v12873_v50, 7  ;;  %v12871_v48 = vmax.f32 %v12785_v25, %v21489_v0  ;;  %v12897_v47 = vsel %vm2214_vm12, %v12893_v19, %v12896_v52  ;;  %v31055_v30 = vsub.s32 %v12949_v10, %v33631_v63 }
 0x7de   :  { %v12749_v27 = vcombine.low %v12727_v40, %v12741_v5  ;;  %v12750_v35 = vcombine.high %v12727_v40, %v12741_v5  ;;  %v31048_v12 = vcombine.low %v12734_v29, %v12748_v57  ;;  %v12752_v34 = vcombine.high %v12734_v29, %v12748_v57 }
 0x7df   :  { %v12924_v59 = vsel %vm2231_vm13, %v12923_v33, %v12872_v24  ;;  %v12916_v7 = vrot.slane %v12871_v48, 7  ;;  %v24568_v48 = vld [vmem:[%s33582_s5 + $0x200] ss:$16 sps:$4 sm:$0xff]  }
 0x7e0   :  { %v12925_v46 = vsel %vm2206_vm8, %v12923_v33, %v12924_v59  ;;  %v21485_v54 = vrot.slane %v12749_v27, 9  ;;  %v21486_v6 = vrot.slane %v12750_v35, 9  ;;  %v21488_v58 = vrot.slane %v12752_v34, 9  ;;  %v24571_v59 = vld [vmem:[%s33582_s5 + $0x208] ss:$16 sps:$4 sm:$0xff]  }
 0x7e1   :  { %v12926_v42 = vsel %vm2210_vm10, %v12923_v33, %v12925_v46  ;;  %v24576_v46 = vld [vmem:[%s33582_s5 + $0x224] ss:$16 sps:$4 sm:$0xff]  }
 0x7e2   :  { %v12868_v60 = vmax.f32 %v12750_v35, %v21486_v6  ;;  %v12927_v3 = vsel %vm2214_vm12, %v12923_v33, %v12926_v42  ;;  %v12870_v8 = vmax.f32 %v12752_v34, %v21488_v58  ;;  %v12867_v20 = vmax.f32 %v12749_v27, %v21485_v54  ;;  %v24579_v54 = vld [vmem:[%s33582_s5 + $0x22c] ss:$16 sps:$4 sm:$0xff]   ;;  %v24574_v58 = vld [vmem:[%s33582_s5 + $0x220] ss:$16 sps:$4 sm:$0xff]  }
 0x7e3   :  { %v12964_v51 = vcombine.high %v12904_v2, %v12927_v3  ;;  %v12963_v56 = vcombine.low %v12904_v2, %v12927_v3  ;;  %v24582_v3 = vld [vmem:[%s33582_s5 + $0x244] ss:$16 sps:$4 sm:$0xff]  }
 0x7e4   :  { %v12907_v16 = vrot.slane %v12868_v60, 7  ;;  %v12917_v19 = vsel %vm2231_vm13, %v12916_v7, %v12870_v8  ;;  %v24577_v60 = vld [vmem:[%s33582_s5 + $0x228] ss:$16 sps:$4 sm:$0xff]   ;;  %v12569_v8 = vmax.f32 %v30713_v21, 0.0  ;;  %v24696_v21 = vld [vmem:[%s33582_s5 + $0x4a4] ss:$16 sps:$4 sm:$0xff]  }
 0x7e5   :  { %v31060_v4 = vrot.slane %v12964_v51, %v31055_v30  ;;  %v31063_v53 = vrot.slane %v12963_v56, %v31055_v30  ;;  %v12918_v17 = vsel %vm2206_vm8, %v12916_v7, %v12917_v19  ;;  %v12570_v51 = vmax.f32 %v30855_v14, 0.0  ;;  %v24580_v56 = vld [vmem:[%s33582_s5 + $0x240] ss:$16 sps:$4 sm:$0xff]   ;;  %v24588_v14 = vld [vmem:[%s33582_s5 + $0x264] ss:$16 sps:$4 sm:$0xff]  }
 0x7e6   :  { %v12908_v63 = vsel %vm2231_vm13, %v12907_v16, %v12867_v20  ;;  %v12919_v1 = vsel %vm2210_vm10, %v12916_v7, %v12918_v17  ;;  %v24583_v20 = vld [vmem:[%s33582_s5 + $0x248] ss:$16 sps:$4 sm:$0xff]   ;;  %v12571_v19 = vmax.f32 %v30865_v45, 0.0  ;;  %v24586_v17 = vld [vmem:[%s33582_s5 + $0x260] ss:$16 sps:$4 sm:$0xff]  }
 0x7e7   :  { %v12980_v25 = vcombine.high %v31063_v53, %v31060_v4  ;;  %v12909_v13 = vsel %vm2206_vm8, %v12907_v16, %v12908_v63  ;;  %v12920_v44 = vsel %vm2214_vm12, %v12916_v7, %v12919_v1  ;;  %v12979_v31 = vcombine.low %v31063_v53, %v31060_v4  ;;  %v24585_v7 = vld [vmem:[%s33582_s5 + $0x24c] ss:$16 sps:$4 sm:$0xff]   ;;  %v24589_v1 = vld [vmem:[%s33582_s5 + $0x268] ss:$16 sps:$4 sm:$0xff]   ;;  %v24594_v45 = vld [vmem:[%s33582_s5 + $0x284] ss:$16 sps:$4 sm:$0xff]  }
 0x7e8   :  { %v12910_v28 = vsel %vm2210_vm10, %v12907_v16, %v12909_v13  ;;  %v12945_v62 = vcombine.low %v12897_v47, %v12920_v44  ;;  %v12946_v55 = vcombine.high %v12897_v47, %v12920_v44  ;;  %v21498_v22 = vcombine.high %v31060_v4, %v31060_v4  ;;  %v24595_v13 = vld [vmem:[%s33582_s5 + $0x288] ss:$16 sps:$4 sm:$0xff]   ;;  %v24600_v44 = vld [vmem:[%s33582_s5 + $0x2a4] ss:$16 sps:$4 sm:$0xff]   ;;  %v24771_v53 = vld [vmem:[%s33582_s5 + $0x62c] ss:$16 sps:$4 sm:$0xff]  }
 0x7e9   :  { %v31078_v43 = vsel %vm2214_vm12, %v12907_v16, %v12910_v28  ;;  %v13101_v10 = vrot.slane %v12980_v25, %v25979_v36  ;;  %v24591_v16 = vld [vmem:[%s33582_s5 + $0x26c] ss:$16 sps:$4 sm:$0xff]   ;;  %v12572_v63 = vmax.f32 %v30811_v32, 0.0  ;;  %v24592_v25 = vld [vmem:[%s33582_s5 + $0x280] ss:$16 sps:$4 sm:$0xff]  }
 0x7ea   :  { %v12953_v41 = vrot.slane %v12945_v62, %v31055_v30  ;;  %v31082_v11 = vrot.slane %v12946_v55, %v31055_v30  ;;  %v13108_v29 = vrot.slane %v21498_v22, %v25979_v36  ;;  %v24597_v32 = vld [vmem:[%s33582_s5 + $0x28c] ss:$16 sps:$4 sm:$0xff]   ;;  %v24598_v62 = vld [vmem:[%s33582_s5 + $0x2a0] ss:$16 sps:$4 sm:$0xff]   ;;  %v24601_v55 = vld [vmem:[%s33582_s5 + $0x2a8] ss:$16 sps:$4 sm:$0xff]  }
 0x7eb   :  { %v13109_v34 = vcombine.high %v13101_v10, %v13101_v10  ;;  %v24603_v28 = vld [vmem:[%s33582_s5 + $0x2ac] ss:$16 sps:$4 sm:$0xff]   ;;  %v24606_v22 = vld [vmem:[%s33582_s5 + $0x2c4] ss:$16 sps:$4 sm:$0xff]  }
 0x7ec   :  { %v12962_v40 = vcombine.high %v12953_v41, %v31082_v11  ;;  %v21496_v0 = vcombine.high %v31082_v11, %v31082_v11  ;;  %v12961_v50 = vcombine.low %v12953_v41, %v31082_v11  ;;  %v13110_v52 = vcombine.high %v13108_v29, %v13108_v29  ;;  %v24609_v41 = vld [vmem:[%s33582_s5 + $0x2cc] ss:$16 sps:$4 sm:$0xff]  }
 0x7ed   :  { %v22835_v42 = vpack.i.bf16 %v13109_v34, %v13101_v10  ;;  %v24621_v10 = vld [vmem:[%s33582_s5 + $0x30c] ss:$16 sps:$4 sm:$0xff]   ;;  %v24630_v34 = vld [vmem:[%s33582_s5 + $0x344] ss:$16 sps:$4 sm:$0xff]  }
 0x7ee   :  { %v13046_v5 = vrot.slane %v12962_v40, %v25979_v36  ;;  %v13053_v57 = vrot.slane %v21496_v0, %v25979_v36  ;;  %v13024_v26 = vrot.slane %v12961_v50, %v25979_v36  ;;  %v22840_v6 = vpack.i.bf16 %v13110_v52, %v13108_v29  ;;  %v24604_v40 = vld [vmem:[%s33582_s5 + $0x2c0] ss:$16 sps:$4 sm:$0xff]   ;;  %v24607_v0 = vld [vmem:[%s33582_s5 + $0x2c8] ss:$16 sps:$4 sm:$0xff]   ;;  %v24612_v50 = vld [vmem:[%s33582_s5 + $0x2e4] ss:$16 sps:$4 sm:$0xff]  }
 0x7ef   :  { %v24615_v29 = vld [vmem:[%s33582_s5 + $0x2ec] ss:$16 sps:$4 sm:$0xff]   ;;  %v24624_v52 = vld [vmem:[%s33582_s5 + $0x324] ss:$16 sps:$4 sm:$0xff]  }
 0x7f0   :  { %13056 = vrot.lane.b32.xlu0 %v13046_v5, %s25735_s21  ;;  %v13054_v24 = vcombine.high %v13046_v5, %v13046_v5  ;;  %v13032_v33 = vcombine.high %v13024_v26, %v13024_v26  ;;  %v13055_v2 = vcombine.high %v13053_v57, %v13053_v57  ;;  %v13206_v47 = vpack.c.bf16 %v13024_v26, %v13024_v26  ;;  %v24610_v5 = vld [vmem:[%s33582_s5 + $0x2e0] ss:$16 sps:$4 sm:$0xff]   ;;  %v24618_v26 = vld [vmem:[%s33582_s5 + $0x304] ss:$16 sps:$4 sm:$0xff]  }
 0x7f2   :  { %v22830_v27 = vpack.i.bf16 %v13053_v57, %v13054_v24  ;;  %v13207_v35 = vpack.c.bf16 %v13032_v33, %v13032_v33  ;;  %v24613_v57 = vld [vmem:[%s33582_s5 + $0x2e8] ss:$16 sps:$4 sm:$0xff]   ;;  %v24616_v24 = vld [vmem:[%s33582_s5 + $0x300] ss:$16 sps:$4 sm:$0xff]  }
 0x7f3   :  { %v24619_v33 = vld [vmem:[%s33582_s5 + $0x308] ss:$16 sps:$4 sm:$0xff]  }
 0x7f4   :  { %13062 = vrot.lane.b32.xlu0 %v13055_v2, %s25735_s21  ;;  %22831 = vrot.lane.b32.xlu1 %v22830_v27, %s25735_s21  ;;  %v24627_v2 = vld [vmem:[%s33582_s5 + $0x32c] ss:$16 sps:$4 sm:$0xff]   ;;  %v24622_v27 = vld [vmem:[%s33582_s5 + $0x320] ss:$16 sps:$4 sm:$0xff]  }
 0x7f5   :  { %17992 = vmatprep.mubr.bf16.mxu1 %v13207_v35  ;;  %18525 = vmatprep.mubr.bf16.mxu0 %v13207_v35  ;;  %v24625_v35 = vld [vmem:[%s33582_s5 + $0x328] ss:$16 sps:$4 sm:$0xff]  }
 0x7f6   :  { %17993 = vmatmul.mubr.bf16.vlgmr.msra.gmra.mrb[128].mxu1 %v13206_v47  ;;  %18526 = vmatmul.mubr.bf16.vlgmr.msra.gmra.mrb[56].mxu0 %v13206_v47  ;;  %v24631_v47 = vld [vmem:[%s33582_s5 + $0x348] ss:$16 sps:$4 sm:$0xff]  }
 0x7f7   :  { %18002 = vmatpush1.bf16.msra.mxu1 %v24568_v48  ;;  %18535 = vmatpush1.bf16.msra.mxu0 %v24571_v59  ;;  %v24633_v48 = vld [vmem:[%s33582_s5 + $0x34c] ss:$16 sps:$4 sm:$0xff]   ;;  %v24628_v59 = vld [vmem:[%s33582_s5 + $0x340] ss:$16 sps:$4 sm:$0xff]  }
 0x7f8   :  { %22841 = vrot.lane.b32.xlu0 %v22840_v6, %s25735_s21  ;;  %22836 = vrot.lane.b32.xlu1 %v22835_v42, %s25735_s21  ;;  %v24634_v6 = vld [vmem:[%s33582_s5 + $0x360] ss:$16 sps:$4 sm:$0xff]   ;;  %v24637_v42 = vld [vmem:[%s33582_s5 + $0x368] ss:$16 sps:$4 sm:$0xff]  }
 0x7f9   :  { %18003 = vmatprep.subr.bf16.mxu1 %v24576_v46  ;;  %18536 = vmatprep.subr.bf16.mxu0 %v24579_v54  ;;  %v24636_v46 = vld [vmem:[%s33582_s5 + $0x364] ss:$16 sps:$4 sm:$0xff]   ;;  %v24639_v54 = vld [vmem:[%s33582_s5 + $0x36c] ss:$16 sps:$4 sm:$0xff]  }
 0x7fb   :  { %18004 = vmatpush1.bf16.msra.mxu1 %v24574_v58  ;;  %18537 = vmatpush1.bf16.msra.mxu0 %v24577_v60  ;;  %v24642_v58 = vld [vmem:[%s33582_s5 + $0x384] ss:$16 sps:$4 sm:$0xff]   ;;  %v24645_v60 = vld [vmem:[%s33582_s5 + $0x38c] ss:$16 sps:$4 sm:$0xff]  }
 0x7fc   :  { %12613 = vrot.lane.b32.xlu1 %v12569_v8, %s25735_s21  ;;  %12615 = vrot.lane.b32.xlu0 %v12570_v51, %s25735_s21  ;;  %v24648_v51 = vld [vmem:[%s33582_s5 + $0x3a4] ss:$16 sps:$4 sm:$0xff]  }
 0x7fd   :  { %18005 = vmatprep.subr.bf16.mxu1 %v24582_v3  ;;  %18538 = vmatprep.subr.bf16.mxu0 %v24585_v7  ;;  %v24640_v3 = vld [vmem:[%s33582_s5 + $0x380] ss:$16 sps:$4 sm:$0xff]   ;;  %v24643_v7 = vld [vmem:[%s33582_s5 + $0x388] ss:$16 sps:$4 sm:$0xff]  }
 0x7ff   :  { %18006 = vmatpush1.bf16.msra.mxu1 %v24580_v56  ;;  %18539 = vmatpush1.bf16.msra.mxu0 %v24583_v20  ;;  %v24651_v56 = vld [vmem:[%s33582_s5 + $0x3ac] ss:$16 sps:$4 sm:$0xff]   ;;  %v24646_v20 = vld [vmem:[%s33582_s5 + $0x3a0] ss:$16 sps:$4 sm:$0xff]  }
 0x800   :  { %12619 = vrot.lane.b32.xlu0 %v12572_v63, %s25735_s21  ;;  %12617 = vrot.lane.b32.xlu1 %v12571_v19, %s25735_s21  ;;  %v24657_v19 = vld [vmem:[%s33582_s5 + $0x3cc] ss:$16 sps:$4 sm:$0xff]   ;;  %v24652_v63 = vld [vmem:[%s33582_s5 + $0x3c0] ss:$16 sps:$4 sm:$0xff]  }
 0x801   :  { %18007 = vmatprep.subr.bf16.mxu1 %v24588_v14  ;;  %18540 = vmatprep.subr.bf16.mxu0 %v24591_v16  ;;  %v24649_v14 = vld [vmem:[%s33582_s5 + $0x3a8] ss:$16 sps:$4 sm:$0xff]   ;;  %v24654_v16 = vld [vmem:[%s33582_s5 + $0x3c4] ss:$16 sps:$4 sm:$0xff]  }
 0x803   :  { %18008 = vmatpush1.bf16.msra.mxu1 %v24586_v17  ;;  %18541 = vmatpush1.bf16.msra.mxu0 %v24589_v1  ;;  %v24655_v17 = vld [vmem:[%s33582_s5 + $0x3c8] ss:$16 sps:$4 sm:$0xff]   ;;  %v24660_v1 = vld [vmem:[%s33582_s5 + $0x3e4] ss:$16 sps:$4 sm:$0xff]  }
 0x804   :  { %18009 = vmatprep.subr.bf16.mxu1 %v24594_v45  ;;  %18542 = vmatprep.subr.bf16.mxu0 %v24597_v32  ;;  %v24663_v45 = vld [vmem:[%s33582_s5 + $0x3ec] ss:$16 sps:$4 sm:$0xff]   ;;  %v24658_v32 = vld [vmem:[%s33582_s5 + $0x3e0] ss:$16 sps:$4 sm:$0xff]  }
 0x807   :  { %18010 = vmatpush1.bf16.msra.mxu1 %v24592_v25  ;;  %18543 = vmatpush1.bf16.msra.mxu0 %v24595_v13  ;;  %v24661_v25 = vld [vmem:[%s33582_s5 + $0x3e8] ss:$16 sps:$4 sm:$0xff]   ;;  %v24666_v13 = vld [vmem:[%s33582_s5 + $0x404] ss:$16 sps:$4 sm:$0xff]  }
 0x808   :  { %18011 = vmatprep.subr.bf16.mxu1 %v24600_v44  ;;  %18544 = vmatprep.subr.bf16.mxu0 %v24603_v28  ;;  %v24669_v44 = vld [vmem:[%s33582_s5 + $0x40c] ss:$16 sps:$4 sm:$0xff]   ;;  %v21495_v28 = vcombine.low %v31082_v11, %v31082_v11  ;;  %v24667_v11 = vld [vmem:[%s33582_s5 + $0x408] ss:$16 sps:$4 sm:$0xff]  }
 0x80b   :  { %18012 = vmatpush1.bf16.msra.mxu1 %v24598_v62  ;;  %18545 = vmatpush1.bf16.msra.mxu0 %v24601_v55  ;;  %v13031_v62 = vrot.slane %v21495_v28, %v25979_v36 }
 0x80c   :  { %18013 = vmatprep.subr.bf16.mxu1 %v24606_v22  ;;  %18546 = vmatprep.subr.bf16.mxu0 %v24609_v41 }
 0x80d   :  { %v13033_v55 = vcombine.high %v13031_v62, %v13031_v62 }
 0x80f   :  { %18014 = vmatpush1.bf16.msra.mxu1 %v24604_v40  ;;  %18547 = vmatpush1.bf16.msra.mxu0 %v24607_v0  ;;  %v21497_v40 = vcombine.low %v31060_v4, %v31060_v4  ;;  %v24768_v4 = vld [vmem:[%s33582_s5 + $0x624] ss:$16 sps:$4 sm:$0xff]  }
 0x810   :  { %18015 = vmatprep.subr.bf16.mxu1 %v24612_v50  ;;  %18548 = vmatprep.subr.bf16.mxu0 %v24615_v29  ;;  %v24664_v50 = vld [vmem:[%s33582_s5 + $0x400] ss:$16 sps:$4 sm:$0xff]   ;;  %v13208_v29 = vpack.c.bf16 %v13031_v62, %v13031_v62 }
 0x813   :  { %18016 = vmatpush1.bf16.msra.mxu1 %v24610_v5  ;;  %18549 = vmatpush1.bf16.msra.mxu0 %v24613_v57  ;;  %v24672_v5 = vld [vmem:[%s33582_s5 + $0x424] ss:$16 sps:$4 sm:$0xff]   ;;  %v24675_v57 = vld [vmem:[%s33582_s5 + $0x42c] ss:$16 sps:$4 sm:$0xff]  }
 0x814   :  { %18017 = vmatprep.subr.bf16.mxu1 %v24618_v26  ;;  %18550 = vmatprep.subr.bf16.mxu0 %v24621_v10 }
 0x817   :  { %18018 = vmatpush1.bf16.msra.mxu1 %v24616_v24  ;;  %18551 = vmatpush1.bf16.msra.mxu0 %v24619_v33 }
 0x818   :  { %18019 = vmatprep.subr.bf16.mxu1 %v24624_v52  ;;  %18552 = vmatprep.subr.bf16.mxu0 %v24627_v2  ;;  %v31326_v52 = vrot.slane %v21497_v40, %v25979_v36  ;;  %v24670_v2 = vld [vmem:[%s33582_s5 + $0x420] ss:$16 sps:$4 sm:$0xff]  }
 0x81b   :  { %18020 = vmatpush1.bf16.msra.mxu1 %v24622_v27  ;;  %18553 = vmatpush1.bf16.msra.mxu0 %v24625_v35  ;;  %v24673_v27 = vld [vmem:[%s33582_s5 + $0x428] ss:$16 sps:$4 sm:$0xff]  }
 0x81c   :  { %18021 = vmatprep.subr.bf16.mxu1 %v24630_v34  ;;  %18554 = vmatprep.subr.bf16.mxu0 %v24633_v48 }
 0x81f   :  { %18022 = vmatpush1.bf16.msra.mxu1 %v24628_v59  ;;  %18555 = vmatpush1.bf16.msra.mxu0 %v24631_v47 }
 0x820   :  { %18023 = vmatprep.subr.bf16.mxu1 %v24636_v46  ;;  %18556 = vmatprep.subr.bf16.mxu0 %v24639_v54  ;;  %v24678_v46 = vld [vmem:[%s33582_s5 + $0x444] ss:$16 sps:$4 sm:$0xff]   ;;  %v24681_v54 = vld [vmem:[%s33582_s5 + $0x44c] ss:$16 sps:$4 sm:$0xff]  }
 0x823   :  { %18024 = vmatpush1.bf16.msra.mxu1 %v24634_v6  ;;  %18557 = vmatpush1.bf16.msra.mxu0 %v24637_v42 }
 0x824   :  { %18025 = vmatprep.subr.bf16.mxu1 %v24642_v58  ;;  %18558 = vmatprep.subr.bf16.mxu0 %v24645_v60  ;;  %v13088_v60 = vcombine.high %v31326_v52, %v31326_v52 }
 0x827   :  { %18026 = vmatpush1.bf16.msra.mxu1 %v24640_v3  ;;  %18559 = vmatpush1.bf16.msra.mxu0 %v24643_v7  ;;  %v24676_v3 = vld [vmem:[%s33582_s5 + $0x440] ss:$16 sps:$4 sm:$0xff]   ;;  %v24679_v7 = vld [vmem:[%s33582_s5 + $0x448] ss:$16 sps:$4 sm:$0xff]  }
 0x828   :  { %18027 = vmatprep.subr.bf16.mxu1 %v24648_v51  ;;  %18560 = vmatprep.subr.bf16.mxu0 %v24651_v56  ;;  %v24684_v56 = vld [vmem:[%s33582_s5 + $0x464] ss:$16 sps:$4 sm:$0xff]  }
 0x82b   :  { %18028 = vmatpush1.bf16.msra.mxu1 %v24646_v20  ;;  %18561 = vmatpush1.bf16.msra.mxu0 %v24649_v14  ;;  %v24687_v20 = vld [vmem:[%s33582_s5 + $0x46c] ss:$16 sps:$4 sm:$0xff]  }
 0x82c   :  { %18029 = vmatprep.subr.bf16.mxu1 %v24654_v16  ;;  %18562 = vmatprep.subr.bf16.mxu0 %v24657_v19 }
 0x82f   :  { %18030 = vmatpush1.bf16.msra.mxu1 %v24652_v63  ;;  %18563 = vmatpush1.bf16.msra.mxu0 %v24655_v17  ;;  %v24682_v63 = vld [vmem:[%s33582_s5 + $0x460] ss:$16 sps:$4 sm:$0xff]   ;;  %v24685_v17 = vld [vmem:[%s33582_s5 + $0x468] ss:$16 sps:$4 sm:$0xff]  }
 0x830   :  { %18031 = vmatprep.subr.bf16.mxu1 %v24660_v1  ;;  %18564 = vmatprep.subr.bf16.mxu0 %v24663_v45  ;;  %v24690_v45 = vld [vmem:[%s33582_s5 + $0x484] ss:$16 sps:$4 sm:$0xff]  }
 0x833   :  { %18032 = vmatpush1.bf16.msra.mxu1 %v24658_v32  ;;  %18565 = vmatpush1.bf16.msra.mxu0 %v24661_v25  ;;  %v24693_v32 = vld [vmem:[%s33582_s5 + $0x48c] ss:$16 sps:$4 sm:$0xff]   ;;  %v12568_v25 = vmax.f32 %v30710_v18, 0.0  ;;  %v24688_v18 = vld [vmem:[%s33582_s5 + $0x480] ss:$16 sps:$4 sm:$0xff]  }
 0x834   :  { %18042 = vmatprep.subr.bf16.mxu1 %v24666_v13  ;;  %18575 = vmatprep.subr.bf16.mxu0 %v24669_v44  ;;  %v12566_v13 = vmax.f32 %v30747_v49, 0.0  ;;  %v12567_v44 = vmax.f32 %v30750_v61, 0.0  ;;  %v24691_v49 = vld [vmem:[%s33582_s5 + $0x488] ss:$16 sps:$4 sm:$0xff]   ;;  %v24699_v61 = vld [vmem:[%s33582_s5 + $0x4ac] ss:$16 sps:$4 sm:$0xff]  }
 0x862   :  { %v31303_v22 = vpop.permute.xlu0 %13056 }
 0x863   :  { %v13203_v41 = vsel %vm158_vm5, %v13033_v55, %v31303_v22 }
 0x864   :  { %v13209_v0 = vpack.c.bf16 %v13203_v41, %v13203_v41 }
 0x866   :  { %v13063_v26 = vpop.permute.xlu0 %13062  ;;  %v31321_v10 = vpop.permute.xlu1 %22831  ;;  %18033 = vmatprep.mubr.bf16.mxu1 %v13209_v0  ;;  %18566 = vmatprep.mubr.bf16.mxu0 %v13209_v0 }
 0x867   :  { %v22834_v24 = vunpack.i.h.bf16 %v31321_v10  ;;  %v22833_v33 = vunpack.i.l.bf16 %v31321_v10  ;;  %18034 = vmatmul.mubr.bf16.vlgmr.msra.gmra.mrb[128].mxu1 %v13208_v29  ;;  %18567 = vmatmul.mubr.bf16.vlgmr.msra.gmra.mrb[56].mxu0 %v13208_v29  ;;  %v24763_v10 = vld [vmem:[%s33582_s5 + $0x608] ss:$16 sps:$4 sm:$0xff]  }
 0x868   :  { %18043 = vmatpush1.bf16.msra.mxu1 %v24664_v50  ;;  %18576 = vmatpush1.bf16.msra.mxu0 %v24667_v11 }
 0x869   :  { %v31335_v35 = vsel %vm158_vm5, %v22834_v24, %v13063_v26  ;;  %18044 = vmatprep.subr.bf16.mxu1 %v24672_v5  ;;  %18577 = vmatprep.subr.bf16.mxu0 %v24675_v57  ;;  %v13065_v34 = vsel %vm158_vm5, %v22833_v33, %v22834_v24  ;;  %v24694_v26 = vld [vmem:[%s33582_s5 + $0x4a0] ss:$16 sps:$4 sm:$0xff]   ;;  %v24697_v24 = vld [vmem:[%s33582_s5 + $0x4a8] ss:$16 sps:$4 sm:$0xff]  }
 0x86a   :  { %v31340_v48 = vpop.permute.xlu0 %22841  ;;  %v31342_v59 = vpop.permute.xlu1 %22836  ;;  %v13211_v47 = vpack.c.bf16 %v13065_v34, %v13065_v34  ;;  %v21487_v34 = vrot.slane %v31048_v12, 9 }
 0x86b   :  { %v22843_v6 = vunpack.i.l.bf16 %v31340_v48  ;;  %v22839_v42 = vunpack.i.h.bf16 %v31342_v59  ;;  %v22838_v58 = vunpack.i.l.bf16 %v31342_v59  ;;  %v24963_v59 = vld [vmem:[%s33582_s5 + $0xa2c] ss:$16 sps:$4 sm:$0xff]  }
 0x86c   :  { %18045 = vmatpush1.bf16.msra.mxu1 %v24670_v2  ;;  %18578 = vmatpush1.bf16.msra.mxu0 %v24673_v27  ;;  %v24702_v2 = vld [vmem:[%s33582_s5 + $0x4c4] ss:$16 sps:$4 sm:$0xff]   ;;  %v24705_v27 = vld [vmem:[%s33582_s5 + $0x4cc] ss:$16 sps:$4 sm:$0xff]  }
 0x86d   :  { %v31366_v51 = vsel %vm158_vm5, %v22839_v42, %v22843_v6  ;;  %18074 = vmatprep.mubr.bf16.mxu1 %v13211_v47  ;;  %18607 = vmatprep.mubr.bf16.mxu0 %v13211_v47  ;;  %v31377_v14 = vsel %vm158_vm5, %v13088_v60, %v22838_v58 }
 0x86e   :  { %v12614_v16 = vpop.permute.xlu1 %12613  ;;  %18046 = vmatprep.subr.bf16.mxu1 %v24678_v46  ;;  %18579 = vmatprep.subr.bf16.mxu0 %v24681_v54  ;;  %v12616_v19 = vpop.permute.xlu0 %12615  ;;  %v21492_v54 = vrot.slane %v31038_v15, 9 }
 0x86f   :  { %v12630_v1 = vsel %vm158_vm5, %v12614_v16, %v12616_v19  ;;  %v24711_v16 = vld [vmem:[%s33582_s5 + $0x4ec] ss:$16 sps:$4 sm:$0xff]  }
 0x870   :  { %18047 = vmatpush1.bf16.msra.mxu1 %v24676_v3  ;;  %18580 = vmatpush1.bf16.msra.mxu0 %v24679_v7  ;;  %v12661_v0 = vmax.f32 %v12566_v13, %v12630_v1  ;;  %v24700_v7 = vld [vmem:[%s33582_s5 + $0x4c0] ss:$16 sps:$4 sm:$0xff]   ;;  %v12874_v1 = vmax.f32 %v31038_v15, %v21492_v54  ;;  %v24717_v15 = vld [vmem:[%s33582_s5 + $0x50c] ss:$16 sps:$4 sm:$0xff]  }
 0x871   :  { %18048 = vmatprep.subr.bf16.mxu1 %v24684_v56  ;;  %18581 = vmatprep.subr.bf16.mxu0 %v24687_v20  ;;  %v24703_v56 = vld [vmem:[%s33582_s5 + $0x4c8] ss:$16 sps:$4 sm:$0xff]   ;;  %v24708_v20 = vld [vmem:[%s33582_s5 + $0x4e4] ss:$16 sps:$4 sm:$0xff]  }
 0x872   :  { %v12620_v28 = vpop.permute.xlu0 %12619  ;;  %v12618_v62 = vpop.permute.xlu1 %12617 }
 0x873   :  { %v12664_v55 = vmax.f32 %v12569_v8, %v12620_v28  ;;  %v12631_v41 = vsel %vm158_vm5, %v12616_v19, %v12618_v62  ;;  %v12632_v40 = vsel %vm158_vm5, %v12618_v62, %v12620_v28  ;;  %v12869_v19 = vmax.f32 %v31048_v12, %v21487_v34  ;;  %v24714_v12 = vld [vmem:[%s33582_s5 + $0x504] ss:$16 sps:$4 sm:$0xff]   ;;  %v24724_v34 = vld [vmem:[%s33582_s5 + $0x540] ss:$16 sps:$4 sm:$0xff]  }
 0x874   :  { %v12662_v50 = vmax.f32 %v12567_v44, %v12631_v41  ;;  %v12663_v11 = vmax.f32 %v12568_v25, %v12632_v40  ;;  %18049 = vmatpush1.bf16.msra.mxu1 %v24682_v63  ;;  %18582 = vmatpush1.bf16.msra.mxu0 %v24685_v17  ;;  %v24709_v25 = vld [vmem:[%s33582_s5 + $0x4e8] ss:$16 sps:$4 sm:$0xff]   ;;  %v24712_v40 = vld [vmem:[%s33582_s5 + $0x500] ss:$16 sps:$4 sm:$0xff]  }
 0x875   :  { %18050 = vmatprep.subr.bf16.mxu1 %v24690_v45  ;;  %18583 = vmatprep.subr.bf16.mxu0 %v24693_v32  ;;  %v24706_v32 = vld [vmem:[%s33582_s5 + $0x4e0] ss:$16 sps:$4 sm:$0xff]  }
 0x876   :  { %v12789_v8 = vcombine.low %v12661_v0, %v12662_v50  ;;  %v12790_v29 = vcombine.low %v12663_v11, %v12664_v55  ;;  %v24715_v0 = vld [vmem:[%s33582_s5 + $0x508] ss:$16 sps:$4 sm:$0xff]  }
 0x878   :  { %v12797_v5 = vrot.slane %v12789_v8, %v25979_v36  ;;  %v12804_v57 = vrot.slane %v12790_v29, %v25979_v36  ;;  %18051 = vmatpush1.bf16.msra.mxu1 %v24688_v18  ;;  %18584 = vmatpush1.bf16.msra.mxu0 %v24691_v49  ;;  %v24720_v18 = vld [vmem:[%s33582_s5 + $0x524] ss:$16 sps:$4 sm:$0xff]   ;;  %v24723_v49 = vld [vmem:[%s33582_s5 + $0x52c] ss:$16 sps:$4 sm:$0xff]   ;;  %v24718_v29 = vld [vmem:[%s33582_s5 + $0x520] ss:$16 sps:$4 sm:$0xff]  }
 0x879   :  { %18052 = vmatprep.subr.bf16.mxu1 %v24696_v21  ;;  %18585 = vmatprep.subr.bf16.mxu0 %v24699_v61 }
 0x87a   :  { %v12805_v47 = vcombine.low %v12797_v5, %v12804_v57  ;;  %v12806_v46 = vcombine.high %v12797_v5, %v12804_v57  ;;  %v24721_v5 = vld [vmem:[%s33582_s5 + $0x528] ss:$16 sps:$4 sm:$0xff]  }
 0x87c   :  { %v21493_v60 = vrot.slane %v12805_v47, 9  ;;  %v21494_v3 = vrot.slane %v12806_v46, 9  ;;  %18053 = vmatpush1.bf16.msra.mxu1 %v24694_v26  ;;  %18586 = vmatpush1.bf16.msra.mxu0 %v24697_v24  ;;  %v24729_v24 = vld [vmem:[%s33582_s5 + $0x54c] ss:$16 sps:$4 sm:$0xff]  }
 0x87d   :  { %18054 = vmatprep.subr.bf16.mxu1 %v24702_v2  ;;  %18587 = vmatprep.subr.bf16.mxu0 %v24705_v27 }
 0x87e   :  { %v12875_v63 = vmax.f32 %v12805_v47, %v21493_v60  ;;  %v12876_v17 = vmax.f32 %v12806_v46, %v21494_v3  ;;  %v24727_v47 = vld [vmem:[%s33582_s5 + $0x548] ss:$16 sps:$4 sm:$0xff]   ;;  %v24732_v60 = vld [vmem:[%s33582_s5 + $0x564] ss:$16 sps:$4 sm:$0xff]   ;;  %v24735_v3 = vld [vmem:[%s33582_s5 + $0x56c] ss:$16 sps:$4 sm:$0xff]  }
 0x880   :  { %v12930_v45 = vrot.slane %v12875_v63, 7  ;;  %18055 = vmatpush1.bf16.msra.mxu1 %v24700_v7  ;;  %18588 = vmatpush1.bf16.msra.mxu0 %v24703_v56  ;;  %v12999_v13 = vcombine.low %v12869_v19, %v12876_v17  ;;  %v13000_v44 = vcombine.high %v12869_v19, %v12876_v17  ;;  %v24730_v56 = vld [vmem:[%s33582_s5 + $0x560] ss:$16 sps:$4 sm:$0xff]   ;;  %v24738_v63 = vld [vmem:[%s33582_s5 + $0x584] ss:$16 sps:$4 sm:$0xff]  }
 0x881   :  { %18056 = vmatprep.subr.bf16.mxu1 %v24708_v20  ;;  %18589 = vmatprep.subr.bf16.mxu0 %v24711_v16  ;;  %v24733_v20 = vld [vmem:[%s33582_s5 + $0x568] ss:$16 sps:$4 sm:$0xff]   ;;  %v24741_v17 = vld [vmem:[%s33582_s5 + $0x58c] ss:$16 sps:$4 sm:$0xff]  }
 0x882   :  { %v12931_v28 = vsel %vm2231_vm13, %v12930_v45, %v12874_v1  ;;  %v31455_v62 = vrot.slane %v12999_v13, %v31055_v30  ;;  %v31458_v55 = vrot.slane %v13000_v44, %v31055_v30  ;;  %v24736_v1 = vld [vmem:[%s33582_s5 + $0x580] ss:$16 sps:$4 sm:$0xff]   ;;  %v24745_v44 = vld [vmem:[%s33582_s5 + $0x5a8] ss:$16 sps:$4 sm:$0xff]  }
 0x883   :  { %v12932_v41 = vsel %vm2206_vm8, %v12930_v45, %v12931_v28  ;;  %v24742_v13 = vld [vmem:[%s33582_s5 + $0x5a0] ss:$16 sps:$4 sm:$0xff]  }
 0x884   :  { %18057 = vmatpush1.bf16.msra.mxu1 %v24706_v32  ;;  %18590 = vmatpush1.bf16.msra.mxu0 %v24709_v25  ;;  %v12933_v50 = vsel %vm2210_vm10, %v12930_v45, %v12932_v41  ;;  %v13015_v11 = vcombine.low %v31455_v62, %v31458_v55  ;;  %v24744_v32 = vld [vmem:[%s33582_s5 + $0x5a4] ss:$16 sps:$4 sm:$0xff]   ;;  %v24747_v25 = vld [vmem:[%s33582_s5 + $0x5ac] ss:$16 sps:$4 sm:$0xff]   ;;  %v24748_v28 = vld [vmem:[%s33582_s5 + $0x5c0] ss:$16 sps:$4 sm:$0xff]  }
 0x885   :  { %18058 = vmatprep.subr.bf16.mxu1 %v24714_v12  ;;  %18591 = vmatprep.subr.bf16.mxu0 %v24717_v15  ;;  %v12934_v21 = vsel %vm2214_vm12, %v12930_v45, %v12933_v50  ;;  %v24739_v45 = vld [vmem:[%s33582_s5 + $0x588] ss:$16 sps:$4 sm:$0xff]   ;;  %v24750_v12 = vld [vmem:[%s33582_s5 + $0x5c4] ss:$16 sps:$4 sm:$0xff]   ;;  %v24753_v15 = vld [vmem:[%s33582_s5 + $0x5cc] ss:$16 sps:$4 sm:$0xff]  }
 0x886   :  { %v12981_v61 = vcombine.low %v31078_v43, %v12934_v21  ;;  %v12982_v8 = vcombine.high %v31078_v43, %v12934_v21  ;;  %v24726_v43 = vld [vmem:[%s33582_s5 + $0x544] ss:$16 sps:$4 sm:$0xff]   ;;  %v24751_v41 = vld [vmem:[%s33582_s5 + $0x5c8] ss:$16 sps:$4 sm:$0xff]   ;;  %v24754_v50 = vld [vmem:[%s33582_s5 + $0x5e0] ss:$16 sps:$4 sm:$0xff]  }
 0x887   :  { %v24765_v21 = vld [vmem:[%s33582_s5 + $0x60c] ss:$16 sps:$4 sm:$0xff]  }
 0x888   :  { %18059 = vmatpush1.bf16.msra.mxu1 %v24712_v40  ;;  %18592 = vmatpush1.bf16.msra.mxu0 %v24715_v0  ;;  %v31486_v57 = vrot.slane %v12981_v61, %v31055_v30  ;;  %v31489_v26 = vrot.slane %v12982_v8, %v31055_v30  ;;  %v24756_v40 = vld [vmem:[%s33582_s5 + $0x5e4] ss:$16 sps:$4 sm:$0xff]   ;;  %v24759_v0 = vld [vmem:[%s33582_s5 + $0x5ec] ss:$16 sps:$4 sm:$0xff]   ;;  %v13064_v61 = vsel %vm158_vm5, %v31303_v22, %v22833_v33  ;;  %v24769_v33 = vld [vmem:[%s33582_s5 + $0x628] ss:$16 sps:$4 sm:$0xff]  }
 0x889   :  { %18060 = vmatprep.subr.bf16.mxu1 %v24720_v18  ;;  %18593 = vmatprep.subr.bf16.mxu0 %v24723_v49  ;;  %v24757_v18 = vld [vmem:[%s33582_s5 + $0x5e8] ss:$16 sps:$4 sm:$0xff]   ;;  %v24762_v49 = vld [vmem:[%s33582_s5 + $0x604] ss:$16 sps:$4 sm:$0xff]   ;;  %v31588_v8 = vrot.slane %v12979_v31, %v25979_v36  ;;  %v24766_v31 = vld [vmem:[%s33582_s5 + $0x620] ss:$16 sps:$4 sm:$0xff]  }
 0x88a   :  { %v12998_v2 = vcombine.high %v31486_v57, %v31489_v26  ;;  %v21500_v27 = vcombine.high %v31489_v26, %v31489_v26  ;;  %v12997_v30 = vcombine.low %v31486_v57, %v31489_v26  ;;  %v25149_v57 = vld [vmem:[%s33582_s5 + $0xe0c] ss:$16 sps:$4 sm:$0xff]  }
 0x88b   :  { %v13213_v22 = vpack.c.bf16 %v31588_v8, %v31588_v8 }
 0x88c   :  { %18061 = vmatpush1.bf16.msra.mxu1 %v24718_v29  ;;  %18594 = vmatpush1.bf16.msra.mxu0 %v24721_v5  ;;  %v13156_v46 = vrot.slane %v12998_v2, %v25979_v36  ;;  %v13163_v54 = vrot.slane %v21500_v27, %v25979_v36  ;;  %v24760_v29 = vld [vmem:[%s33582_s5 + $0x600] ss:$16 sps:$4 sm:$0xff]   ;;  %v13210_v5 = vpack.c.bf16 %v13064_v61, %v13064_v61  ;;  %v24775_v27 = vld [vmem:[%s33582_s5 + $0x648] ss:$16 sps:$4 sm:$0xff]   ;;  %v24825_v61 = vld [vmem:[%s33582_s5 + $0x74c] ss:$16 sps:$4 sm:$0xff]  }
 0x88d   :  { %18062 = vmatprep.subr.bf16.mxu1 %v24726_v43  ;;  %18595 = vmatprep.subr.bf16.mxu0 %v24729_v24  ;;  %v24774_v43 = vld [vmem:[%s33582_s5 + $0x644] ss:$16 sps:$4 sm:$0xff]   ;;  %v24777_v24 = vld [vmem:[%s33582_s5 + $0x64c] ss:$16 sps:$4 sm:$0xff]   ;;  %v24772_v2 = vld [vmem:[%s33582_s5 + $0x640] ss:$16 sps:$4 sm:$0xff]  }
 0x88e   :  { %13166 = vrot.lane.b32.xlu1 %v13156_v46, %s25735_s21  ;;  %v13164_v7 = vcombine.high %v13156_v46, %v13156_v46  ;;  %v13165_v16 = vcombine.high %v13163_v54, %v13163_v54  ;;  %v24778_v46 = vld [vmem:[%s33582_s5 + $0x660] ss:$16 sps:$4 sm:$0xff]  }
 0x890   :  { %18063 = vmatpush1.bf16.msra.mxu1 %v24724_v34  ;;  %18596 = vmatpush1.bf16.msra.mxu0 %v24727_v47  ;;  %v22845_v19 = vpack.i.bf16 %v13163_v54, %v13164_v7  ;;  %v24780_v34 = vld [vmem:[%s33582_s5 + $0x664] ss:$16 sps:$4 sm:$0xff]   ;;  %v24783_v47 = vld [vmem:[%s33582_s5 + $0x66c] ss:$16 sps:$4 sm:$0xff]   ;;  %v24781_v54 = vld [vmem:[%s33582_s5 + $0x668] ss:$16 sps:$4 sm:$0xff]  }
 0x891   :  { %18064 = vmatprep.subr.bf16.mxu1 %v24732_v60  ;;  %18597 = vmatprep.subr.bf16.mxu0 %v24735_v3  ;;  %v24786_v60 = vld [vmem:[%s33582_s5 + $0x684] ss:$16 sps:$4 sm:$0xff]   ;;  %v24789_v3 = vld [vmem:[%s33582_s5 + $0x68c] ss:$16 sps:$4 sm:$0xff]   ;;  %v24784_v7 = vld [vmem:[%s33582_s5 + $0x680] ss:$16 sps:$4 sm:$0xff]  }
 0x892   :  { %13172 = vrot.lane.b32.xlu1 %v13165_v16, %s25735_s21  ;;  %22846 = vrot.lane.b32.xlu0 %v22845_v19, %s25735_s21  ;;  %v24795_v16 = vld [vmem:[%s33582_s5 + $0x6ac] ss:$16 sps:$4 sm:$0xff]   ;;  %v24790_v19 = vld [vmem:[%s33582_s5 + $0x6a0] ss:$16 sps:$4 sm:$0xff]  }
 0x894   :  { %18065 = vmatpush1.bf16.msra.mxu1 %v24730_v56  ;;  %18598 = vmatpush1.bf16.msra.mxu0 %v24733_v20  ;;  %v24787_v56 = vld [vmem:[%s33582_s5 + $0x688] ss:$16 sps:$4 sm:$0xff]   ;;  %v24792_v20 = vld [vmem:[%s33582_s5 + $0x6a4] ss:$16 sps:$4 sm:$0xff]  }
 0x895   :  { %18066 = vmatprep.subr.bf16.mxu1 %v24738_v63  ;;  %18599 = vmatprep.subr.bf16.mxu0 %v24741_v17  ;;  %v24793_v63 = vld [vmem:[%s33582_s5 + $0x6a8] ss:$16 sps:$4 sm:$0xff]   ;;  %v24798_v17 = vld [vmem:[%s33582_s5 + $0x6c4] ss:$16 sps:$4 sm:$0xff]  }
 0x898   :  { %18067 = vmatpush1.bf16.msra.mxu1 %v24736_v1  ;;  %18600 = vmatpush1.bf16.msra.mxu0 %v24739_v45  ;;  %v24801_v1 = vld [vmem:[%s33582_s5 + $0x6cc] ss:$16 sps:$4 sm:$0xff]   ;;  %v24796_v45 = vld [vmem:[%s33582_s5 + $0x6c0] ss:$16 sps:$4 sm:$0xff]  }
 0x899   :  { %18068 = vmatprep.subr.bf16.mxu1 %v24744_v32  ;;  %18601 = vmatprep.subr.bf16.mxu0 %v24747_v25  ;;  %v24799_v32 = vld [vmem:[%s33582_s5 + $0x6c8] ss:$16 sps:$4 sm:$0xff]   ;;  %v24804_v25 = vld [vmem:[%s33582_s5 + $0x6e4] ss:$16 sps:$4 sm:$0xff]  }
 0x89c   :  { %18069 = vmatpush1.bf16.msra.mxu1 %v24742_v13  ;;  %18602 = vmatpush1.bf16.msra.mxu0 %v24745_v44  ;;  %v24807_v13 = vld [vmem:[%s33582_s5 + $0x6ec] ss:$16 sps:$4 sm:$0xff]   ;;  %v24802_v44 = vld [vmem:[%s33582_s5 + $0x6e0] ss:$16 sps:$4 sm:$0xff]  }
 0x89d   :  { %18070 = vmatprep.subr.bf16.mxu1 %v24750_v12  ;;  %18603 = vmatprep.subr.bf16.mxu0 %v24753_v15  ;;  %v24805_v12 = vld [vmem:[%s33582_s5 + $0x6e8] ss:$16 sps:$4 sm:$0xff]   ;;  %v24810_v15 = vld [vmem:[%s33582_s5 + $0x704] ss:$16 sps:$4 sm:$0xff]  }
 0x8a0   :  { %18071 = vmatpush1.bf16.msra.mxu1 %v24748_v28  ;;  %18604 = vmatpush1.bf16.msra.mxu0 %v24751_v41  ;;  %v24813_v28 = vld [vmem:[%s33582_s5 + $0x70c] ss:$16 sps:$4 sm:$0xff]   ;;  %v24808_v41 = vld [vmem:[%s33582_s5 + $0x700] ss:$16 sps:$4 sm:$0xff]  }
 0x8a1   :  { %18072 = vmatprep.subr.bf16.mxu1 %v24756_v40  ;;  %18605 = vmatprep.subr.bf16.mxu0 %v24759_v0  ;;  %v24811_v40 = vld [vmem:[%s33582_s5 + $0x708] ss:$16 sps:$4 sm:$0xff]   ;;  %v24816_v0 = vld [vmem:[%s33582_s5 + $0x724] ss:$16 sps:$4 sm:$0xff]  }
 0x8a4   :  { %18073 = vmatpush1.bf16.msra.mxu1 %v24754_v50  ;;  %18606 = vmatpush1.bf16.msra.mxu0 %v24757_v18  ;;  %v24819_v50 = vld [vmem:[%s33582_s5 + $0x72c] ss:$16 sps:$4 sm:$0xff]   ;;  %v24814_v18 = vld [vmem:[%s33582_s5 + $0x720] ss:$16 sps:$4 sm:$0xff]  }
 0x8a5   :  { %18083 = vmatprep.subr.bf16.mxu1 %v24762_v49  ;;  %18616 = vmatprep.subr.bf16.mxu0 %v24765_v21  ;;  %v24817_v49 = vld [vmem:[%s33582_s5 + $0x728] ss:$16 sps:$4 sm:$0xff]   ;;  %v24822_v21 = vld [vmem:[%s33582_s5 + $0x744] ss:$16 sps:$4 sm:$0xff]  }
 0x8a7   :  { %18075 = vmatmul.mubr.bf16.vlgmr.msra.gmra.mrb[128].mxu1 %v13210_v5  ;;  %18608 = vmatmul.mubr.bf16.vlgmr.msra.gmra.mrb[56].mxu0 %v13210_v5  ;;  %v24823_v5 = vld [vmem:[%s33582_s5 + $0x748] ss:$16 sps:$4 sm:$0xff]  }
 0x8a8   :  { %18084 = vmatpush1.bf16.msra.mxu1 %v24760_v29  ;;  %18115 = vmatprep.mubr.bf16.mxu1 %v13213_v22  ;;  %v24820_v29 = vld [vmem:[%s33582_s5 + $0x740] ss:$16 sps:$4 sm:$0xff]  }
 0x8a9   :  { %18617 = vmatpush1.bf16.msra.mxu0 %v24763_v10  ;;  %18648 = vmatprep.mubr.bf16.mxu0 %v13213_v22  ;;  %v24828_v10 = vld [vmem:[%s33582_s5 + $0x764] ss:$16 sps:$4 sm:$0xff]   ;;  %v24831_v22 = vld [vmem:[%s33582_s5 + $0x76c] ss:$16 sps:$4 sm:$0xff]  }
 0x8aa   :  { %18085 = vmatprep.subr.bf16.mxu1 %v24768_v4  ;;  %18618 = vmatprep.subr.bf16.mxu0 %v24771_v53  ;;  %v24826_v4 = vld [vmem:[%s33582_s5 + $0x760] ss:$16 sps:$4 sm:$0xff]   ;;  %v24829_v53 = vld [vmem:[%s33582_s5 + $0x768] ss:$16 sps:$4 sm:$0xff]  }
 0x8ac   :  { %18086 = vmatpush1.bf16.msra.mxu1 %v24766_v31  ;;  %v24834_v31 = vld [vmem:[%s33582_s5 + $0x784] ss:$16 sps:$4 sm:$0xff]  }
 0x8ad   :  { %18619 = vmatpush1.bf16.msra.mxu0 %v24769_v33  ;;  %18087 = vmatprep.subr.bf16.mxu1 %v24774_v43  ;;  %v24837_v33 = vld [vmem:[%s33582_s5 + $0x78c] ss:$16 sps:$4 sm:$0xff]   ;;  %v24832_v43 = vld [vmem:[%s33582_s5 + $0x780] ss:$16 sps:$4 sm:$0xff]  }
 0x8ae   :  { %18620 = vmatprep.subr.bf16.mxu0 %v24777_v24  ;;  %v24835_v24 = vld [vmem:[%s33582_s5 + $0x788] ss:$16 sps:$4 sm:$0xff]  }
 0x8b0   :  { %18088 = vmatpush1.bf16.msra.mxu1 %v24772_v2  ;;  %v24840_v2 = vld [vmem:[%s33582_s5 + $0x7a4] ss:$16 sps:$4 sm:$0xff]  }
 0x8b1   :  { %18621 = vmatpush1.bf16.msra.mxu0 %v24775_v27  ;;  %18089 = vmatprep.subr.bf16.mxu1 %v24780_v34  ;;  %v24843_v27 = vld [vmem:[%s33582_s5 + $0x7ac] ss:$16 sps:$4 sm:$0xff]   ;;  %v24838_v34 = vld [vmem:[%s33582_s5 + $0x7a0] ss:$16 sps:$4 sm:$0xff]  }
 0x8b2   :  { %18622 = vmatprep.subr.bf16.mxu0 %v24783_v47  ;;  %v24841_v47 = vld [vmem:[%s33582_s5 + $0x7a8] ss:$16 sps:$4 sm:$0xff]  }
 0x8b4   :  { %18090 = vmatpush1.bf16.msra.mxu1 %v24778_v46  ;;  %v24846_v46 = vld [vmem:[%s33582_s5 + $0x7c4] ss:$16 sps:$4 sm:$0xff]  }
 0x8b5   :  { %18623 = vmatpush1.bf16.msra.mxu0 %v24781_v54  ;;  %18091 = vmatprep.subr.bf16.mxu1 %v24786_v60  ;;  %v24849_v54 = vld [vmem:[%s33582_s5 + $0x7cc] ss:$16 sps:$4 sm:$0xff]   ;;  %v24844_v60 = vld [vmem:[%s33582_s5 + $0x7c0] ss:$16 sps:$4 sm:$0xff]  }
 0x8b6   :  { %18624 = vmatprep.subr.bf16.mxu0 %v24789_v3  ;;  %v24847_v3 = vld [vmem:[%s33582_s5 + $0x7c8] ss:$16 sps:$4 sm:$0xff]  }
 0x8b8   :  { %18092 = vmatpush1.bf16.msra.mxu1 %v24784_v7  ;;  %v24852_v7 = vld [vmem:[%s33582_s5 + $0x7e4] ss:$16 sps:$4 sm:$0xff]  }
 0x8b9   :  { %18625 = vmatpush1.bf16.msra.mxu0 %v24787_v56  ;;  %18093 = vmatprep.subr.bf16.mxu1 %v24792_v20  ;;  %v24855_v56 = vld [vmem:[%s33582_s5 + $0x7ec] ss:$16 sps:$4 sm:$0xff]   ;;  %v24850_v20 = vld [vmem:[%s33582_s5 + $0x7e0] ss:$16 sps:$4 sm:$0xff]  }
 0x8ba   :  { %18626 = vmatprep.subr.bf16.mxu0 %v24795_v16  ;;  %v24853_v16 = vld [vmem:[%s33582_s5 + $0x7e8] ss:$16 sps:$4 sm:$0xff]  }
 0x8bc   :  { %18094 = vmatpush1.bf16.msra.mxu1 %v24790_v19  ;;  %v24858_v19 = vld [vmem:[%s33582_s5 + $0x804] ss:$16 sps:$4 sm:$0xff]  }
 0x8bd   :  { %18627 = vmatpush1.bf16.msra.mxu0 %v24793_v63  ;;  %18095 = vmatprep.subr.bf16.mxu1 %v24798_v17  ;;  %v24861_v63 = vld [vmem:[%s33582_s5 + $0x80c] ss:$16 sps:$4 sm:$0xff]   ;;  %v24856_v17 = vld [vmem:[%s33582_s5 + $0x800] ss:$16 sps:$4 sm:$0xff]  }
 0x8be   :  { %18628 = vmatprep.subr.bf16.mxu0 %v24801_v1  ;;  %v13212_v1 = vpack.c.bf16 %v31335_v35, %v31335_v35  ;;  %v24862_v35 = vld [vmem:[%s33582_s5 + $0x820] ss:$16 sps:$4 sm:$0xff]  }
 0x8c0   :  { %18096 = vmatpush1.bf16.msra.mxu1 %v24796_v45  ;;  %v24859_v45 = vld [vmem:[%s33582_s5 + $0x808] ss:$16 sps:$4 sm:$0xff]  }
 0x8c1   :  { %18629 = vmatpush1.bf16.msra.mxu0 %v24799_v32  ;;  %18097 = vmatprep.subr.bf16.mxu1 %v24804_v25  ;;  %v24864_v32 = vld [vmem:[%s33582_s5 + $0x824] ss:$16 sps:$4 sm:$0xff]   ;;  %v13215_v25 = vpack.c.bf16 %v31326_v52, %v31326_v52 }
 0x8c2   :  { %18630 = vmatprep.subr.bf16.mxu0 %v24807_v13  ;;  %v24867_v13 = vld [vmem:[%s33582_s5 + $0x82c] ss:$16 sps:$4 sm:$0xff]   ;;  %v24870_v52 = vld [vmem:[%s33582_s5 + $0x844] ss:$16 sps:$4 sm:$0xff]  }
 0x8c4   :  { %18098 = vmatpush1.bf16.msra.mxu1 %v24802_v44  ;;  %v24865_v44 = vld [vmem:[%s33582_s5 + $0x828] ss:$16 sps:$4 sm:$0xff]  }
 0x8c5   :  { %18631 = vmatpush1.bf16.msra.mxu0 %v24805_v12  ;;  %18099 = vmatprep.subr.bf16.mxu1 %v24810_v15  ;;  %v24873_v12 = vld [vmem:[%s33582_s5 + $0x84c] ss:$16 sps:$4 sm:$0xff]   ;;  %v24868_v15 = vld [vmem:[%s33582_s5 + $0x840] ss:$16 sps:$4 sm:$0xff]  }
 0x8c6   :  { %18632 = vmatprep.subr.bf16.mxu0 %v24813_v28  ;;  %v24871_v28 = vld [vmem:[%s33582_s5 + $0x848] ss:$16 sps:$4 sm:$0xff]  }
 0x8c8   :  { %18100 = vmatpush1.bf16.msra.mxu1 %v24808_v41  ;;  %v24876_v41 = vld [vmem:[%s33582_s5 + $0x864] ss:$16 sps:$4 sm:$0xff]  }
 0x8c9   :  { %18633 = vmatpush1.bf16.msra.mxu0 %v24811_v40  ;;  %18101 = vmatprep.subr.bf16.mxu1 %v24816_v0  ;;  %v24879_v40 = vld [vmem:[%s33582_s5 + $0x86c] ss:$16 sps:$4 sm:$0xff]   ;;  %v24874_v0 = vld [vmem:[%s33582_s5 + $0x860] ss:$16 sps:$4 sm:$0xff]  }
 0x8ca   :  { %18634 = vmatprep.subr.bf16.mxu0 %v24819_v50  ;;  %v24877_v50 = vld [vmem:[%s33582_s5 + $0x868] ss:$16 sps:$4 sm:$0xff]  }
 0x8cc   :  { %18102 = vmatpush1.bf16.msra.mxu1 %v24814_v18  ;;  %v24882_v18 = vld [vmem:[%s33582_s5 + $0x884] ss:$16 sps:$4 sm:$0xff]  }
 0x8cd   :  { %18635 = vmatpush1.bf16.msra.mxu0 %v24817_v49  ;;  %18103 = vmatprep.subr.bf16.mxu1 %v24822_v21  ;;  %v24885_v49 = vld [vmem:[%s33582_s5 + $0x88c] ss:$16 sps:$4 sm:$0xff]   ;;  %v24880_v21 = vld [vmem:[%s33582_s5 + $0x880] ss:$16 sps:$4 sm:$0xff]  }
 0x8ce   :  { %18636 = vmatprep.subr.bf16.mxu0 %v24825_v61  ;;  %v24883_v61 = vld [vmem:[%s33582_s5 + $0x888] ss:$16 sps:$4 sm:$0xff]  }
 0x8d0   :  { %18104 = vmatpush1.bf16.msra.mxu1 %v24820_v29  ;;  %v24888_v29 = vld [vmem:[%s33582_s5 + $0x8a4] ss:$16 sps:$4 sm:$0xff]  }
 0x8d1   :  { %18637 = vmatpush1.bf16.msra.mxu0 %v24823_v5  ;;  %18105 = vmatprep.subr.bf16.mxu1 %v24828_v10  ;;  %v24891_v5 = vld [vmem:[%s33582_s5 + $0x8ac] ss:$16 sps:$4 sm:$0xff]   ;;  %v24886_v10 = vld [vmem:[%s33582_s5 + $0x8a0] ss:$16 sps:$4 sm:$0xff]  }
 0x8d2   :  { %18638 = vmatprep.subr.bf16.mxu0 %v24831_v22  ;;  %v24889_v22 = vld [vmem:[%s33582_s5 + $0x8a8] ss:$16 sps:$4 sm:$0xff]  }
 0x8d4   :  { %18106 = vmatpush1.bf16.msra.mxu1 %v24826_v4  ;;  %v24894_v4 = vld [vmem:[%s33582_s5 + $0x8c4] ss:$16 sps:$4 sm:$0xff]  }
 0x8d5   :  { %18639 = vmatpush1.bf16.msra.mxu0 %v24829_v53  ;;  %18107 = vmatprep.subr.bf16.mxu1 %v24834_v31  ;;  %v24897_v53 = vld [vmem:[%s33582_s5 + $0x8cc] ss:$16 sps:$4 sm:$0xff]   ;;  %v24892_v31 = vld [vmem:[%s33582_s5 + $0x8c0] ss:$16 sps:$4 sm:$0xff]  }
 0x8d6   :  { %18640 = vmatprep.subr.bf16.mxu0 %v24837_v33  ;;  %v24895_v33 = vld [vmem:[%s33582_s5 + $0x8c8] ss:$16 sps:$4 sm:$0xff]  }
 0x8d8   :  { %18108 = vmatpush1.bf16.msra.mxu1 %v24832_v43  ;;  %v24900_v43 = vld [vmem:[%s33582_s5 + $0x8e4] ss:$16 sps:$4 sm:$0xff]  }
 0x8d9   :  { %18641 = vmatpush1.bf16.msra.mxu0 %v24835_v24  ;;  %18109 = vmatprep.subr.bf16.mxu1 %v24840_v2  ;;  %v24903_v24 = vld [vmem:[%s33582_s5 + $0x8ec] ss:$16 sps:$4 sm:$0xff]   ;;  %v24898_v2 = vld [vmem:[%s33582_s5 + $0x8e0] ss:$16 sps:$4 sm:$0xff]  }
 0x8da   :  { %18642 = vmatprep.subr.bf16.mxu0 %v24843_v27  ;;  %v24901_v27 = vld [vmem:[%s33582_s5 + $0x8e8] ss:$16 sps:$4 sm:$0xff]  }
 0x8dc   :  { %18110 = vmatpush1.bf16.msra.mxu1 %v24838_v34  ;;  %v24906_v34 = vld [vmem:[%s33582_s5 + $0x904] ss:$16 sps:$4 sm:$0xff]  }
 0x8dd   :  { %18643 = vmatpush1.bf16.msra.mxu0 %v24841_v47  ;;  %18111 = vmatprep.subr.bf16.mxu1 %v24846_v46  ;;  %v24909_v47 = vld [vmem:[%s33582_s5 + $0x90c] ss:$16 sps:$4 sm:$0xff]   ;;  %v24904_v46 = vld [vmem:[%s33582_s5 + $0x900] ss:$16 sps:$4 sm:$0xff]  }
 0x8de   :  { %18644 = vmatprep.subr.bf16.mxu0 %v24849_v54  ;;  %v24907_v54 = vld [vmem:[%s33582_s5 + $0x908] ss:$16 sps:$4 sm:$0xff]  }
 0x8e0   :  { %18112 = vmatpush1.bf16.msra.mxu1 %v24844_v60  ;;  %v24912_v60 = vld [vmem:[%s33582_s5 + $0x924] ss:$16 sps:$4 sm:$0xff]  }
 0x8e1   :  { %18645 = vmatpush1.bf16.msra.mxu0 %v24847_v3  ;;  %18113 = vmatprep.subr.bf16.mxu1 %v24852_v7  ;;  %v24915_v3 = vld [vmem:[%s33582_s5 + $0x92c] ss:$16 sps:$4 sm:$0xff]   ;;  %v24910_v7 = vld [vmem:[%s33582_s5 + $0x920] ss:$16 sps:$4 sm:$0xff]  }
 0x8e2   :  { %18646 = vmatprep.subr.bf16.mxu0 %v24855_v56  ;;  %v24913_v56 = vld [vmem:[%s33582_s5 + $0x928] ss:$16 sps:$4 sm:$0xff]  }
 0x8e4   :  { %18114 = vmatpush1.bf16.msra.mxu1 %v24850_v20  ;;  %v24918_v20 = vld [vmem:[%s33582_s5 + $0x944] ss:$16 sps:$4 sm:$0xff]  }
 0x8e5   :  { %18647 = vmatpush1.bf16.msra.mxu0 %v24853_v16  ;;  %18124 = vmatprep.subr.bf16.mxu1 %v24858_v19  ;;  %v24921_v16 = vld [vmem:[%s33582_s5 + $0x94c] ss:$16 sps:$4 sm:$0xff]   ;;  %v24916_v19 = vld [vmem:[%s33582_s5 + $0x940] ss:$16 sps:$4 sm:$0xff]  }
 0x8e6   :  { %18657 = vmatprep.subr.bf16.mxu0 %v24861_v63  ;;  %v24919_v63 = vld [vmem:[%s33582_s5 + $0x948] ss:$16 sps:$4 sm:$0xff]  }
 0x8e7   :  { %18116 = vmatmul.mubr.bf16.vlgmr.msra.gmra.mrb[128].mxu1 %v13212_v1 }
 0x8e8   :  { %18649 = vmatmul.mubr.bf16.vlgmr.msra.gmra.mrb[56].mxu0 %v13212_v1  ;;  %18125 = vmatpush1.bf16.msra.mxu1 %v24856_v17  ;;  %v24924_v17 = vld [vmem:[%s33582_s5 + $0x964] ss:$16 sps:$4 sm:$0xff]   ;;  %v24927_v1 = vld [vmem:[%s33582_s5 + $0x96c] ss:$16 sps:$4 sm:$0xff]  }
 0x8e9   :  { %18156 = vmatprep.mubr.bf16.mxu1 %v13215_v25  ;;  %18658 = vmatpush1.bf16.msra.mxu0 %v24859_v45  ;;  %v24922_v45 = vld [vmem:[%s33582_s5 + $0x960] ss:$16 sps:$4 sm:$0xff]  }
 0x8ea   :  { %18689 = vmatprep.mubr.bf16.mxu0 %v13215_v25  ;;  %18126 = vmatprep.subr.bf16.mxu1 %v24864_v32  ;;  %v24925_v32 = vld [vmem:[%s33582_s5 + $0x968] ss:$16 sps:$4 sm:$0xff]   ;;  %v24930_v25 = vld [vmem:[%s33582_s5 + $0x984] ss:$16 sps:$4 sm:$0xff]  }
 0x8eb   :  { %18659 = vmatprep.subr.bf16.mxu0 %v24867_v13  ;;  %v24933_v13 = vld [vmem:[%s33582_s5 + $0x98c] ss:$16 sps:$4 sm:$0xff]  }
 0x8ec   :  { %18127 = vmatpush1.bf16.msra.mxu1 %v24862_v35  ;;  %v24928_v35 = vld [vmem:[%s33582_s5 + $0x980] ss:$16 sps:$4 sm:$0xff]  }
 0x8ed   :  { %18660 = vmatpush1.bf16.msra.mxu0 %v24865_v44  ;;  %18128 = vmatprep.subr.bf16.mxu1 %v24870_v52  ;;  %v24931_v44 = vld [vmem:[%s33582_s5 + $0x988] ss:$16 sps:$4 sm:$0xff]   ;;  %v24936_v52 = vld [vmem:[%s33582_s5 + $0x9a4] ss:$16 sps:$4 sm:$0xff]  }
 0x8ee   :  { %18661 = vmatprep.subr.bf16.mxu0 %v24873_v12  ;;  %v24939_v12 = vld [vmem:[%s33582_s5 + $0x9ac] ss:$16 sps:$4 sm:$0xff]  }
 0x8f0   :  { %18129 = vmatpush1.bf16.msra.mxu1 %v24868_v15  ;;  %v24934_v15 = vld [vmem:[%s33582_s5 + $0x9a0] ss:$16 sps:$4 sm:$0xff]  }
 0x8f1   :  { %18662 = vmatpush1.bf16.msra.mxu0 %v24871_v28  ;;  %18130 = vmatprep.subr.bf16.mxu1 %v24876_v41  ;;  %v24937_v28 = vld [vmem:[%s33582_s5 + $0x9a8] ss:$16 sps:$4 sm:$0xff]   ;;  %v24942_v41 = vld [vmem:[%s33582_s5 + $0x9c4] ss:$16 sps:$4 sm:$0xff]  }
 0x8f2   :  { %18663 = vmatprep.subr.bf16.mxu0 %v24879_v40  ;;  %v24945_v40 = vld [vmem:[%s33582_s5 + $0x9cc] ss:$16 sps:$4 sm:$0xff]  }
 0x8f4   :  { %18131 = vmatpush1.bf16.msra.mxu1 %v24874_v0  ;;  %v24940_v0 = vld [vmem:[%s33582_s5 + $0x9c0] ss:$16 sps:$4 sm:$0xff]  }
 0x8f5   :  { %18664 = vmatpush1.bf16.msra.mxu0 %v24877_v50  ;;  %18132 = vmatprep.subr.bf16.mxu1 %v24882_v18  ;;  %v24943_v50 = vld [vmem:[%s33582_s5 + $0x9c8] ss:$16 sps:$4 sm:$0xff]   ;;  %v24948_v18 = vld [vmem:[%s33582_s5 + $0x9e4] ss:$16 sps:$4 sm:$0xff]  }
 0x8f6   :  { %18665 = vmatprep.subr.bf16.mxu0 %v24885_v49  ;;  %v24951_v49 = vld [vmem:[%s33582_s5 + $0x9ec] ss:$16 sps:$4 sm:$0xff]  }
 0x8f8   :  { %18133 = vmatpush1.bf16.msra.mxu1 %v24880_v21  ;;  %v24946_v21 = vld [vmem:[%s33582_s5 + $0x9e0] ss:$16 sps:$4 sm:$0xff]  }
 0x8f9   :  { %18666 = vmatpush1.bf16.msra.mxu0 %v24883_v61  ;;  %18134 = vmatprep.subr.bf16.mxu1 %v24888_v29  ;;  %v24949_v61 = vld [vmem:[%s33582_s5 + $0x9e8] ss:$16 sps:$4 sm:$0xff]   ;;  %v13087_v29 = vcombine.high %v31588_v8, %v31588_v8  ;;  %v13119_v8 = vsel %vm158_vm5, %v22838_v58, %v22839_v42  ;;  %v24958_v42 = vld [vmem:[%s33582_s5 + $0xa20] ss:$16 sps:$4 sm:$0xff]  }
 0x8fa   :  { %18667 = vmatprep.subr.bf16.mxu0 %v24891_v5  ;;  %v24954_v5 = vld [vmem:[%s33582_s5 + $0xa04] ss:$16 sps:$4 sm:$0xff]   ;;  %v24961_v58 = vld [vmem:[%s33582_s5 + $0xa28] ss:$16 sps:$4 sm:$0xff]  }
 0x8fc   :  { %18135 = vmatpush1.bf16.msra.mxu1 %v24886_v10  ;;  %v24957_v10 = vld [vmem:[%s33582_s5 + $0xa0c] ss:$16 sps:$4 sm:$0xff]  }
 0x8fd   :  { %18668 = vmatpush1.bf16.msra.mxu0 %v24889_v22  ;;  %18136 = vmatprep.subr.bf16.mxu1 %v24894_v4  ;;  %v24952_v22 = vld [vmem:[%s33582_s5 + $0xa00] ss:$16 sps:$4 sm:$0xff]   ;;  %v13214_v4 = vpack.c.bf16 %v13087_v29, %v13087_v29  ;;  %v25020_v29 = vld [vmem:[%s33582_s5 + $0xb64] ss:$16 sps:$4 sm:$0xff]  }
 0x8fe   :  { %18669 = vmatprep.subr.bf16.mxu0 %v24897_v53  ;;  %v24955_v53 = vld [vmem:[%s33582_s5 + $0xa08] ss:$16 sps:$4 sm:$0xff]  }
 0x900   :  { %18137 = vmatpush1.bf16.msra.mxu1 %v24892_v31  ;;  %v24960_v31 = vld [vmem:[%s33582_s5 + $0xa24] ss:$16 sps:$4 sm:$0xff]  }
 0x901   :  { %18670 = vmatpush1.bf16.msra.mxu0 %v24895_v33  ;;  %18138 = vmatprep.subr.bf16.mxu1 %v24900_v43  ;;  %v13217_v33 = vpack.c.bf16 %v13119_v8, %v13119_v8  ;;  %v24966_v43 = vld [vmem:[%s33582_s5 + $0xa44] ss:$16 sps:$4 sm:$0xff]  }
 0x902   :  { %18671 = vmatprep.subr.bf16.mxu0 %v24903_v24  ;;  %v24969_v24 = vld [vmem:[%s33582_s5 + $0xa4c] ss:$16 sps:$4 sm:$0xff]   ;;  %v25026_v8 = vld [vmem:[%s33582_s5 + $0xb84] ss:$16 sps:$4 sm:$0xff]  }
 0x904   :  { %18139 = vmatpush1.bf16.msra.mxu1 %v24898_v2  ;;  %v24964_v2 = vld [vmem:[%s33582_s5 + $0xa40] ss:$16 sps:$4 sm:$0xff]  }
 0x905   :  { %18672 = vmatpush1.bf16.msra.mxu0 %v24901_v27  ;;  %18140 = vmatprep.subr.bf16.mxu1 %v24906_v34  ;;  %v24967_v27 = vld [vmem:[%s33582_s5 + $0xa48] ss:$16 sps:$4 sm:$0xff]   ;;  %v24972_v34 = vld [vmem:[%s33582_s5 + $0xa64] ss:$16 sps:$4 sm:$0xff]  }
 0x906   :  { %18673 = vmatprep.subr.bf16.mxu0 %v24909_v47  ;;  %v24975_v47 = vld [vmem:[%s33582_s5 + $0xa6c] ss:$16 sps:$4 sm:$0xff]  }
 0x908   :  { %18141 = vmatpush1.bf16.msra.mxu1 %v24904_v46  ;;  %v24970_v46 = vld [vmem:[%s33582_s5 + $0xa60] ss:$16 sps:$4 sm:$0xff]  }
 0x909   :  { %18674 = vmatpush1.bf16.msra.mxu0 %v24907_v54  ;;  %18142 = vmatprep.subr.bf16.mxu1 %v24912_v60  ;;  %v24973_v54 = vld [vmem:[%s33582_s5 + $0xa68] ss:$16 sps:$4 sm:$0xff]   ;;  %v24978_v60 = vld [vmem:[%s33582_s5 + $0xa84] ss:$16 sps:$4 sm:$0xff]  }
 0x90a   :  { %18675 = vmatprep.subr.bf16.mxu0 %v24915_v3  ;;  %v24981_v3 = vld [vmem:[%s33582_s5 + $0xa8c] ss:$16 sps:$4 sm:$0xff]  }
 0x90c   :  { %18143 = vmatpush1.bf16.msra.mxu1 %v24910_v7  ;;  %v24976_v7 = vld [vmem:[%s33582_s5 + $0xa80] ss:$16 sps:$4 sm:$0xff]  }
 0x90d   :  { %18676 = vmatpush1.bf16.msra.mxu0 %v24913_v56  ;;  %18144 = vmatprep.subr.bf16.mxu1 %v24918_v20  ;;  %v24979_v56 = vld [vmem:[%s33582_s5 + $0xa88] ss:$16 sps:$4 sm:$0xff]   ;;  %v24984_v20 = vld [vmem:[%s33582_s5 + $0xaa4] ss:$16 sps:$4 sm:$0xff]  }
 0x90e   :  { %18677 = vmatprep.subr.bf16.mxu0 %v24921_v16  ;;  %v24987_v16 = vld [vmem:[%s33582_s5 + $0xaac] ss:$16 sps:$4 sm:$0xff]  }
 0x910   :  { %18145 = vmatpush1.bf16.msra.mxu1 %v24916_v19  ;;  %v24982_v19 = vld [vmem:[%s33582_s5 + $0xaa0] ss:$16 sps:$4 sm:$0xff]  }
 0x911   :  { %18678 = vmatpush1.bf16.msra.mxu0 %v24919_v63  ;;  %18146 = vmatprep.subr.bf16.mxu1 %v24924_v17  ;;  %v24985_v63 = vld [vmem:[%s33582_s5 + $0xaa8] ss:$16 sps:$4 sm:$0xff]   ;;  %v24990_v17 = vld [vmem:[%s33582_s5 + $0xac4] ss:$16 sps:$4 sm:$0xff]  }
 0x912   :  { %18679 = vmatprep.subr.bf16.mxu0 %v24927_v1  ;;  %v24993_v1 = vld [vmem:[%s33582_s5 + $0xacc] ss:$16 sps:$4 sm:$0xff]  }
 0x914   :  { %18147 = vmatpush1.bf16.msra.mxu1 %v24922_v45  ;;  %v24988_v45 = vld [vmem:[%s33582_s5 + $0xac0] ss:$16 sps:$4 sm:$0xff]  }
 0x915   :  { %18680 = vmatpush1.bf16.msra.mxu0 %v24925_v32  ;;  %18148 = vmatprep.subr.bf16.mxu1 %v24930_v25  ;;  %v24991_v32 = vld [vmem:[%s33582_s5 + $0xac8] ss:$16 sps:$4 sm:$0xff]   ;;  %v24996_v25 = vld [vmem:[%s33582_s5 + $0xae4] ss:$16 sps:$4 sm:$0xff]  }
 0x916   :  { %18681 = vmatprep.subr.bf16.mxu0 %v24933_v13  ;;  %v24999_v13 = vld [vmem:[%s33582_s5 + $0xaec] ss:$16 sps:$4 sm:$0xff]  }
 0x918   :  { %18149 = vmatpush1.bf16.msra.mxu1 %v24928_v35  ;;  %v24994_v35 = vld [vmem:[%s33582_s5 + $0xae0] ss:$16 sps:$4 sm:$0xff]  }
 0x919   :  { %18682 = vmatpush1.bf16.msra.mxu0 %v24931_v44  ;;  %18150 = vmatprep.subr.bf16.mxu1 %v24936_v52  ;;  %v24997_v44 = vld [vmem:[%s33582_s5 + $0xae8] ss:$16 sps:$4 sm:$0xff]   ;;  %v25002_v52 = vld [vmem:[%s33582_s5 + $0xb04] ss:$16 sps:$4 sm:$0xff]  }
 0x91a   :  { %18683 = vmatprep.subr.bf16.mxu0 %v24939_v12  ;;  %v25005_v12 = vld [vmem:[%s33582_s5 + $0xb0c] ss:$16 sps:$4 sm:$0xff]  }
 0x91c   :  { %18151 = vmatpush1.bf16.msra.mxu1 %v24934_v15  ;;  %v25000_v15 = vld [vmem:[%s33582_s5 + $0xb00] ss:$16 sps:$4 sm:$0xff]  }
 0x91d   :  { %18684 = vmatpush1.bf16.msra.mxu0 %v24937_v28  ;;  %18152 = vmatprep.subr.bf16.mxu1 %v24942_v41  ;;  %v25003_v28 = vld [vmem:[%s33582_s5 + $0xb08] ss:$16 sps:$4 sm:$0xff]   ;;  %v25008_v41 = vld [vmem:[%s33582_s5 + $0xb24] ss:$16 sps:$4 sm:$0xff]  }
 0x91e   :  { %18685 = vmatprep.subr.bf16.mxu0 %v24945_v40  ;;  %v25011_v40 = vld [vmem:[%s33582_s5 + $0xb2c] ss:$16 sps:$4 sm:$0xff]  }
 0x920   :  { %18153 = vmatpush1.bf16.msra.mxu1 %v24940_v0  ;;  %v25006_v0 = vld [vmem:[%s33582_s5 + $0xb20] ss:$16 sps:$4 sm:$0xff]  }
 0x921   :  { %18686 = vmatpush1.bf16.msra.mxu0 %v24943_v50  ;;  %18154 = vmatprep.subr.bf16.mxu1 %v24948_v18  ;;  %v25009_v50 = vld [vmem:[%s33582_s5 + $0xb28] ss:$16 sps:$4 sm:$0xff]   ;;  %v25014_v18 = vld [vmem:[%s33582_s5 + $0xb44] ss:$16 sps:$4 sm:$0xff]  }
 0x922   :  { %18687 = vmatprep.subr.bf16.mxu0 %v24951_v49  ;;  %v25017_v49 = vld [vmem:[%s33582_s5 + $0xb4c] ss:$16 sps:$4 sm:$0xff]  }
 0x924   :  { %18155 = vmatpush1.bf16.msra.mxu1 %v24946_v21  ;;  %v25012_v21 = vld [vmem:[%s33582_s5 + $0xb40] ss:$16 sps:$4 sm:$0xff]  }
 0x925   :  { %18688 = vmatpush1.bf16.msra.mxu0 %v24949_v61  ;;  %18165 = vmatprep.subr.bf16.mxu1 %v24954_v5  ;;  %v25015_v61 = vld [vmem:[%s33582_s5 + $0xb48] ss:$16 sps:$4 sm:$0xff]   ;;  %v25023_v5 = vld [vmem:[%s33582_s5 + $0xb6c] ss:$16 sps:$4 sm:$0xff]  }
 0x926   :  { %18698 = vmatprep.subr.bf16.mxu0 %v24957_v10  ;;  %v25018_v10 = vld [vmem:[%s33582_s5 + $0xb60] ss:$16 sps:$4 sm:$0xff]  }
 0x927   :  { %18157 = vmatmul.mubr.bf16.vlgmr.msra.gmra.mrb[128].mxu1 %v13214_v4 }
 0x928   :  { %18690 = vmatmul.mubr.bf16.vlgmr.msra.gmra.mrb[56].mxu0 %v13214_v4  ;;  %18166 = vmatpush1.bf16.msra.mxu1 %v24952_v22  ;;  %v25021_v22 = vld [vmem:[%s33582_s5 + $0xb68] ss:$16 sps:$4 sm:$0xff]   ;;  %v25029_v4 = vld [vmem:[%s33582_s5 + $0xb8c] ss:$16 sps:$4 sm:$0xff]  }
 0x929   :  { %18197 = vmatprep.mubr.bf16.mxu1 %v13217_v33  ;;  %18699 = vmatpush1.bf16.msra.mxu0 %v24955_v53  ;;  %v25024_v53 = vld [vmem:[%s33582_s5 + $0xb80] ss:$16 sps:$4 sm:$0xff]  }
 0x92a   :  { %18730 = vmatprep.mubr.bf16.mxu0 %v13217_v33  ;;  %18167 = vmatprep.subr.bf16.mxu1 %v24960_v31  ;;  %v25027_v31 = vld [vmem:[%s33582_s5 + $0xb88] ss:$16 sps:$4 sm:$0xff]   ;;  %v25032_v33 = vld [vmem:[%s33582_s5 + $0xba4] ss:$16 sps:$4 sm:$0xff]  }
 0x92b   :  { %18700 = vmatprep.subr.bf16.mxu0 %v24963_v59  ;;  %v25035_v59 = vld [vmem:[%s33582_s5 + $0xbac] ss:$16 sps:$4 sm:$0xff]  }
 0x92c   :  { %18168 = vmatpush1.bf16.msra.mxu1 %v24958_v42  ;;  %v25030_v42 = vld [vmem:[%s33582_s5 + $0xba0] ss:$16 sps:$4 sm:$0xff]  }
 0x92d   :  { %18701 = vmatpush1.bf16.msra.mxu0 %v24961_v58  ;;  %18169 = vmatprep.subr.bf16.mxu1 %v24966_v43  ;;  %v25033_v58 = vld [vmem:[%s33582_s5 + $0xba8] ss:$16 sps:$4 sm:$0xff]   ;;  %v25038_v43 = vld [vmem:[%s33582_s5 + $0xbc4] ss:$16 sps:$4 sm:$0xff]  }
 0x92e   :  { %18702 = vmatprep.subr.bf16.mxu0 %v24969_v24  ;;  %v25041_v24 = vld [vmem:[%s33582_s5 + $0xbcc] ss:$16 sps:$4 sm:$0xff]  }
 0x930   :  { %18170 = vmatpush1.bf16.msra.mxu1 %v24964_v2  ;;  %v25036_v2 = vld [vmem:[%s33582_s5 + $0xbc0] ss:$16 sps:$4 sm:$0xff]  }
 0x931   :  { %18703 = vmatpush1.bf16.msra.mxu0 %v24967_v27  ;;  %18171 = vmatprep.subr.bf16.mxu1 %v24972_v34  ;;  %v25039_v27 = vld [vmem:[%s33582_s5 + $0xbc8] ss:$16 sps:$4 sm:$0xff]   ;;  %v25044_v34 = vld [vmem:[%s33582_s5 + $0xbe4] ss:$16 sps:$4 sm:$0xff]  }
 0x932   :  { %18704 = vmatprep.subr.bf16.mxu0 %v24975_v47  ;;  %v25047_v47 = vld [vmem:[%s33582_s5 + $0xbec] ss:$16 sps:$4 sm:$0xff]  }
 0x934   :  { %18172 = vmatpush1.bf16.msra.mxu1 %v24970_v46  ;;  %v22844_v46 = vunpack.i.h.bf16 %v31340_v48  ;;  %v25059_v48 = vld [vmem:[%s33582_s5 + $0xc2c] ss:$16 sps:$4 sm:$0xff]  }
 0x935   :  { %18705 = vmatpush1.bf16.msra.mxu0 %v24973_v54  ;;  %18173 = vmatprep.subr.bf16.mxu1 %v24978_v60  ;;  %v25042_v54 = vld [vmem:[%s33582_s5 + $0xbe0] ss:$16 sps:$4 sm:$0xff]   ;;  %v25045_v60 = vld [vmem:[%s33582_s5 + $0xbe8] ss:$16 sps:$4 sm:$0xff]  }
 0x936   :  { %18706 = vmatprep.subr.bf16.mxu0 %v24981_v3  ;;  %v25050_v3 = vld [vmem:[%s33582_s5 + $0xc04] ss:$16 sps:$4 sm:$0xff]  }
 0x938   :  { %18174 = vmatpush1.bf16.msra.mxu1 %v24976_v7  ;;  %v25053_v7 = vld [vmem:[%s33582_s5 + $0xc0c] ss:$16 sps:$4 sm:$0xff]  }
 0x939   :  { %18707 = vmatpush1.bf16.msra.mxu0 %v24979_v56  ;;  %18175 = vmatprep.subr.bf16.mxu1 %v24984_v20  ;;  %v25048_v56 = vld [vmem:[%s33582_s5 + $0xc00] ss:$16 sps:$4 sm:$0xff]   ;;  %v13121_v20 = vsel %vm158_vm5, %v22843_v6, %v22844_v46  ;;  %v25119_v46 = vld [vmem:[%s33582_s5 + $0xd6c] ss:$16 sps:$4 sm:$0xff]  }
 0x93a   :  { %18708 = vmatprep.subr.bf16.mxu0 %v24987_v16  ;;  %v13216_v16 = vpack.c.bf16 %v31377_v14, %v31377_v14  ;;  %v25054_v6 = vld [vmem:[%s33582_s5 + $0xc20] ss:$16 sps:$4 sm:$0xff]   ;;  %v25057_v14 = vld [vmem:[%s33582_s5 + $0xc28] ss:$16 sps:$4 sm:$0xff]  }
 0x93c   :  { %18176 = vmatpush1.bf16.msra.mxu1 %v24982_v19  ;;  %v25051_v19 = vld [vmem:[%s33582_s5 + $0xc08] ss:$16 sps:$4 sm:$0xff]  }
 0x93d   :  { %18709 = vmatpush1.bf16.msra.mxu0 %v24985_v63  ;;  %18177 = vmatprep.subr.bf16.mxu1 %v24990_v17  ;;  %v25056_v63 = vld [vmem:[%s33582_s5 + $0xc24] ss:$16 sps:$4 sm:$0xff]   ;;  %v13219_v17 = vpack.c.bf16 %v13121_v20, %v13121_v20  ;;  %v25123_v20 = vld [vmem:[%s33582_s5 + $0xd88] ss:$16 sps:$4 sm:$0xff]  }
 0x93e   :  { %18710 = vmatprep.subr.bf16.mxu0 %v24993_v1  ;;  %v25062_v1 = vld [vmem:[%s33582_s5 + $0xc44] ss:$16 sps:$4 sm:$0xff]  }
 0x940   :  { %18178 = vmatpush1.bf16.msra.mxu1 %v24988_v45  ;;  %v25065_v45 = vld [vmem:[%s33582_s5 + $0xc4c] ss:$16 sps:$4 sm:$0xff]  }
 0x941   :  { %18711 = vmatpush1.bf16.msra.mxu0 %v24991_v32  ;;  %18179 = vmatprep.subr.bf16.mxu1 %v24996_v25  ;;  %v25060_v32 = vld [vmem:[%s33582_s5 + $0xc40] ss:$16 sps:$4 sm:$0xff]   ;;  %v25063_v25 = vld [vmem:[%s33582_s5 + $0xc48] ss:$16 sps:$4 sm:$0xff]  }
 0x942   :  { %18712 = vmatprep.subr.bf16.mxu0 %v24999_v13  ;;  %v25068_v13 = vld [vmem:[%s33582_s5 + $0xc64] ss:$16 sps:$4 sm:$0xff]  }
 0x944   :  { %18180 = vmatpush1.bf16.msra.mxu1 %v24994_v35  ;;  %v25071_v35 = vld [vmem:[%s33582_s5 + $0xc6c] ss:$16 sps:$4 sm:$0xff]  }
 0x945   :  { %18713 = vmatpush1.bf16.msra.mxu0 %v24997_v44  ;;  %18181 = vmatprep.subr.bf16.mxu1 %v25002_v52  ;;  %v25066_v44 = vld [vmem:[%s33582_s5 + $0xc60] ss:$16 sps:$4 sm:$0xff]   ;;  %v25069_v52 = vld [vmem:[%s33582_s5 + $0xc68] ss:$16 sps:$4 sm:$0xff]  }
 0x946   :  { %18714 = vmatprep.subr.bf16.mxu0 %v25005_v12  ;;  %v25074_v12 = vld [vmem:[%s33582_s5 + $0xc84] ss:$16 sps:$4 sm:$0xff]  }
 0x948   :  { %18182 = vmatpush1.bf16.msra.mxu1 %v25000_v15  ;;  %v25077_v15 = vld [vmem:[%s33582_s5 + $0xc8c] ss:$16 sps:$4 sm:$0xff]  }
 0x949   :  { %18715 = vmatpush1.bf16.msra.mxu0 %v25003_v28  ;;  %18183 = vmatprep.subr.bf16.mxu1 %v25008_v41  ;;  %v25072_v28 = vld [vmem:[%s33582_s5 + $0xc80] ss:$16 sps:$4 sm:$0xff]   ;;  %v25075_v41 = vld [vmem:[%s33582_s5 + $0xc88] ss:$16 sps:$4 sm:$0xff]  }
 0x94a   :  { %18716 = vmatprep.subr.bf16.mxu0 %v25011_v40  ;;  %v25080_v40 = vld [vmem:[%s33582_s5 + $0xca4] ss:$16 sps:$4 sm:$0xff]  }
 0x94c   :  { %18184 = vmatpush1.bf16.msra.mxu1 %v25006_v0  ;;  %v25083_v0 = vld [vmem:[%s33582_s5 + $0xcac] ss:$16 sps:$4 sm:$0xff]  }
 0x94d   :  { %18717 = vmatpush1.bf16.msra.mxu0 %v25009_v50  ;;  %18185 = vmatprep.subr.bf16.mxu1 %v25014_v18  ;;  %v25078_v50 = vld [vmem:[%s33582_s5 + $0xca0] ss:$16 sps:$4 sm:$0xff]   ;;  %v25081_v18 = vld [vmem:[%s33582_s5 + $0xca8] ss:$16 sps:$4 sm:$0xff]  }
 0x94e   :  { %18718 = vmatprep.subr.bf16.mxu0 %v25017_v49  ;;  %v25086_v49 = vld [vmem:[%s33582_s5 + $0xcc4] ss:$16 sps:$4 sm:$0xff]  }
 0x950   :  { %18186 = vmatpush1.bf16.msra.mxu1 %v25012_v21  ;;  %v25089_v21 = vld [vmem:[%s33582_s5 + $0xccc] ss:$16 sps:$4 sm:$0xff]  }
 0x951   :  { %18719 = vmatpush1.bf16.msra.mxu0 %v25015_v61  ;;  %18187 = vmatprep.subr.bf16.mxu1 %v25020_v29  ;;  %v25084_v61 = vld [vmem:[%s33582_s5 + $0xcc0] ss:$16 sps:$4 sm:$0xff]   ;;  %v25087_v29 = vld [vmem:[%s33582_s5 + $0xcc8] ss:$16 sps:$4 sm:$0xff]  }
 0x952   :  { %18720 = vmatprep.subr.bf16.mxu0 %v25023_v5  ;;  %v25092_v5 = vld [vmem:[%s33582_s5 + $0xce4] ss:$16 sps:$4 sm:$0xff]  }
 0x954   :  { %18188 = vmatpush1.bf16.msra.mxu1 %v25018_v10  ;;  %v25095_v10 = vld [vmem:[%s33582_s5 + $0xcec] ss:$16 sps:$4 sm:$0xff]  }
 0x955   :  { %18721 = vmatpush1.bf16.msra.mxu0 %v25021_v22  ;;  %18189 = vmatprep.subr.bf16.mxu1 %v25026_v8  ;;  %v25090_v22 = vld [vmem:[%s33582_s5 + $0xce0] ss:$16 sps:$4 sm:$0xff]   ;;  %v25093_v8 = vld [vmem:[%s33582_s5 + $0xce8] ss:$16 sps:$4 sm:$0xff]  }
 0x956   :  { %18722 = vmatprep.subr.bf16.mxu0 %v25029_v4  ;;  %v25098_v4 = vld [vmem:[%s33582_s5 + $0xd04] ss:$16 sps:$4 sm:$0xff]  }
 0x958   :  { %18190 = vmatpush1.bf16.msra.mxu1 %v25024_v53  ;;  %v25101_v53 = vld [vmem:[%s33582_s5 + $0xd0c] ss:$16 sps:$4 sm:$0xff]  }
 0x959   :  { %18723 = vmatpush1.bf16.msra.mxu0 %v25027_v31  ;;  %18191 = vmatprep.subr.bf16.mxu1 %v25032_v33  ;;  %v25096_v31 = vld [vmem:[%s33582_s5 + $0xd00] ss:$16 sps:$4 sm:$0xff]   ;;  %v25099_v33 = vld [vmem:[%s33582_s5 + $0xd08] ss:$16 sps:$4 sm:$0xff]  }
 0x95a   :  { %18724 = vmatprep.subr.bf16.mxu0 %v25035_v59  ;;  %v25104_v59 = vld [vmem:[%s33582_s5 + $0xd24] ss:$16 sps:$4 sm:$0xff]  }
 0x95c   :  { %18192 = vmatpush1.bf16.msra.mxu1 %v25030_v42  ;;  %v25107_v42 = vld [vmem:[%s33582_s5 + $0xd2c] ss:$16 sps:$4 sm:$0xff]  }
 0x95d   :  { %18725 = vmatpush1.bf16.msra.mxu0 %v25033_v58  ;;  %18193 = vmatprep.subr.bf16.mxu1 %v25038_v43  ;;  %v25102_v58 = vld [vmem:[%s33582_s5 + $0xd20] ss:$16 sps:$4 sm:$0xff]   ;;  %v25105_v43 = vld [vmem:[%s33582_s5 + $0xd28] ss:$16 sps:$4 sm:$0xff]  }
 0x95e   :  { %18726 = vmatprep.subr.bf16.mxu0 %v25041_v24  ;;  %v25110_v24 = vld [vmem:[%s33582_s5 + $0xd44] ss:$16 sps:$4 sm:$0xff]  }
 0x960   :  { %18194 = vmatpush1.bf16.msra.mxu1 %v25036_v2  ;;  %v25113_v2 = vld [vmem:[%s33582_s5 + $0xd4c] ss:$16 sps:$4 sm:$0xff]  }
 0x961   :  { %18727 = vmatpush1.bf16.msra.mxu0 %v25039_v27  ;;  %18195 = vmatprep.subr.bf16.mxu1 %v25044_v34  ;;  %v25108_v27 = vld [vmem:[%s33582_s5 + $0xd40] ss:$16 sps:$4 sm:$0xff]   ;;  %v25111_v34 = vld [vmem:[%s33582_s5 + $0xd48] ss:$16 sps:$4 sm:$0xff]  }
 0x962   :  { %18728 = vmatprep.subr.bf16.mxu0 %v25047_v47  ;;  %v25116_v47 = vld [vmem:[%s33582_s5 + $0xd64] ss:$16 sps:$4 sm:$0xff]  }
 0x964   :  { %18196 = vmatpush1.bf16.msra.mxu1 %v25042_v54  ;;  %v25114_v54 = vld [vmem:[%s33582_s5 + $0xd60] ss:$16 sps:$4 sm:$0xff]  }
 0x965   :  { %18729 = vmatpush1.bf16.msra.mxu0 %v25045_v60  ;;  %18206 = vmatprep.subr.bf16.mxu1 %v25050_v3  ;;  %v25117_v60 = vld [vmem:[%s33582_s5 + $0xd68] ss:$16 sps:$4 sm:$0xff]   ;;  %v25122_v3 = vld [vmem:[%s33582_s5 + $0xd84] ss:$16 sps:$4 sm:$0xff]  }
 0x966   :  { %18739 = vmatprep.subr.bf16.mxu0 %v25053_v7  ;;  %v25125_v7 = vld [vmem:[%s33582_s5 + $0xd8c] ss:$16 sps:$4 sm:$0xff]  }
 0x967   :  { %18198 = vmatmul.mubr.bf16.vlgmr.msra.gmra.mrb[128].mxu1 %v13216_v16 }
 0x968   :  { %18731 = vmatmul.mubr.bf16.vlgmr.msra.gmra.mrb[56].mxu0 %v13216_v16  ;;  %18207 = vmatpush1.bf16.msra.mxu1 %v25048_v56  ;;  %v25120_v56 = vld [vmem:[%s33582_s5 + $0xd80] ss:$16 sps:$4 sm:$0xff]   ;;  %v25128_v16 = vld [vmem:[%s33582_s5 + $0xda4] ss:$16 sps:$4 sm:$0xff]  }
 0x969   :  { %18238 = vmatprep.mubr.bf16.mxu1 %v13219_v17  ;;  %18740 = vmatpush1.bf16.msra.mxu0 %v25051_v19  ;;  %v25131_v19 = vld [vmem:[%s33582_s5 + $0xdac] ss:$16 sps:$4 sm:$0xff]  }
 0x96a   :  { %18771 = vmatprep.mubr.bf16.mxu0 %v13219_v17  ;;  %18208 = vmatprep.subr.bf16.mxu1 %v25056_v63  ;;  %v25126_v63 = vld [vmem:[%s33582_s5 + $0xda0] ss:$16 sps:$4 sm:$0xff]   ;;  %v25129_v17 = vld [vmem:[%s33582_s5 + $0xda8] ss:$16 sps:$4 sm:$0xff]  }
 0x96b   :  { %18741 = vmatprep.subr.bf16.mxu0 %v25059_v48  ;;  %v25134_v48 = vld [vmem:[%s33582_s5 + $0xdc4] ss:$16 sps:$4 sm:$0xff]  }
 0x96c   :  { %18209 = vmatpush1.bf16.msra.mxu1 %v25054_v6  ;;  %v25137_v6 = vld [vmem:[%s33582_s5 + $0xdcc] ss:$16 sps:$4 sm:$0xff]  }
 0x96d   :  { %18742 = vmatpush1.bf16.msra.mxu0 %v25057_v14  ;;  %18210 = vmatprep.subr.bf16.mxu1 %v25062_v1  ;;  %v25132_v14 = vld [vmem:[%s33582_s5 + $0xdc0] ss:$16 sps:$4 sm:$0xff]   ;;  %v25135_v1 = vld [vmem:[%s33582_s5 + $0xdc8] ss:$16 sps:$4 sm:$0xff]  }
 0x96e   :  { %18743 = vmatprep.subr.bf16.mxu0 %v25065_v45  ;;  %v25140_v45 = vld [vmem:[%s33582_s5 + $0xde4] ss:$16 sps:$4 sm:$0xff]  }
 0x970   :  { %18211 = vmatpush1.bf16.msra.mxu1 %v25060_v32  ;;  %v25143_v32 = vld [vmem:[%s33582_s5 + $0xdec] ss:$16 sps:$4 sm:$0xff]  }
 0x971   :  { %18744 = vmatpush1.bf16.msra.mxu0 %v25063_v25  ;;  %18212 = vmatprep.subr.bf16.mxu1 %v25068_v13  ;;  %v32369_v25 = vrot.slane %v12997_v30, %v25979_v36  ;;  %v25138_v13 = vld [vmem:[%s33582_s5 + $0xde0] ss:$16 sps:$4 sm:$0xff]  }
 0x972   :  { %18745 = vmatprep.subr.bf16.mxu0 %v25071_v35  ;;  %v25141_v35 = vld [vmem:[%s33582_s5 + $0xde8] ss:$16 sps:$4 sm:$0xff]  }
 0x973   :  { %v13142_v30 = vcombine.high %v32369_v25, %v32369_v25 }
 0x974   :  { %18213 = vmatpush1.bf16.msra.mxu1 %v25066_v44  ;;  %v25146_v44 = vld [vmem:[%s33582_s5 + $0xe04] ss:$16 sps:$4 sm:$0xff]  }
 0x975   :  { %18746 = vmatpush1.bf16.msra.mxu0 %v25069_v52  ;;  %18214 = vmatprep.subr.bf16.mxu1 %v25074_v12  ;;  %v25144_v52 = vld [vmem:[%s33582_s5 + $0xe00] ss:$16 sps:$4 sm:$0xff]   ;;  %v13218_v12 = vpack.c.bf16 %v31366_v51, %v31366_v51 }
 0x976   :  { %18747 = vmatprep.subr.bf16.mxu0 %v25077_v15  ;;  %v25147_v15 = vld [vmem:[%s33582_s5 + $0xe08] ss:$16 sps:$4 sm:$0xff]   ;;  %v25150_v51 = vld [vmem:[%s33582_s5 + $0xe20] ss:$16 sps:$4 sm:$0xff]  }
 0x978   :  { %18215 = vmatpush1.bf16.msra.mxu1 %v25072_v28  ;;  %v25152_v28 = vld [vmem:[%s33582_s5 + $0xe24] ss:$16 sps:$4 sm:$0xff]  }
 0x979   :  { %18748 = vmatpush1.bf16.msra.mxu0 %v25075_v41  ;;  %18216 = vmatprep.subr.bf16.mxu1 %v25080_v40  ;;  %v13221_v41 = vpack.c.bf16 %v13142_v30, %v13142_v30  ;;  %v25155_v40 = vld [vmem:[%s33582_s5 + $0xe2c] ss:$16 sps:$4 sm:$0xff]   ;;  %v25224_v30 = vld [vmem:[%s33582_s5 + $0xfa4] ss:$16 sps:$4 sm:$0xff]  }
 0x97a   :  { %18749 = vmatprep.subr.bf16.mxu0 %v25083_v0  ;;  %v25153_v0 = vld [vmem:[%s33582_s5 + $0xe28] ss:$16 sps:$4 sm:$0xff]  }
 0x97c   :  { %18217 = vmatpush1.bf16.msra.mxu1 %v25078_v50  ;;  %v25158_v50 = vld [vmem:[%s33582_s5 + $0xe44] ss:$16 sps:$4 sm:$0xff]  }
 0x97d   :  { %18750 = vmatpush1.bf16.msra.mxu0 %v25081_v18  ;;  %18218 = vmatprep.subr.bf16.mxu1 %v25086_v49  ;;  %v25161_v18 = vld [vmem:[%s33582_s5 + $0xe4c] ss:$16 sps:$4 sm:$0xff]   ;;  %v25156_v49 = vld [vmem:[%s33582_s5 + $0xe40] ss:$16 sps:$4 sm:$0xff]  }
 0x97e   :  { %18751 = vmatprep.subr.bf16.mxu0 %v25089_v21  ;;  %v25159_v21 = vld [vmem:[%s33582_s5 + $0xe48] ss:$16 sps:$4 sm:$0xff]  }
 0x980   :  { %18219 = vmatpush1.bf16.msra.mxu1 %v25084_v61  ;;  %v25164_v61 = vld [vmem:[%s33582_s5 + $0xe64] ss:$16 sps:$4 sm:$0xff]  }
 0x981   :  { %18752 = vmatpush1.bf16.msra.mxu0 %v25087_v29  ;;  %18220 = vmatprep.subr.bf16.mxu1 %v25092_v5  ;;  %v25167_v29 = vld [vmem:[%s33582_s5 + $0xe6c] ss:$16 sps:$4 sm:$0xff]   ;;  %v25162_v5 = vld [vmem:[%s33582_s5 + $0xe60] ss:$16 sps:$4 sm:$0xff]  }
 0x982   :  { %18753 = vmatprep.subr.bf16.mxu0 %v25095_v10  ;;  %v25165_v10 = vld [vmem:[%s33582_s5 + $0xe68] ss:$16 sps:$4 sm:$0xff]  }
 0x984   :  { %18221 = vmatpush1.bf16.msra.mxu1 %v25090_v22  ;;  %v25170_v22 = vld [vmem:[%s33582_s5 + $0xe84] ss:$16 sps:$4 sm:$0xff]  }
 0x985   :  { %18754 = vmatpush1.bf16.msra.mxu0 %v25093_v8  ;;  %18222 = vmatprep.subr.bf16.mxu1 %v25098_v4  ;;  %v25173_v8 = vld [vmem:[%s33582_s5 + $0xe8c] ss:$16 sps:$4 sm:$0xff]   ;;  %v25168_v4 = vld [vmem:[%s33582_s5 + $0xe80] ss:$16 sps:$4 sm:$0xff]  }
 0x986   :  { %18755 = vmatprep.subr.bf16.mxu0 %v25101_v53  ;;  %v25171_v53 = vld [vmem:[%s33582_s5 + $0xe88] ss:$16 sps:$4 sm:$0xff]  }
 0x988   :  { %18223 = vmatpush1.bf16.msra.mxu1 %v25096_v31  ;;  %v25176_v31 = vld [vmem:[%s33582_s5 + $0xea4] ss:$16 sps:$4 sm:$0xff]  }
 0x989   :  { %18756 = vmatpush1.bf16.msra.mxu0 %v25099_v33  ;;  %18224 = vmatprep.subr.bf16.mxu1 %v25104_v59  ;;  %v25179_v33 = vld [vmem:[%s33582_s5 + $0xeac] ss:$16 sps:$4 sm:$0xff]   ;;  %v25174_v59 = vld [vmem:[%s33582_s5 + $0xea0] ss:$16 sps:$4 sm:$0xff]  }
 0x98a   :  { %18757 = vmatprep.subr.bf16.mxu0 %v25107_v42  ;;  %v25177_v42 = vld [vmem:[%s33582_s5 + $0xea8] ss:$16 sps:$4 sm:$0xff]  }
 0x98c   :  { %18225 = vmatpush1.bf16.msra.mxu1 %v25102_v58  ;;  %v25182_v58 = vld [vmem:[%s33582_s5 + $0xec4] ss:$16 sps:$4 sm:$0xff]  }
 0x98d   :  { %18758 = vmatpush1.bf16.msra.mxu0 %v25105_v43  ;;  %18226 = vmatprep.subr.bf16.mxu1 %v25110_v24  ;;  %v25185_v43 = vld [vmem:[%s33582_s5 + $0xecc] ss:$16 sps:$4 sm:$0xff]   ;;  %v25180_v24 = vld [vmem:[%s33582_s5 + $0xec0] ss:$16 sps:$4 sm:$0xff]  }
 0x98e   :  { %18759 = vmatprep.subr.bf16.mxu0 %v25113_v2  ;;  %v25183_v2 = vld [vmem:[%s33582_s5 + $0xec8] ss:$16 sps:$4 sm:$0xff]  }
 0x990   :  { %18227 = vmatpush1.bf16.msra.mxu1 %v25108_v27  ;;  %v25188_v27 = vld [vmem:[%s33582_s5 + $0xee4] ss:$16 sps:$4 sm:$0xff]  }
 0x991   :  { %18760 = vmatpush1.bf16.msra.mxu0 %v25111_v34  ;;  %18228 = vmatprep.subr.bf16.mxu1 %v25116_v47  ;;  %v25191_v34 = vld [vmem:[%s33582_s5 + $0xeec] ss:$16 sps:$4 sm:$0xff]   ;;  %v25186_v47 = vld [vmem:[%s33582_s5 + $0xee0] ss:$16 sps:$4 sm:$0xff]  }
 0x992   :  { %18761 = vmatprep.subr.bf16.mxu0 %v25119_v46  ;;  %v25189_v46 = vld [vmem:[%s33582_s5 + $0xee8] ss:$16 sps:$4 sm:$0xff]  }
 0x994   :  { %18229 = vmatpush1.bf16.msra.mxu1 %v25114_v54  ;;  %v25194_v54 = vld [vmem:[%s33582_s5 + $0xf04] ss:$16 sps:$4 sm:$0xff]  }
 0x995   :  { %18762 = vmatpush1.bf16.msra.mxu0 %v25117_v60  ;;  %18230 = vmatprep.subr.bf16.mxu1 %v25122_v3  ;;  %v25197_v60 = vld [vmem:[%s33582_s5 + $0xf0c] ss:$16 sps:$4 sm:$0xff]   ;;  %v25192_v3 = vld [vmem:[%s33582_s5 + $0xf00] ss:$16 sps:$4 sm:$0xff]  }
 0x996   :  { %18763 = vmatprep.subr.bf16.mxu0 %v25125_v7  ;;  %v25195_v7 = vld [vmem:[%s33582_s5 + $0xf08] ss:$16 sps:$4 sm:$0xff]  }
 0x998   :  { %18231 = vmatpush1.bf16.msra.mxu1 %v25120_v56  ;;  %v25200_v56 = vld [vmem:[%s33582_s5 + $0xf24] ss:$16 sps:$4 sm:$0xff]  }
 0x999   :  { %18764 = vmatpush1.bf16.msra.mxu0 %v25123_v20  ;;  %18232 = vmatprep.subr.bf16.mxu1 %v25128_v16  ;;  %v25203_v20 = vld [vmem:[%s33582_s5 + $0xf2c] ss:$16 sps:$4 sm:$0xff]   ;;  %v25198_v16 = vld [vmem:[%s33582_s5 + $0xf20] ss:$16 sps:$4 sm:$0xff]  }
 0x99a   :  { %18765 = vmatprep.subr.bf16.mxu0 %v25131_v19  ;;  %v25201_v19 = vld [vmem:[%s33582_s5 + $0xf28] ss:$16 sps:$4 sm:$0xff]  }
 0x99c   :  { %18233 = vmatpush1.bf16.msra.mxu1 %v25126_v63  ;;  %v25206_v63 = vld [vmem:[%s33582_s5 + $0xf44] ss:$16 sps:$4 sm:$0xff]  }
 0x99d   :  { %18766 = vmatpush1.bf16.msra.mxu0 %v25129_v17  ;;  %18234 = vmatprep.subr.bf16.mxu1 %v25134_v48  ;;  %v25209_v17 = vld [vmem:[%s33582_s5 + $0xf4c] ss:$16 sps:$4 sm:$0xff]   ;;  %v25204_v48 = vld [vmem:[%s33582_s5 + $0xf40] ss:$16 sps:$4 sm:$0xff]  }
 0x99e   :  { %18767 = vmatprep.subr.bf16.mxu0 %v25137_v6  ;;  %v25207_v6 = vld [vmem:[%s33582_s5 + $0xf48] ss:$16 sps:$4 sm:$0xff]  }
 0x9a0   :  { %18235 = vmatpush1.bf16.msra.mxu1 %v25132_v14  ;;  %v25212_v14 = vld [vmem:[%s33582_s5 + $0xf64] ss:$16 sps:$4 sm:$0xff]  }
 0x9a1   :  { %18768 = vmatpush1.bf16.msra.mxu0 %v25135_v1  ;;  %18236 = vmatprep.subr.bf16.mxu1 %v25140_v45  ;;  %v25215_v1 = vld [vmem:[%s33582_s5 + $0xf6c] ss:$16 sps:$4 sm:$0xff]   ;;  %v25210_v45 = vld [vmem:[%s33582_s5 + $0xf60] ss:$16 sps:$4 sm:$0xff]  }
 0x9a2   :  { %18769 = vmatprep.subr.bf16.mxu0 %v25143_v32  ;;  %v25213_v32 = vld [vmem:[%s33582_s5 + $0xf68] ss:$16 sps:$4 sm:$0xff]  }
 0x9a4   :  { %18237 = vmatpush1.bf16.msra.mxu1 %v25138_v13  ;;  %v25218_v13 = vld [vmem:[%s33582_s5 + $0xf84] ss:$16 sps:$4 sm:$0xff]  }
 0x9a5   :  { %18770 = vmatpush1.bf16.msra.mxu0 %v25141_v35  ;;  %18247 = vmatprep.subr.bf16.mxu1 %v25146_v44  ;;  %v25221_v35 = vld [vmem:[%s33582_s5 + $0xf8c] ss:$16 sps:$4 sm:$0xff]   ;;  %v25216_v44 = vld [vmem:[%s33582_s5 + $0xf80] ss:$16 sps:$4 sm:$0xff]  }
 0x9a6   :  { %18780 = vmatprep.subr.bf16.mxu0 %v25149_v57  ;;  %v25219_v57 = vld [vmem:[%s33582_s5 + $0xf88] ss:$16 sps:$4 sm:$0xff]  }
 0x9a7   :  { %18239 = vmatmul.mubr.bf16.vlgmr.msra.gmra.mrb[128].mxu1 %v13218_v12 }
 0x9a8   :  { %18772 = vmatmul.mubr.bf16.vlgmr.msra.gmra.mrb[56].mxu0 %v13218_v12  ;;  %18248 = vmatpush1.bf16.msra.mxu1 %v25144_v52  ;;  %v25227_v52 = vld [vmem:[%s33582_s5 + $0xfac] ss:$16 sps:$4 sm:$0xff]   ;;  %v25222_v12 = vld [vmem:[%s33582_s5 + $0xfa0] ss:$16 sps:$4 sm:$0xff]  }
 0x9a9   :  { %18279 = vmatprep.mubr.bf16.mxu1 %v13221_v41  ;;  %18781 = vmatpush1.bf16.msra.mxu0 %v25147_v15  ;;  %v25225_v15 = vld [vmem:[%s33582_s5 + $0xfa8] ss:$16 sps:$4 sm:$0xff]  }
 0x9aa   :  { %18812 = vmatprep.mubr.bf16.mxu0 %v13221_v41  ;;  %18249 = vmatprep.subr.bf16.mxu1 %v25152_v28  ;;  %v25230_v28 = vld [vmem:[%s33582_s5 + $0xfc4] ss:$16 sps:$4 sm:$0xff]   ;;  %v21499_v41 = vcombine.low %v31489_v26, %v31489_v26 }
 0x9ab   :  { %18782 = vmatprep.subr.bf16.mxu0 %v25155_v40  ;;  %v25233_v40 = vld [vmem:[%s33582_s5 + $0xfcc] ss:$16 sps:$4 sm:$0xff]   ;;  %v25236_v26 = vld [vmem:[%s33582_s5 + $0xfe4] ss:$16 sps:$4 sm:$0xff]  }
 0x9ac   :  { %18250 = vmatpush1.bf16.msra.mxu1 %v25150_v51  ;;  %v25228_v51 = vld [vmem:[%s33582_s5 + $0xfc0] ss:$16 sps:$4 sm:$0xff]  }
 0x9ad   :  { %18783 = vmatpush1.bf16.msra.mxu0 %v25153_v0  ;;  %18251 = vmatprep.subr.bf16.mxu1 %v25158_v50  ;;  %v25231_v0 = vld [vmem:[%s33582_s5 + $0xfc8] ss:$16 sps:$4 sm:$0xff]   ;;  %v32567_v50 = vrot.slane %v21499_v41, %v25979_v36  ;;  %v25305_v41 = vld [vmem:[%s33582_s5 + $0x114c] ss:$16 sps:$4 sm:$0xff]  }
 0x9ae   :  { %18784 = vmatprep.subr.bf16.mxu0 %v25161_v18  ;;  %v25239_v18 = vld [vmem:[%s33582_s5 + $0xfec] ss:$16 sps:$4 sm:$0xff]  }
 0x9b0   :  { %18252 = vmatpush1.bf16.msra.mxu1 %v25156_v49  ;;  %v25234_v49 = vld [vmem:[%s33582_s5 + $0xfe0] ss:$16 sps:$4 sm:$0xff]  }
 0x9b1   :  { %18785 = vmatpush1.bf16.msra.mxu0 %v25159_v21  ;;  %18253 = vmatprep.subr.bf16.mxu1 %v25164_v61  ;;  %v32575_v21 = vpop.permute.xlu1 %13166  ;;  %v25237_v61 = vld [vmem:[%s33582_s5 + $0xfe8] ss:$16 sps:$4 sm:$0xff]  }
 0x9b2   :  { %18786 = vmatprep.subr.bf16.mxu0 %v25167_v29  ;;  %v25242_v29 = vld [vmem:[%s33582_s5 + $0x1004] ss:$16 sps:$4 sm:$0xff]  }
 0x9b4   :  { %18254 = vmatpush1.bf16.msra.mxu1 %v25162_v5  ;;  %v13143_v5 = vcombine.high %v32567_v50, %v32567_v50 }
 0x9b5   :  { %18787 = vmatpush1.bf16.msra.mxu0 %v25165_v10  ;;  %18255 = vmatprep.subr.bf16.mxu1 %v25170_v22  ;;  %v25245_v10 = vld [vmem:[%s33582_s5 + $0x100c] ss:$16 sps:$4 sm:$0xff]  }
 0x9b6   :  { %18788 = vmatprep.subr.bf16.mxu0 %v25173_v8  ;;  %v13205_v22 = vsel %vm158_vm5, %v13143_v5, %v32575_v21  ;;  %v25240_v8 = vld [vmem:[%s33582_s5 + $0x1000] ss:$16 sps:$4 sm:$0xff]  }
 0x9b7   :  { %v25312_v5 = vld [vmem:[%s33582_s5 + $0x1180] ss:$16 sps:$4 sm:$0xff]  }
 0x9b8   :  { %18256 = vmatpush1.bf16.msra.mxu1 %v25168_v4  ;;  %v13220_v4 = vpack.c.bf16 %v32369_v25, %v32369_v25  ;;  %v25246_v25 = vld [vmem:[%s33582_s5 + $0x1020] ss:$16 sps:$4 sm:$0xff]  }
 0x9b9   :  { %18789 = vmatpush1.bf16.msra.mxu0 %v25171_v53  ;;  %18257 = vmatprep.subr.bf16.mxu1 %v25176_v31  ;;  %v25243_v53 = vld [vmem:[%s33582_s5 + $0x1008] ss:$16 sps:$4 sm:$0xff]   ;;  %v25248_v31 = vld [vmem:[%s33582_s5 + $0x1024] ss:$16 sps:$4 sm:$0xff]  }
 0x9ba   :  { %18790 = vmatprep.subr.bf16.mxu0 %v25179_v33  ;;  %v13223_v33 = vpack.c.bf16 %v13205_v22, %v13205_v22  ;;  %v25320_v22 = vld [vmem:[%s33582_s5 + $0x11a4] ss:$16 sps:$4 sm:$0xff]  }
 0x9bc   :  { %18258 = vmatpush1.bf16.msra.mxu1 %v25174_v59  ;;  %v25251_v59 = vld [vmem:[%s33582_s5 + $0x102c] ss:$16 sps:$4 sm:$0xff]  }
 0x9bd   :  { %18791 = vmatpush1.bf16.msra.mxu0 %v25177_v42  ;;  %18259 = vmatprep.subr.bf16.mxu1 %v25182_v58  ;;  %v25249_v42 = vld [vmem:[%s33582_s5 + $0x1028] ss:$16 sps:$4 sm:$0xff]   ;;  %v25254_v58 = vld [vmem:[%s33582_s5 + $0x1044] ss:$16 sps:$4 sm:$0xff]  }
 0x9be   :  { %18792 = vmatprep.subr.bf16.mxu0 %v25185_v43  ;;  %v25257_v43 = vld [vmem:[%s33582_s5 + $0x104c] ss:$16 sps:$4 sm:$0xff]  }
 0x9c0   :  { %18260 = vmatpush1.bf16.msra.mxu1 %v25180_v24  ;;  %v25252_v24 = vld [vmem:[%s33582_s5 + $0x1040] ss:$16 sps:$4 sm:$0xff]  }
 0x9c1   :  { %18793 = vmatpush1.bf16.msra.mxu0 %v25183_v2  ;;  %18261 = vmatprep.subr.bf16.mxu1 %v25188_v27  ;;  %v25255_v2 = vld [vmem:[%s33582_s5 + $0x1048] ss:$16 sps:$4 sm:$0xff]   ;;  %v25260_v27 = vld [vmem:[%s33582_s5 + $0x1064] ss:$16 sps:$4 sm:$0xff]  }
 0x9c2   :  { %18794 = vmatprep.subr.bf16.mxu0 %v25191_v34  ;;  %v25263_v34 = vld [vmem:[%s33582_s5 + $0x106c] ss:$16 sps:$4 sm:$0xff]  }
 0x9c4   :  { %18262 = vmatpush1.bf16.msra.mxu1 %v25186_v47  ;;  %v25258_v47 = vld [vmem:[%s33582_s5 + $0x1060] ss:$16 sps:$4 sm:$0xff]  }
 0x9c5   :  { %18795 = vmatpush1.bf16.msra.mxu0 %v25189_v46  ;;  %18263 = vmatprep.subr.bf16.mxu1 %v25194_v54  ;;  %v25261_v46 = vld [vmem:[%s33582_s5 + $0x1068] ss:$16 sps:$4 sm:$0xff]   ;;  %v25266_v54 = vld [vmem:[%s33582_s5 + $0x1084] ss:$16 sps:$4 sm:$0xff]  }
 0x9c6   :  { %18796 = vmatprep.subr.bf16.mxu0 %v25197_v60  ;;  %v25269_v60 = vld [vmem:[%s33582_s5 + $0x108c] ss:$16 sps:$4 sm:$0xff]  }
 0x9c8   :  { %18264 = vmatpush1.bf16.msra.mxu1 %v25192_v3  ;;  %v25264_v3 = vld [vmem:[%s33582_s5 + $0x1080] ss:$16 sps:$4 sm:$0xff]  }
 0x9c9   :  { %18797 = vmatpush1.bf16.msra.mxu0 %v25195_v7  ;;  %18265 = vmatprep.subr.bf16.mxu1 %v25200_v56  ;;  %v25267_v7 = vld [vmem:[%s33582_s5 + $0x1088] ss:$16 sps:$4 sm:$0xff]   ;;  %v25272_v56 = vld [vmem:[%s33582_s5 + $0x10a4] ss:$16 sps:$4 sm:$0xff]  }
 0x9ca   :  { %18798 = vmatprep.subr.bf16.mxu0 %v25203_v20  ;;  %v25275_v20 = vld [vmem:[%s33582_s5 + $0x10ac] ss:$16 sps:$4 sm:$0xff]  }
 0x9cc   :  { %18266 = vmatpush1.bf16.msra.mxu1 %v25198_v16  ;;  %v25270_v16 = vld [vmem:[%s33582_s5 + $0x10a0] ss:$16 sps:$4 sm:$0xff]  }
 0x9cd   :  { %18799 = vmatpush1.bf16.msra.mxu0 %v25201_v19  ;;  %18267 = vmatprep.subr.bf16.mxu1 %v25206_v63  ;;  %v25273_v19 = vld [vmem:[%s33582_s5 + $0x10a8] ss:$16 sps:$4 sm:$0xff]   ;;  %v25278_v63 = vld [vmem:[%s33582_s5 + $0x10c4] ss:$16 sps:$4 sm:$0xff]  }
 0x9ce   :  { %18800 = vmatprep.subr.bf16.mxu0 %v25209_v17  ;;  %v25281_v17 = vld [vmem:[%s33582_s5 + $0x10cc] ss:$16 sps:$4 sm:$0xff]  }
 0x9d0   :  { %18268 = vmatpush1.bf16.msra.mxu1 %v25204_v48  ;;  %v25276_v48 = vld [vmem:[%s33582_s5 + $0x10c0] ss:$16 sps:$4 sm:$0xff]  }
 0x9d1   :  { %18801 = vmatpush1.bf16.msra.mxu0 %v25207_v6  ;;  %18269 = vmatprep.subr.bf16.mxu1 %v25212_v14  ;;  %v25279_v6 = vld [vmem:[%s33582_s5 + $0x10c8] ss:$16 sps:$4 sm:$0xff]   ;;  %v25284_v14 = vld [vmem:[%s33582_s5 + $0x10e4] ss:$16 sps:$4 sm:$0xff]  }
 0x9d2   :  { %18802 = vmatprep.subr.bf16.mxu0 %v25215_v1  ;;  %v25287_v1 = vld [vmem:[%s33582_s5 + $0x10ec] ss:$16 sps:$4 sm:$0xff]  }
 0x9d4   :  { %18270 = vmatpush1.bf16.msra.mxu1 %v25210_v45  ;;  %v25282_v45 = vld [vmem:[%s33582_s5 + $0x10e0] ss:$16 sps:$4 sm:$0xff]  }
 0x9d5   :  { %18803 = vmatpush1.bf16.msra.mxu0 %v25213_v32  ;;  %18271 = vmatprep.subr.bf16.mxu1 %v25218_v13  ;;  %v25285_v32 = vld [vmem:[%s33582_s5 + $0x10e8] ss:$16 sps:$4 sm:$0xff]   ;;  %v25290_v13 = vld [vmem:[%s33582_s5 + $0x1104] ss:$16 sps:$4 sm:$0xff]  }
 0x9d6   :  { %18804 = vmatprep.subr.bf16.mxu0 %v25221_v35  ;;  %v25293_v35 = vld [vmem:[%s33582_s5 + $0x110c] ss:$16 sps:$4 sm:$0xff]  }
 0x9d8   :  { %18272 = vmatpush1.bf16.msra.mxu1 %v25216_v44  ;;  %v25288_v44 = vld [vmem:[%s33582_s5 + $0x1100] ss:$16 sps:$4 sm:$0xff]  }
 0x9d9   :  { %18805 = vmatpush1.bf16.msra.mxu0 %v25219_v57  ;;  %18273 = vmatprep.subr.bf16.mxu1 %v25224_v30  ;;  %v25291_v57 = vld [vmem:[%s33582_s5 + $0x1108] ss:$16 sps:$4 sm:$0xff]   ;;  %v25296_v30 = vld [vmem:[%s33582_s5 + $0x1124] ss:$16 sps:$4 sm:$0xff]  }
 0x9da   :  { %18806 = vmatprep.subr.bf16.mxu0 %v25227_v52  ;;  %v25299_v52 = vld [vmem:[%s33582_s5 + $0x112c] ss:$16 sps:$4 sm:$0xff]  }
 0x9dc   :  { %18274 = vmatpush1.bf16.msra.mxu1 %v25222_v12  ;;  %v25294_v12 = vld [vmem:[%s33582_s5 + $0x1120] ss:$16 sps:$4 sm:$0xff]  }
 0x9dd   :  { %18807 = vmatpush1.bf16.msra.mxu0 %v25225_v15  ;;  %18275 = vmatprep.subr.bf16.mxu1 %v25230_v28  ;;  %v25297_v15 = vld [vmem:[%s33582_s5 + $0x1128] ss:$16 sps:$4 sm:$0xff]   ;;  %v25302_v28 = vld [vmem:[%s33582_s5 + $0x1144] ss:$16 sps:$4 sm:$0xff]  }
 0x9de   :  { %18808 = vmatprep.subr.bf16.mxu0 %v25233_v40  ;;  %v25300_v40 = vld [vmem:[%s33582_s5 + $0x1140] ss:$16 sps:$4 sm:$0xff]  }
 0x9e0   :  { %18276 = vmatpush1.bf16.msra.mxu1 %v25228_v51  ;;  %v25303_v51 = vld [vmem:[%s33582_s5 + $0x1148] ss:$16 sps:$4 sm:$0xff]  }
 0x9e1   :  { %18809 = vmatpush1.bf16.msra.mxu0 %v25231_v0  ;;  %18277 = vmatprep.subr.bf16.mxu1 %v25236_v26  ;;  %v25308_v0 = vld [vmem:[%s33582_s5 + $0x1164] ss:$16 sps:$4 sm:$0xff]   ;;  %v25311_v26 = vld [vmem:[%s33582_s5 + $0x116c] ss:$16 sps:$4 sm:$0xff]  }
 0x9e2   :  { %18810 = vmatprep.subr.bf16.mxu0 %v25239_v18  ;;  %v25306_v18 = vld [vmem:[%s33582_s5 + $0x1160] ss:$16 sps:$4 sm:$0xff]  }
 0x9e4   :  { %18278 = vmatpush1.bf16.msra.mxu1 %v25234_v49  ;;  %v25309_v49 = vld [vmem:[%s33582_s5 + $0x1168] ss:$16 sps:$4 sm:$0xff]  }
 0x9e5   :  { %18811 = vmatpush1.bf16.msra.mxu0 %v25237_v61  ;;  %18288 = vmatprep.subr.bf16.mxu1 %v25242_v29  ;;  %v25314_v61 = vld [vmem:[%s33582_s5 + $0x1184] ss:$16 sps:$4 sm:$0xff]   ;;  %v25317_v29 = vld [vmem:[%s33582_s5 + $0x118c] ss:$16 sps:$4 sm:$0xff]  }
 0x9e6   :  { %18821 = vmatprep.subr.bf16.mxu0 %v25245_v10  ;;  %v25315_v10 = vld [vmem:[%s33582_s5 + $0x1188] ss:$16 sps:$4 sm:$0xff]  }
 0x9e7   :  { %18280 = vmatmul.mubr.bf16.vlgmr.msra.gmra.mrb[128].mxu1 %v13220_v4 }
 0x9e8   :  { %18813 = vmatmul.mubr.bf16.vlgmr.msra.gmra.mrb[56].mxu0 %v13220_v4  ;;  %18289 = vmatpush1.bf16.msra.mxu1 %v25240_v8  ;;  %v25323_v8 = vld [vmem:[%s33582_s5 + $0x11ac] ss:$16 sps:$4 sm:$0xff]   ;;  %v25318_v4 = vld [vmem:[%s33582_s5 + $0x11a0] ss:$16 sps:$4 sm:$0xff]  }
 0x9e9   :  { %18320 = vmatprep.mubr.bf16.mxu1 %v13223_v33  ;;  %18822 = vmatpush1.bf16.msra.mxu0 %v25243_v53  ;;  %v25321_v53 = vld [vmem:[%s33582_s5 + $0x11a8] ss:$16 sps:$4 sm:$0xff]  }
 0x9ea   :  { %18853 = vmatprep.mubr.bf16.mxu0 %v13223_v33  ;;  %18290 = vmatprep.subr.bf16.mxu1 %v25248_v31  ;;  %v25326_v31 = vld [vmem:[%s33582_s5 + $0x11c4] ss:$16 sps:$4 sm:$0xff]   ;;  %v25329_v33 = vld [vmem:[%s33582_s5 + $0x11cc] ss:$16 sps:$4 sm:$0xff]  }
 0x9eb   :  { %18823 = vmatprep.subr.bf16.mxu0 %v25251_v59  ;;  %v25324_v59 = vld [vmem:[%s33582_s5 + $0x11c0] ss:$16 sps:$4 sm:$0xff]  }
 0x9ec   :  { %18291 = vmatpush1.bf16.msra.mxu1 %v25246_v25  ;;  %v32763_v25 = vpop.permute.xlu0 %22846 }
 0x9ed   :  { %18824 = vmatpush1.bf16.msra.mxu0 %v25249_v42  ;;  %18292 = vmatprep.subr.bf16.mxu1 %v25254_v58  ;;  %v25327_v42 = vld [vmem:[%s33582_s5 + $0x11c8] ss:$16 sps:$4 sm:$0xff]   ;;  %v25332_v58 = vld [vmem:[%s33582_s5 + $0x11e4] ss:$16 sps:$4 sm:$0xff]  }
 0x9ee   :  { %18825 = vmatprep.subr.bf16.mxu0 %v25257_v43  ;;  %v25335_v43 = vld [vmem:[%s33582_s5 + $0x11ec] ss:$16 sps:$4 sm:$0xff]  }
 0x9f0   :  { %18293 = vmatpush1.bf16.msra.mxu1 %v25252_v24  ;;  %v22849_v24 = vunpack.i.h.bf16 %v32763_v25 }
 0x9f1   :  { %18826 = vmatpush1.bf16.msra.mxu0 %v25255_v2  ;;  %18294 = vmatprep.subr.bf16.mxu1 %v25260_v27  ;;  %v22848_v2 = vunpack.i.l.bf16 %v32763_v25  ;;  %v25330_v27 = vld [vmem:[%s33582_s5 + $0x11e0] ss:$16 sps:$4 sm:$0xff]   ;;  %v25531_v25 = vld [vmem:[%s33582_s5 + $0x1608] ss:$16 sps:$4 sm:$0xff]  }
 0x9f2   :  { %18827 = vmatprep.subr.bf16.mxu0 %v25263_v34  ;;  %v25333_v34 = vld [vmem:[%s33582_s5 + $0x11e8] ss:$16 sps:$4 sm:$0xff]  }
 0x9f4   :  { %18295 = vmatpush1.bf16.msra.mxu1 %v25258_v47  ;;  %v25338_v47 = vld [vmem:[%s33582_s5 + $0x1204] ss:$16 sps:$4 sm:$0xff]  }
 0x9f5   :  { %18828 = vmatpush1.bf16.msra.mxu0 %v25261_v46  ;;  %18296 = vmatprep.subr.bf16.mxu1 %v25266_v54  ;;  %v25341_v46 = vld [vmem:[%s33582_s5 + $0x120c] ss:$16 sps:$4 sm:$0xff]   ;;  %v25336_v54 = vld [vmem:[%s33582_s5 + $0x1200] ss:$16 sps:$4 sm:$0xff]  }
 0x9f6   :  { %18829 = vmatprep.subr.bf16.mxu0 %v25269_v60  ;;  %v13175_v60 = vsel %vm158_vm5, %v22848_v2, %v22849_v24 }
 0x9f8   :  { %18297 = vmatpush1.bf16.msra.mxu1 %v25264_v3  ;;  %v13222_v3 = vpack.c.bf16 %v32567_v50, %v32567_v50  ;;  %v25342_v50 = vld [vmem:[%s33582_s5 + $0x1220] ss:$16 sps:$4 sm:$0xff]  }
 0x9f9   :  { %18830 = vmatpush1.bf16.msra.mxu0 %v25267_v7  ;;  %18298 = vmatprep.subr.bf16.mxu1 %v25272_v56  ;;  %v25339_v7 = vld [vmem:[%s33582_s5 + $0x1208] ss:$16 sps:$4 sm:$0xff]   ;;  %v25344_v56 = vld [vmem:[%s33582_s5 + $0x1224] ss:$16 sps:$4 sm:$0xff]  }
 0x9fa   :  { %18831 = vmatprep.subr.bf16.mxu0 %v25275_v20  ;;  %v13225_v20 = vpack.c.bf16 %v13175_v60, %v13175_v60  ;;  %v25411_v60 = vld [vmem:[%s33582_s5 + $0x1388] ss:$16 sps:$4 sm:$0xff]  }
 0x9fc   :  { %18299 = vmatpush1.bf16.msra.mxu1 %v25270_v16  ;;  %v25347_v16 = vld [vmem:[%s33582_s5 + $0x122c] ss:$16 sps:$4 sm:$0xff]  }
 0x9fd   :  { %18832 = vmatpush1.bf16.msra.mxu0 %v25273_v19  ;;  %18300 = vmatprep.subr.bf16.mxu1 %v25278_v63  ;;  %v25345_v19 = vld [vmem:[%s33582_s5 + $0x1228] ss:$16 sps:$4 sm:$0xff]   ;;  %v25350_v63 = vld [vmem:[%s33582_s5 + $0x1244] ss:$16 sps:$4 sm:$0xff]  }
 0x9fe   :  { %18833 = vmatprep.subr.bf16.mxu0 %v25281_v17  ;;  %v25353_v17 = vld [vmem:[%s33582_s5 + $0x124c] ss:$16 sps:$4 sm:$0xff]  }
 0xa00   :  { %18301 = vmatpush1.bf16.msra.mxu1 %v25276_v48  ;;  %v25348_v48 = vld [vmem:[%s33582_s5 + $0x1240] ss:$16 sps:$4 sm:$0xff]  }
 0xa01   :  { %18834 = vmatpush1.bf16.msra.mxu0 %v25279_v6  ;;  %18302 = vmatprep.subr.bf16.mxu1 %v25284_v14  ;;  %v25351_v6 = vld [vmem:[%s33582_s5 + $0x1248] ss:$16 sps:$4 sm:$0xff]   ;;  %v25356_v14 = vld [vmem:[%s33582_s5 + $0x1264] ss:$16 sps:$4 sm:$0xff]  }
 0xa02   :  { %18835 = vmatprep.subr.bf16.mxu0 %v25287_v1  ;;  %v25359_v1 = vld [vmem:[%s33582_s5 + $0x126c] ss:$16 sps:$4 sm:$0xff]  }
 0xa04   :  { %18303 = vmatpush1.bf16.msra.mxu1 %v25282_v45  ;;  %v25354_v45 = vld [vmem:[%s33582_s5 + $0x1260] ss:$16 sps:$4 sm:$0xff]  }
 0xa05   :  { %18836 = vmatpush1.bf16.msra.mxu0 %v25285_v32  ;;  %18304 = vmatprep.subr.bf16.mxu1 %v25290_v13  ;;  %v25357_v32 = vld [vmem:[%s33582_s5 + $0x1268] ss:$16 sps:$4 sm:$0xff]   ;;  %v25362_v13 = vld [vmem:[%s33582_s5 + $0x1284] ss:$16 sps:$4 sm:$0xff]  }
 0xa06   :  { %18837 = vmatprep.subr.bf16.mxu0 %v25293_v35  ;;  %v25365_v35 = vld [vmem:[%s33582_s5 + $0x128c] ss:$16 sps:$4 sm:$0xff]  }
 0xa08   :  { %18305 = vmatpush1.bf16.msra.mxu1 %v25288_v44  ;;  %v25360_v44 = vld [vmem:[%s33582_s5 + $0x1280] ss:$16 sps:$4 sm:$0xff]  }
 0xa09   :  { %18838 = vmatpush1.bf16.msra.mxu0 %v25291_v57  ;;  %18306 = vmatprep.subr.bf16.mxu1 %v25296_v30  ;;  %v25363_v57 = vld [vmem:[%s33582_s5 + $0x1288] ss:$16 sps:$4 sm:$0xff]   ;;  %v25368_v30 = vld [vmem:[%s33582_s5 + $0x12a4] ss:$16 sps:$4 sm:$0xff]  }
 0xa0a   :  { %18839 = vmatprep.subr.bf16.mxu0 %v25299_v52  ;;  %v25371_v52 = vld [vmem:[%s33582_s5 + $0x12ac] ss:$16 sps:$4 sm:$0xff]  }
 0xa0c   :  { %18307 = vmatpush1.bf16.msra.mxu1 %v25294_v12  ;;  %v25366_v12 = vld [vmem:[%s33582_s5 + $0x12a0] ss:$16 sps:$4 sm:$0xff]  }
 0xa0d   :  { %18840 = vmatpush1.bf16.msra.mxu0 %v25297_v15  ;;  %18308 = vmatprep.subr.bf16.mxu1 %v25302_v28  ;;  %v25369_v15 = vld [vmem:[%s33582_s5 + $0x12a8] ss:$16 sps:$4 sm:$0xff]   ;;  %v25374_v28 = vld [vmem:[%s33582_s5 + $0x12c4] ss:$16 sps:$4 sm:$0xff]  }
 0xa0e   :  { %18841 = vmatprep.subr.bf16.mxu0 %v25305_v41  ;;  %v25377_v41 = vld [vmem:[%s33582_s5 + $0x12cc] ss:$16 sps:$4 sm:$0xff]  }
 0xa10   :  { %18309 = vmatpush1.bf16.msra.mxu1 %v25300_v40  ;;  %v25372_v40 = vld [vmem:[%s33582_s5 + $0x12c0] ss:$16 sps:$4 sm:$0xff]  }
 0xa11   :  { %18842 = vmatpush1.bf16.msra.mxu0 %v25303_v51  ;;  %18310 = vmatprep.subr.bf16.mxu1 %v25308_v0  ;;  %v25375_v51 = vld [vmem:[%s33582_s5 + $0x12c8] ss:$16 sps:$4 sm:$0xff]   ;;  %v25380_v0 = vld [vmem:[%s33582_s5 + $0x12e4] ss:$16 sps:$4 sm:$0xff]  }
 0xa12   :  { %18843 = vmatprep.subr.bf16.mxu0 %v25311_v26  ;;  %v25383_v26 = vld [vmem:[%s33582_s5 + $0x12ec] ss:$16 sps:$4 sm:$0xff]  }
 0xa14   :  { %18311 = vmatpush1.bf16.msra.mxu1 %v25306_v18  ;;  %v25378_v18 = vld [vmem:[%s33582_s5 + $0x12e0] ss:$16 sps:$4 sm:$0xff]  }
 0xa15   :  { %18844 = vmatpush1.bf16.msra.mxu0 %v25309_v49  ;;  %18312 = vmatprep.subr.bf16.mxu1 %v25314_v61  ;;  %v25381_v49 = vld [vmem:[%s33582_s5 + $0x12e8] ss:$16 sps:$4 sm:$0xff]   ;;  %v25386_v61 = vld [vmem:[%s33582_s5 + $0x1304] ss:$16 sps:$4 sm:$0xff]  }
 0xa16   :  { %18845 = vmatprep.subr.bf16.mxu0 %v25317_v29  ;;  %v25389_v29 = vld [vmem:[%s33582_s5 + $0x130c] ss:$16 sps:$4 sm:$0xff]  }
 0xa18   :  { %18313 = vmatpush1.bf16.msra.mxu1 %v25312_v5  ;;  %v25384_v5 = vld [vmem:[%s33582_s5 + $0x1300] ss:$16 sps:$4 sm:$0xff]  }
 0xa19   :  { %18846 = vmatpush1.bf16.msra.mxu0 %v25315_v10  ;;  %18314 = vmatprep.subr.bf16.mxu1 %v25320_v22  ;;  %v25387_v10 = vld [vmem:[%s33582_s5 + $0x1308] ss:$16 sps:$4 sm:$0xff]   ;;  %v25392_v22 = vld [vmem:[%s33582_s5 + $0x1324] ss:$16 sps:$4 sm:$0xff]  }
 0xa1a   :  { %18847 = vmatprep.subr.bf16.mxu0 %v25323_v8  ;;  %v25395_v8 = vld [vmem:[%s33582_s5 + $0x132c] ss:$16 sps:$4 sm:$0xff]  }
 0xa1c   :  { %18315 = vmatpush1.bf16.msra.mxu1 %v25318_v4  ;;  %v25390_v4 = vld [vmem:[%s33582_s5 + $0x1320] ss:$16 sps:$4 sm:$0xff]  }
 0xa1d   :  { %18848 = vmatpush1.bf16.msra.mxu0 %v25321_v53  ;;  %18316 = vmatprep.subr.bf16.mxu1 %v25326_v31  ;;  %v25393_v53 = vld [vmem:[%s33582_s5 + $0x1328] ss:$16 sps:$4 sm:$0xff]   ;;  %v25398_v31 = vld [vmem:[%s33582_s5 + $0x1344] ss:$16 sps:$4 sm:$0xff]  }
 0xa1e   :  { %18849 = vmatprep.subr.bf16.mxu0 %v25329_v33  ;;  %v25401_v33 = vld [vmem:[%s33582_s5 + $0x134c] ss:$16 sps:$4 sm:$0xff]  }
 0xa20   :  { %18317 = vmatpush1.bf16.msra.mxu1 %v25324_v59  ;;  %v25396_v59 = vld [vmem:[%s33582_s5 + $0x1340] ss:$16 sps:$4 sm:$0xff]  }
 0xa21   :  { %18850 = vmatpush1.bf16.msra.mxu0 %v25327_v42  ;;  %18318 = vmatprep.subr.bf16.mxu1 %v25332_v58  ;;  %v25399_v42 = vld [vmem:[%s33582_s5 + $0x1348] ss:$16 sps:$4 sm:$0xff]   ;;  %v25404_v58 = vld [vmem:[%s33582_s5 + $0x1364] ss:$16 sps:$4 sm:$0xff]  }
 0xa22   :  { %18851 = vmatprep.subr.bf16.mxu0 %v25335_v43  ;;  %v25407_v43 = vld [vmem:[%s33582_s5 + $0x136c] ss:$16 sps:$4 sm:$0xff]  }
 0xa24   :  { %18319 = vmatpush1.bf16.msra.mxu1 %v25330_v27  ;;  %v25402_v27 = vld [vmem:[%s33582_s5 + $0x1360] ss:$16 sps:$4 sm:$0xff]  }
 0xa25   :  { %18852 = vmatpush1.bf16.msra.mxu0 %v25333_v34  ;;  %18329 = vmatprep.subr.bf16.mxu1 %v25338_v47  ;;  %v25405_v34 = vld [vmem:[%s33582_s5 + $0x1368] ss:$16 sps:$4 sm:$0xff]   ;;  %v25410_v47 = vld [vmem:[%s33582_s5 + $0x1384] ss:$16 sps:$4 sm:$0xff]  }
 0xa26   :  { %18862 = vmatprep.subr.bf16.mxu0 %v25341_v46  ;;  %v25413_v46 = vld [vmem:[%s33582_s5 + $0x138c] ss:$16 sps:$4 sm:$0xff]  }
 0xa27   :  { %18321 = vmatmul.mubr.bf16.vlgmr.msra.gmra.mrb[128].mxu1 %v13222_v3 }
 0xa28   :  { %18854 = vmatmul.mubr.bf16.vlgmr.msra.gmra.mrb[56].mxu0 %v13222_v3  ;;  %18330 = vmatpush1.bf16.msra.mxu1 %v25336_v54  ;;  %v25408_v54 = vld [vmem:[%s33582_s5 + $0x1380] ss:$16 sps:$4 sm:$0xff]   ;;  %v25416_v3 = vld [vmem:[%s33582_s5 + $0x13a4] ss:$16 sps:$4 sm:$0xff]  }
 0xa29   :  { %18361 = vmatprep.mubr.bf16.mxu1 %v13225_v20  ;;  %18863 = vmatpush1.bf16.msra.mxu0 %v25339_v7  ;;  %v25419_v7 = vld [vmem:[%s33582_s5 + $0x13ac] ss:$16 sps:$4 sm:$0xff]  }
 0xa2a   :  { %18894 = vmatprep.mubr.bf16.mxu0 %v13225_v20  ;;  %18331 = vmatprep.subr.bf16.mxu1 %v25344_v56  ;;  %v25414_v56 = vld [vmem:[%s33582_s5 + $0x13a0] ss:$16 sps:$4 sm:$0xff]   ;;  %v25417_v20 = vld [vmem:[%s33582_s5 + $0x13a8] ss:$16 sps:$4 sm:$0xff]  }
 0xa2b   :  { %18864 = vmatprep.subr.bf16.mxu0 %v25347_v16  ;;  %v25422_v16 = vld [vmem:[%s33582_s5 + $0x13c4] ss:$16 sps:$4 sm:$0xff]  }
 0xa2c   :  { %18332 = vmatpush1.bf16.msra.mxu1 %v25342_v50  ;;  %v25425_v50 = vld [vmem:[%s33582_s5 + $0x13cc] ss:$16 sps:$4 sm:$0xff]  }
 0xa2d   :  { %18865 = vmatpush1.bf16.msra.mxu0 %v25345_v19  ;;  %18333 = vmatprep.subr.bf16.mxu1 %v25350_v63  ;;  %v25420_v19 = vld [vmem:[%s33582_s5 + $0x13c0] ss:$16 sps:$4 sm:$0xff]   ;;  %v25423_v63 = vld [vmem:[%s33582_s5 + $0x13c8] ss:$16 sps:$4 sm:$0xff]  }
 0xa2e   :  { %18866 = vmatprep.subr.bf16.mxu0 %v25353_v17  ;;  %v25428_v17 = vld [vmem:[%s33582_s5 + $0x13e4] ss:$16 sps:$4 sm:$0xff]  }
 0xa30   :  { %18334 = vmatpush1.bf16.msra.mxu1 %v25348_v48  ;;  %v25431_v48 = vld [vmem:[%s33582_s5 + $0x13ec] ss:$16 sps:$4 sm:$0xff]  }
 0xa31   :  { %18867 = vmatpush1.bf16.msra.mxu0 %v25351_v6  ;;  %18335 = vmatprep.subr.bf16.mxu1 %v25356_v14  ;;  %v25426_v6 = vld [vmem:[%s33582_s5 + $0x13e0] ss:$16 sps:$4 sm:$0xff]   ;;  %v25429_v14 = vld [vmem:[%s33582_s5 + $0x13e8] ss:$16 sps:$4 sm:$0xff]  }
 0xa32   :  { %18868 = vmatprep.subr.bf16.mxu0 %v25359_v1  ;;  %v25434_v1 = vld [vmem:[%s33582_s5 + $0x1404] ss:$16 sps:$4 sm:$0xff]  }
 0xa34   :  { %18336 = vmatpush1.bf16.msra.mxu1 %v25354_v45  ;;  %v13174_v45 = vsel %vm158_vm5, %v32575_v21, %v22848_v2  ;;  %v25435_v21 = vld [vmem:[%s33582_s5 + $0x1408] ss:$16 sps:$4 sm:$0xff]   ;;  %v25440_v2 = vld [vmem:[%s33582_s5 + $0x1424] ss:$16 sps:$4 sm:$0xff]  }
 0xa35   :  { %18869 = vmatpush1.bf16.msra.mxu0 %v25357_v32  ;;  %18337 = vmatprep.subr.bf16.mxu1 %v25362_v13  ;;  %v25437_v32 = vld [vmem:[%s33582_s5 + $0x140c] ss:$16 sps:$4 sm:$0xff]   ;;  %v32995_v13 = vrot.slane %v13015_v11, %v25979_v36 }
 0xa36   :  { %18870 = vmatprep.subr.bf16.mxu0 %v25365_v35  ;;  %v25432_v35 = vld [vmem:[%s33582_s5 + $0x1400] ss:$16 sps:$4 sm:$0xff]   ;;  %v25443_v11 = vld [vmem:[%s33582_s5 + $0x142c] ss:$16 sps:$4 sm:$0xff]  }
 0xa37   :  { %v13227_v62 = vpack.c.bf16 %v32995_v13, %v32995_v13 }
 0xa38   :  { %18338 = vmatpush1.bf16.msra.mxu1 %v25360_v44  ;;  %v13224_v44 = vpack.c.bf16 %v13174_v45, %v13174_v45  ;;  %v25512_v45 = vld [vmem:[%s33582_s5 + $0x15a4] ss:$16 sps:$4 sm:$0xff]  }
 0xa39   :  { %18871 = vmatpush1.bf16.msra.mxu0 %v25363_v57  ;;  %18339 = vmatprep.subr.bf16.mxu1 %v25368_v30  ;;  %v25438_v57 = vld [vmem:[%s33582_s5 + $0x1420] ss:$16 sps:$4 sm:$0xff]   ;;  %v25441_v30 = vld [vmem:[%s33582_s5 + $0x1428] ss:$16 sps:$4 sm:$0xff]  }
 0xa3a   :  { %18872 = vmatprep.subr.bf16.mxu0 %v25371_v52  ;;  %v25446_v52 = vld [vmem:[%s33582_s5 + $0x1444] ss:$16 sps:$4 sm:$0xff]  }
 0xa3c   :  { %18340 = vmatpush1.bf16.msra.mxu1 %v25366_v12  ;;  %v25449_v12 = vld [vmem:[%s33582_s5 + $0x144c] ss:$16 sps:$4 sm:$0xff]  }
 0xa3d   :  { %18873 = vmatpush1.bf16.msra.mxu0 %v25369_v15  ;;  %18341 = vmatprep.subr.bf16.mxu1 %v25374_v28  ;;  %v25444_v15 = vld [vmem:[%s33582_s5 + $0x1440] ss:$16 sps:$4 sm:$0xff]   ;;  %v25447_v28 = vld [vmem:[%s33582_s5 + $0x1448] ss:$16 sps:$4 sm:$0xff]  }
 0xa3e   :  { %18874 = vmatprep.subr.bf16.mxu0 %v25377_v41  ;;  %v25452_v41 = vld [vmem:[%s33582_s5 + $0x1464] ss:$16 sps:$4 sm:$0xff]  }
 0xa40   :  { %18342 = vmatpush1.bf16.msra.mxu1 %v25372_v40  ;;  %v25455_v40 = vld [vmem:[%s33582_s5 + $0x146c] ss:$16 sps:$4 sm:$0xff]  }
 0xa41   :  { %18875 = vmatpush1.bf16.msra.mxu0 %v25375_v51  ;;  %18343 = vmatprep.subr.bf16.mxu1 %v25380_v0  ;;  %v25450_v51 = vld [vmem:[%s33582_s5 + $0x1460] ss:$16 sps:$4 sm:$0xff]   ;;  %v25453_v0 = vld [vmem:[%s33582_s5 + $0x1468] ss:$16 sps:$4 sm:$0xff]  }
 0xa42   :  { %18876 = vmatprep.subr.bf16.mxu0 %v25383_v26  ;;  %v25458_v26 = vld [vmem:[%s33582_s5 + $0x1484] ss:$16 sps:$4 sm:$0xff]  }
 0xa44   :  { %18344 = vmatpush1.bf16.msra.mxu1 %v25378_v18  ;;  %v25461_v18 = vld [vmem:[%s33582_s5 + $0x148c] ss:$16 sps:$4 sm:$0xff]  }
 0xa45   :  { %18877 = vmatpush1.bf16.msra.mxu0 %v25381_v49  ;;  %18345 = vmatprep.subr.bf16.mxu1 %v25386_v61  ;;  %v25456_v49 = vld [vmem:[%s33582_s5 + $0x1480] ss:$16 sps:$4 sm:$0xff]   ;;  %v25459_v61 = vld [vmem:[%s33582_s5 + $0x1488] ss:$16 sps:$4 sm:$0xff]  }
 0xa46   :  { %18878 = vmatprep.subr.bf16.mxu0 %v25389_v29  ;;  %v25464_v29 = vld [vmem:[%s33582_s5 + $0x14a4] ss:$16 sps:$4 sm:$0xff]  }
 0xa48   :  { %18346 = vmatpush1.bf16.msra.mxu1 %v25384_v5  ;;  %v25467_v5 = vld [vmem:[%s33582_s5 + $0x14ac] ss:$16 sps:$4 sm:$0xff]  }
 0xa49   :  { %18879 = vmatpush1.bf16.msra.mxu0 %v25387_v10  ;;  %18347 = vmatprep.subr.bf16.mxu1 %v25392_v22  ;;  %v25462_v10 = vld [vmem:[%s33582_s5 + $0x14a0] ss:$16 sps:$4 sm:$0xff]   ;;  %v25465_v22 = vld [vmem:[%s33582_s5 + $0x14a8] ss:$16 sps:$4 sm:$0xff]  }
 0xa4a   :  { %18880 = vmatprep.subr.bf16.mxu0 %v25395_v8  ;;  %v25470_v8 = vld [vmem:[%s33582_s5 + $0x14c4] ss:$16 sps:$4 sm:$0xff]  }
 0xa4c   :  { %18348 = vmatpush1.bf16.msra.mxu1 %v25390_v4  ;;  %v25473_v4 = vld [vmem:[%s33582_s5 + $0x14cc] ss:$16 sps:$4 sm:$0xff]  }
 0xa4d   :  { %18881 = vmatpush1.bf16.msra.mxu0 %v25393_v53  ;;  %18349 = vmatprep.subr.bf16.mxu1 %v25398_v31  ;;  %v25468_v53 = vld [vmem:[%s33582_s5 + $0x14c0] ss:$16 sps:$4 sm:$0xff]   ;;  %v25471_v31 = vld [vmem:[%s33582_s5 + $0x14c8] ss:$16 sps:$4 sm:$0xff]  }
 0xa4e   :  { %18882 = vmatprep.subr.bf16.mxu0 %v25401_v33  ;;  %v25476_v33 = vld [vmem:[%s33582_s5 + $0x14e4] ss:$16 sps:$4 sm:$0xff]  }
 0xa50   :  { %18350 = vmatpush1.bf16.msra.mxu1 %v25396_v59  ;;  %v25479_v59 = vld [vmem:[%s33582_s5 + $0x14ec] ss:$16 sps:$4 sm:$0xff]  }
 0xa51   :  { %18883 = vmatpush1.bf16.msra.mxu0 %v25399_v42  ;;  %18351 = vmatprep.subr.bf16.mxu1 %v25404_v58  ;;  %v25474_v42 = vld [vmem:[%s33582_s5 + $0x14e0] ss:$16 sps:$4 sm:$0xff]   ;;  %v25477_v58 = vld [vmem:[%s33582_s5 + $0x14e8] ss:$16 sps:$4 sm:$0xff]  }
 0xa52   :  { %18884 = vmatprep.subr.bf16.mxu0 %v25407_v43  ;;  %v25482_v43 = vld [vmem:[%s33582_s5 + $0x1504] ss:$16 sps:$4 sm:$0xff]  }
 0xa54   :  { %18352 = vmatpush1.bf16.msra.mxu1 %v25402_v27  ;;  %v25485_v27 = vld [vmem:[%s33582_s5 + $0x150c] ss:$16 sps:$4 sm:$0xff]  }
 0xa55   :  { %18885 = vmatpush1.bf16.msra.mxu0 %v25405_v34  ;;  %18353 = vmatprep.subr.bf16.mxu1 %v25410_v47  ;;  %v25480_v34 = vld [vmem:[%s33582_s5 + $0x1500] ss:$16 sps:$4 sm:$0xff]   ;;  %v25483_v47 = vld [vmem:[%s33582_s5 + $0x1508] ss:$16 sps:$4 sm:$0xff]  }
 0xa56   :  { %18886 = vmatprep.subr.bf16.mxu0 %v25413_v46  ;;  %v25488_v46 = vld [vmem:[%s33582_s5 + $0x1524] ss:$16 sps:$4 sm:$0xff]  }
 0xa58   :  { %18354 = vmatpush1.bf16.msra.mxu1 %v25408_v54  ;;  %v25491_v54 = vld [vmem:[%s33582_s5 + $0x152c] ss:$16 sps:$4 sm:$0xff]  }
 0xa59   :  { %18887 = vmatpush1.bf16.msra.mxu0 %v25411_v60  ;;  %18355 = vmatprep.subr.bf16.mxu1 %v25416_v3  ;;  %v25486_v60 = vld [vmem:[%s33582_s5 + $0x1520] ss:$16 sps:$4 sm:$0xff]   ;;  %v25489_v3 = vld [vmem:[%s33582_s5 + $0x1528] ss:$16 sps:$4 sm:$0xff]  }
 0xa5a   :  { %18888 = vmatprep.subr.bf16.mxu0 %v25419_v7  ;;  %v25494_v7 = vld [vmem:[%s33582_s5 + $0x1544] ss:$16 sps:$4 sm:$0xff]  }
 0xa5c   :  { %18356 = vmatpush1.bf16.msra.mxu1 %v25414_v56  ;;  %v25497_v56 = vld [vmem:[%s33582_s5 + $0x154c] ss:$16 sps:$4 sm:$0xff]  }
 0xa5d   :  { %18889 = vmatpush1.bf16.msra.mxu0 %v25417_v20  ;;  %18357 = vmatprep.subr.bf16.mxu1 %v25422_v16  ;;  %v25492_v20 = vld [vmem:[%s33582_s5 + $0x1540] ss:$16 sps:$4 sm:$0xff]   ;;  %v25495_v16 = vld [vmem:[%s33582_s5 + $0x1548] ss:$16 sps:$4 sm:$0xff]  }
 0xa5e   :  { %18890 = vmatprep.subr.bf16.mxu0 %v25425_v50  ;;  %v25500_v50 = vld [vmem:[%s33582_s5 + $0x1564] ss:$16 sps:$4 sm:$0xff]  }
 0xa60   :  { %18358 = vmatpush1.bf16.msra.mxu1 %v25420_v19  ;;  %v25503_v19 = vld [vmem:[%s33582_s5 + $0x156c] ss:$16 sps:$4 sm:$0xff]  }
 0xa61   :  { %18891 = vmatpush1.bf16.msra.mxu0 %v25423_v63  ;;  %18359 = vmatprep.subr.bf16.mxu1 %v25428_v17  ;;  %v25498_v63 = vld [vmem:[%s33582_s5 + $0x1560] ss:$16 sps:$4 sm:$0xff]   ;;  %v25501_v17 = vld [vmem:[%s33582_s5 + $0x1568] ss:$16 sps:$4 sm:$0xff]  }
 0xa62   :  { %18892 = vmatprep.subr.bf16.mxu0 %v25431_v48  ;;  %v25506_v48 = vld [vmem:[%s33582_s5 + $0x1584] ss:$16 sps:$4 sm:$0xff]  }
 0xa64   :  { %18360 = vmatpush1.bf16.msra.mxu1 %v25426_v6  ;;  %v25509_v6 = vld [vmem:[%s33582_s5 + $0x158c] ss:$16 sps:$4 sm:$0xff]  }
 0xa65   :  { %18893 = vmatpush1.bf16.msra.mxu0 %v25429_v14  ;;  %18370 = vmatprep.subr.bf16.mxu1 %v25434_v1  ;;  %v25504_v14 = vld [vmem:[%s33582_s5 + $0x1580] ss:$16 sps:$4 sm:$0xff]   ;;  %v25507_v1 = vld [vmem:[%s33582_s5 + $0x1588] ss:$16 sps:$4 sm:$0xff]  }
 0xa66   :  { %18903 = vmatprep.subr.bf16.mxu0 %v25437_v32  ;;  %v25515_v32 = vld [vmem:[%s33582_s5 + $0x15ac] ss:$16 sps:$4 sm:$0xff]  }
 0xa67   :  { %18362 = vmatmul.mubr.bf16.vlgmr.msra.gmra.mrb[128].mxu1 %v13224_v44 }
 0xa68   :  { %18895 = vmatmul.mubr.bf16.vlgmr.msra.gmra.mrb[56].mxu0 %v13224_v44  ;;  %18371 = vmatpush1.bf16.msra.mxu1 %v25432_v35  ;;  %v25510_v35 = vld [vmem:[%s33582_s5 + $0x15a0] ss:$16 sps:$4 sm:$0xff]   ;;  %v25513_v44 = vld [vmem:[%s33582_s5 + $0x15a8] ss:$16 sps:$4 sm:$0xff]  }
 0xa69   :  { %18402 = vmatprep.mubr.bf16.mxu1 %v13227_v62  ;;  %18904 = vmatpush1.bf16.msra.mxu0 %v25435_v21  ;;  %v25518_v21 = vld [vmem:[%s33582_s5 + $0x15c4] ss:$16 sps:$4 sm:$0xff]  }
 0xa6a   :  { %18935 = vmatprep.mubr.bf16.mxu0 %v13227_v62  ;;  %18372 = vmatprep.subr.bf16.mxu1 %v25440_v2  ;;  %v25521_v2 = vld [vmem:[%s33582_s5 + $0x15cc] ss:$16 sps:$4 sm:$0xff]   ;;  %v25516_v62 = vld [vmem:[%s33582_s5 + $0x15c0] ss:$16 sps:$4 sm:$0xff]  }
 0xa6b   :  { %18905 = vmatprep.subr.bf16.mxu0 %v25443_v11  ;;  %v25519_v11 = vld [vmem:[%s33582_s5 + $0x15c8] ss:$16 sps:$4 sm:$0xff]  }
 0xa6c   :  { %18373 = vmatpush1.bf16.msra.mxu1 %v25438_v57  ;;  %v25524_v57 = vld [vmem:[%s33582_s5 + $0x15e4] ss:$16 sps:$4 sm:$0xff]  }
 0xa6d   :  { %18906 = vmatpush1.bf16.msra.mxu0 %v25441_v30  ;;  %18374 = vmatprep.subr.bf16.mxu1 %v25446_v52  ;;  %v25527_v30 = vld [vmem:[%s33582_s5 + $0x15ec] ss:$16 sps:$4 sm:$0xff]   ;;  %v21501_v52 = vcombine.low %v31458_v55, %v31458_v55 }
 0xa6e   :  { %18907 = vmatprep.subr.bf16.mxu0 %v25449_v12  ;;  %v25522_v12 = vld [vmem:[%s33582_s5 + $0x15e0] ss:$16 sps:$4 sm:$0xff]  }
 0xa70   :  { %18375 = vmatpush1.bf16.msra.mxu1 %v25444_v15  ;;  %v13173_v15 = vpop.permute.xlu1 %13172 }
 0xa71   :  { %18908 = vmatpush1.bf16.msra.mxu0 %v25447_v28  ;;  %18376 = vmatprep.subr.bf16.mxu1 %v25452_v41  ;;  %v25525_v28 = vld [vmem:[%s33582_s5 + $0x15e8] ss:$16 sps:$4 sm:$0xff]   ;;  %v25530_v41 = vld [vmem:[%s33582_s5 + $0x1604] ss:$16 sps:$4 sm:$0xff]   ;;  %v13176_v55 = vsel %vm158_vm5, %v22849_v24, %v13173_v15 }
 0xa72   :  { %18909 = vmatprep.subr.bf16.mxu0 %v25455_v40  ;;  %v25533_v40 = vld [vmem:[%s33582_s5 + $0x160c] ss:$16 sps:$4 sm:$0xff]   ;;  %v25536_v24 = vld [vmem:[%s33582_s5 + $0x1624] ss:$16 sps:$4 sm:$0xff]  }
 0xa73   :  { %v25608_v15 = vld [vmem:[%s33582_s5 + $0x17a4] ss:$16 sps:$4 sm:$0xff]  }
 0xa74   :  { %18377 = vmatpush1.bf16.msra.mxu1 %v25450_v51  ;;  %v33197_v51 = vrot.slane %v21501_v52, %v25979_v36  ;;  %v25600_v52 = vld [vmem:[%s33582_s5 + $0x1780] ss:$16 sps:$4 sm:$0xff]  }
 0xa75   :  { %18910 = vmatpush1.bf16.msra.mxu0 %v25453_v0  ;;  %18378 = vmatprep.subr.bf16.mxu1 %v25458_v26  ;;  %v25528_v0 = vld [vmem:[%s33582_s5 + $0x1600] ss:$16 sps:$4 sm:$0xff]   ;;  %v13226_v26 = vpack.c.bf16 %v13176_v55, %v13176_v55  ;;  %v25609_v55 = vld [vmem:[%s33582_s5 + $0x17a8] ss:$16 sps:$4 sm:$0xff]  }
 0xa76   :  { %18911 = vmatprep.subr.bf16.mxu0 %v25461_v18  ;;  %v13229_v36 = vpack.c.bf16 %v33197_v51, %v33197_v51  ;;  %v25539_v18 = vld [vmem:[%s33582_s5 + $0x162c] ss:$16 sps:$4 sm:$0xff]  }
 0xa78   :  { %18379 = vmatpush1.bf16.msra.mxu1 %v25456_v49  ;;  %v25534_v49 = vld [vmem:[%s33582_s5 + $0x1620] ss:$16 sps:$4 sm:$0xff]  }
 0xa79   :  { %18912 = vmatpush1.bf16.msra.mxu0 %v25459_v61  ;;  %18380 = vmatprep.subr.bf16.mxu1 %v25464_v29  ;;  %v25537_v61 = vld [vmem:[%s33582_s5 + $0x1628] ss:$16 sps:$4 sm:$0xff]   ;;  %v25542_v29 = vld [vmem:[%s33582_s5 + $0x1644] ss:$16 sps:$4 sm:$0xff]  }
 0xa7a   :  { %18913 = vmatprep.subr.bf16.mxu0 %v25467_v5  ;;  %v25545_v5 = vld [vmem:[%s33582_s5 + $0x164c] ss:$16 sps:$4 sm:$0xff]  }
 0xa7c   :  { %18381 = vmatpush1.bf16.msra.mxu1 %v25462_v10  ;;  %v25540_v10 = vld [vmem:[%s33582_s5 + $0x1640] ss:$16 sps:$4 sm:$0xff]  }
 0xa7d   :  { %18914 = vmatpush1.bf16.msra.mxu0 %v25465_v22  ;;  %18382 = vmatprep.subr.bf16.mxu1 %v25470_v8  ;;  %v25543_v22 = vld [vmem:[%s33582_s5 + $0x1648] ss:$16 sps:$4 sm:$0xff]   ;;  %v25548_v8 = vld [vmem:[%s33582_s5 + $0x1664] ss:$16 sps:$4 sm:$0xff]  }
 0xa7e   :  { %18915 = vmatprep.subr.bf16.mxu0 %v25473_v4  ;;  %v25551_v4 = vld [vmem:[%s33582_s5 + $0x166c] ss:$16 sps:$4 sm:$0xff]  }
 0xa80   :  { %18383 = vmatpush1.bf16.msra.mxu1 %v25468_v53  ;;  %v25546_v53 = vld [vmem:[%s33582_s5 + $0x1660] ss:$16 sps:$4 sm:$0xff]  }
 0xa81   :  { %18916 = vmatpush1.bf16.msra.mxu0 %v25471_v31  ;;  %18384 = vmatprep.subr.bf16.mxu1 %v25476_v33  ;;  %v25549_v31 = vld [vmem:[%s33582_s5 + $0x1668] ss:$16 sps:$4 sm:$0xff]   ;;  %v25554_v33 = vld [vmem:[%s33582_s5 + $0x1684] ss:$16 sps:$4 sm:$0xff]  }
 0xa82   :  { %18917 = vmatprep.subr.bf16.mxu0 %v25479_v59  ;;  %v25557_v59 = vld [vmem:[%s33582_s5 + $0x168c] ss:$16 sps:$4 sm:$0xff]  }
 0xa84   :  { %18385 = vmatpush1.bf16.msra.mxu1 %v25474_v42  ;;  %v25552_v42 = vld [vmem:[%s33582_s5 + $0x1680] ss:$16 sps:$4 sm:$0xff]  }
 0xa85   :  { %18918 = vmatpush1.bf16.msra.mxu0 %v25477_v58  ;;  %18386 = vmatprep.subr.bf16.mxu1 %v25482_v43  ;;  %v25555_v58 = vld [vmem:[%s33582_s5 + $0x1688] ss:$16 sps:$4 sm:$0xff]   ;;  %v25560_v43 = vld [vmem:[%s33582_s5 + $0x16a4] ss:$16 sps:$4 sm:$0xff]  }
 0xa86   :  { %18919 = vmatprep.subr.bf16.mxu0 %v25485_v27  ;;  %v25563_v27 = vld [vmem:[%s33582_s5 + $0x16ac] ss:$16 sps:$4 sm:$0xff]  }
 0xa88   :  { %18387 = vmatpush1.bf16.msra.mxu1 %v25480_v34  ;;  %v25558_v34 = vld [vmem:[%s33582_s5 + $0x16a0] ss:$16 sps:$4 sm:$0xff]  }
 0xa89   :  { %18920 = vmatpush1.bf16.msra.mxu0 %v25483_v47  ;;  %18388 = vmatprep.subr.bf16.mxu1 %v25488_v46  ;;  %v25561_v47 = vld [vmem:[%s33582_s5 + $0x16a8] ss:$16 sps:$4 sm:$0xff]   ;;  %v25566_v46 = vld [vmem:[%s33582_s5 + $0x16c4] ss:$16 sps:$4 sm:$0xff]  }
 0xa8a   :  { %18921 = vmatprep.subr.bf16.mxu0 %v25491_v54  ;;  %v25569_v54 = vld [vmem:[%s33582_s5 + $0x16cc] ss:$16 sps:$4 sm:$0xff]  }
 0xa8c   :  { %18389 = vmatpush1.bf16.msra.mxu1 %v25486_v60  ;;  %v25564_v60 = vld [vmem:[%s33582_s5 + $0x16c0] ss:$16 sps:$4 sm:$0xff]  }
 0xa8d   :  { %18922 = vmatpush1.bf16.msra.mxu0 %v25489_v3  ;;  %18390 = vmatprep.subr.bf16.mxu1 %v25494_v7  ;;  %v25567_v3 = vld [vmem:[%s33582_s5 + $0x16c8] ss:$16 sps:$4 sm:$0xff]   ;;  %v25572_v7 = vld [vmem:[%s33582_s5 + $0x16e4] ss:$16 sps:$4 sm:$0xff]  }
 0xa8e   :  { %18923 = vmatprep.subr.bf16.mxu0 %v25497_v56  ;;  %v25575_v56 = vld [vmem:[%s33582_s5 + $0x16ec] ss:$16 sps:$4 sm:$0xff]  }
 0xa90   :  { %18391 = vmatpush1.bf16.msra.mxu1 %v25492_v20  ;;  %v25570_v20 = vld [vmem:[%s33582_s5 + $0x16e0] ss:$16 sps:$4 sm:$0xff]  }
 0xa91   :  { %18924 = vmatpush1.bf16.msra.mxu0 %v25495_v16  ;;  %18392 = vmatprep.subr.bf16.mxu1 %v25500_v50  ;;  %v25573_v16 = vld [vmem:[%s33582_s5 + $0x16e8] ss:$16 sps:$4 sm:$0xff]   ;;  %v25578_v50 = vld [vmem:[%s33582_s5 + $0x1704] ss:$16 sps:$4 sm:$0xff]  }
 0xa92   :  { %18925 = vmatprep.subr.bf16.mxu0 %v25503_v19  ;;  %v25581_v19 = vld [vmem:[%s33582_s5 + $0x170c] ss:$16 sps:$4 sm:$0xff]  }
 0xa94   :  { %18393 = vmatpush1.bf16.msra.mxu1 %v25498_v63  ;;  %v25576_v63 = vld [vmem:[%s33582_s5 + $0x1700] ss:$16 sps:$4 sm:$0xff]  }
 0xa95   :  { %18926 = vmatpush1.bf16.msra.mxu0 %v25501_v17  ;;  %18394 = vmatprep.subr.bf16.mxu1 %v25506_v48  ;;  %v25579_v17 = vld [vmem:[%s33582_s5 + $0x1708] ss:$16 sps:$4 sm:$0xff]   ;;  %v25584_v48 = vld [vmem:[%s33582_s5 + $0x1724] ss:$16 sps:$4 sm:$0xff]  }
 0xa96   :  { %18927 = vmatprep.subr.bf16.mxu0 %v25509_v6  ;;  %v25587_v6 = vld [vmem:[%s33582_s5 + $0x172c] ss:$16 sps:$4 sm:$0xff]  }
 0xa98   :  { %18395 = vmatpush1.bf16.msra.mxu1 %v25504_v14  ;;  %v25582_v14 = vld [vmem:[%s33582_s5 + $0x1720] ss:$16 sps:$4 sm:$0xff]  }
 0xa99   :  { %18928 = vmatpush1.bf16.msra.mxu0 %v25507_v1  ;;  %18396 = vmatprep.subr.bf16.mxu1 %v25512_v45  ;;  %v25585_v1 = vld [vmem:[%s33582_s5 + $0x1728] ss:$16 sps:$4 sm:$0xff]   ;;  %v25590_v45 = vld [vmem:[%s33582_s5 + $0x1744] ss:$16 sps:$4 sm:$0xff]  }
 0xa9a   :  { %18929 = vmatprep.subr.bf16.mxu0 %v25515_v32  ;;  %v25593_v32 = vld [vmem:[%s33582_s5 + $0x174c] ss:$16 sps:$4 sm:$0xff]  }
 0xa9c   :  { %18397 = vmatpush1.bf16.msra.mxu1 %v25510_v35  ;;  %v25588_v35 = vld [vmem:[%s33582_s5 + $0x1740] ss:$16 sps:$4 sm:$0xff]  }
 0xa9d   :  { %18930 = vmatpush1.bf16.msra.mxu0 %v25513_v44  ;;  %18398 = vmatprep.subr.bf16.mxu1 %v25518_v21  ;;  %v25591_v44 = vld [vmem:[%s33582_s5 + $0x1748] ss:$16 sps:$4 sm:$0xff]   ;;  %v25596_v21 = vld [vmem:[%s33582_s5 + $0x1764] ss:$16 sps:$4 sm:$0xff]  }
 0xa9e   :  { %18931 = vmatprep.subr.bf16.mxu0 %v25521_v2  ;;  %v25599_v2 = vld [vmem:[%s33582_s5 + $0x176c] ss:$16 sps:$4 sm:$0xff]  }
 0xaa0   :  { %18399 = vmatpush1.bf16.msra.mxu1 %v25516_v62  ;;  %v25594_v62 = vld [vmem:[%s33582_s5 + $0x1760] ss:$16 sps:$4 sm:$0xff]  }
 0xaa1   :  { %18932 = vmatpush1.bf16.msra.mxu0 %v25519_v11  ;;  %18400 = vmatprep.subr.bf16.mxu1 %v25524_v57  ;;  %v25597_v11 = vld [vmem:[%s33582_s5 + $0x1768] ss:$16 sps:$4 sm:$0xff]   ;;  %v25602_v57 = vld [vmem:[%s33582_s5 + $0x1784] ss:$16 sps:$4 sm:$0xff]  }
 0xaa2   :  { %18933 = vmatprep.subr.bf16.mxu0 %v25527_v30  ;;  %v25605_v30 = vld [vmem:[%s33582_s5 + $0x178c] ss:$16 sps:$4 sm:$0xff]  }
 0xaa4   :  { %18401 = vmatpush1.bf16.msra.mxu1 %v25522_v12  ;;  %v25603_v12 = vld [vmem:[%s33582_s5 + $0x1788] ss:$16 sps:$4 sm:$0xff]  }
 0xaa5   :  { %18934 = vmatpush1.bf16.msra.mxu0 %v25525_v28  ;;  %18411 = vmatprep.subr.bf16.mxu1 %v25530_v41  ;;  %v25611_v28 = vld [vmem:[%s33582_s5 + $0x17ac] ss:$16 sps:$4 sm:$0xff]   ;;  %v25606_v41 = vld [vmem:[%s33582_s5 + $0x17a0] ss:$16 sps:$4 sm:$0xff]  }
 0xaa6   :  { %18944 = vmatprep.subr.bf16.mxu0 %v25533_v40  ;;  %v25614_v40 = vld [vmem:[%s33582_s5 + $0x17c4] ss:$16 sps:$4 sm:$0xff]  }
 0xaa7   :  { %18403 = vmatmul.mubr.bf16.vlgmr.msra.gmra.mrb[128].mxu1 %v13226_v26 }
 0xaa8   :  { %18936 = vmatmul.mubr.bf16.vlgmr.msra.gmra.mrb[56].mxu0 %v13226_v26  ;;  %18412 = vmatpush1.bf16.msra.mxu1 %v25528_v0  ;;  %v25617_v0 = vld [vmem:[%s33582_s5 + $0x17cc] ss:$16 sps:$4 sm:$0xff]   ;;  %v25612_v26 = vld [vmem:[%s33582_s5 + $0x17c0] ss:$16 sps:$4 sm:$0xff]  }
 0xaa9   :  { %18443 = vmatprep.mubr.bf16.mxu1 %v13229_v36  ;;  %18945 = vmatpush1.bf16.msra.mxu0 %v25531_v25  ;;  %v25615_v25 = vld [vmem:[%s33582_s5 + $0x17c8] ss:$16 sps:$4 sm:$0xff]  }
 0xaaa   :  { %18976 = vmatprep.mubr.bf16.mxu0 %v13229_v36  ;;  %18413 = vmatprep.subr.bf16.mxu1 %v25536_v24  ;;  %v25620_v24 = vld [vmem:[%s33582_s5 + $0x17e4] ss:$16 sps:$4 sm:$0xff]   ;;  %v25623_v36 = vld [vmem:[%s33582_s5 + $0x17ec] ss:$16 sps:$4 sm:$0xff]  }
 0xaab   :  { %18946 = vmatprep.subr.bf16.mxu0 %v25539_v18  ;;  %v25618_v18 = vld [vmem:[%s33582_s5 + $0x17e0] ss:$16 sps:$4 sm:$0xff]  }
 0xaac   :  { %18414 = vmatpush1.bf16.msra.mxu1 %v25534_v49  ;;  %v25621_v49 = vld [vmem:[%s33582_s5 + $0x17e8] ss:$16 sps:$4 sm:$0xff]  }
 0xaad   :  { %18947 = vmatpush1.bf16.msra.mxu0 %v25537_v61  ;;  %18415 = vmatprep.subr.bf16.mxu1 %v25542_v29  ;;  %v13197_v61 = vcombine.high %v32995_v13, %v32995_v13  ;;  %v25626_v29 = vld [vmem:[%s33582_s5 + $0x1804] ss:$16 sps:$4 sm:$0xff]   ;;  %v25627_v13 = vld [vmem:[%s33582_s5 + $0x1808] ss:$16 sps:$4 sm:$0xff]  }
 0xaae   :  { %18948 = vmatprep.subr.bf16.mxu0 %v25545_v5  ;;  %v25629_v5 = vld [vmem:[%s33582_s5 + $0x180c] ss:$16 sps:$4 sm:$0xff]  }
 0xab0   :  { %18416 = vmatpush1.bf16.msra.mxu1 %v25540_v10  ;;  %v25624_v10 = vld [vmem:[%s33582_s5 + $0x1800] ss:$16 sps:$4 sm:$0xff]  }
 0xab1   :  { %18949 = vmatpush1.bf16.msra.mxu0 %v25543_v22  ;;  %18417 = vmatprep.subr.bf16.mxu1 %v25548_v8  ;;  %v13228_v22 = vpack.c.bf16 %v13197_v61, %v13197_v61  ;;  %v25632_v8 = vld [vmem:[%s33582_s5 + $0x1824] ss:$16 sps:$4 sm:$0xff]   ;;  %v25670_v61 = vld [vmem:[%s33584_s7 + $0xd8] sm:$0xff]  }
 0xab2   :  { %18950 = vmatprep.subr.bf16.mxu0 %v25551_v4  ;;  %v25635_v4 = vld [vmem:[%s33582_s5 + $0x182c] ss:$16 sps:$4 sm:$0xff]  }
 0xab4   :  { %18418 = vmatpush1.bf16.msra.mxu1 %v25546_v53  ;;  %v25630_v53 = vld [vmem:[%s33582_s5 + $0x1820] ss:$16 sps:$4 sm:$0xff]  }
 0xab5   :  { %18951 = vmatpush1.bf16.msra.mxu0 %v25549_v31  ;;  %18419 = vmatprep.subr.bf16.mxu1 %v25554_v33  ;;  %v25633_v31 = vld [vmem:[%s33582_s5 + $0x1828] ss:$16 sps:$4 sm:$0xff]   ;;  %v25638_v33 = vld [vmem:[%s33582_s5 + $0x1844] ss:$16 sps:$4 sm:$0xff]  }
 0xab6   :  { %18952 = vmatprep.subr.bf16.mxu0 %v25557_v59  ;;  %v25641_v59 = vld [vmem:[%s33582_s5 + $0x184c] ss:$16 sps:$4 sm:$0xff]  }
 0xab8   :  { %18420 = vmatpush1.bf16.msra.mxu1 %v25552_v42  ;;  %v25636_v42 = vld [vmem:[%s33582_s5 + $0x1840] ss:$16 sps:$4 sm:$0xff]  }
 0xab9   :  { %18953 = vmatpush1.bf16.msra.mxu0 %v25555_v58  ;;  %18421 = vmatprep.subr.bf16.mxu1 %v25560_v43  ;;  %v25639_v58 = vld [vmem:[%s33582_s5 + $0x1848] ss:$16 sps:$4 sm:$0xff]   ;;  %v25644_v43 = vld [vmem:[%s33582_s5 + $0x1864] ss:$16 sps:$4 sm:$0xff]  }
 0xaba   :  { %18954 = vmatprep.subr.bf16.mxu0 %v25563_v27  ;;  %v25642_v27 = vld [vmem:[%s33582_s5 + $0x1860] ss:$16 sps:$4 sm:$0xff]  }
 0xabc   :  { %18422 = vmatpush1.bf16.msra.mxu1 %v25558_v34  ;;  %v13198_v34 = vcombine.high %v33197_v51, %v33197_v51  ;;  %v25650_v51 = vld [vmem:[%s33584_s7 + $0x48] sm:$0xff]  }
 0xabd   :  { %18955 = vmatpush1.bf16.msra.mxu0 %v25561_v47  ;;  %18423 = vmatprep.subr.bf16.mxu1 %v25566_v46  ;;  %v25645_v47 = vld [vmem:[%s33582_s5 + $0x1868] ss:$16 sps:$4 sm:$0xff]   ;;  %v25648_v46 = vld [vmem:[%s33584_s7 + $0x40] sm:$0xff]  }
 0xabe   :  { %18956 = vmatprep.subr.bf16.mxu0 %v25569_v54  ;;  %v25649_v54 = vld [vmem:[%s33584_s7] sm:$0xff]  }
 0xac0   :  { %18424 = vmatpush1.bf16.msra.mxu1 %v25564_v60  ;;  %v13230_v60 = vpack.c.bf16 %v13198_v34, %v13198_v34 }
 0xac1   :  { %18957 = vmatpush1.bf16.msra.mxu0 %v25567_v3  ;;  %18425 = vmatprep.subr.bf16.mxu1 %v25572_v7  ;;  %v25651_v3 = vld [vmem:[%s33584_s7 + $0x8] sm:$0xff]   ;;  %v25652_v7 = vld [vmem:[%s33584_s7 + $0x50] sm:$0xff]  }
 0xac2   :  { %18958 = vmatprep.subr.bf16.mxu0 %v25575_v56  ;;  %v25653_v56 = vld [vmem:[%s33584_s7 + $0x10] sm:$0xff]  }
 0xac4   :  { %18426 = vmatpush1.bf16.msra.mxu1 %v25570_v20  ;;  %v25654_v20 = vld [vmem:[%s33584_s7 + $0x58] sm:$0xff]  }
 0xac5   :  { %18959 = vmatpush1.bf16.msra.mxu0 %v25573_v16  ;;  %18427 = vmatprep.subr.bf16.mxu1 %v25578_v50  ;;  %v25655_v16 = vld [vmem:[%s33584_s7 + $0x18] sm:$0xff]   ;;  %v25656_v50 = vld [vmem:[%s33584_s7 + $0x60] sm:$0xff]  }
 0xac6   :  { %18960 = vmatprep.subr.bf16.mxu0 %v25581_v19  ;;  %v25657_v19 = vld [vmem:[%s33584_s7 + $0x20] sm:$0xff]  }
 0xac8   :  { %18428 = vmatpush1.bf16.msra.mxu1 %v25576_v63  ;;  %v25658_v63 = vld [vmem:[%s33584_s7 + $0x68] sm:$0xff]  }
 0xac9   :  { %18961 = vmatpush1.bf16.msra.mxu0 %v25579_v17  ;;  %18429 = vmatprep.subr.bf16.mxu1 %v25584_v48  ;;  %v25659_v17 = vld [vmem:[%s33584_s7 + $0x28] sm:$0xff]   ;;  %v25660_v48 = vld [vmem:[%s33584_s7 + $0x70] sm:$0xff]  }
 0xaca   :  { %18962 = vmatprep.subr.bf16.mxu0 %v25587_v6  ;;  %v25661_v6 = vld [vmem:[%s33584_s7 + $0x30] sm:$0xff]  }
 0xacc   :  { %18430 = vmatpush1.bf16.msra.mxu1 %v25582_v14  ;;  %v25662_v14 = vld [vmem:[%s33584_s7 + $0x78] sm:$0xff]  }
 0xacd   :  { %18963 = vmatpush1.bf16.msra.mxu0 %v25585_v1  ;;  %18431 = vmatprep.subr.bf16.mxu1 %v25590_v45  ;;  %v25663_v1 = vld [vmem:[%s33584_s7 + $0x38] sm:$0xff]   ;;  %v25664_v45 = vld [vmem:[%s33584_s7 + $0xc0] sm:$0xff]  }
 0xace   :  { %18964 = vmatprep.subr.bf16.mxu0 %v25593_v32  ;;  %v14015_v32 = vld [vmem:[%s33583_s6] sm:$0xf] }
 0xad0   :  { %18432 = vmatpush1.bf16.msra.mxu1 %v25588_v35  ;;  %v14020_v35 = vrot.slane %v14015_v32, %v26223_v37  ;;  %v25665_v37 = vld [vmem:[%s33584_s7 + $0x80] sm:$0xff]  }
 0xad1   :  { %18965 = vmatpush1.bf16.msra.mxu0 %v25591_v44  ;;  %18433 = vmatprep.subr.bf16.mxu1 %v25596_v21  ;;  %v14024_v44 = vrot.slane %v14015_v32, %v26229_v39  ;;  %v14032_v21 = vrot.slane %v14015_v32, %v26171_v9  ;;  %v25666_v39 = vld [vmem:[%s33584_s7 + $0xc8] sm:$0xff]  }
 0xad2   :  { %18966 = vmatprep.subr.bf16.mxu0 %v25599_v2 }
 0xad4   :  { %18434 = vmatpush1.bf16.msra.mxu1 %v25594_v62 }
 0xad5   :  { %18967 = vmatpush1.bf16.msra.mxu0 %v25597_v11  ;;  %18435 = vmatprep.subr.bf16.mxu1 %v25602_v57 }
 0xad6   :  { %18968 = vmatprep.subr.bf16.mxu0 %v25605_v30 }
 0xad8   :  { %18436 = vmatpush1.bf16.msra.mxu1 %v25600_v52 }
 0xad9   :  { %18969 = vmatpush1.bf16.msra.mxu0 %v25603_v12  ;;  %18437 = vmatprep.subr.bf16.mxu1 %v25608_v15 }
 0xada   :  { %18970 = vmatprep.subr.bf16.mxu0 %v25611_v28 }
 0xadc   :  { %18438 = vmatpush1.bf16.msra.mxu1 %v25606_v41 }
 0xadd   :  { %18971 = vmatpush1.bf16.msra.mxu0 %v25609_v55  ;;  %18439 = vmatprep.subr.bf16.mxu1 %v25614_v40 }
 0xade   :  { %18972 = vmatprep.subr.bf16.mxu0 %v25617_v0 }
 0xae0   :  { %18440 = vmatpush1.bf16.msra.mxu1 %v25612_v26 }
 0xae1   :  { %18973 = vmatpush1.bf16.msra.mxu0 %v25615_v25  ;;  %18441 = vmatprep.subr.bf16.mxu1 %v25620_v24 }
 0xae2   :  { %18974 = vmatprep.subr.bf16.mxu0 %v25623_v36  ;;  %v25667_v36 = vld [vmem:[%s33584_s7 + $0x88] sm:$0xff]  }
 0xae4   :  { %18442 = vmatpush1.bf16.msra.mxu1 %v25618_v18  ;;  %v25668_v18 = vld [vmem:[%s33584_s7 + $0xd0] sm:$0xff]  }
 0xae5   :  { %18975 = vmatpush1.bf16.msra.mxu0 %v25621_v49  ;;  %18452 = vmatprep.subr.bf16.mxu1 %v25626_v29  ;;  %v25669_v49 = vld [vmem:[%s33584_s7 + $0x90] sm:$0xff]   ;;  %v25671_v29 = vld [vmem:[%s33584_s7 + $0x98] sm:$0xff]  }
 0xae6   :  { %18985 = vmatprep.subr.bf16.mxu0 %v25629_v5  ;;  %v25672_v5 = vld [vmem:[%s33584_s7 + $0xe0] sm:$0xff]  }
 0xae7   :  { %18444 = vmatmul.mubr.bf16.vlgmr.msra.gmra.mrb[128].mxu1 %v13228_v22 }
 0xae8   :  { %18977 = vmatmul.mubr.bf16.vlgmr.msra.gmra.mrb[56].mxu0 %v13228_v22  ;;  %18453 = vmatpush1.bf16.msra.mxu1 %v25624_v10  ;;  %v25673_v10 = vld [vmem:[%s33584_s7 + $0xa0] sm:$0xff]   ;;  %v25674_v22 = vld [vmem:[%s33584_s7 + $0xe8] sm:$0xff]  }
 0xae9   :  { %18986 = vmatpush1.bf16.msra.mxu0 %v25627_v13  ;;  %18454 = vmatprep.subr.bf16.mxu1 %v25632_v8  ;;  %v25675_v13 = vld [vmem:[%s33584_s7 + $0xa8] sm:$0xff]   ;;  %v14028_v8 = vrot.slane %v14015_v32, %v26226_v38  ;;  %v25679_v38 = vld [vmem:[%s33584_s7 + $0xb8] sm:$0xff]  }
 0xaea   :  { %18987 = vmatprep.subr.bf16.mxu0 %v25635_v4  ;;  %18484 = vmatprep.mubr.bf16.mxu1 %v33629_v23  ;;  %v25676_v4 = vld [vmem:[%s33584_s7 + $0xf0] sm:$0xff]  }
 0xaeb   :  { %19017 = vmatprep.mubr.bf16.mxu0 %v33629_v23  ;;  %v25647_v23 = vld [vmem:[%s33582_s5 + $0x186c] ss:$16 sps:$4 sm:$0xff]  }
 0xaec   :  { %18455 = vmatpush1.bf16.msra.mxu1 %v25630_v53  ;;  %v25677_v53 = vld [vmem:[%s33584_s7 + $0xb0] sm:$0xff]  }
 0xaed   :  { %18988 = vmatpush1.bf16.msra.mxu0 %v25633_v31  ;;  %18456 = vmatprep.subr.bf16.mxu1 %v25638_v33  ;;  %v25678_v33 = vld [vmem:[%s33584_s7 + $0xf8] sm:$0xff]   ;;  %s25740_s7 = smov [#allocation3]  }
 0xaee   :  { %18989 = vmatprep.subr.bf16.mxu0 %v25641_v59 }
 0xaf0   :  { %18457 = vmatpush1.bf16.msra.mxu1 %v25636_v42 }
 0xaf1   :  { %18990 = vmatpush1.bf16.msra.mxu0 %v25639_v58  ;;  %18458 = vmatprep.subr.bf16.mxu1 %v25644_v43 }
 0xaf2   :  { %18991 = vmatprep.subr.bf16.mxu0 %v25647_v23 }
 0xaf4   :  { %18459 = vmatpush1.bf16.msra.mxu1 %v25642_v27 }
 0xaf5   :  { %18992 = vmatpush1.bf16.msra.mxu0 %v25645_v47  ;;  %22461 = vmatprep.subr.bf16.mxu1 %v25648_v46  ;;  %v22288_v47 = vld [vmem:[%s33585_s8] ss:$0 sm:$0xff]  ;;  %s19397_s8 = sshll.u32 %s25740_s7, 4  ;;  %s19398_s8 = int_to_ptr.vmem [resolvable:$true] %s19397_s8 }
 0xaf6   :  { %s25685_s2 = scalar_lea.vmem %s19398_s8, 32  ;;  %p25690_p1 = scmp.lt.s32.totalorder %s19398_s8, %s19398_s8 }
 0xaf7   :  { %22286 = vmatmul.mubr.msk.bf16.vlgmr.msra.gmra.mrb[128].mxu1 %vm158_vm5, %v13230_v60  ;;  %p25686_p0 = scmp.ne.s32.totalorder %s19398_s8, %s25685_s2  ;;  %p25691_p2 = scmp.lt.s32.totalorder %s25685_s2, %s25685_s2 }
 0xaf8   :  { %22287 = vmatmul.mubr.msk.bf16.vlgmr.msra.gmra.mrb[56].mxu0 %vm158_vm5, %v13230_v60  ;;  %22462 = vmatpush3.bf16.msra.mxu1 %v25649_v54 }
 0xaf9   :  { %22463 = vmatprep.subr.bf16.mxu1 %v25650_v51  ;;  %p25692_p3 = por %p25691_p2, %p25690_p1 }
 0xafb   :  { %p25693_p4 = pnand %p25692_p3, %p25686_p0 }
 0xafc   :  { %22464 = vmatpush3.bf16.msra.mxu1 %v25651_v3 }
 0xafd   :  { %22465 = vmatprep.subr.bf16.mxu1 %v25652_v7 }
 0xb00   :  { %22466 = vmatpush3.bf16.msra.mxu1 %v25653_v56 }
 0xb01   :  { %22467 = vmatprep.subr.bf16.mxu1 %v25654_v20 }
 0xb04   :  { %22468 = vmatpush3.bf16.msra.mxu1 %v25655_v16 }
 0xb05   :  { %22469 = vmatprep.subr.bf16.mxu1 %v25656_v50 }
 0xb08   :  { %22470 = vmatpush3.bf16.msra.mxu1 %v25657_v19 }
 0xb09   :  { %22471 = vmatprep.subr.bf16.mxu1 %v25658_v63 }
 0xb0c   :  { %22472 = vmatpush3.bf16.msra.mxu1 %v25659_v17 }
 0xb0d   :  { %22473 = vmatprep.subr.bf16.mxu1 %v25660_v48 }
 0xb10   :  { %22474 = vmatpush3.bf16.msra.mxu1 %v25661_v6 }
 0xb11   :  { %22475 = vmatprep.subr.bf16.mxu1 %v25662_v14 }
 0xb14   :  { %22476 = vmatpush3.bf16.msra.mxu1 %v25663_v1 }
 0xb15   :  { %22483 = vmatprep.subr.bf16.mxu1 %v25664_v45 }
 0xbca   :  { %v18486_v2 = vpop.f32.mrb[128].mxu1 }
 0xbcb   :  { %v22521_v62 = vadd.f32 %v18486_v2, %v14020_v35  ;;  %v19019_v11 = vpop.f32.mrb[56].mxu0  ;;  %v18488_v57 = vpop.f32.mrb[129].mxu1 }
 0xbcc   :  { %v22522_v30 = vadd.f32 %v18488_v57, %v14024_v44  ;;  %v19021_v52 = vpop.f32.mrb[57].mxu0  ;;  %v18490_v12 = vpop.f32.mrb[130].mxu1  ;;  %v22523_v31 = vadd.f32 %v19019_v11, %v14028_v8 }
 0xbcd   :  { %v19026_v15 = vmax.f32 %v22521_v62, 0.0  ;;  %v22524_v28 = vadd.f32 %v19021_v52, %v14032_v21  ;;  %v19023_v41 = vpop.f32.mrb[58].mxu0  ;;  %v18491_v55 = vpop.f32.mrb[131].mxu1 }
 0xbce   :  { %v19027_v40 = vmax.f32 %v22522_v30, 0.0  ;;  %v19024_v0 = vpop.f32.mrb[59].mxu0  ;;  %v19028_v59 = vmax.f32 %v22523_v31, 0.0 }
 0xbcf   :  { %v19029_v26 = vmax.f32 %v22524_v28, 0.0  ;;  %v19030_v9 = vpack.c.bf16 %v19026_v15, %v19026_v15 }
 0xbd0   :  { %v19031_v25 = vpack.c.bf16 %v19027_v40, %v19027_v40  ;;  %v19032_v42 = vpack.c.bf16 %v19028_v59, %v19028_v59 }
 0xbd1   :  { %v19033_v24 = vpack.c.bf16 %v19029_v26, %v19029_v26 }
 0xbd2   :  { %19329 = vmatprep.mubr.bf16.mxu1 %v19031_v25 }
 0xbd3   :  { %19330 = vmatmul.mubr.bf16.vlgmr.msra.gmra.mrb[132].mxu1 %v19030_v9 }
 0xbd4   :  { %22484 = vmatpush3.bf16.msra.mxu1 %v25665_v37  ;;  %19369 = vmatprep.mubr.bf16.mxu1 %v19033_v24 }
 0xbd5   :  { %22485 = vmatprep.subr.bf16.mxu1 %v25666_v39 }
 0xbd8   :  { %22486 = vmatpush3.bf16.msra.mxu1 %v25667_v36 }
 0xbd9   :  { %22487 = vmatprep.subr.bf16.mxu1 %v25668_v18 }
 0xbdc   :  { %22488 = vmatpush3.bf16.msra.mxu1 %v25669_v49 }
 0xbdd   :  { %22489 = vmatprep.subr.bf16.mxu1 %v25670_v61 }
 0xbe0   :  { %22490 = vmatpush3.bf16.msra.mxu1 %v25671_v29 }
 0xbe1   :  { %22491 = vmatprep.subr.bf16.mxu1 %v25672_v5 }
 0xbe4   :  { %22492 = vmatpush3.bf16.msra.mxu1 %v25673_v10 }
 0xbe5   :  { %22493 = vmatprep.subr.bf16.mxu1 %v25674_v22 }
 0xbe8   :  { %22494 = vmatpush3.bf16.msra.mxu1 %v25675_v13 }
 0xbe9   :  { %22495 = vmatprep.subr.bf16.mxu1 %v25676_v4 }
 0xbec   :  { %22496 = vmatpush3.bf16.msra.mxu1 %v25677_v53 }
 0xbed   :  { %22497 = vmatprep.subr.bf16.mxu1 %v25678_v33 }
 0xbf0   :  { %22498 = vmatpush3.bf16.msra.mxu1 %v25679_v38 }
 0xbf3   :  { %19370 = vmatmul.mubr.bf16.vlgmr.msra.gmra.mrb[136].mxu1 %v19032_v42 }
 0xca6   :  { %v22477_v58 = vpop.f32.mrb[132].mxu1 }
 0xca7   :  { %v22478_v43 = vpop.f32.mrb[133].mxu1 }
 0xca8   :  { %v22479_v23 = vadd.f32 %v22478_v43, %v22477_v58  ;;  %v22480_v27 = vpop.f32.mrb[134].mxu1 }
 0xca9   :  { %v22481_v34 = vpop.f32.mrb[135].mxu1 }
 0xcaa   :  { %v19332_v60 = vadd.f32 %v22479_v23, %v22288_v47 }
 0xcc6   :  { %v22499_v46 = vpop.f32.mrb[136].mxu1 }
 0xcc7   :  { %v22500_v54 = vpop.f32.mrb[137].mxu1 }
 0xcc8   :  { %v22501_v51 = vadd.f32 %v22500_v54, %v22499_v46  ;;  %v22502_v3 = vpop.f32.mrb[138].mxu1 }
 0xcc9   :  { %v22503_v7 = vpop.f32.mrb[139].mxu1 }
 0xcca   :  { %v19372_v56 = vadd.f32 %v22501_v51, %v19332_v60 }
 0xccc   :  { %v19379_v20 = vsel %vm19377_vm4, %v19372_v56, -inf  ;;  %19378 = vst.msk [vmem:[#allocation3] sm:$0x3] %vm19377_vm4, %v19372_v56 }
 0xccd   :  { %19380 = vmax.xlane.f32.xlu0 %v19379_v20 }
 0xd5a   :  { %v19381_v16 = vpop.xlane.xlu0 %19380 }
 0xd5b   :  { %v19382_v50 = vsub.f32 %v19372_v56, %v19381_v16 }
 0xd5d   :  { %v19383_v19 = vmul.f32 1.442695, %v19382_v50 }
 0xd5f   :  { %25680 = vpow2.f32 %v19383_v19 }
 0xd69   :  { %v25681_v63 = vpop.eup %25680 }
 0xd6a   :  { %v19385_v17 = vsel %vm19377_vm4, %v25681_v63, 0.0 }
 0xd6b   :  { %19386 = vadd.xlane.f32.xlu1 %v19385_v17 }
 0xd6c   :  { %25696 = shalt.err (!%p25693_p4)
}
 0xd6d   :  { %s25697_s16 = scalar_lea.hbm %s33586_s9, 32 }
 0xd6e   :  { %p25698_p5 = scmp.ne.s32.totalorder %s33586_s9, %s25697_s16  ;;  %p25701_p6 = scmp.lt.u32.totalorder %s25697_s16, %s33586_s9 }
 0xd70   :  { %p25703_p7 = pnand %p25701_p6, %p25698_p5 }
 0xd72   :  { %25706 = shalt.err (!%p25703_p7)
}
 0xd73   :  { %19400 = dma.vmem_to_hbm [thread:$0]  %s19398_s8, 32, %s33586_s9, [#allocation4]  }
 0xd74   :  { %s25741_s20 = smov [#allocation5]  }
 0xd75   :  { %s19407_s27 = sshll.u32 %s25741_s20, 4  ;;  %s19408_s27 = int_to_ptr.vmem [resolvable:$true] %s19407_s27 }
 0xd76   :  { %s25707_s22 = scalar_lea.vmem %s19408_s27, 32  ;;  %p25712_p9 = scmp.lt.s32.totalorder %s19408_s27, %s19408_s27 }
 0xd77   :  { %p25708_p8 = scmp.ne.s32.totalorder %s19408_s27, %s25707_s22  ;;  %p25713_p10 = scmp.lt.s32.totalorder %s25707_s22, %s25707_s22 }
 0xd79   :  { %p25714_p11 = por %p25713_p10, %p25712_p9 }
 0xd7b   :  { %p25715_p12 = pnand %p25714_p11, %p25708_p8 }
 0xdf8   :  { %v19387_v48 = vpop.xlane.xlu1 %19386 }
 0xdf9   :  { %25682 = vrcp.f32 %v19387_v48 }
 0xe03   :  { %v25683_v6 = vpop.eup %25682 }
 0xe04   :  { %v19389_v14 = vmul.f32 %v25683_v6, %v25681_v63 }
 0xe06   :  { %19390 = vst.msk [vmem:[#allocation5] sm:$0x3] %vm19377_vm4, %v19389_v14 }
 0xe07   :  { %25718 = shalt.err (!%p25715_p12)
}
 0xe08   :  { %s25719_s9 = scalar_lea.hbm %s33587_s10, 32 }
 0xe09   :  { %p25720_p13 = scmp.ne.s32.totalorder %s33587_s10, %s25719_s9  ;;  %p25723_p0 = scmp.lt.u32.totalorder %s25719_s9, %s33587_s10 }
 0xe0b   :  { %p25725_p1 = pnand %p25723_p0, %p25720_p13 }
 0xe0d   :  { %25728 = shalt.err (!%p25725_p1)
}
 0xe0e   :  { %19410 = dma.vmem_to_hbm [thread:$0]  %s19408_s27, 32, %s33587_s10, [#allocation6]  }
 0xe0f   :  { %25729 = dma.done.wait [#allocation4], 32  }
 0xe10   :  { %25730 = vsyncadd [#allocation4], 4294967264 }
 0xe11   :  { %25731 = dma.done.wait [#allocation6], 32  }
 0xe12   :  { %25732 = vsyncadd [#allocation6], 4294967264 }
 0xe13   :  { %19417 = vsyncpa [#allocation4], 1 }
 0xe14   :  { %19418 = vsyncpa [#allocation6], 1 }

</bundles_post_ra>
